<compile_context>
chip_gen: v7x
topology: tpu7x:2x2x1
jax: 0.10.0
libtpu: 0.0.40
codegen_flags: <defaults>
</compile_context>

<pallas_src>
import numpy as np
import jax
import jax.numpy as jnp
from jax.experimental import pallas as pl
from jax.experimental.pallas import tpu as pltpu

VMEM = pltpu.MemorySpace.VMEM
_LN_EPS = 1e-5
_HP = jax.lax.Precision.HIGHEST
_LANE = 128


def _layernorm(y, g, b):
    mean = jnp.mean(y, axis=-1, keepdims=True)
    var = jnp.mean(jnp.square(y - mean), axis=-1, keepdims=True)
    return (y - mean) * jax.lax.rsqrt(var + _LN_EPS) * g + b


# --------------------------- fused Pallas kernel -----------------------------

def make_fused_kernel(geom, slots):
    """Whole forward in one kernel: conv GEMMs -> tau branch -> merge head."""
    C0, H0, W0 = geom['C0'], geom['H0'], geom['W0']
    K1, S1, H1O = geom['K1'], geom['S1'], geom['H1O']
    BLK = geom['BLK']
    n_dense = geom['n_dense']
    HW0 = H0 * W0
    BAND = K1 * W0                      # lanes per input channel per band

    def kernel(*refs):
        obs_ref, tau_ref, w1_ref = refs[0], refs[1], refs[2]
        dense_refs = refs[3:3 + n_dense]
        tw_ref, mw_ref, lw_ref, small_ref, o_ref = refs[3 + n_dense:]

        B = obs_ref.shape[0]
        M = tau_ref.shape[0]
        T = M // B

        # [R2] all small row-vectors live in one packed buffer; every slot
        # starts at a 128-aligned lane offset (static slices, no shuffles).
        def vec(name):
            off, width = slots[name]
            return small_ref[:, off:off + width]

        # --- conv1 [R1]/[R8]: one shared row-band matrix, H1O band GEMMs.
        # Lane order of the flattened obs is (ci, h, w); the K1 input rows of
        # band `oh` are a contiguous run of K1*W0 lanes per channel.
        x = obs_ref[...]                                   # [B, C0*H0*W0]
        w1 = w1_ref[...]                                   # [C0*K1*W0, BLK]
        band_outs = []
        for oh in range(H1O):
            start = oh * S1 * W0
            band = jnp.concatenate(
                [x[:, ci * HW0 + start: ci * HW0 + start + BAND]
                 for ci in range(C0)], axis=-1)            # [B, C0*K1*W0]
            band_outs.append(
                jnp.dot(band, w1, precision=_HP,
                        preferred_element_type=jnp.float32))       # [B, BLK]
        a = jnp.concatenate(band_outs, axis=-1)            # [B, H1O*BLK] (384)
        a = jnp.maximum(a + vec('conv_b0'), 0.0)

        # --- conv2..n: dense unfolded GEMMs on the flattened feature map
        #     (conv2's rows were permuted at init to the band/padded layout).
        for i in range(n_dense):
            a = jnp.maximum(
                jnp.dot(a, dense_refs[i][...], precision=_HP,
                        preferred_element_type=jnp.float32)
                + vec('conv_b%d' % (i + 1)), 0.0)
        h = a                                              # [B, D]
        D = h.shape[-1]

        # --- tau branch: cos(tau * pi * arange) -> Linear -> LayerNorm -> Sigmoid
        phi = jnp.cos(tau_ref[...] * vec('const_pi'))      # [M, E]
        y = jnp.dot(phi, tw_ref[...], precision=_HP,
                    preferred_element_type=jnp.float32) + vec('tau_b')
        x_tau = jax.nn.sigmoid(_layernorm(y, vec('tau_g'), vec('tau_beta')))

        # --- [R3] broadcast h over the T quantile rows in-kernel
        #     (sublane broadcast + concat; row m uses batch element m // T).
        h_bt = jnp.concatenate(
            [jnp.broadcast_to(h[b:b + 1, :], (T, D)) for b in range(B)],
            axis=0)                                        # [M, D]

        # --- merge head: mul -> Linear -> LayerNorm -> ReLU -> Linear (lane-padded)
        m = x_tau * h_bt
        y = jnp.dot(m, mw_ref[...], precision=_HP,
                    preferred_element_type=jnp.float32) + vec('merge_b')
        y = jnp.maximum(_layernorm(y, vec('merge_g'), vec('merge_beta')), 0.0)
        o_ref[...] = jnp.dot(y, lw_ref[...], precision=_HP,
                             preferred_element_type=jnp.float32) + vec('last_b')

    return kernel


def make_forward(geom, slots, output_size):
    kernel = make_fused_kernel(geom, slots)

    def forward(params, observation, tau):
        B = observation.shape[0]
        T = tau.shape[1]
        M = B * T
        obs_flat = observation.astype(jnp.float32).reshape(B, -1)  # free NCHW flatten
        tau_col = tau.astype(jnp.float32).reshape(M, 1)

        args = [obs_flat, tau_col, params['w1_band']]
        args += list(params['conv_wdense'])
        args += [params['tau_w'], params['merge_w'], params['last_w'],
                 params['small']]

        o_pad = params['last_w'].shape[1]                  # lane-dense (128)
        out = pl.pallas_call(
            kernel,
            out_shape=jax.ShapeDtypeStruct((M, o_pad), jnp.float32),
            in_specs=[pl.BlockSpec(memory_space=VMEM)] * len(args),
            out_specs=pl.BlockSpec(memory_space=VMEM),
        )(*args)
        return out[:, :output_size].reshape(B, T, output_size)

    return forward


# --------------------------- parameter init ----------------------------------

def _he_normal(key, shape, fan_in):
    return (jnp.sqrt(2.0 / fan_in) * jax.random.normal(key, shape)).astype(jnp.float32)


def _linear_init(key, fan_in, fan_out, pad_to=None):
    kw, kb = jax.random.split(key)
    bound = 1.0 / np.sqrt(fan_in)
    w = jax.random.uniform(kw, (fan_in, fan_out), jnp.float32, -bound, bound)
    b = jax.random.uniform(kb, (1, fan_out), jnp.float32, -bound, bound)
    if pad_to is not None and pad_to > fan_out:
        w = jnp.pad(w, ((0, 0), (0, pad_to - fan_out)))
        b = jnp.pad(b, ((0, 0), (0, pad_to - fan_out)))
    return w, b


def _conv1_band_unfold(w_oihw, bias, w_in, stride, w_out, h_out, blk):
    """[R1] Conv1 (pad=0) as one [Ci*K*w_in, blk] matrix shared by every output
    row.  Row order (ci, kh, w_in); column order (co, ow), lane-padded to blk.
    Also returns the matching band bias [1, h_out*blk]."""
    wn = np.asarray(w_oihw)
    bn = np.asarray(bias)
    Co, Ci, K, _ = wn.shape
    Wm = np.zeros((Ci * K * w_in, blk), np.float32)
    for co in range(Co):
        for ow in range(w_out):
            col = co * w_out + ow
            for ci in range(Ci):
                for kh in range(K):
                    for kw in range(K):
                        wi = ow * stride + kw
                        Wm[ci * K * w_in + kh * w_in + wi, col] = wn[co, ci, kh, kw]
    bvec = np.zeros((1, h_out * blk), np.float32)
    for oh in range(h_out):
        for co in range(Co):
            bvec[0, oh * blk + co * w_out: oh * blk + co * w_out + w_out] = bn[co]
    return jnp.asarray(Wm), bvec


def _permute_rows_to_band_layout(wm, c1, h1o, w1o, blk):
    """[R8] Remap conv2's dense rows from (ci, h, w) order to the kernel's
    conv1 output layout: row = oh*blk + ci*w1o + ow (zero rows in the pad)."""
    wm = np.asarray(wm)
    out = np.zeros((h1o * blk, wm.shape[1]), np.float32)
    for ci in range(c1):
        for oh in range(h1o):
            for ow in range(w1o):
                out[oh * blk + ci * w1o + ow] = wm[ci * h1o * w1o + oh * w1o + ow]
    return jnp.asarray(out)


def _conv_to_dense(w_oihw, b, hi_, wi_, stride, pad):
    """Unfold a Conv2d into a dense matrix acting on the NCHW-flattened image.
    Rows (ci, h, w)-ordered, columns (co, oh, ow)-ordered (matches flatten)."""
    wn = np.asarray(w_oihw)
    bn = np.asarray(b)
    Co, Ci, k, _ = wn.shape
    Ho = (hi_ + 2 * pad - k) // stride + 1
    Wo = (wi_ + 2 * pad - k) // stride + 1
    W = np.zeros((Ci * hi_ * wi_, Co * Ho * Wo), np.float32)
    ci_idx = np.arange(Ci)
    co_idx = np.arange(Co)
    for oh in range(Ho):
        for ow in range(Wo):
            cols = (co_idx * Ho + oh) * Wo + ow
            for kh in range(k):
                h_in = oh * stride - pad + kh
                if h_in < 0 or h_in >= hi_:
                    continue
                for kw in range(k):
                    w_in = ow * stride - pad + kw
                    if w_in < 0 or w_in >= wi_:
                        continue
                    rows = (ci_idx * hi_ + h_in) * wi_ + w_in
                    W[rows[:, None], cols[None, :]] = wn[:, :, kh, kw].T
    b_full = np.repeat(bn, Ho * Wo)[None, :].astype(np.float32)
    return jnp.asarray(W), jnp.asarray(b_full), Ho, Wo


def _build_slots(entries):
    """Assign 128-aligned lane offsets for the packed small-parameter buffer."""
    slots, off = {}, 0
    for name, width in entries:
        slots[name] = (off, width)
        off += ((width + _LANE - 1) // _LANE) * _LANE
    return slots, off


def init_params(key, image_shape, output_size, convs, hidden_sizes, embedding_size):
    c, ih, iw = image_shape
    channels, kernels, strides, paddings = zip(*convs)
    n_convs = len(convs)
    assert n_convs >= 2
    # TODO(synk): conv1 row-band unfolding assumes padding=0 for the first conv
    # (true for the default config); fall back to a dense unfold otherwise.
    assert paddings[0] == 0
    keys = jax.random.split(key, n_convs + 3)

    # raw conv params (He weights, zero bias) — also used by the pure-JAX reference
    conv_w, conv_b = [], []
    in_c = c
    for i in range(n_convs):
        co, k = channels[i], kernels[i]
        conv_w.append(_he_normal(keys[i], (co, in_c, k, k), in_c * k * k))
        conv_b.append(jnp.zeros((co,), jnp.float32))
        in_c = co

    # conv1: shared row-band matrix, lane-padded columns
    H1O = (ih - kernels[0]) // strides[0] + 1
    W1O = (iw - kernels[0]) // strides[0] + 1
    blk = ((channels[0] * W1O + _LANE - 1) // _LANE) * _LANE
    w1_band, b0_band = _conv1_band_unfold(conv_w[0], conv_b[0], iw,
                                          strides[0], W1O, H1O, blk)

    # conv2..n: dense unfolds (layer-2 rows permuted/padded to the band layout)
    conv_wdense, conv_bias_vecs = [], [b0_band]
    hh, ww = H1O, W1O
    for i in range(1, n_convs):
        wm, bm, hh, ww = _conv_to_dense(conv_w[i], conv_b[i], hh, ww,
                                        strides[i], paddings[i])
        if i == 1:
            wm = _permute_rows_to_band_layout(wm, channels[0], H1O, W1O, blk)
        conv_wdense.append(wm)
        conv_bias_vecs.append(bm)
    D = channels[-1] * hh * ww            # state_embedding_size

    # TODO(synk): merge_fc with multiple hidden layers is not fused; this
    # implementation covers the default hidden_sizes=[H] (single layer).
    assert len(hidden_sizes) == 1
    H = hidden_sizes[0]
    o_pad = ((output_size + _LANE - 1) // _LANE) * _LANE   # lane-dense final store

    tau_w, tau_b = _linear_init(keys[-3], embedding_size, D)
    merge_w, merge_b = _linear_init(keys[-2], D, H)
    last_w, last_b = _linear_init(keys[-1], H, output_size, pad_to=o_pad)

    # [R2] pack every small row-vector into a single lane-aligned buffer
    small_values = [('conv_b0', b0_band)]
    for i in range(1, n_convs):
        small_values.append(('conv_b%d' % i, conv_bias_vecs[i]))
    small_values += [
        ('const_pi', (np.pi * jnp.arange(1, embedding_size + 1,
                                         dtype=jnp.float32)).reshape(1, -1)),
        ('tau_b', tau_b),
        ('tau_g', jnp.ones((1, D), jnp.float32)),
        ('tau_beta', jnp.zeros((1, D), jnp.float32)),
        ('merge_b', merge_b),
        ('merge_g', jnp.ones((1, H), jnp.float32)),
        ('merge_beta', jnp.zeros((1, H), jnp.float32)),
        ('last_b', last_b),
    ]
    slots, total = _build_slots([(n, int(np.asarray(v).shape[-1]))
                                 for n, v in small_values])
    small = np.zeros((1, total), np.float32)
    for n, v in small_values:
        off, width = slots[n]
        small[0, off:off + width] = np.asarray(v).reshape(-1)

    params = {
        'conv_w': conv_w, 'conv_b': conv_b,        # raw OIHW (reference path)
        'w1_band': w1_band,                        # [C*K*W, 128]  (kernel)
        'conv_wdense': conv_wdense,                # unfolded conv2..n (kernel)
        'tau_w': tau_w, 'merge_w': merge_w, 'last_w': last_w,
        'small': jnp.asarray(small),               # packed small params (kernel+ref)
    }
    geom = {'C0': c, 'H0': ih, 'W0': iw, 'K1': kernels[0], 'S1': strides[0],
            'H1O': H1O, 'BLK': blk, 'n_dense': n_convs - 1}
    return params, geom, slots


# --------------------------- pure-JAX reference -------------------------------

def reference_forward(params, slots, obs, tau, conv_cfg, output_size):
    def vec(name):
        off, width = slots[name]
        return params['small'][0, off:off + width]

    x = obs.astype(jnp.float32)
    for i, (k, s, p) in enumerate(conv_cfg):
        x = jax.lax.conv_general_dilated(
            x, params['conv_w'][i], window_strides=(s, s),
            padding=[(p, p), (p, p)],
            dimension_numbers=('NCHW', 'OIHW', 'NCHW'), precision=_HP)
        x = jnp.maximum(x + params['conv_b'][i][None, :, None, None], 0.0)
    B = x.shape[0]
    h = x.reshape(B, -1)
    phi = jnp.cos(tau[..., None] * vec('const_pi'))                  # [B,T,E]
    y = jnp.dot(phi, params['tau_w'], precision=_HP) + vec('tau_b')
    xq = jax.nn.sigmoid(_layernorm(y, vec('tau_g'), vec('tau_beta')))
    m = xq * h[:, None, :]
    y = jnp.dot(m, params['merge_w'], precision=_HP) + vec('merge_b')
    y = jnp.maximum(_layernorm(y, vec('merge_g'), vec('merge_beta')), 0.0)
    out = jnp.dot(y, params['last_w'], precision=_HP) + vec('last_b')
    return out[..., :output_size]


# --------------------------- main ---------------------------------------------

if __name__ == "__main__":
    key = jax.random.PRNGKey(0)
    image_shape = (4, 16, 16)          # (C, H, W)
    output_size = 6
    convs = [(32, 8, 4, 0), (64, 4, 2, 1), (64, 3, 1, 1)]   # (ch, k, stride, pad)
    hidden_sizes = [512]
    embedding_size = 64
    B, T = 2, 8

    kp, ko, kt = jax.random.split(key, 3)
    params, geom, slots = init_params(kp, image_shape, output_size, convs,
                                      hidden_sizes, embedding_size)
    observation = jax.random.normal(ko, (B,) + image_shape, jnp.float32)
    tau = jax.random.uniform(kt, (B, T), jnp.float32)

    forward = jax.jit(make_forward(geom, slots, output_size))
    out = jax.block_until_ready(forward(params, observation, tau))
    assert out.shape == (B, T, output_size), out.shape

    conv_cfg = [(k, s, p) for (_, k, s, p) in convs]
    ref = reference_forward(params, slots, observation, tau, conv_cfg, output_size)
    np.testing.assert_allclose(np.asarray(out), np.asarray(ref),
                               rtol=1e-3, atol=1e-3)
    print("KERNEL_OK")
</pallas_src>

<mosaic_0001>
module attributes {stable_mosaic.version = 11 : i64} {
  func.func @kernel(%arg0: memref<2x1024xf32, #tpu.memory_space<vmem>>, %arg1: memref<16x1xf32, #tpu.memory_space<vmem>>, %arg2: memref<512x128xf32, #tpu.memory_space<vmem>>, %arg3: memref<384x64xf32, #tpu.memory_space<vmem>>, %arg4: memref<64x64xf32, #tpu.memory_space<vmem>>, %arg5: memref<64x64xf32, #tpu.memory_space<vmem>>, %arg6: memref<64x512xf32, #tpu.memory_space<vmem>>, %arg7: memref<512x128xf32, #tpu.memory_space<vmem>>, %arg8: memref<1x2816xf32, #tpu.memory_space<vmem>>, %arg9: memref<16x128xf32, #tpu.memory_space<vmem>>) attributes {dimension_semantics = [], scalar_prefetch = 0 : i64, scratch_operands = 0 : i64, tpu.core_type = #tpu.core_type<tc>} {
    %c0 = arith.constant 0 : index
    %c0_0 = arith.constant 0 : index
    %0 = vector.load %arg0[%c0, %c0_0] : memref<2x1024xf32, #tpu.memory_space<vmem>>, vector<2x1024xf32>
    %c0_1 = arith.constant 0 : index
    %c0_2 = arith.constant 0 : index
    %1 = vector.load %arg2[%c0_1, %c0_2] : memref<512x128xf32, #tpu.memory_space<vmem>>, vector<512x128xf32>
    %2 = vector.extract_strided_slice %0 {offsets = [0, 0], sizes = [2, 128], strides = [1, 1]} : vector<2x1024xf32> to vector<2x128xf32>
    %3 = vector.extract_strided_slice %0 {offsets = [0, 256], sizes = [2, 128], strides = [1, 1]} : vector<2x1024xf32> to vector<2x128xf32>
    %4 = vector.extract_strided_slice %0 {offsets = [0, 512], sizes = [2, 128], strides = [1, 1]} : vector<2x1024xf32> to vector<2x128xf32>
    %5 = vector.extract_strided_slice %0 {offsets = [0, 768], sizes = [2, 128], strides = [1, 1]} : vector<2x1024xf32> to vector<2x128xf32>
    %6 = tpu.concatenate %2, %3, %4, %5 in 1 : vector<2x128xf32>, vector<2x128xf32>, vector<2x128xf32>, vector<2x128xf32> -> vector<2x512xf32>
    %cst = arith.constant dense<0.000000e+00> : vector<2x128xf32>
    %7 = tpu.matmul %6, %1, %cst {dimension_numbers = #tpu.dot_dimension_numbers<[1], [0], [0], [1], [0, 0, 1, 1], [], []>, precision = #tpu.contract_precision<fp32>} : vector<2x512xf32>, vector<512x128xf32>, vector<2x128xf32> -> vector<2x128xf32>
    %8 = vector.extract_strided_slice %0 {offsets = [0, 64], sizes = [2, 128], strides = [1, 1]} : vector<2x1024xf32> to vector<2x128xf32>
    %9 = vector.extract_strided_slice %0 {offsets = [0, 320], sizes = [2, 128], strides = [1, 1]} : vector<2x1024xf32> to vector<2x128xf32>
    %10 = vector.extract_strided_slice %0 {offsets = [0, 576], sizes = [2, 128], strides = [1, 1]} : vector<2x1024xf32> to vector<2x128xf32>
    %11 = vector.extract_strided_slice %0 {offsets = [0, 832], sizes = [2, 128], strides = [1, 1]} : vector<2x1024xf32> to vector<2x128xf32>
    %12 = tpu.concatenate %8, %9, %10, %11 in 1 : vector<2x128xf32>, vector<2x128xf32>, vector<2x128xf32>, vector<2x128xf32> -> vector<2x512xf32>
    %cst_3 = arith.constant dense<0.000000e+00> : vector<2x128xf32>
    %13 = tpu.matmul %12, %1, %cst_3 {dimension_numbers = #tpu.dot_dimension_numbers<[1], [0], [0], [1], [0, 0, 1, 1], [], []>, precision = #tpu.contract_precision<fp32>} : vector<2x512xf32>, vector<512x128xf32>, vector<2x128xf32> -> vector<2x128xf32>
    %14 = vector.extract_strided_slice %0 {offsets = [0, 128], sizes = [2, 128], strides = [1, 1]} : vector<2x1024xf32> to vector<2x128xf32>
    %15 = vector.extract_strided_slice %0 {offsets = [0, 384], sizes = [2, 128], strides = [1, 1]} : vector<2x1024xf32> to vector<2x128xf32>
    %16 = vector.extract_strided_slice %0 {offsets = [0, 640], sizes = [2, 128], strides = [1, 1]} : vector<2x1024xf32> to vector<2x128xf32>
    %17 = vector.extract_strided_slice %0 {offsets = [0, 896], sizes = [2, 128], strides = [1, 1]} : vector<2x1024xf32> to vector<2x128xf32>
    %18 = tpu.concatenate %14, %15, %16, %17 in 1 : vector<2x128xf32>, vector<2x128xf32>, vector<2x128xf32>, vector<2x128xf32> -> vector<2x512xf32>
    %cst_4 = arith.constant dense<0.000000e+00> : vector<2x128xf32>
    %19 = tpu.matmul %18, %1, %cst_4 {dimension_numbers = #tpu.dot_dimension_numbers<[1], [0], [0], [1], [0, 0, 1, 1], [], []>, precision = #tpu.contract_precision<fp32>} : vector<2x512xf32>, vector<512x128xf32>, vector<2x128xf32> -> vector<2x128xf32>
    %20 = tpu.concatenate %7, %13, %19 in 1 : vector<2x128xf32>, vector<2x128xf32>, vector<2x128xf32> -> vector<2x384xf32>
    %c0_5 = arith.constant 0 : index
    %c0_6 = arith.constant 0 : index
    %21 = vector.load %arg8[%c0_5, %c0_6] : memref<1x2816xf32, #tpu.memory_space<vmem>>, vector<1x384xf32>
    %22 = vector.broadcast %21 : vector<1x384xf32> to vector<2x384xf32>
    %23 = arith.addf %20, %22 : vector<2x384xf32>
    %cst_7 = arith.constant 0.000000e+00 : f32
    %24 = vector.broadcast %cst_7 : f32 to vector<2x384xf32>
    %25 = arith.maximumf %23, %24 : vector<2x384xf32>
    %c0_8 = arith.constant 0 : index
    %c0_9 = arith.constant 0 : index
    %26 = vector.load %arg3[%c0_8, %c0_9] : memref<384x64xf32, #tpu.memory_space<vmem>>, vector<384x64xf32>
    %cst_10 = arith.constant dense<0.000000e+00> : vector<2x64xf32>
    %27 = tpu.matmul %25, %26, %cst_10 {dimension_numbers = #tpu.dot_dimension_numbers<[1], [0], [0], [1], [0, 0, 1, 1], [], []>, precision = #tpu.contract_precision<fp32>} : vector<2x384xf32>, vector<384x64xf32>, vector<2x64xf32> -> vector<2x64xf32>
    %c0_11 = arith.constant 0 : index
    %c384 = arith.constant 384 : index
    %28 = vector.load %arg8[%c0_11, %c384] : memref<1x2816xf32, #tpu.memory_space<vmem>>, vector<1x64xf32>
    %29 = vector.broadcast %28 : vector<1x64xf32> to vector<2x64xf32>
    %30 = arith.addf %27, %29 : vector<2x64xf32>
    %cst_12 = arith.constant 0.000000e+00 : f32
    %31 = vector.broadcast %cst_12 : f32 to vector<2x64xf32>
    %32 = arith.maximumf %30, %31 : vector<2x64xf32>
    %c0_13 = arith.constant 0 : index
    %c0_14 = arith.constant 0 : index
    %33 = vector.load %arg4[%c0_13, %c0_14] : memref<64x64xf32, #tpu.memory_space<vmem>>, vector<64x64xf32>
    %cst_15 = arith.constant dense<0.000000e+00> : vector<2x64xf32>
    %34 = tpu.matmul %32, %33, %cst_15 {dimension_numbers = #tpu.dot_dimension_numbers<[1], [0], [0], [1], [0, 0, 1, 1], [], []>, precision = #tpu.contract_precision<fp32>} : vector<2x64xf32>, vector<64x64xf32>, vector<2x64xf32> -> vector<2x64xf32>
    %c0_16 = arith.constant 0 : index
    %c512 = arith.constant 512 : index
    %35 = vector.load %arg8[%c0_16, %c512] : memref<1x2816xf32, #tpu.memory_space<vmem>>, vector<1x64xf32>
    %36 = vector.broadcast %35 : vector<1x64xf32> to vector<2x64xf32>
    %37 = arith.addf %34, %36 : vector<2x64xf32>
    %cst_17 = arith.constant 0.000000e+00 : f32
    %38 = vector.broadcast %cst_17 : f32 to vector<2x64xf32>
    %39 = arith.maximumf %37, %38 : vector<2x64xf32>
    %c0_18 = arith.constant 0 : index
    %c0_19 = arith.constant 0 : index
    %40 = vector.load %arg1[%c0_18, %c0_19] : memref<16x1xf32, #tpu.memory_space<vmem>>, vector<16x1xf32>
    %c0_20 = arith.constant 0 : index
    %c640 = arith.constant 640 : index
    %41 = vector.load %arg8[%c0_20, %c640] : memref<1x2816xf32, #tpu.memory_space<vmem>>, vector<1x64xf32>
    %42 = vector.broadcast %40 : vector<16x1xf32> to vector<16x64xf32>
    %43 = vector.broadcast %41 : vector<1x64xf32> to vector<16x64xf32>
    %44 = arith.mulf %42, %43 : vector<16x64xf32>
    %45 = math.cos %44 : vector<16x64xf32>
    %c0_21 = arith.constant 0 : index
    %c0_22 = arith.constant 0 : index
    %46 = vector.load %arg5[%c0_21, %c0_22] : memref<64x64xf32, #tpu.memory_space<vmem>>, vector<64x64xf32>
    %cst_23 = arith.constant dense<0.000000e+00> : vector<16x64xf32>
    %47 = tpu.matmul %45, %46, %cst_23 {dimension_numbers = #tpu.dot_dimension_numbers<[1], [0], [0], [1], [0, 0, 1, 1], [], []>, precision = #tpu.contract_precision<fp32>} : vector<16x64xf32>, vector<64x64xf32>, vector<16x64xf32> -> vector<16x64xf32>
    %c0_24 = arith.constant 0 : index
    %c768 = arith.constant 768 : index
    %48 = vector.load %arg8[%c0_24, %c768] : memref<1x2816xf32, #tpu.memory_space<vmem>>, vector<1x64xf32>
    %49 = vector.broadcast %48 : vector<1x64xf32> to vector<16x64xf32>
    %50 = arith.addf %47, %49 : vector<16x64xf32>
    %c0_25 = arith.constant 0 : index
    %c896 = arith.constant 896 : index
    %51 = vector.load %arg8[%c0_25, %c896] : memref<1x2816xf32, #tpu.memory_space<vmem>>, vector<1x64xf32>
    %c0_26 = arith.constant 0 : index
    %c1024 = arith.constant 1024 : index
    %52 = vector.load %arg8[%c0_26, %c1024] : memref<1x2816xf32, #tpu.memory_space<vmem>>, vector<1x64xf32>
    %cst_27 = arith.constant dense<0.000000e+00> : vector<16xf32>
    %53 = vector.multi_reduction <add>, %50, %cst_27 [1] : vector<16x64xf32> to vector<16xf32>
    %54 = vector.shape_cast %53 : vector<16xf32> to vector<16x1xf32>
    %cst_28 = arith.constant 6.400000e+01 : f32
    %55 = vector.broadcast %cst_28 : f32 to vector<16x1xf32>
    %56 = arith.divf %54, %55 : vector<16x1xf32>
    %57 = vector.broadcast %56 : vector<16x1xf32> to vector<16x64xf32>
    %58 = arith.subf %50, %57 : vector<16x64xf32>
    %59 = arith.mulf %58, %58 : vector<16x64xf32>
    %cst_29 = arith.constant dense<0.000000e+00> : vector<16xf32>
    %60 = vector.multi_reduction <add>, %59, %cst_29 [1] : vector<16x64xf32> to vector<16xf32>
    %61 = vector.shape_cast %60 : vector<16xf32> to vector<16x1xf32>
    %cst_30 = arith.constant 6.400000e+01 : f32
    %62 = vector.broadcast %cst_30 : f32 to vector<16x1xf32>
    %63 = arith.divf %61, %62 : vector<16x1xf32>
    %64 = vector.broadcast %56 : vector<16x1xf32> to vector<16x64xf32>
    %65 = arith.subf %50, %64 : vector<16x64xf32>
    %cst_31 = arith.constant 9.99999974E-6 : f32
    %66 = vector.broadcast %cst_31 : f32 to vector<16x1xf32>
    %67 = arith.addf %63, %66 : vector<16x1xf32>
    %68 = math.rsqrt %67 : vector<16x1xf32>
    %69 = vector.broadcast %68 : vector<16x1xf32> to vector<16x64xf32>
    %70 = arith.mulf %65, %69 : vector<16x64xf32>
    %71 = vector.broadcast %51 : vector<1x64xf32> to vector<16x64xf32>
    %72 = arith.mulf %70, %71 : vector<16x64xf32>
    %73 = vector.broadcast %52 : vector<1x64xf32> to vector<16x64xf32>
    %74 = arith.addf %72, %73 : vector<16x64xf32>
    %75 = arith.negf %74 : vector<16x64xf32>
    %76 = math.exp %75 : vector<16x64xf32>
    %cst_32 = arith.constant 1.000000e+00 : f32
    %77 = vector.broadcast %cst_32 : f32 to vector<16x64xf32>
    %78 = arith.addf %77, %76 : vector<16x64xf32>
    %79 = arith.divf %77, %78 : vector<16x64xf32>
    %80 = vector.extract_strided_slice %39 {offsets = [0, 0], sizes = [1, 64], strides = [1, 1]} : vector<2x64xf32> to vector<1x64xf32>
    %81 = vector.shape_cast %80 : vector<1x64xf32> to vector<1x64xf32>
    %82 = vector.broadcast %81 : vector<1x64xf32> to vector<8x64xf32>
    %83 = vector.extract_strided_slice %39 {offsets = [1, 0], sizes = [1, 64], strides = [1, 1]} : vector<2x64xf32> to vector<1x64xf32>
    %84 = vector.shape_cast %83 : vector<1x64xf32> to vector<1x64xf32>
    %85 = vector.broadcast %84 : vector<1x64xf32> to vector<8x64xf32>
    %86 = tpu.concatenate %82, %85 in 0 : vector<8x64xf32>, vector<8x64xf32> -> vector<16x64xf32>
    %87 = arith.mulf %79, %86 : vector<16x64xf32>
    %c0_33 = arith.constant 0 : index
    %c0_34 = arith.constant 0 : index
    %88 = vector.load %arg6[%c0_33, %c0_34] : memref<64x512xf32, #tpu.memory_space<vmem>>, vector<64x512xf32>
    %cst_35 = arith.constant dense<0.000000e+00> : vector<16x512xf32>
    %89 = tpu.matmul %87, %88, %cst_35 {dimension_numbers = #tpu.dot_dimension_numbers<[1], [0], [0], [1], [0, 0, 1, 1], [], []>, precision = #tpu.contract_precision<fp32>} : vector<16x64xf32>, vector<64x512xf32>, vector<16x512xf32> -> vector<16x512xf32>
    %c0_36 = arith.constant 0 : index
    %c1152 = arith.constant 1152 : index
    %90 = vector.load %arg8[%c0_36, %c1152] : memref<1x2816xf32, #tpu.memory_space<vmem>>, vector<1x512xf32>
    %91 = vector.broadcast %90 : vector<1x512xf32> to vector<16x512xf32>
    %92 = arith.addf %89, %91 : vector<16x512xf32>
    %c0_37 = arith.constant 0 : index
    %c1664 = arith.constant 1664 : index
    %93 = vector.load %arg8[%c0_37, %c1664] : memref<1x2816xf32, #tpu.memory_space<vmem>>, vector<1x512xf32>
    %c0_38 = arith.constant 0 : index
    %c2176 = arith.constant 2176 : index
    %94 = vector.load %arg8[%c0_38, %c2176] : memref<1x2816xf32, #tpu.memory_space<vmem>>, vector<1x512xf32>
    %cst_39 = arith.constant dense<0.000000e+00> : vector<16xf32>
    %95 = vector.multi_reduction <add>, %92, %cst_39 [1] : vector<16x512xf32> to vector<16xf32>
    %96 = vector.shape_cast %95 : vector<16xf32> to vector<16x1xf32>
    %cst_40 = arith.constant 5.120000e+02 : f32
    %97 = vector.broadcast %cst_40 : f32 to vector<16x1xf32>
    %98 = arith.divf %96, %97 : vector<16x1xf32>
    %99 = vector.broadcast %98 : vector<16x1xf32> to vector<16x512xf32>
    %100 = arith.subf %92, %99 : vector<16x512xf32>
    %101 = arith.mulf %100, %100 : vector<16x512xf32>
    %cst_41 = arith.constant dense<0.000000e+00> : vector<16xf32>
    %102 = vector.multi_reduction <add>, %101, %cst_41 [1] : vector<16x512xf32> to vector<16xf32>
    %103 = vector.shape_cast %102 : vector<16xf32> to vector<16x1xf32>
    %cst_42 = arith.constant 5.120000e+02 : f32
    %104 = vector.broadcast %cst_42 : f32 to vector<16x1xf32>
    %105 = arith.divf %103, %104 : vector<16x1xf32>
    %106 = vector.broadcast %98 : vector<16x1xf32> to vector<16x512xf32>
    %107 = arith.subf %92, %106 : vector<16x512xf32>
    %cst_43 = arith.constant 9.99999974E-6 : f32
    %108 = vector.broadcast %cst_43 : f32 to vector<16x1xf32>
    %109 = arith.addf %105, %108 : vector<16x1xf32>
    %110 = math.rsqrt %109 : vector<16x1xf32>
    %111 = vector.broadcast %110 : vector<16x1xf32> to vector<16x512xf32>
    %112 = arith.mulf %107, %111 : vector<16x512xf32>
    %113 = vector.broadcast %93 : vector<1x512xf32> to vector<16x512xf32>
    %114 = arith.mulf %112, %113 : vector<16x512xf32>
    %115 = vector.broadcast %94 : vector<1x512xf32> to vector<16x512xf32>
    %116 = arith.addf %114, %115 : vector<16x512xf32>
    %cst_44 = arith.constant 0.000000e+00 : f32
    %117 = vector.broadcast %cst_44 : f32 to vector<16x512xf32>
    %118 = arith.maximumf %116, %117 : vector<16x512xf32>
    %c0_45 = arith.constant 0 : index
    %c0_46 = arith.constant 0 : index
    %119 = vector.load %arg7[%c0_45, %c0_46] : memref<512x128xf32, #tpu.memory_space<vmem>>, vector<512x128xf32>
    %cst_47 = arith.constant dense<0.000000e+00> : vector<16x128xf32>
    %120 = tpu.matmul %118, %119, %cst_47 {dimension_numbers = #tpu.dot_dimension_numbers<[1], [0], [0], [1], [0, 0, 1, 1], [], []>, precision = #tpu.contract_precision<fp32>} : vector<16x512xf32>, vector<512x128xf32>, vector<16x128xf32> -> vector<16x128xf32>
    %c0_48 = arith.constant 0 : index
    %c2688 = arith.constant 2688 : index
    %121 = vector.load %arg8[%c0_48, %c2688] : memref<1x2816xf32, #tpu.memory_space<vmem>>, vector<1x128xf32>
    %122 = vector.broadcast %121 : vector<1x128xf32> to vector<16x128xf32>
    %123 = arith.addf %120, %122 : vector<16x128xf32>
    %c0_49 = arith.constant 0 : index
    %c0_50 = arith.constant 0 : index
    %124 = vector.load %arg9[%c0_49, %c0_50] : memref<16x128xf32, #tpu.memory_space<vmem>>, vector<16x128xf32>
    tpu.vector_store %arg9[%c0_49, %c0_50], %123 {strides = array<i32>} : memref<16x128xf32, #tpu.memory_space<vmem>>, vector<16x128xf32>,
    return
  }
}

</mosaic_0001>

<bundles_post_ra>
// kernel: forward.1
= control target key start
LH: loop header
LB: loop body
LE: loop exit
PB: predicated region body
PF: predicated region fallthrough
CT: control target
= control target key end

     0   :  { %14 = vsyncpa [#allocation3], 0  ;;  %s22951_s0 = inlined_call_operand.vmem [shape: f32[2,1024], index: 0, kind: input, shape index: {}]   ;;  %s22952_s1 = inlined_call_operand.vmem [shape: f32[16,1], index: 1, kind: input, shape index: {}]   ;;  %s22953_s2 = inlined_call_operand.vmem [shape: f32[512,128], index: 2, kind: input, shape index: {}]   ;;  %s22954_s3 = inlined_call_operand.vmem [shape: f32[384,64], index: 3, kind: input, shape index: {}]   ;;  %s22955_s4 = inlined_call_operand.vmem [shape: f32[64,64], index: 4, kind: input, shape index: {}]   ;;  %s22956_s5 = inlined_call_operand.vmem [shape: f32[64,64], index: 5, kind: input, shape index: {}]   ;;  %s22957_s6 = inlined_call_operand.hbm [shape: f32[64,512], index: 6, kind: input, shape index: {}]   ;;  %s22958_s7 = inlined_call_operand.hbm [shape: f32[512,128], index: 7, kind: input, shape index: {}]   ;;  %s22959_s8 = inlined_call_operand.vmem [shape: f32[1,2816], index: 8, kind: input, shape index: {}]   ;;  %s22960_s9 = inlined_call_operand.vmem [shape: f32[16,128], index: 9, kind: output, shape index: {}]  }
   0x1   :  { %15 = vsyncpa [#allocation5], 0  ;;  %s16899_s30 = smov [#allocation2]   ;;  %s16851_s13 = scalar_lea.hbm %s22957_s6, 4096 }
   0x2   :  { %s33_s10 = sshll.u32 %s16899_s30, 4  ;;  %p16852_p0 = scmp.ne.s32.totalorder %s22957_s6, %s16851_s13  ;;  %s34_s10 = int_to_ptr.vmem [resolvable:$true] %s33_s10 }
   0x3   :  { %p16855_p1 = scmp.lt.u32.totalorder %s16851_s13, %s22957_s6 }
   0x5   :  { %p16857_p2 = pnand %p16855_p1, %p16852_p0 }
   0x7   :  { %16860 = shalt.err (!%p16857_p2)
}
   0x8   :  { %s16861_s18 = scalar_lea.vmem %s34_s10, 4096  ;;  %p16866_p4 = scmp.lt.s32.totalorder %s34_s10, %s34_s10 }
   0x9   :  { %p16862_p3 = scmp.ne.s32.totalorder %s34_s10, %s16861_s18  ;;  %p16867_p5 = scmp.lt.s32.totalorder %s16861_s18, %s16861_s18 }
   0xb   :  { %p16868_p6 = por %p16867_p5, %p16866_p4 }
   0xd   :  { %p16869_p7 = pnand %p16868_p6, %p16862_p3 }
   0xf   :  { %16872 = shalt.err (!%p16869_p7)
}
  0x10   :  { %s16900_s19 = smov 512   ;;  %s16901_s20 = smov 32  }
  0x11   :  { %39 = dma.hbm_to_vmem [thread:$0]  %s22957_s6, 4096, %s34_s10, [#allocation3], %s16900_s19, %s16900_s19, %s16901_s20  }
  0x12   :  { %s16902_s23 = smov [#allocation4]   ;;  %s16873_s27 = scalar_lea.hbm %s22958_s7, 8192 }
  0x13   :  { %s45_s24 = sshll.u32 %s16902_s23, 4  ;;  %p16874_p8 = scmp.ne.s32.totalorder %s22958_s7, %s16873_s27  ;;  %s46_s24 = int_to_ptr.vmem [resolvable:$true] %s45_s24 }
  0x14   :  { %p16877_p9 = scmp.lt.u32.totalorder %s16873_s27, %s22958_s7 }
  0x16   :  { %p16879_p10 = pnand %p16877_p9, %p16874_p8 }
  0x18   :  { %16882 = shalt.err (!%p16879_p10)
}
  0x19   :  { %s16883_s12 = scalar_lea.vmem %s46_s24, 8192  ;;  %p16888_p12 = scmp.lt.s32.totalorder %s46_s24, %s46_s24 }
  0x1a   :  { %p16884_p11 = scmp.ne.s32.totalorder %s46_s24, %s16883_s12  ;;  %p16889_p13 = scmp.lt.s32.totalorder %s16883_s12, %s16883_s12 }
  0x1c   :  { %p16890_p0 = por %p16889_p13, %p16888_p12 }
  0x1e   :  { %p16891_p1 = pnand %p16890_p0, %p16884_p11 }
  0x20   :  { %16894 = shalt.err (!%p16891_p1)
}
  0x21   :  { %s16903_s6 = smov 128   ;;  %s16904_s10 = smov 8  }
  0x22   :  { %51 = dma.hbm_to_vmem [thread:$0]  %s22958_s7, 8192, %s46_s24, [#allocation5], %s16903_s6, %s16903_s6, %s16904_s10  }
  0x23   :  { %16895 = dma.done.wait [#allocation3], 4096  }
  0x24   :  { %16896 = vsyncadd [#allocation3], 4294963200 }
  0x25   :  { %16897 = dma.done.wait [#allocation5], 8192  }
  0x26   :  { %16898 = vsyncadd [#allocation5], 4294959104  ;;  %v16905_v0 = vmov 1983009808   ;;  %v131_v2 = vlaneseq  ;;  %v78_v5 = vld [vmem:[%s22953_s2 + $0x80] sm:$0xff]  ;;  %v79_v6 = vld [vmem:[%s22953_s2 + $0x88] sm:$0xff] }
  0x27   :  { %v129_v1 = vunpack.c.l.s4 %v16905_v0  ;;  %v62_v7 = vld [vmem:[%s22953_s2] sm:$0xff]  ;;  %v209_v8 = vand.u32 4294901760, %v78_v5  ;;  %v212_v9 = vand.u32 4294901760, %v79_v6  ;;  %v63_v10 = vld [vmem:[%s22953_s2 + $0x8] sm:$0xff]  ;;  %v80_v12 = vld [vmem:[%s22953_s2 + $0x90] sm:$0xff]  ;;  %s16906_s10 = smov 64  }
  0x28   :  { %v16991_v4 = vshrl.u32 %v131_v2, 7  ;;  %v161_v11 = vand.u32 4294901760, %v62_v7  ;;  %v81_v13 = vld [vmem:[%s22953_s2 + $0x98] sm:$0xff]  ;;  %v164_v14 = vand.u32 4294901760, %v63_v10  ;;  %v215_v15 = vand.u32 4294901760, %v80_v12  ;;  %v64_v17 = vld [vmem:[%s22953_s2 + $0x10] sm:$0xff] }
  0x29   :  { %v130_v3 = vunpack.c.0.s8 %v129_v1  ;;  %v218_v16 = vand.u32 4294901760, %v81_v13  ;;  %v65_v18 = vld [vmem:[%s22953_s2 + $0x18] sm:$0xff]  ;;  %v17020_v19 = vld [vmem:[%s22953_s2 + $0xa0] sm:$0xff]  ;;  %v17025_v21 = vpack.c.bf16 %v212_v9, %v209_v8  ;;  %v167_v22 = vand.u32 4294901760, %v64_v17  ;;  %v17030_v24 = vld [vmem:[%s22953_s2 + $0xa8] sm:$0xff] }
  0x2a   :  { %23553 = vst [vmem:[#allocation8_spill] sm:$0xff] %v16991_v4  ;;  %v170_v23 = vand.u32 4294901760, %v65_v18  ;;  %v221_v25 = vand.u32 4294901760, %v17020_v19  ;;  %v17036_v26 = vld [vmem:[%s22953_s2 + $0x20] sm:$0xff]  ;;  %v17041_v27 = vld [vmem:[%s22953_s2 + $0x28] sm:$0xff]  ;;  %v17043_v28 = vpack.c.bf16 %v164_v14, %v161_v11  ;;  %v224_v30 = vand.u32 4294901760, %v17030_v24 }
  0x2b   :  { %v17023_v20 = vsub.s32 %v130_v3, %v16991_v4  ;;  %23554 = vst [vmem:[#allocation9_spill] sm:$0xff] %v17025_v21  ;;  %v17045_v29 = vpack.c.bf16 %v218_v16, %v215_v15  ;;  %v17048_v31 = vsub.f32 %v78_v5, %v209_v8  ;;  %v17053_v32 = vld [vmem:[%s22953_s2 + $0xb0] sm:$0xff]  ;;  %v17058_v33 = vld [vmem:[%s22953_s2 + $0xb8] sm:$0xff]  ;;  %14484 = vmatprep.subr.bf16.mxu0 %v17025_v21  ;;  %v173_v36 = vand.u32 4294901760, %v17036_v26  ;;  %v17134_v0 = vld [vmem:[%s22953_s2 + $0xc0] sm:$0xff] }
  0x2c   :  { %23555 = vst [vmem:[#allocation10_spill] sm:$0xff] %v17043_v28  ;;  %v17061_v34 = vpack.c.bf16 %v170_v23, %v167_v22  ;;  %v17063_v35 = vsub.f32 %v79_v6, %v212_v9  ;;  %v176_v37 = vand.u32 4294901760, %v17041_v27  ;;  %14486 = vmatpush3.bf16.msra.mxu0 %v17043_v28  ;;  %v17072_v38 = vpack.c.bf16 %v224_v30, %v221_v25  ;;  %v17082_v42 = vld [vmem:[%s22953_s2 + $0x30] sm:$0xff]  ;;  %v17104_v51 = vld [vmem:[%s22953_s2 + $0x38] sm:$0xff]  ;;  %v17144_v6 = vld [vmem:[%s22953_s2 + $0xc8] sm:$0xff] }
  0x2d   :  { %23556 = vst [vmem:[#allocation11_spill] sm:$0xff] %v17045_v29  ;;  %v22972_v39 = vand.u32 4294901760, %v17048_v31  ;;  %v17075_v40 = vsub.f32 %v62_v7, %v161_v11  ;;  %v17077_v41 = vsub.f32 %v63_v10, %v164_v14  ;;  %14488 = vmatprep.subr.bf16.mxu0 %v17045_v29  ;;  %v227_v45 = vand.u32 4294901760, %v17053_v32  ;;  %v17161_v11 = vld [vmem:[%s22953_s2 + $0x40] sm:$0xff] }
  0x2e   :  { %23557 = vst [vmem:[#allocation12_spill] sm:$0xff] %v17061_v34  ;;  %23558 = vst [vmem:[#allocation13_spill] sm:$0xff] %v17072_v38  ;;  %v22971_v43 = vand.u32 4294901760, %v17063_v35  ;;  %v17090_v44 = vpack.c.bf16 %v176_v37, %v173_v36  ;;  %v230_v46 = vand.u32 4294901760, %v17058_v33  ;;  %v17099_v50 = vsub.f32 %v80_v12, %v215_v15  ;;  %v17166_v12 = vld [vmem:[%s22953_s2 + $0x48] sm:$0xff] }
  0x2f   :  { %v388_v47 = vsub.f32 %v17048_v31, %v22972_v39  ;;  %v22970_v48 = vand.u32 4294901760, %v17075_v40  ;;  %v22969_v49 = vand.u32 4294901760, %v17077_v41  ;;  %v17115_v54 = vsub.f32 %v81_v13, %v218_v16 }
  0x30   :  { %23559 = vst [vmem:[#allocation14_spill] sm:$0xff] %v17090_v44  ;;  %v395_v52 = vsub.f32 %v17063_v35, %v22971_v43  ;;  %v17113_v53 = vpack.c.bf16 %v230_v46, %v227_v45  ;;  %v179_v55 = vand.u32 4294901760, %v17082_v42  ;;  %14490 = vmatpush3.bf16.msra.mxu0 %v17061_v34  ;;  %v22966_v59 = vand.u32 4294901760, %v17099_v50 }
  0x31   :  { %v389_v56 = vand.u32 4294901760, %v388_v47  ;;  %v276_v57 = vsub.f32 %v17075_v40, %v22970_v48  ;;  %v283_v58 = vsub.f32 %v17077_v41, %v22969_v49  ;;  %14492 = vmatprep.subr.bf16.mxu0 %v17072_v38  ;;  %v22965_v61 = vand.u32 4294901760, %v17115_v54 }
  0x32   :  { %23560 = vst [vmem:[#allocation15_spill] sm:$0xff] %v17113_v53  ;;  %v396_v60 = vand.u32 4294901760, %v395_v52  ;;  %v182_v62 = vand.u32 4294901760, %v17104_v51  ;;  %v17129_v63 = vsub.f32 %v64_v17, %v167_v22  ;;  %v402_v3 = vsub.f32 %v17099_v50, %v22966_v59 }
  0x33   :  { %v277_v1 = vand.u32 4294901760, %v276_v57  ;;  %v284_v2 = vand.u32 4294901760, %v283_v58  ;;  %v17139_v5 = vsub.f32 %v65_v18, %v170_v23  ;;  %v409_v8 = vsub.f32 %v17115_v54, %v22965_v61 }
  0x34   :  { %v17146_v7 = vpack.c.bf16 %v396_v60, %v389_v56  ;;  %v17155_v9 = vpack.c.bf16 %v182_v62, %v179_v55  ;;  %v22963_v10 = vand.u32 4294901760, %v17129_v63  ;;  %14494 = vmatpush3.bf16.msra.mxu0 %v17090_v44  ;;  %v403_v14 = vand.u32 4294901760, %v402_v3 }
  0x35   :  { %v17169_v13 = vpack.c.bf16 %v284_v2, %v277_v1  ;;  %v22962_v15 = vand.u32 4294901760, %v17139_v5  ;;  %v233_v16 = vand.u32 4294901760, %v17134_v0  ;;  %14496 = vmatprep.subr.bf16.mxu0 %v17113_v53  ;;  %v410_v17 = vand.u32 4294901760, %v409_v8 }
  0x36   :  { %23561 = vst [vmem:[#allocation16_spill] sm:$0xff] %v17146_v7  ;;  %23562 = vst [vmem:[#allocation17_spill] sm:$0xff] %v17155_v9  ;;  %14516 = vmatprep.subr.bf16.mxu1 %v17146_v7  ;;  %v290_v18 = vsub.f32 %v17129_v63, %v22963_v10  ;;  %v236_v22 = vand.u32 4294901760, %v17144_v6  ;;  %v17182_v23 = vsub.f32 %v17020_v19, %v221_v25  ;;  %v185_v56 = vand.u32 4294901760, %v17161_v11  ;;  %v17198_v19 = vld [vmem:[%s22953_s2 + $0xd0] sm:$0xff]  ;;  %v17203_v25 = vld [vmem:[%s22953_s2 + $0xd8] sm:$0xff] }
  0x37   :  { %23563 = vst [vmem:[#allocation18_spill] sm:$0xff] %v17169_v13  ;;  %14518 = vmatpush3.bf16.msra.mxu1 %v17169_v13  ;;  %v297_v47 = vsub.f32 %v17139_v5, %v22962_v15  ;;  %v17191_v52 = vsub.f32 %v17030_v24, %v224_v30  ;;  %v188_v57 = vand.u32 4294901760, %v17166_v12  ;;  %v17205_v58 = vpack.c.bf16 %v410_v17, %v403_v14 }
  0x38   :  { %v291_v60 = vand.u32 4294901760, %v290_v18  ;;  %v17211_v24 = vpack.c.bf16 %v236_v22, %v233_v16  ;;  %v22961_v30 = vand.u32 4294901760, %v17182_v23  ;;  %14498 = vmatpush3.bf16.msra.mxu0 %v17155_v9  ;;  %v17225_v8 = vsub.f32 %v17036_v26, %v173_v36  ;;  %v17242_v26 = vld [vmem:[%s22953_s2 + $0x50] sm:$0xff] }
  0x39   :  { %23564 = vst [vmem:[#allocation19_spill] sm:$0xff] %v17205_v58  ;;  %v298_v1 = vand.u32 4294901760, %v297_v47  ;;  %v22964_v2 = vand.u32 4294901760, %v17191_v52  ;;  %v17220_v3 = vpack.c.bf16 %v188_v57, %v185_v56  ;;  %14520 = vmatprep.subr.bf16.mxu1 %v17205_v58  ;;  %v17235_v17 = vsub.f32 %v17041_v27, %v176_v37  ;;  %v17258_v37 = vld [vmem:[%s22953_s2 + $0x58] sm:$0xff] }
  0x3a   :  { %23565 = vst [vmem:[#allocation20_spill] sm:$0xff] %v17211_v24  ;;  %14500 = vmatprep.subr.bf16.mxu0 %v17211_v24  ;;  %v416_v14 = vsub.f32 %v17182_v23, %v22961_v30  ;;  %v22978_v18 = vand.u32 4294901760, %v17198_v19  ;;  %v22977_v47 = vand.u32 4294901760, %v17203_v25  ;;  %v22967_v15 = vand.u32 4294901760, %v17225_v8 }
  0x3b   :  { %23566 = vst [vmem:[#allocation21_spill] sm:$0xff] %v17220_v3  ;;  %v17244_v36 = vpack.c.bf16 %v298_v1, %v291_v60  ;;  %v423_v30 = vsub.f32 %v17191_v52, %v22964_v2  ;;  %v17253_v27 = vsub.f32 %v17053_v32, %v227_v45  ;;  %v22968_v60 = vand.u32 4294901760, %v17235_v17 }
  0x3c   :  { %v417_v10 = vand.u32 4294901760, %v416_v14  ;;  %v17265_v1 = vpack.c.bf16 %v22977_v47, %v22978_v18  ;;  %v17270_v2 = vsub.f32 %v17058_v33, %v230_v46  ;;  %14502 = vmatpush3.bf16.msra.mxu0 %v17220_v3  ;;  %v304_v45 = vsub.f32 %v17225_v8, %v22967_v15  ;;  %v17293_v15 = vld [vmem:[%s22953_s2 + $0xe0] sm:$0xff] }
  0x3d   :  { %23567 = vst [vmem:[#allocation22_spill] sm:$0xff] %v17244_v36  ;;  %14522 = vmatpush3.bf16.msra.mxu1 %v17244_v36  ;;  %v424_v32 = vand.u32 4294901760, %v423_v30  ;;  %v22974_v14 = vand.u32 4294901760, %v17253_v27  ;;  %v22976_v61 = vand.u32 4294901760, %v17242_v26  ;;  %v311_v59 = vsub.f32 %v17235_v17, %v22968_v60  ;;  %v17298_v60 = vld [vmem:[%s22953_s2 + $0xe8] sm:$0xff] }
  0x3e   :  { %23568 = vst [vmem:[#allocation23_spill] sm:$0xff] %v17265_v1  ;;  %14504 = vmatprep.subr.bf16.mxu0 %v17265_v1  ;;  %v22973_v33 = vand.u32 4294901760, %v17270_v2  ;;  %v22975_v46 = vand.u32 4294901760, %v17258_v37  ;;  %v17288_v30 = vsub.f32 %v17082_v42, %v179_v55  ;;  %v305_v48 = vand.u32 4294901760, %v304_v45  ;;  %v17323_v45 = vld [vmem:[%s22953_s2 + $0x60] sm:$0xff] }
  0x3f   :  { %v17300_v49 = vpack.c.bf16 %v424_v32, %v417_v10  ;;  %v430_v43 = vsub.f32 %v17253_v27, %v22974_v14  ;;  %v17308_v42 = vsub.f32 %v17104_v51, %v182_v62  ;;  %v312_v55 = vand.u32 4294901760, %v311_v59  ;;  %v17332_v14 = vld [vmem:[%s22953_s2 + $0x68] sm:$0xff] }
  0x40   :  { %v437_v39 = vsub.f32 %v17270_v2, %v22973_v33  ;;  %v17317_v10 = vpack.c.bf16 %v22975_v46, %v22976_v61  ;;  %v22980_v32 = vand.u32 4294901760, %v17288_v30  ;;  %v22982_v62 = vand.u32 4294901760, %v17293_v15 }
  0x41   :  { %23569 = vst [vmem:[#allocation24_spill] sm:$0xff] %v17300_v49  ;;  %14524 = vmatprep.subr.bf16.mxu1 %v17300_v49  ;;  %v431_v51 = vand.u32 4294901760, %v430_v43  ;;  %v22979_v59 = vand.u32 4294901760, %v17308_v42  ;;  %v22981_v33 = vand.u32 4294901760, %v17298_v60  ;;  %v17334_v46 = vpack.c.bf16 %v312_v55, %v305_v48 }
  0x42   :  { %23570 = vst [vmem:[#allocation25_spill] sm:$0xff] %v17317_v10  ;;  %v438_v61 = vand.u32 4294901760, %v437_v39  ;;  %14506 = vmatpush3.bf16.msra.mxu0 %v17317_v10  ;;  %v318_v43 = vsub.f32 %v17288_v30, %v22980_v32  ;;  %v17343_v47 = vsub.f32 %v17134_v0, %v233_v16  ;;  %v17357_v48 = vsub.f32 %v17144_v6, %v236_v22  ;;  %v17363_v0 = vld [vmem:[%s22953_s2 + $0xf0] sm:$0xff]  ;;  %v17368_v16 = vld [vmem:[%s22953_s2 + $0xf8] sm:$0xff] }
  0x43   :  { %23571 = vst [vmem:[#allocation26_spill] sm:$0xff] %v17334_v46  ;;  %v325_v18 = vsub.f32 %v17308_v42, %v22979_v59  ;;  %v17352_v39 = vpack.c.bf16 %v22981_v33, %v22982_v62  ;;  %14526 = vmatpush3.bf16.msra.mxu1 %v17334_v46  ;;  %v22986_v22 = vand.u32 4294901760, %v17332_v14  ;;  %v17380_v55 = vsub.f32 %v17161_v11, %v185_v56 }
  0x44   :  { %v17371_v59 = vpack.c.bf16 %v438_v61, %v431_v51  ;;  %v319_v32 = vand.u32 4294901760, %v318_v43  ;;  %v22983_v6 = vand.u32 4294901760, %v17343_v47  ;;  %v22987_v62 = vand.u32 4294901760, %v17357_v48 }
  0x45   :  { %23572 = vst [vmem:[#allocation27_spill] sm:$0xff] %v17352_v39  ;;  %v326_v33 = vand.u32 4294901760, %v325_v18  ;;  %14508 = vmatprep.subr.bf16.mxu0 %v17352_v39  ;;  %v17385_v61 = vsub.f32 %v17166_v12, %v188_v57  ;;  %v23574_v51 = vand.u32 4294901760, %v17323_v45  ;;  %v22994_v11 = vand.u32 4294901760, %v17363_v0  ;;  %v17402_v12 = vld [vmem:[%s22953_s2 + $0x70] sm:$0xff] }
  0x46   :  { %23573 = vst [vmem:[#allocation28_spill] sm:$0xff] %v17371_v59  ;;  %14528 = vmatprep.subr.bf16.mxu1 %v17371_v59  ;;  %v444_v18 = vsub.f32 %v17343_v47, %v22983_v6  ;;  %v451_v6 = vsub.f32 %v17357_v48, %v22987_v62  ;;  %v23579_v62 = vand.u32 4294901760, %v17198_v19  ;;  %v23581_v46 = vand.u32 4294901760, %v17380_v55 }
  0x47   :  { %v17395_v43 = vpack.c.bf16 %v22986_v22, %v23574_v51  ;;  %v17404_v57 = vpack.c.bf16 %v326_v33, %v319_v32  ;;  %v17414_v22 = vld [vmem:[%s22953_s2 + $0x78] sm:$0xff]  ;;  %v23577_v33 = vand.u32 4294901760, %v17368_v16  ;;  %v23580_v51 = vand.u32 4294901760, %v17203_v25 }
  0x48   :  { %v445_v56 = vand.u32 4294901760, %v444_v18  ;;  %v17426_v4 = vsub.f32 %v17198_v19, %v23579_v62  ;;  %v452_v18 = vand.u32 4294901760, %v451_v6  ;;  %v332_v49 = vsub.f32 %v17380_v55, %v23581_v46  ;;  %v17453_v46 = vld [vmem:[%s22951_s0] sm:$0xff] }
  0x49   :  { %23575 = vst [vmem:[#allocation29_spill] sm:$0xff] %v17395_v43  ;;  %23576 = vst [vmem:[#allocation30_spill] sm:$0xff] %v17404_v57  ;;  %14510 = vmatpush3.bf16.msra.mxu0 %v17395_v43  ;;  %v17421_v32 = vpack.c.bf16 %v23577_v33, %v22994_v11  ;;  %v17431_v59 = vsub.f32 %v17203_v25, %v23580_v51  ;;  %14530 = vmatpush3.bf16.msra.mxu1 %v17404_v57  ;;  %v23582_v33 = vand.u32 4294901760, %v17385_v61  ;;  %vm1889_vm0 = vcmask 523264  }
  0x4a   :  { %v23583_v6 = vand.u32 4294901760, %v17242_v26  ;;  %v333_v36 = vand.u32 4294901760, %v332_v49  ;;  %v23585_v19 = vand.u32 4294901760, %v17258_v37  ;;  %v23586_v62 = vand.u32 4294901760, %v17426_v4 }
  0x4b   :  { %23578 = vst [vmem:[#allocation31_spill] sm:$0xff] %v17421_v32  ;;  %v339_v11 = vsub.f32 %v17385_v61, %v23582_v33  ;;  %14512 = vmatprep.subr.bf16.mxu0 %v17421_v32  ;;  %v17455_v33 = vpack.c.bf16 %v452_v18, %v445_v56  ;;  %v23588_v13 = vand.u32 4294901760, %v17402_v12  ;;  %v23589_v56 = vand.u32 4294901760, %v17414_v22 }
  0x4c   :  { %v17448_v51 = vsub.f32 %v17242_v26, %v23583_v6  ;;  %v17460_v25 = vsub.f32 %v17258_v37, %v23585_v19  ;;  %v458_v58 = vsub.f32 %v17426_v4, %v23586_v62  ;;  %v23587_v26 = vand.u32 4294901760, %v17431_v59 }
  0x4d   :  { %23584 = vst [vmem:[#allocation32_spill] sm:$0xff] %v17455_v33  ;;  %v340_v57 = vand.u32 4294901760, %v339_v11  ;;  %v17472_v18 = vpack.c.bf16 %v23589_v56, %v23588_v13  ;;  %14532 = vmatprep.subr.bf16.mxu1 %v17455_v33  ;;  %v127_v19 = vcombine.high %v17453_v46, %v17453_v46  ;;  %v23592_v62 = vand.u32 4294901760, %v17293_v15 }
  0x4e   :  { %v465_v6 = vsub.f32 %v17431_v59, %v23587_v26  ;;  %v23007_v49 = vand.u32 4294901760, %v17448_v51  ;;  %v23010_v11 = vand.u32 4294901760, %v17460_v25  ;;  %v459_v7 = vand.u32 4294901760, %v458_v58 }
  0x4f   :  { %23590 = vst [vmem:[#allocation33_spill] sm:$0xff] %v17472_v18  ;;  %v17476_v37 = vpack.c.bf16 %v340_v57, %v333_v36  ;;  %v17484_v26 = vsub.f32 %v17293_v15, %v23592_v62  ;;  %14514 = vmatpush3.bf16.msra.mxu0 %v17472_v18  ;;  %v23593_v36 = vand.u32 4294901760, %v17298_v60  ;;  %v17500_v58 = vrot.slane %v127_v19, %v17023_v20 }
  0x50   :  { %v466_v32 = vand.u32 4294901760, %v465_v6  ;;  %v346_v13 = vsub.f32 %v17448_v51, %v23007_v49  ;;  %v353_v15 = vsub.f32 %v17460_v25, %v23010_v11  ;;  %v17505_v56 = vpack.c.bf16 %v17063_v35, %v17048_v31 }
  0x51   :  { %23591 = vst [vmem:[#allocation34_spill] sm:$0xff] %v17476_v37  ;;  %v17493_v57 = vsub.f32 %v17298_v60, %v23593_v36  ;;  %14534 = vmatpush3.bf16.msra.mxu1 %v17476_v37  ;;  %v23013_v6 = vand.u32 4294901760, %v17484_v26  ;;  %v17511_v36 = vand.u32 4294901760, %v17453_v46  ;;  %v17514_v11 = vand.u32 4294901760, %v17500_v58  ;;  %1893 = vrot.lane.b32.xlu0 %v17500_v58, %s16906_s10 }
  0x52   :  { %23594 = vst [vmem:[#allocation35_spill] sm:$0xff] %v17505_v56  ;;  %v17507_v62 = vpack.c.bf16 %v466_v32, %v459_v7  ;;  %v347_v49 = vand.u32 4294901760, %v346_v13  ;;  %v354_v37 = vand.u32 4294901760, %v353_v15  ;;  %14548 = vmatprep.subr.bf16.mxu0 %v17505_v56  ;;  %v23597_v33 = vand.u32 4294901760, %v17323_v45 }
  0x53   :  { %v23018_v60 = vand.u32 4294901760, %v17493_v57  ;;  %23596 = vst [vmem:[#allocation37_spill] sm:$0xff] %v17514_v11  ;;  %v472_v19 = vsub.f32 %v17484_v26, %v23013_v6  ;;  %v17533_v13 = vsub.f32 %v17453_v46, %v17511_v36  ;;  %v23599_v15 = vand.u32 4294901760, %v17332_v14  ;;  %497 = vmatprep.mubr.f32.mxu1 %v17514_v11 }
  0x54   :  { %23595 = vst [vmem:[#allocation36_spill] sm:$0xff] %v17507_v62  ;;  %v17523_v7 = vsub.f32 %v17323_v45, %v23597_v33  ;;  %14536 = vmatprep.subr.bf16.mxu1 %v17507_v62  ;;  %v17540_v45 = vpack.c.bf16 %v354_v37, %v347_v49  ;;  %v17544_v33 = vsub.f32 %v17500_v58, %v17514_v11  ;;  %v23601_v39 = vand.u32 4294901760, %v17363_v0 }
  0x55   :  { %v479_v32 = vsub.f32 %v17493_v57, %v23018_v60  ;;  %23598 = vst [vmem:[#allocation38_spill] sm:$0xff] %v17533_v13  ;;  %v17538_v6 = vsub.f32 %v17332_v14, %v23599_v15  ;;  %v473_v56 = vand.u32 4294901760, %v472_v19  ;;  %v23030_v18 = vand.u32 4294901760, %v17533_v13 }
  0x56   :  { %23600 = vst [vmem:[#allocation39_spill] sm:$0xff] %v17540_v45  ;;  %v23027_v62 = vand.u32 4294901760, %v17523_v7  ;;  %v17553_v14 = vsub.f32 %v17363_v0, %v23601_v39  ;;  %14538 = vmatpush3.bf16.msra.mxu1 %v17540_v45  ;;  %v23602_v19 = vand.u32 4294901760, %v17368_v16  ;;  %v23604_v45 = vand.u32 4294901760, %v17544_v33 }
  0x57   :  { %v480_v60 = vand.u32 4294901760, %v479_v32  ;;  %v23031_v43 = vand.u32 4294901760, %v17538_v6  ;;  %v265_v39 = vsub.f32 %v17533_v13, %v23030_v18  ;;  %v23606_v13 = vand.u32 4294901760, %v17414_v22 }
  0x58   :  { %v360_v37 = vsub.f32 %v17523_v7, %v23027_v62  ;;  %v17563_v32 = vsub.f32 %v17368_v16, %v23602_v19  ;;  %v23036_v49 = vand.u32 4294901760, %v17553_v14  ;;  %v259_v62 = vsub.f32 %v17544_v33, %v23604_v45 }
  0x59   :  { %v17565_v15 = vpack.c.bf16 %v480_v60, %v473_v56  ;;  %v367_v0 = vsub.f32 %v17538_v6, %v23031_v43  ;;  %v23605_v56 = vand.u32 4294901760, %v17402_v12  ;;  %v266_v19 = vand.u32 4294901760, %v265_v39 }
  0x5a   :  { %v361_v11 = vand.u32 4294901760, %v360_v37  ;;  %v486_v43 = vsub.f32 %v17553_v14, %v23036_v49  ;;  %v17590_v45 = vsub.f32 %v17414_v22, %v23606_v13  ;;  %v260_v37 = vand.u32 4294901760, %v259_v62 }
  0x5b   :  { %23603 = vst [vmem:[#allocation40_spill] sm:$0xff] %v17565_v15  ;;  %v17581_v60 = vsub.f32 %v17402_v12, %v23605_v56  ;;  %14540 = vmatprep.subr.bf16.mxu1 %v17565_v15  ;;  %v368_v18 = vand.u32 4294901760, %v367_v0  ;;  %v17594_v16 = vpack.c.bf16 %v17077_v41, %v17075_v40  ;;  %v23608_v12 = vand.u32 4294901760, %v17563_v32 }
  0x5c   :  { %v487_v15 = vand.u32 4294901760, %v486_v43  ;;  %v17604_v49 = vpack.c.bf16 %v17115_v54, %v17099_v50  ;;  %v23037_v22 = vand.u32 4294901760, %v17590_v45  ;;  %261 = vmatprep.mubr.f32.mxu0 %v260_v37  ;;  %v17619_v37 = vpack.c.bf16 %v17139_v5, %v17129_v63 }
  0x5d   :  { %23607 = vst [vmem:[#allocation41_spill] sm:$0xff] %v17594_v16  ;;  %v493_v56 = vsub.f32 %v17563_v32, %v23608_v12  ;;  %v23038_v39 = vand.u32 4294901760, %v17581_v60  ;;  %v17600_v0 = vpack.c.bf16 %v368_v18, %v361_v11  ;;  %267 = vmatmul.mubr.f32.vlgmr.msra.gmra.mrb[0].mxu0 %v266_v19  ;;  %v17625_v12 = vpack.c.bf16 %v17191_v52, %v17182_v23 }
  0x5e   :  { %23610 = vst [vmem:[#allocation43_spill] sm:$0xff] %v17604_v49  ;;  %v381_v18 = vsub.f32 %v17590_v45, %v23037_v22  ;;  %14550 = vmatpush3.bf16.msra.mxu0 %v17594_v16  ;;  %23612 = vst [vmem:[#allocation45_spill] sm:$0xff] %v17619_v37  ;;  %634 = vmatprep.mubr.f32.mxu0 %v17544_v33  ;;  %v23624_v16 = vand.u32 4294901760, %v17115_v54  ;;  %v23633_v54 = vand.u32 4294901760, %v17235_v17  ;;  %vm16908_vm1 = vmmov 0  }
  0x5f   :  { %23609 = vst [vmem:[#allocation42_spill] sm:$0xff] %v17600_v0  ;;  %v494_v62 = vand.u32 4294901760, %v493_v56  ;;  %v374_v13 = vsub.f32 %v17581_v60, %v23038_v39  ;;  %14542 = vmatpush3.bf16.msra.mxu1 %v17600_v0  ;;  %14552 = vmatprep.subr.bf16.mxu0 %v17604_v49  ;;  %23613 = vst [vmem:[#allocation46_spill] sm:$0xff] %v17625_v12  ;;  %v17634_v56 = vpack.c.bf16 %v17270_v2, %v17253_v27 }
  0x60   :  { %v382_v19 = vand.u32 4294901760, %v381_v18  ;;  %v23619_v18 = vand.u32 4294901760, %v17075_v40  ;;  %v23620_v39 = vand.u32 4294901760, %v17077_v41  ;;  %v23623_v0 = vand.u32 4294901760, %v17099_v50 }
  0x61   :  { %v17615_v43 = vpack.c.bf16 %v494_v62, %v487_v15  ;;  %v375_v11 = vand.u32 4294901760, %v374_v13  ;;  %v17630_v15 = vpack.c.bf16 %v17235_v17, %v17225_v8  ;;  %23615 = vst [vmem:[#allocation48_spill] sm:$0xff] %v17634_v56  ;;  %v23616_v62 = vand.u32 4294901760, %v17048_v31 }
  0x62   :  { %v23617_v13 = vand.u32 4294901760, %v17063_v35  ;;  %v17646_v49 = vpack.c.bf16 %v23620_v39, %v23619_v18  ;;  %v17654_v10 = vpack.c.bf16 %v23624_v16, %v23623_v0  ;;  %v23626_v31 = vand.u32 4294901760, %v17129_v63  ;;  %14554 = vmatpush3.bf16.msra.mxu0 %v17619_v37 }
  0x63   :  { %23611 = vst [vmem:[#allocation44_spill] sm:$0xff] %v17615_v43  ;;  %14544 = vmatprep.subr.bf16.mxu1 %v17615_v43  ;;  %23614 = vst [vmem:[#allocation47_spill] sm:$0xff] %v17630_v15  ;;  %v17648_v43 = vpack.c.bf16 %v382_v19, %v375_v11  ;;  %v23627_v35 = vand.u32 4294901760, %v17139_v5  ;;  %v23629_v40 = vand.u32 4294901760, %v17182_v23  ;;  %v23630_v41 = vand.u32 4294901760, %v17191_v52  ;;  %14556 = vmatprep.subr.bf16.mxu0 %v17625_v12 }
  0x64   :  { %v17640_v22 = vpack.c.bf16 %v23617_v13, %v23616_v62  ;;  %23621 = vst [vmem:[#allocation50_spill] sm:$0xff] %v17646_v49  ;;  %23625 = vst [vmem:[#allocation52_spill] sm:$0xff] %v17654_v10  ;;  %v23632_v50 = vand.u32 4294901760, %v17225_v8  ;;  %v23635_v63 = vand.u32 4294901760, %v17253_v27  ;;  %v23636_v5 = vand.u32 4294901760, %v17270_v2 }
  0x65   :  { %23622 = vst [vmem:[#allocation51_spill] sm:$0xff] %v17648_v43  ;;  %v17660_v62 = vpack.c.bf16 %v23627_v35, %v23626_v31  ;;  %v17666_v39 = vpack.c.bf16 %v23630_v41, %v23629_v40  ;;  %v23638_v23 = vand.u32 4294901760, %v17288_v30  ;;  %v23639_v52 = vand.u32 4294901760, %v17308_v42  ;;  %14546 = vmatpush3.bf16.msra.mxu1 %v17648_v43 }
  0x66   :  { %23618 = vst [vmem:[#allocation49_spill] sm:$0xff] %v17640_v22  ;;  %v17673_v16 = vpack.c.bf16 %v23633_v54, %v23632_v50  ;;  %v17679_v0 = vpack.c.bf16 %v23636_v5, %v23635_v63  ;;  %v23641_v19 = vand.u32 4294901760, %v17343_v47  ;;  %v23642_v8 = vand.u32 4294901760, %v17357_v48  ;;  %14580 = vmatprep.subr.bf16.mxu1 %v17025_v21  ;;  %14558 = vmatpush3.bf16.msra.mxu0 %v17630_v15 }
  0x67   :  { %23628 = vst [vmem:[#allocation53_spill] sm:$0xff] %v17660_v62  ;;  %23631 = vst [vmem:[#allocation54_spill] sm:$0xff] %v17666_v39  ;;  %v17685_v11 = vpack.c.bf16 %v23639_v52, %v23638_v23  ;;  %v23644_v2 = vand.u32 4294901760, %v17380_v55  ;;  %v23645_v17 = vand.u32 4294901760, %v17385_v61  ;;  %v23647_v18 = vand.u32 4294901760, %v17426_v4  ;;  %14560 = vmatprep.subr.bf16.mxu0 %v17634_v56  ;;  %v23667_v52 = vld [vmem:[#allocation38_spill] sm:$0xff] }
  0x68   :  { %23634 = vst [vmem:[#allocation55_spill] sm:$0xff] %v17673_v16  ;;  %23637 = vst [vmem:[#allocation56_spill] sm:$0xff] %v17679_v0  ;;  %v17691_v13 = vpack.c.bf16 %v23642_v8, %v23641_v19  ;;  %v23648_v31 = vand.u32 4294901760, %v17431_v59  ;;  %v23650_v40 = vand.u32 4294901760, %v17448_v51  ;;  %v23651_v41 = vand.u32 4294901760, %v17460_v25  ;;  %499 = vmatmul.mubr.f32.vlgmr.msra.gmra.mrb[0].mxu1 %v17511_v36  ;;  %v94_v19 = vld [vmem:[%s22953_s2 + $0x100] sm:$0xff] }
  0x69   :  { %23640 = vst [vmem:[#allocation57_spill] sm:$0xff] %v17685_v11  ;;  %v17699_v27 = vpack.c.bf16 %v23645_v17, %v23644_v2  ;;  %v134_v54 = vrot.slane %v17453_v46, %v17023_v20  ;;  %v17718_v63 = vcombine.high %v17500_v58, %v17500_v58  ;;  %v17724_v5 = vpack.c.bf16 %v17308_v42, %v17288_v30  ;;  %v95_v8 = vld [vmem:[%s22953_s2 + $0x108] sm:$0xff] }
  0x6a   :  { %23643 = vst [vmem:[#allocation58_spill] sm:$0xff] %v17691_v13  ;;  %v17705_v35 = vpack.c.bf16 %v23648_v31, %v23647_v18  ;;  %v17711_v50 = vpack.c.bf16 %v23651_v41, %v23650_v40  ;;  %14582 = vmatpush3.bf16.msra.mxu1 %v17043_v28  ;;  %v17730_v23 = vpack.c.bf16 %v17357_v48, %v17343_v47  ;;  %v23656_v46 = vand.u32 4294901760, %v17544_v33  ;;  %v111_v33 = vld [vmem:[%s22953_s2 + $0x188] sm:$0xff]  ;;  %v23670_v40 = vld [vmem:[#allocation31_spill] sm:$0xff] }
  0x6b   :  { %23646 = vst [vmem:[#allocation59_spill] sm:$0xff] %v17699_v27  ;;  %23653 = vst [vmem:[#allocation62_spill] sm:$0xff] %v17718_v63  ;;  %14584 = vmatprep.subr.bf16.mxu1 %v17045_v29  ;;  %1885 = vrot.lane.b32.xlu1 %v134_v54, %s16906_s10  ;;  %v17736_v58 = vcombine.high %v134_v54, %v134_v54  ;;  %v17743_v30 = vpack.c.bf16 %v17385_v61, %v17380_v55  ;;  %v23665_v61 = vld [vmem:[#allocation25_spill] sm:$0xff]  ;;  %v1074_v31 = vand.u32 4294901760, %v111_v33 }
  0x6c   :  { %23649 = vst [vmem:[#allocation60_spill] sm:$0xff] %v17705_v35  ;;  %23652 = vst [vmem:[#allocation61_spill] sm:$0xff] %v17711_v50  ;;  %741 = vmatprep.mubr.f32.mxu1 %v23656_v46  ;;  %1895 = vrot.lane.b32.xlu0 %v17718_v63, %s16906_s10  ;;  %v17749_v47 = vpack.c.bf16 %v17431_v59, %v17426_v4  ;;  %v17757_v42 = vpack.c.bf16 %v17460_v25, %v17448_v51  ;;  %v110_v25 = vld [vmem:[%s22953_s2 + $0x180] sm:$0xff]  ;;  %v23666_v51 = vld [vmem:[#allocation27_spill] sm:$0xff]  ;;  %v1023_v41 = vand.u32 4294901760, %v94_v19 }
  0x6d   :  { %23654 = vst [vmem:[#allocation63_spill] sm:$0xff] %v17724_v5  ;;  %23655 = vst [vmem:[#allocation64_spill] sm:$0xff] %v17730_v23  ;;  %14562 = vmatpush3.bf16.msra.mxu0 %v17724_v5  ;;  %v17763_v48 = vpack.c.bf16 %v17493_v57, %v17484_v26  ;;  %v17769_v4 = vpack.c.bf16 %v17538_v6, %v17523_v7  ;;  %v17775_v59 = vpack.c.bf16 %v17563_v32, %v17553_v14  ;;  %v23668_v2 = vld [vmem:[#allocation37_spill] sm:$0xff]  ;;  %v112_v46 = vld [vmem:[%s22953_s2 + $0x190] sm:$0xff] }
  0x6e   :  { %23657 = vst [vmem:[#allocation65_spill] sm:$0xff] %v17736_v58  ;;  %23658 = vst [vmem:[#allocation66_spill] sm:$0xff] %v17743_v30  ;;  %14586 = vmatpush3.bf16.msra.mxu1 %v17061_v34  ;;  %14564 = vmatprep.subr.bf16.mxu0 %v17730_v23  ;;  %v17781_v55 = vpack.c.bf16 %v17590_v45, %v17581_v60  ;;  %v1071_v17 = vand.u32 4294901760, %v110_v25  ;;  %v23669_v18 = vld [vmem:[#allocation29_spill] sm:$0xff]  ;;  %v1026_v54 = vand.u32 4294901760, %v95_v8 }
  0x6f   :  { %23659 = vst [vmem:[#allocation67_spill] sm:$0xff] %v17749_v47  ;;  %14588 = vmatprep.subr.bf16.mxu1 %v17072_v38  ;;  %1887 = vrot.lane.b32.xlu1 %v17736_v58, %s16906_s10  ;;  %23660 = vst [vmem:[#allocation68_spill] sm:$0xff] %v17757_v42  ;;  %v113_v58 = vld [vmem:[%s22953_s2 + $0x198] sm:$0xff] }
  0x70   :  { %23661 = vst [vmem:[#allocation69_spill] sm:$0xff] %v17763_v48  ;;  %23662 = vst [vmem:[#allocation70_spill] sm:$0xff] %v17769_v4  ;;  %v17815_v63 = vsub.f32 %v110_v25, %v1071_v17  ;;  %v23673_v25 = vand.u32 4294901760, %v17484_v26  ;;  %v17871_v26 = vld [vmem:[%s22951_s0 + $0x8] sm:$0xff] }
  0x71   :  { %14566 = vmatpush3.bf16.msra.mxu0 %v17743_v30  ;;  %23663 = vst [vmem:[#allocation71_spill] sm:$0xff] %v17775_v59  ;;  %23664 = vst [vmem:[#allocation72_spill] sm:$0xff] %v17781_v55 }
  0x72   :  { %14590 = vmatpush3.bf16.msra.mxu1 %v17090_v44  ;;  %14568 = vmatprep.subr.bf16.mxu0 %v17749_v47 }
  0x73   :  { %14592 = vmatprep.subr.bf16.mxu1 %v17113_v53 }
  0x75   :  { %14570 = vmatpush3.bf16.msra.mxu0 %v17757_v42  ;;  %v144_v42 = vcombine.high %v17871_v26, %v17871_v26 }
  0x76   :  { %14594 = vmatpush3.bf16.msra.mxu1 %v17155_v9  ;;  %14572 = vmatprep.subr.bf16.mxu0 %v17763_v48  ;;  %v23674_v48 = vand.u32 4294901760, %v17493_v57  ;;  %v23676_v57 = vand.u32 4294901760, %v17523_v7  ;;  %v23683_v7 = vand.u32 4294901760, %v17590_v45 }
  0x77   :  { %14596 = vmatprep.subr.bf16.mxu1 %v17211_v24  ;;  %v17946_v5 = vrot.slane %v144_v42, %v17023_v20 }
  0x79   :  { %14574 = vmatpush3.bf16.msra.mxu0 %v17769_v4  ;;  %v23672_v4 = vand.u32 4294901760, %v23667_v52  ;;  %v17960_v42 = vand.u32 4294901760, %v17946_v5  ;;  %1907 = vrot.lane.b32.xlu0 %v17946_v5, %s16906_s10 }
  0x7a   :  { %14598 = vmatpush3.bf16.msra.mxu1 %v17220_v3  ;;  %14576 = vmatprep.subr.bf16.mxu0 %v17775_v59  ;;  %v17824_v59 = vsub.f32 %v95_v8, %v1026_v54  ;;  %v23679_v8 = vand.u32 4294901760, %v17553_v14 }
  0x7b   :  { %14600 = vmatprep.subr.bf16.mxu1 %v17265_v1  ;;  %23692 = vst [vmem:[#allocation78_spill] sm:$0xff] %v17960_v42 }
  0x7c   :  { %v23691_v30 = vand.u32 4294901760, %v17824_v59 }
  0x7d   :  { %14578 = vmatpush3.bf16.msra.mxu0 %v17781_v55  ;;  %v17822_v55 = vsub.f32 %v94_v19, %v1023_v41  ;;  %v17843_v19 = vld [vmem:[%s22953_s2 + $0x118] sm:$0xff] }
  0x7e   :  { %14602 = vmatpush3.bf16.msra.mxu1 %v23665_v61  ;;  %14612 = vmatprep.subr.bf16.mxu0 %v17640_v22  ;;  %v17819_v22 = vsub.f32 %v111_v33, %v1074_v31  ;;  %v17838_v33 = vld [vmem:[%s22953_s2 + $0x110] sm:$0xff]  ;;  %v1145_v23 = vsub.f32 %v17824_v59, %v23691_v30 }
  0x7f   :  { %14604 = vmatprep.subr.bf16.mxu1 %v23666_v51  ;;  %v1029_v45 = vand.u32 4294901760, %v17838_v33 }
  0x80   :  { %637 = vmatmul.mubr.f32.vlgmr.msra.gmra.mrb[2].mxu0 %v23667_v52 }
  0x81   :  { %14614 = vmatpush3.bf16.msra.mxu0 %v17646_v49  ;;  %911 = vmatprep.mubr.f32.mxu0 %v23668_v2  ;;  %v23671_v49 = vld [vmem:[#allocation33_spill] sm:$0xff]  ;;  %v17951_v12 = vsub.f32 %v17838_v33, %v1029_v45 }
  0x82   :  { %14606 = vmatpush3.bf16.msra.mxu1 %v23669_v18  ;;  %14616 = vmatprep.subr.bf16.mxu0 %v17654_v10  ;;  %v1077_v10 = vand.u32 4294901760, %v112_v46 }
  0x83   :  { %14608 = vmatprep.subr.bf16.mxu1 %v23670_v40 }
  0x84   :  { %v17866_v47 = vsub.f32 %v112_v46, %v1077_v10  ;;  %v115_v46 = vld [vmem:[%s22953_s2 + $0x1a8] sm:$0xff] }
  0x85   :  { %14618 = vmatpush3.bf16.msra.mxu0 %v17660_v62  ;;  %v1080_v62 = vand.u32 4294901760, %v113_v58 }
  0x86   :  { %14610 = vmatpush3.bf16.msra.mxu1 %v23671_v49  ;;  %14620 = vmatprep.subr.bf16.mxu0 %v17666_v39  ;;  %v17833_v39 = vpack.c.bf16 %v23674_v48, %v23673_v25  ;;  %v23677_v48 = vand.u32 4294901760, %v17538_v6  ;;  %v23680_v25 = vand.u32 4294901760, %v17563_v32  ;;  %v23682_v6 = vand.u32 4294901760, %v17581_v60 }
  0x87   :  { %14644 = vmatprep.subr.bf16.mxu1 %v17025_v21  ;;  %v17880_v32 = vpack.c.bf16 %v1074_v31, %v1071_v17  ;;  %v1032_v17 = vand.u32 4294901760, %v17843_v19 }
  0x88   :  { %23675 = vst [vmem:[#allocation38_spill] sm:$0xff] %v17833_v39  ;;  %v17857_v52 = vpack.c.bf16 %v23677_v48, %v23676_v57  ;;  %v17878_v14 = vpack.c.bf16 %v23683_v7, %v23682_v6  ;;  %v17889_v57 = vld [vmem:[%s22953_s2 + $0x120] sm:$0xff]  ;;  %v17904_v6 = vpack.c.bf16 %v1080_v62, %v1077_v10  ;;  %v23688_v7 = vand.u32 4294901760, %v17815_v63  ;;  %v17912_v48 = vld [vmem:[%s22953_s2 + $0x1b0] sm:$0xff] }
  0x89   :  { %745 = vmatmul.mubr.f32.vlgmr.msra.gmra.mrb[2].mxu1 %v23672_v4  ;;  %14622 = vmatpush3.bf16.msra.mxu0 %v17673_v16  ;;  %v17848_v4 = vld [vmem:[%s22953_s2 + $0x1a0] sm:$0xff]  ;;  %v17863_v16 = vpack.c.bf16 %v23680_v25, %v23679_v8  ;;  %23685 = vst [vmem:[#allocation75_spill] sm:$0xff] %v17880_v32  ;;  %v17899_v8 = vsub.f32 %v113_v58, %v1080_v62  ;;  %v1086_v58 = vand.u32 4294901760, %v115_v46  ;;  %v23689_v10 = vand.u32 4294901760, %v17819_v22 }
  0x8a   :  { %14646 = vmatpush3.bf16.msra.mxu1 %v17043_v28  ;;  %14624 = vmatprep.subr.bf16.mxu0 %v17679_v0  ;;  %23678 = vst [vmem:[#allocation37_spill] sm:$0xff] %v17857_v52  ;;  %23684 = vst [vmem:[#allocation74_spill] sm:$0xff] %v17878_v14  ;;  %v1083_v31 = vand.u32 4294901760, %v17848_v4  ;;  %v17902_v25 = vpack.c.bf16 %v1026_v54, %v1023_v41  ;;  %v1250_v60 = vsub.f32 %v17815_v63, %v23688_v7  ;;  %v17925_v54 = vld [vmem:[%s22953_s2 + $0x1b8] sm:$0xff] }
  0x8b   :  { %23681 = vst [vmem:[#allocation73_spill] sm:$0xff] %v17863_v16  ;;  %14648 = vmatprep.subr.bf16.mxu1 %v17045_v29  ;;  %1015 = vmatprep.mubr.f32.mxu1 %v23668_v2  ;;  %v99_v2 = vld [vmem:[%s22953_s2 + $0x128] sm:$0xff]  ;;  %23687 = vst [vmem:[#allocation77_spill] sm:$0xff] %v17904_v6  ;;  %v1257_v62 = vsub.f32 %v17819_v22, %v23689_v10  ;;  %v1035_v41 = vand.u32 4294901760, %v17889_v57  ;;  %v23690_v0 = vand.u32 4294901760, %v17822_v55  ;;  %v17943_v7 = vld [vmem:[%s22953_s2 + $0x138] sm:$0xff] }
  0x8c   :  { %23686 = vst [vmem:[#allocation76_spill] sm:$0xff] %v17902_v25  ;;  %v1089_v56 = vand.u32 4294901760, %v17912_v48  ;;  %v1251_v30 = vand.u32 4294901760, %v1250_v60  ;;  %v1092_v43 = vand.u32 4294901760, %v17925_v54  ;;  %v1044_v60 = vand.u32 4294901760, %v17943_v7 }
  0x8d   :  { %14626 = vmatpush3.bf16.msra.mxu0 %v17685_v11  ;;  %v17931_v11 = vld [vmem:[%s22953_s2 + $0x130] sm:$0xff]  ;;  %v1138_v10 = vsub.f32 %v17822_v55, %v23690_v0  ;;  %v17954_v0 = vsub.f32 %v17843_v19, %v1032_v17  ;;  %v1258_v33 = vand.u32 4294901760, %v1257_v62  ;;  %v23693_v19 = vand.u32 4294901760, %v17866_v47 }
  0x8e   :  { %14650 = vmatpush3.bf16.msra.mxu1 %v17061_v34  ;;  %14628 = vmatprep.subr.bf16.mxu0 %v17691_v13  ;;  %v1038_v13 = vand.u32 4294901760, %v99_v2  ;;  %v1041_v37 = vand.u32 4294901760, %v17931_v11  ;;  %v1146_v34 = vand.u32 4294901760, %v1145_v23  ;;  %v17974_v29 = vsub.f32 %v115_v46, %v1086_v58  ;;  %v17993_v23 = vld [vmem:[%s22953_s2 + $0x1c0] sm:$0xff] }
  0x8f   :  { %14652 = vmatprep.subr.bf16.mxu1 %v17072_v38  ;;  %v1264_v15 = vsub.f32 %v17866_v47, %v23693_v19  ;;  %v1139_v38 = vand.u32 4294901760, %v1138_v10  ;;  %v17980_v62 = vpack.c.bf16 %v1032_v17, %v1029_v45  ;;  %v17988_v10 = vpack.c.bf16 %v1086_v58, %v1083_v31 }
  0x90   :  { %v17996_v46 = vsub.f32 %v17889_v57, %v1035_v41  ;;  %v17998_v45 = vsub.f32 %v99_v2, %v1038_v13  ;;  %v18003_v17 = vpack.c.bf16 %v1258_v33, %v1251_v30  ;;  %v18007_v58 = vpack.c.bf16 %v1092_v43, %v1089_v56 }
  0x91   :  { %14630 = vmatpush3.bf16.msra.mxu0 %v17699_v27  ;;  %v17971_v27 = vsub.f32 %v17848_v4, %v1083_v31  ;;  %v18005_v31 = vpack.c.bf16 %v1038_v13, %v1035_v41  ;;  %v119_v4 = vld [vmem:[%s22953_s2 + $0x1c8] sm:$0xff]  ;;  %v18014_v2 = vpack.c.bf16 %v1146_v34, %v1139_v38  ;;  %v18016_v28 = vpack.c.bf16 %v1044_v60, %v1041_v37  ;;  %v18022_v13 = vld [vmem:[%s22953_s2 + $0x140] sm:$0xff] }
  0x92   :  { %14654 = vmatpush3.bf16.msra.mxu1 %v17090_v44  ;;  %14632 = vmatprep.subr.bf16.mxu0 %v17705_v35  ;;  %v17978_v44 = vsub.f32 %v17946_v5, %v17960_v42  ;;  %v23696_v35 = vand.u32 4294901760, %v17899_v8  ;;  %23697 = vst [vmem:[#allocation81_spill] sm:$0xff] %v17996_v46  ;;  %23698 = vst [vmem:[#allocation82_spill] sm:$0xff] %v17998_v45  ;;  %v23702_v33 = vand.u32 4294901760, %v17951_v12  ;;  %v23703_v57 = vand.u32 4294901760, %v17954_v0 }
  0x93   :  { %23694 = vst [vmem:[#allocation79_spill] sm:$0xff] %v17971_v27  ;;  %14656 = vmatprep.subr.bf16.mxu1 %v17113_v53  ;;  %23699 = vst [vmem:[#allocation83_spill] sm:$0xff] %v18003_v17  ;;  %v1095_v38 = vand.u32 4294901760, %v17993_v23  ;;  %v1098_v30 = vand.u32 4294901760, %v119_v4  ;;  %v18059_v53 = vsub.f32 %v17912_v48, %v1089_v56  ;;  %v18062_v21 = vsub.f32 %v17925_v54, %v1092_v43 }
  0x94   :  { %23695 = vst [vmem:[#allocation80_spill] sm:$0xff] %v17978_v44  ;;  %v1271_v19 = vsub.f32 %v17899_v8, %v23696_v35  ;;  %23700 = vst [vmem:[#allocation84_spill] sm:$0xff] %v18014_v2  ;;  %v1265_v35 = vand.u32 4294901760, %v1264_v15  ;;  %v1159_v34 = vsub.f32 %v17954_v0, %v23703_v57  ;;  %v18034_v15 = vld [vmem:[%s22953_s2 + $0x148] sm:$0xff]  ;;  %v18047_v57 = vld [vmem:[%s22953_s2 + $0x1d8] sm:$0xff] }
  0x95   :  { %14634 = vmatpush3.bf16.msra.mxu0 %v17711_v50  ;;  %23701 = vst [vmem:[#allocation85_spill] sm:$0xff] %v18016_v28  ;;  %v23705_v50 = vand.u32 4294901760, %v17971_v27  ;;  %v1104_v43 = vand.u32 4294901760, %v18047_v57 }
  0x96   :  { %14658 = vmatpush3.bf16.msra.mxu1 %v17155_v9  ;;  %14636 = vmatprep.subr.bf16.mxu0 %v17833_v39  ;;  %v1272_v41 = vand.u32 4294901760, %v1271_v19  ;;  %v1152_v39 = vsub.f32 %v17951_v12, %v23702_v33  ;;  %v18042_v33 = vld [vmem:[%s22953_s2 + $0x1d0] sm:$0xff]  ;;  %v1160_v56 = vand.u32 4294901760, %v1159_v34  ;;  %v18113_v34 = vld [vmem:[%s22953_s2 + $0x1e8] sm:$0xff] }
  0x97   :  { %14660 = vmatprep.subr.bf16.mxu1 %v17211_v24  ;;  %v23704_v24 = vand.u32 4294901760, %v17978_v44  ;;  %v1278_v19 = vsub.f32 %v17971_v27, %v23705_v50  ;;  %v18073_v50 = vsub.f32 %v17943_v7, %v1044_v60  ;;  %v1101_v48 = vand.u32 4294901760, %v18042_v33 }
  0x98   :  { %v1153_v27 = vand.u32 4294901760, %v1152_v39  ;;  %v18078_v54 = vpack.c.bf16 %v1272_v41, %v1265_v35  ;;  %v18088_v39 = vpack.c.bf16 %v1098_v30, %v1095_v38  ;;  %v18095_v41 = vld [vmem:[%s22953_s2 + $0x150] sm:$0xff]  ;;  %v18108_v35 = vld [vmem:[%s22953_s2 + $0x1e0] sm:$0xff] }
  0x99   :  { %14638 = vmatpush3.bf16.msra.mxu0 %v17857_v52  ;;  %v1121_v9 = vsub.f32 %v17978_v44, %v23704_v24  ;;  %v1047_v52 = vand.u32 4294901760, %v18022_v13  ;;  %v23706_v24 = vand.u32 4294901760, %v17974_v29  ;;  %v18070_v44 = vsub.f32 %v17931_v11, %v1041_v37 }
  0x9a   :  { %14662 = vmatpush3.bf16.msra.mxu1 %v17220_v3  ;;  %14640 = vmatprep.subr.bf16.mxu0 %v17863_v16  ;;  %v1050_v16 = vand.u32 4294901760, %v18034_v15  ;;  %23707 = vst [vmem:[#allocation86_spill] sm:$0xff] %v18078_v54  ;;  %v23709_v37 = vand.u32 4294901760, %v17998_v45  ;;  %23710 = vst [vmem:[#allocation87_spill] sm:$0xff] %v18088_v39  ;;  %v1279_v60 = vand.u32 4294901760, %v1278_v19  ;;  %v18123_v19 = vpack.c.bf16 %v1104_v43, %v1101_v48 }
  0x9b   :  { %14664 = vmatprep.subr.bf16.mxu1 %v17265_v1  ;;  %v1285_v3 = vsub.f32 %v17974_v29, %v23706_v24  ;;  %v23708_v24 = vand.u32 4294901760, %v17996_v46  ;;  %v1122_v7 = vand.u32 4294901760, %v1121_v9  ;;  %v18100_v9 = vld [vmem:[%s22953_s2 + $0x158] sm:$0xff] }
  0x9c   :  { %v1173_v11 = vsub.f32 %v17998_v45, %v23709_v37  ;;  %v18121_v37 = vpack.c.bf16 %v1050_v16, %v1047_v52  ;;  %23712 = vst [vmem:[#allocation89_spill] sm:$0xff] %v18123_v19  ;;  %v1053_v45 = vand.u32 4294901760, %v18095_v41 }
  0x9d   :  { %14642 = vmatpush3.bf16.msra.mxu0 %v17878_v14  ;;  %v1166_v1 = vsub.f32 %v17996_v46, %v23708_v24  ;;  %v1286_v24 = vand.u32 4294901760, %v1285_v3  ;;  %v18116_v14 = vsub.f32 %v17993_v23, %v1095_v38  ;;  %v18119_v3 = vpack.c.bf16 %v1160_v56, %v1153_v27 }
  0x9e   :  { %14666 = vmatpush3.bf16.msra.mxu1 %v23665_v61  ;;  %14676 = vmatprep.subr.bf16.mxu0 %v17880_v32  ;;  %v1174_v32 = vand.u32 4294901760, %v1173_v11  ;;  %v1056_v46 = vand.u32 4294901760, %v18100_v9  ;;  %v23713_v27 = vand.u32 4294901760, %v18059_v53  ;;  %v1110_v38 = vand.u32 4294901760, %v18113_v34 }
  0x9f   :  { %14668 = vmatprep.subr.bf16.mxu1 %v23666_v51  ;;  %23711 = vst [vmem:[#allocation88_spill] sm:$0xff] %v18119_v3  ;;  %v18125_v51 = vsub.f32 %v119_v4, %v1098_v30  ;;  %v1167_v61 = vand.u32 4294901760, %v1166_v1  ;;  %v23714_v4 = vand.u32 4294901760, %v18062_v21  ;;  %v1107_v1 = vand.u32 4294901760, %v18108_v35 }
  0xa0   :  { %913 = vmatmul.mubr.f32.vlgmr.msra.gmra.mrb[4].mxu0 %v17511_v36  ;;  %v1292_v23 = vsub.f32 %v18059_v53, %v23713_v27  ;;  %v18141_v56 = vpack.c.bf16 %v1286_v24, %v1279_v60  ;;  %v23716_v11 = vand.u32 4294901760, %v18070_v44  ;;  %v18157_v60 = vsub.f32 %v18022_v13, %v1047_v52 }
  0xa1   :  { %14678 = vmatpush3.bf16.msra.mxu0 %v17902_v25  ;;  %1123 = vmatprep.mubr.f32.mxu0 %v1122_v7  ;;  %v1299_v30 = vsub.f32 %v18062_v21, %v23714_v4  ;;  %v18154_v25 = vld [vmem:[%s22953_s2 + $0x160] sm:$0xff]  ;;  %v18160_v24 = vsub.f32 %v18034_v15, %v1050_v16  ;;  %v18170_v4 = vsub.f32 %v18042_v33, %v1101_v48 }
  0xa2   :  { %14670 = vmatpush3.bf16.msra.mxu1 %v23669_v18  ;;  %14680 = vmatprep.subr.bf16.mxu0 %v17904_v6  ;;  %23715 = vst [vmem:[#allocation90_spill] sm:$0xff] %v18141_v56  ;;  %v1180_v7 = vsub.f32 %v18070_v44, %v23716_v11  ;;  %v23717_v18 = vand.u32 4294901760, %v18073_v50  ;;  %v18164_v11 = vcombine.high %v17946_v5, %v17946_v5  ;;  %v1293_v5 = vand.u32 4294901760, %v1292_v23  ;;  %v18201_v23 = vld [vmem:[%s22953_s2 + $0x1f8] sm:$0xff] }
  0xa3   :  { %14672 = vmatprep.subr.bf16.mxu1 %v23670_v40  ;;  %v18173_v6 = vsub.f32 %v18047_v57, %v1104_v43  ;;  %v151_v52 = vrot.slane %v17871_v26, %v17023_v20  ;;  %v18179_v16 = vpack.c.bf16 %v1174_v32, %v1167_v61  ;;  %v1300_v13 = vand.u32 4294901760, %v1299_v30  ;;  %v18190_v20 = vld [vmem:[%s22953_s2 + $0x168] sm:$0xff]  ;;  %v18196_v32 = vld [vmem:[%s22953_s2 + $0x1f0] sm:$0xff] }
  0xa4   :  { %v1187_v27 = vsub.f32 %v18073_v50, %v23717_v18  ;;  %23718 = vst [vmem:[#allocation91_spill] sm:$0xff] %v18164_v11  ;;  %v18167_v18 = vpack.c.bf16 %v1056_v46, %v1053_v45  ;;  %v18181_v15 = vpack.c.bf16 %v1110_v38, %v1107_v1  ;;  %v1181_v33 = vand.u32 4294901760, %v1180_v7  ;;  %1909 = vrot.lane.b32.xlu1 %v18164_v11, %s16906_s10 }
  0xa5   :  { %14682 = vmatpush3.bf16.msra.mxu0 %v17980_v62  ;;  %23719 = vst [vmem:[#allocation92_spill] sm:$0xff] %v18179_v16  ;;  %v23720_v57 = vand.u32 4294901760, %v18116_v14  ;;  %v23721_v30 = vand.u32 4294901760, %v18125_v51  ;;  %v18210_v61 = vcombine.high %v151_v52, %v151_v52  ;;  %1900 = vrot.lane.b32.xlu0 %v151_v52, %s16906_s10  ;;  %v1113_v52 = vand.u32 4294901760, %v18196_v32 }
  0xa6   :  { %14674 = vmatpush3.bf16.msra.mxu1 %v23671_v49  ;;  %14684 = vmatprep.subr.bf16.mxu0 %v17988_v10  ;;  %v1188_v48 = vand.u32 4294901760, %v1187_v27  ;;  %v23159_v27 = vand.u32 4294901760, %v18157_v60  ;;  %v18218_v49 = vsub.f32 %v18095_v41, %v1053_v45  ;;  %v18241_v41 = vld [vmem:[%s22953_s2 + $0x178] sm:$0xff] }
  0xa7   :  { %14708 = vmatprep.subr.bf16.mxu1 %v18003_v17  ;;  %v1306_v43 = vsub.f32 %v18116_v14, %v23720_v57  ;;  %v1313_v7 = vsub.f32 %v18125_v51, %v23721_v30  ;;  %23722 = vst [vmem:[#allocation93_spill] sm:$0xff] %v18210_v61  ;;  %v18221_v30 = vsub.f32 %v18100_v9, %v1056_v46  ;;  %v1116_v17 = vand.u32 4294901760, %v18201_v23  ;;  %v18236_v46 = vld [vmem:[%s22953_s2 + $0x170] sm:$0xff] }
  0xa8   :  { %v18225_v57 = vpack.c.bf16 %v1300_v13, %v1293_v5  ;;  %v18231_v11 = vpack.c.bf16 %v1188_v48, %v1181_v33  ;;  %v18244_v9 = vsub.f32 %v18108_v35, %v1107_v1  ;;  %v18247_v5 = vsub.f32 %v18113_v34, %v1110_v38  ;;  %1902 = vrot.lane.b32.xlu1 %v18210_v61, %s16906_s10 }
  0xa9   :  { %1017 = vmatmul.mubr.f32.vlgmr.msra.gmra.mrb[4].mxu1 %v17511_v36  ;;  %14686 = vmatpush3.bf16.msra.mxu0 %v18005_v31  ;;  %v1062_v36 = vand.u32 4294901760, %v18190_v20  ;;  %v1307_v45 = vand.u32 4294901760, %v1306_v43  ;;  %v1314_v13 = vand.u32 4294901760, %v1313_v7  ;;  %v1194_v33 = vsub.f32 %v18157_v60, %v23159_v27 }
  0xaa   :  { %14710 = vmatpush3.bf16.msra.mxu1 %v18014_v2  ;;  %14688 = vmatprep.subr.bf16.mxu0 %v18007_v58  ;;  %23723 = vst [vmem:[#allocation94_spill] sm:$0xff] %v18225_v57  ;;  %23724 = vst [vmem:[#allocation95_spill] sm:$0xff] %v18231_v11  ;;  %v23725_v48 = vand.u32 4294901760, %v18160_v24  ;;  %v23726_v34 = vand.u32 4294901760, %v18170_v4  ;;  %v23727_v1 = vand.u32 4294901760, %v18173_v6  ;;  %v1065_v27 = vand.u32 4294901760, %v18236_v46 }
  0xab   :  { %14712 = vmatprep.subr.bf16.mxu1 %v18078_v54  ;;  %1359 = vmatprep.mubr.f32.mxu1 %v17960_v42  ;;  %v18257_v54 = vand.u32 4294901760, %v17871_v26  ;;  %v1068_v61 = vand.u32 4294901760, %v18241_v41  ;;  %v23728_v2 = vand.u32 4294901760, %v18154_v25  ;;  %v18280_v40 = vsub.f32 %v18190_v20, %v1062_v36 }
  0xac   :  { %v1201_v43 = vsub.f32 %v18160_v24, %v23725_v48  ;;  %v1320_v35 = vsub.f32 %v18170_v4, %v23726_v34  ;;  %v1327_v38 = vsub.f32 %v18173_v6, %v23727_v1  ;;  %v18286_v7 = vsub.f32 %v18196_v32, %v1113_v52 }
  0xad   :  { %14690 = vmatpush3.bf16.msra.mxu0 %v18016_v28  ;;  %v18277_v34 = vsub.f32 %v18154_v25, %v23728_v2  ;;  %v18291_v42 = vpack.c.bf16 %v1314_v13, %v1307_v45  ;;  %v18295_v20 = vsub.f32 %v17871_v26, %v18257_v54  ;;  %v23730_v48 = vand.u32 4294901760, %v18218_v49 }
  0xae   :  { %14714 = vmatpush3.bf16.msra.mxu1 %v18119_v3  ;;  %14692 = vmatprep.subr.bf16.mxu0 %v18088_v39  ;;  %v18289_v3 = vsub.f32 %v18201_v23, %v1116_v17  ;;  %v1195_v39 = vand.u32 4294901760, %v1194_v33  ;;  %v1202_v2 = vand.u32 4294901760, %v1201_v43  ;;  %v1328_v1 = vand.u32 4294901760, %v1327_v38 }
  0xaf   :  { %14716 = vmatprep.subr.bf16.mxu1 %v18141_v56  ;;  %23729 = vst [vmem:[#allocation96_spill] sm:$0xff] %v18291_v42  ;;  %v1321_v56 = vand.u32 4294901760, %v1320_v35  ;;  %v1208_v32 = vsub.f32 %v18218_v49, %v23730_v48  ;;  %v23731_v28 = vand.u32 4294901760, %v18221_v30  ;;  %v18309_v13 = vsub.f32 %v18236_v46, %v1065_v27 }
  0xb0   :  { %v18312_v33 = vsub.f32 %v18241_v41, %v1068_v61  ;;  %v23732_v43 = vand.u32 4294901760, %v18244_v9  ;;  %v23733_v35 = vand.u32 4294901760, %v18247_v5  ;;  %v23182_v48 = vand.u32 4294901760, %v18286_v7 }
  0xb1   :  { %14694 = vmatpush3.bf16.msra.mxu0 %v18121_v37  ;;  %v1215_v23 = vsub.f32 %v18221_v30, %v23731_v28  ;;  %v23181_v26 = vand.u32 4294901760, %v18289_v3  ;;  %v23734_v46 = vand.u32 4294901760, %v18154_v25  ;;  %v18327_v41 = vpack.c.bf16 %v1116_v17, %v1113_v52 }
  0xb2   :  { %14718 = vmatpush3.bf16.msra.mxu1 %v18179_v16  ;;  %14696 = vmatprep.subr.bf16.mxu0 %v18123_v19  ;;  %v1334_v28 = vsub.f32 %v18244_v9, %v23732_v43  ;;  %v1341_v38 = vsub.f32 %v18247_v5, %v23733_v35  ;;  %v18331_v16 = vpack.c.bf16 %v1202_v2, %v1195_v39  ;;  %v1209_v19 = vand.u32 4294901760, %v1208_v32 }
  0xb3   :  { %14720 = vmatprep.subr.bf16.mxu1 %v18225_v57  ;;  %v18325_v45 = vpack.c.bf16 %v1062_v36, %v23734_v46  ;;  %v23183_v57 = vand.u32 4294901760, %v18295_v20  ;;  %v18333_v43 = vpack.c.bf16 %v1328_v1, %v1321_v56  ;;  %v1216_v35 = vand.u32 4294901760, %v1215_v23 }
  0xb4   :  { %23735 = vst [vmem:[#allocation97_spill] sm:$0xff] %v18331_v16  ;;  %v23737_v25 = vand.u32 4294901760, %v18277_v34  ;;  %v23738_v17 = vand.u32 4294901760, %v18280_v40  ;;  %v23185_v46 = vand.u32 4294901760, %v18309_v13  ;;  %v23184_v39 = vand.u32 4294901760, %v18312_v33 }
  0xb5   :  { %14698 = vmatpush3.bf16.msra.mxu0 %v18167_v18  ;;  %23736 = vst [vmem:[#allocation98_spill] sm:$0xff] %v18333_v43  ;;  %v1335_v56 = vand.u32 4294901760, %v1334_v28  ;;  %v1342_v1 = vand.u32 4294901760, %v1341_v38  ;;  %v1348_v2 = vsub.f32 %v18286_v7, %v23182_v48  ;;  %v1355_v32 = vsub.f32 %v18289_v3, %v23181_v26 }
  0xb6   :  { %14722 = vmatpush3.bf16.msra.mxu1 %v18231_v11  ;;  %14700 = vmatprep.subr.bf16.mxu0 %v18181_v15  ;;  %v1222_v36 = vsub.f32 %v18277_v34, %v23737_v25  ;;  %v1229_v52 = vsub.f32 %v18280_v40, %v23738_v17  ;;  %v1127_v23 = vsub.f32 %v18295_v20, %v23183_v57 }
  0xb7   :  { %14724 = vmatprep.subr.bf16.mxu1 %v18291_v42  ;;  %v18356_v25 = vpack.c.bf16 %v1068_v61, %v1065_v27  ;;  %v18358_v17 = vpack.c.bf16 %v1216_v35, %v1209_v19  ;;  %v18362_v28 = vpack.c.bf16 %v17819_v22, %v17815_v63  ;;  %v1236_v48 = vsub.f32 %v18309_v13, %v23185_v46  ;;  %v23755_v46 = vld [vmem:[#allocation76_spill] sm:$0xff] }
  0xb8   :  { %v1223_v38 = vand.u32 4294901760, %v1222_v36  ;;  %v1230_v26 = vand.u32 4294901760, %v1229_v52  ;;  %v1243_v61 = vsub.f32 %v18312_v33, %v23184_v39  ;;  %v18373_v19 = vpack.c.bf16 %v1342_v1, %v1335_v56 }
  0xb9   :  { %14702 = vmatpush3.bf16.msra.mxu0 %v18325_v45  ;;  %v1349_v27 = vand.u32 4294901760, %v1348_v2  ;;  %v1356_v35 = vand.u32 4294901760, %v1355_v32  ;;  %v1128_v57 = vand.u32 4294901760, %v1127_v23  ;;  %v18378_v36 = vpack.c.bf16 %v17824_v59, %v17822_v55  ;;  %v23745_v23 = vld [vmem:[#allocation80_spill] sm:$0xff] }
  0xba   :  { %14726 = vmatpush3.bf16.msra.mxu1 %v18331_v16  ;;  %14704 = vmatprep.subr.bf16.mxu0 %v18327_v41  ;;  %23739 = vst [vmem:[#allocation99_spill] sm:$0xff] %v18373_v19  ;;  %v18382_v52 = vpack.c.bf16 %v1230_v26, %v1223_v38  ;;  %v18386_v39 = vpack.c.bf16 %v17899_v8, %v17866_v47  ;;  %v1237_v56 = vand.u32 4294901760, %v1236_v48  ;;  %v1244_v1 = vand.u32 4294901760, %v1243_v61  ;;  %v23747_v48 = vld [vmem:[#allocation79_spill] sm:$0xff]  ;;  %v23750_v61 = vld [vmem:[#allocation82_spill] sm:$0xff] }
  0xbb   :  { %14728 = vmatprep.subr.bf16.mxu1 %v18333_v43  ;;  %23740 = vst [vmem:[#allocation100_spill] sm:$0xff] %v18378_v36  ;;  %v18389_v2 = vpack.c.bf16 %v1356_v35, %v1349_v27  ;;  %v18394_v32 = vpack.c.bf16 %v17954_v0, %v17951_v12  ;;  %v18403_v38 = vpack.c.bf16 %v17974_v29, %v23747_v48 }
  0xbc   :  { %23741 = vst [vmem:[#allocation101_spill] sm:$0xff] %v18382_v52  ;;  %23742 = vst [vmem:[#allocation102_spill] sm:$0xff] %v18386_v39  ;;  %v18399_v26 = vpack.c.bf16 %v1244_v1, %v1237_v56  ;;  %v18415_v35 = vpack.c.bf16 %v18062_v21, %v18059_v53  ;;  %v23753_v56 = vld [vmem:[#allocation75_spill] sm:$0xff]  ;;  %v18422_v1 = vpack.c.bf16 %v18073_v50, %v18070_v44 }
  0xbd   :  { %14706 = vmatpush3.bf16.msra.mxu0 %v18356_v25  ;;  %23743 = vst [vmem:[#allocation103_spill] sm:$0xff] %v18389_v2  ;;  %23744 = vst [vmem:[#allocation104_spill] sm:$0xff] %v18394_v32 }
  0xbe   :  { %14730 = vmatpush3.bf16.msra.mxu1 %v18358_v17  ;;  %14740 = vmatprep.subr.bf16.mxu0 %v18362_v28  ;;  %23746 = vst [vmem:[#allocation80_spill] sm:$0xff] %v18399_v26  ;;  %23748 = vst [vmem:[#allocation79_spill] sm:$0xff] %v18403_v38 }
  0xbf   :  { %14732 = vmatprep.subr.bf16.mxu1 %v18373_v19  ;;  %23752 = vst [vmem:[#allocation82_spill] sm:$0xff] %v18415_v35  ;;  %23754 = vst [vmem:[#allocation75_spill] sm:$0xff] %v18422_v1 }
  0xc0   :  { %1129 = vmatmul.mubr.f32.vlgmr.msra.gmra.mrb[6].mxu0 %v1128_v57  ;;  %v23749_v57 = vld [vmem:[#allocation81_spill] sm:$0xff] }
  0xc1   :  { %14742 = vmatpush3.bf16.msra.mxu0 %v18378_v36  ;;  %1496 = vmatprep.mubr.f32.mxu0 %v23745_v23  ;;  %v18409_v27 = vpack.c.bf16 %v23750_v61, %v23749_v57  ;;  %v23770_v36 = vand.u32 4294901760, %v17824_v59  ;;  %v23773_v59 = vand.u32 4294901760, %v17951_v12  ;;  %v23780_v12 = vand.u32 4294901760, %v23749_v57 }
  0xc2   :  { %14734 = vmatpush3.bf16.msra.mxu1 %v18382_v52  ;;  %14744 = vmatprep.subr.bf16.mxu0 %v18386_v39  ;;  %v23768_v52 = vld [vmem:[#allocation89_spill] sm:$0xff]  ;;  %v23786_v57 = vand.u32 4294901760, %v18295_v20 }
  0xc3   :  { %14736 = vmatprep.subr.bf16.mxu1 %v18389_v2  ;;  %23751 = vst [vmem:[#allocation81_spill] sm:$0xff] %v18409_v27  ;;  %v18472_v2 = vpack.c.bf16 %v18312_v33, %v18309_v13 }
  0xc5   :  { %14746 = vmatpush3.bf16.msra.mxu0 %v18394_v32  ;;  %v23758_v32 = vand.u32 4294901760, %v23745_v23  ;;  %v18454_v23 = vpack.c.bf16 %v18247_v5, %v18244_v9 }
  0xc6   :  { %14738 = vmatpush3.bf16.msra.mxu1 %v18399_v26  ;;  %14748 = vmatprep.subr.bf16.mxu0 %v18403_v38  ;;  %v18428_v38 = vpack.c.bf16 %v18125_v51, %v18116_v14  ;;  %v23757_v26 = vld [vmem:[#allocation77_spill] sm:$0xff] }
  0xc7   :  { %14772 = vmatprep.subr.bf16.mxu1 %v23753_v56  ;;  %23762 = vst [vmem:[#allocation107_spill] sm:$0xff] %v18454_v23 }
  0xc8   :  { %23756 = vst [vmem:[#allocation76_spill] sm:$0xff] %v18428_v38 }
  0xc9   :  { %1361 = vmatmul.mubr.f32.vlgmr.msra.gmra.mrb[6].mxu1 %v18257_v54  ;;  %14750 = vmatpush3.bf16.msra.mxu0 %v18409_v27  ;;  %v18436_v27 = vpack.c.bf16 %v18160_v24, %v18157_v60 }
  0xca   :  { %14774 = vmatpush3.bf16.msra.mxu1 %v23755_v46  ;;  %14752 = vmatprep.subr.bf16.mxu0 %v18415_v35  ;;  %v18442_v35 = vpack.c.bf16 %v18173_v6, %v18170_v4 }
  0xcb   :  { %14776 = vmatprep.subr.bf16.mxu1 %v23757_v26  ;;  %1603 = vmatprep.mubr.f32.mxu1 %v23758_v32  ;;  %23759 = vst [vmem:[#allocation77_spill] sm:$0xff] %v18436_v27  ;;  %v18448_v32 = vpack.c.bf16 %v18221_v30, %v18218_v49 }
  0xcc   :  { %23760 = vst [vmem:[#allocation105_spill] sm:$0xff] %v18442_v35 }
  0xcd   :  { %14754 = vmatpush3.bf16.msra.mxu0 %v18422_v1  ;;  %23761 = vst [vmem:[#allocation106_spill] sm:$0xff] %v18448_v32  ;;  %v18466_v1 = vpack.c.bf16 %v18289_v3, %v18286_v7 }
  0xce   :  { %14778 = vmatpush3.bf16.msra.mxu1 %v17980_v62  ;;  %14756 = vmatprep.subr.bf16.mxu0 %v18428_v38  ;;  %v18460_v38 = vpack.c.bf16 %v18280_v40, %v18277_v34 }
  0xcf   :  { %14780 = vmatprep.subr.bf16.mxu1 %v17988_v10 }
  0xd0   :  { %23763 = vst [vmem:[#allocation108_spill] sm:$0xff] %v18460_v38 }
  0xd1   :  { %14758 = vmatpush3.bf16.msra.mxu0 %v18436_v27  ;;  %v23764_v27 = vld [vmem:[#allocation85_spill] sm:$0xff] }
  0xd2   :  { %14782 = vmatpush3.bf16.msra.mxu1 %v18005_v31  ;;  %14760 = vmatprep.subr.bf16.mxu0 %v18442_v35  ;;  %v23765_v35 = vld [vmem:[#allocation87_spill] sm:$0xff] }
  0xd3   :  { %14784 = vmatprep.subr.bf16.mxu1 %v18007_v58 }
  0xd5   :  { %14762 = vmatpush3.bf16.msra.mxu0 %v18448_v32  ;;  %v23766_v32 = vand.u32 4294901760, %v17815_v63  ;;  %v23771_v63 = vand.u32 4294901760, %v17866_v47  ;;  %v23777_v47 = vand.u32 4294901760, %v23747_v48  ;;  %v23783_v48 = vand.u32 4294901760, %v18059_v53 }
  0xd6   :  { %14786 = vmatpush3.bf16.msra.mxu1 %v23764_v27  ;;  %14764 = vmatprep.subr.bf16.mxu0 %v18454_v23  ;;  %v23767_v23 = vand.u32 4294901760, %v17819_v22  ;;  %v23772_v22 = vand.u32 4294901760, %v17899_v8  ;;  %v23778_v8 = vand.u32 4294901760, %v17974_v29  ;;  %v23784_v29 = vand.u32 4294901760, %v18062_v21 }
  0xd7   :  { %14788 = vmatprep.subr.bf16.mxu1 %v23765_v35  ;;  %v23790_v21 = vand.u32 4294901760, %v18116_v14  ;;  %v23791_v53 = vand.u32 4294901760, %v18125_v51  ;;  %v23796_v51 = vand.u32 4294901760, %v18170_v4  ;;  %v23797_v14 = vand.u32 4294901760, %v18173_v6 }
  0xd8   :  { %v18480_v39 = vpack.c.bf16 %v23767_v23, %v23766_v32  ;;  %v18496_v32 = vpack.c.bf16 %v23772_v22, %v23771_v63  ;;  %v1894_v23 = vpop.permute.xlu0 %1893  ;;  %v18514_v63 = vpack.c.bf16 %v23778_v8, %v23777_v47  ;;  %v23788_v47 = vand.u32 4294901760, %v18073_v50 }
  0xd9   :  { %14766 = vmatpush3.bf16.msra.mxu0 %v18460_v38  ;;  %v23769_v38 = vand.u32 4294901760, %v17822_v55  ;;  %v23774_v55 = vand.u32 4294901760, %v17954_v0  ;;  %v23781_v0 = vand.u32 4294901760, %v23750_v61  ;;  %v23787_v61 = vand.u32 4294901760, %v18070_v44 }
  0xda   :  { %14790 = vmatpush3.bf16.msra.mxu1 %v18121_v37  ;;  %14768 = vmatprep.subr.bf16.mxu0 %v18466_v1  ;;  %23779 = vst [vmem:[#allocation87_spill] sm:$0xff] %v18514_v63  ;;  %v23793_v44 = vand.u32 4294901760, %v18157_v60  ;;  %v23794_v50 = vand.u32 4294901760, %v18160_v24  ;;  %v23799_v60 = vand.u32 4294901760, %v18218_v49  ;;  %v23800_v24 = vand.u32 4294901760, %v18221_v30 }
  0xdb   :  { %14792 = vmatprep.subr.bf16.mxu1 %v23768_v52  ;;  %v18488_v19 = vpack.c.bf16 %v23770_v36, %v23769_v38  ;;  %v18505_v36 = vpack.c.bf16 %v23774_v55, %v23773_v59  ;;  %v23776_v38 = vld [vmem:[#allocation78_spill] sm:$0xff]  ;;  %v18522_v22 = vpack.c.bf16 %v23781_v0, %v23780_v12  ;;  %v18530_v59 = vpack.c.bf16 %v23784_v29, %v23783_v48 }
  0xdc   :  { %v18540_v8 = vpack.c.bf16 %v23788_v47, %v23787_v61  ;;  %v18548_v12 = vpack.c.bf16 %v23791_v53, %v23790_v21  ;;  %v18558_v0 = vpack.c.bf16 %v23794_v50, %v23793_v44  ;;  %v23802_v6 = vand.u32 4294901760, %v18244_v9  ;;  %v23817_v44 = vld [vmem:[#allocation12_spill] sm:$0xff]  ;;  %v23818_v50 = vld [vmem:[#allocation13_spill] sm:$0xff] }
  0xdd   :  { %14770 = vmatpush3.bf16.msra.mxu0 %v18472_v2  ;;  %23775 = vst [vmem:[#allocation85_spill] sm:$0xff] %v18505_v36  ;;  %23782 = vst [vmem:[#allocation89_spill] sm:$0xff] %v18522_v22  ;;  %v23803_v4 = vand.u32 4294901760, %v18247_v5  ;;  %v23805_v49 = vand.u32 4294901760, %v18277_v34  ;;  %v23806_v30 = vand.u32 4294901760, %v18280_v40  ;;  %v23808_v9 = vand.u32 4294901760, %v18286_v7 }
  0xde   :  { %14794 = vmatpush3.bf16.msra.mxu1 %v18167_v18  ;;  %14804 = vmatprep.subr.bf16.mxu0 %v18480_v39  ;;  %23785 = vst [vmem:[#allocation78_spill] sm:$0xff] %v18530_v59  ;;  %v1896_v55 = vpop.permute.xlu0 %1895  ;;  %23789 = vst [vmem:[#allocation109_spill] sm:$0xff] %v18540_v8  ;;  %v23809_v5 = vand.u32 4294901760, %v18289_v3  ;;  %v23811_v40 = vand.u32 4294901760, %v18309_v13  ;;  %v23812_v34 = vand.u32 4294901760, %v18312_v33  ;;  %v23814_v7 = vld [vmem:[#allocation9_spill] sm:$0xff]  ;;  %v1886_v13 = vpop.permute.xlu1 %1885 }
  0xdf   :  { %14796 = vmatprep.subr.bf16.mxu1 %v18181_v15  ;;  %23792 = vst [vmem:[#allocation110_spill] sm:$0xff] %v18548_v12  ;;  %23795 = vst [vmem:[#allocation111_spill] sm:$0xff] %v18558_v0  ;;  %v23815_v33 = vld [vmem:[#allocation10_spill] sm:$0xff] }
  0xe0   :  { %1499 = vmatmul.mubr.f32.vlgmr.msra.gmra.mrb[8].mxu0 %v18295_v20  ;;  %v1897_v20 = vsel %vm1889_vm0, %v1894_v23, %v1896_v55  ;;  %v18568_v23 = vpack.c.bf16 %v23797_v14, %v23796_v51  ;;  %v18587_v55 = vpack.c.bf16 %v23803_v4, %v23802_v6  ;;  %v18604_v47 = vpack.c.bf16 %v23809_v5, %v23808_v9  ;;  %v23819_v14 = vld [vmem:[#allocation16_spill] sm:$0xff]  ;;  %v23821_v6 = vld [vmem:[#allocation18_spill] sm:$0xff]  ;;  %v23822_v4 = vld [vmem:[#allocation15_spill] sm:$0xff] }
  0xe1   :  { %14806 = vmatpush3.bf16.msra.mxu0 %v18488_v19  ;;  %1773 = vmatprep.mubr.f32.mxu0 %v23776_v38  ;;  %v18560_v48 = vand.u32 4294901760, %v1897_v20  ;;  %v18612_v21 = vpack.c.bf16 %v23812_v34, %v23811_v40  ;;  %v23824_v9 = vld [vmem:[#allocation17_spill] sm:$0xff]  ;;  %v23825_v5 = vld [vmem:[#allocation22_spill] sm:$0xff]  ;;  %v23826_v40 = vld [vmem:[#allocation20_spill] sm:$0xff] }
  0xe2   :  { %14798 = vmatpush3.bf16.msra.mxu1 %v18325_v45  ;;  %14808 = vmatprep.subr.bf16.mxu0 %v18496_v32  ;;  %23798 = vst [vmem:[#allocation112_spill] sm:$0xff] %v18568_v23  ;;  %23804 = vst [vmem:[#allocation114_spill] sm:$0xff] %v18587_v55  ;;  %v1888_v51 = vpop.permute.xlu1 %1887 }
  0xe3   :  { %14800 = vmatprep.subr.bf16.mxu1 %v18327_v41  ;;  %v18579_v29 = vsub.f32 %v1897_v20, %v18560_v48  ;;  %23810 = vst [vmem:[#allocation116_spill] sm:$0xff] %v18604_v47  ;;  %23813 = vst [vmem:[#allocation117_spill] sm:$0xff] %v18612_v21  ;;  %v23816_v20 = vld [vmem:[#allocation11_spill] sm:$0xff] }
  0xe5   :  { %14810 = vmatpush3.bf16.msra.mxu0 %v18505_v36  ;;  %v23220_v61 = vand.u32 4294901760, %v18579_v29 }
  0xe6   :  { %14802 = vmatpush3.bf16.msra.mxu1 %v18356_v25  ;;  %14812 = vmatprep.subr.bf16.mxu0 %v18514_v63 }
  0xe7   :  { %14836 = vmatprep.subr.bf16.mxu1 %v23753_v56  ;;  %v2012_v53 = vsub.f32 %v18579_v29, %v23220_v61 }
  0xe9   :  { %1607 = vmatmul.mubr.f32.vlgmr.msra.gmra.mrb[8].mxu1 %v23786_v57  ;;  %14814 = vmatpush3.bf16.msra.mxu0 %v18522_v22  ;;  %v18595_v57 = vpack.c.bf16 %v23806_v30, %v23805_v49  ;;  %v2013_v3 = vand.u32 4294901760, %v2012_v53  ;;  %v23823_v49 = vld [vmem:[#allocation19_spill] sm:$0xff]  ;;  %v23828_v53 = vld [vmem:[#allocation21_spill] sm:$0xff] }
  0xea   :  { %14838 = vmatpush3.bf16.msra.mxu1 %v23755_v46  ;;  %14816 = vmatprep.subr.bf16.mxu0 %v18530_v59 }
  0xeb   :  { %14840 = vmatprep.subr.bf16.mxu1 %v23757_v26  ;;  %1877 = vmatprep.mubr.f32.mxu1 %v23776_v38  ;;  %v18576_v38 = vpack.c.bf16 %v23800_v24, %v23799_v60  ;;  %23807 = vst [vmem:[#allocation115_spill] sm:$0xff] %v18595_v57  ;;  %v23820_v60 = vld [vmem:[#allocation14_spill] sm:$0xff]  ;;  %v1890_v24 = vsel %vm1889_vm0, %v1886_v13, %v1888_v51  ;;  %v23830_v13 = vld [vmem:[#allocation23_spill] sm:$0xff]  ;;  %v23831_v51 = vld [vmem:[#allocation28_spill] sm:$0xff] }
  0xec   :  { %v18640_v30 = vand.u32 4294901760, %v1890_v24 }
  0xed   :  { %14818 = vmatpush3.bf16.msra.mxu0 %v18540_v8  ;;  %23801 = vst [vmem:[#allocation113_spill] sm:$0xff] %v18576_v38 }
  0xee   :  { %14842 = vmatpush3.bf16.msra.mxu1 %v17980_v62  ;;  %14820 = vmatprep.subr.bf16.mxu0 %v18548_v12  ;;  %v18647_v34 = vsub.f32 %v1890_v24, %v18640_v30 }
  0xef   :  { %14844 = vmatprep.subr.bf16.mxu1 %v17988_v10 }
  0xf0   :  { %v23231_v61 = vand.u32 4294901760, %v18647_v34 }
  0xf1   :  { %14822 = vmatpush3.bf16.msra.mxu0 %v18558_v0 }
  0xf2   :  { %14846 = vmatpush3.bf16.msra.mxu1 %v18005_v31  ;;  %14824 = vmatprep.subr.bf16.mxu0 %v18568_v23  ;;  %v2018_v24 = vsub.f32 %v18647_v34, %v23231_v61  ;;  %v23845_v61 = vld [vmem:[#allocation42_spill] sm:$0xff]  ;;  %v23847_v23 = vld [vmem:[#allocation44_spill] sm:$0xff] }
  0xf3   :  { %14848 = vmatprep.subr.bf16.mxu1 %v18007_v58 }
  0xf5   :  { %14826 = vmatpush3.bf16.msra.mxu0 %v18576_v38  ;;  %v23844_v38 = vld [vmem:[#allocation41_spill] sm:$0xff] }
  0xf6   :  { %14850 = vmatpush3.bf16.msra.mxu1 %v23764_v27  ;;  %14828 = vmatprep.subr.bf16.mxu0 %v18587_v55  ;;  %v23842_v55 = vld [vmem:[#allocation35_spill] sm:$0xff] }
  0xf7   :  { %14852 = vmatprep.subr.bf16.mxu1 %v23765_v35 }
  0xf9   :  { %14830 = vmatpush3.bf16.msra.mxu0 %v18595_v57  ;;  %v23840_v57 = vld [vmem:[#allocation33_spill] sm:$0xff] }
  0xfa   :  { %14854 = vmatpush3.bf16.msra.mxu1 %v18121_v37  ;;  %14832 = vmatprep.subr.bf16.mxu0 %v18604_v47  ;;  %v2019_v47 = vand.u32 4294901760, %v2018_v24  ;;  %v23848_v24 = vld [vmem:[#allocation45_spill] sm:$0xff] }
  0xfb   :  { %14856 = vmatprep.subr.bf16.mxu1 %v23768_v52 }
  0xfd   :  { %14834 = vmatpush3.bf16.msra.mxu0 %v18612_v21  ;;  %v23838_v21 = vld [vmem:[#allocation31_spill] sm:$0xff] }
  0xfe   :  { %14858 = vmatpush3.bf16.msra.mxu1 %v18167_v18  ;;  %14868 = vmatprep.subr.bf16.mxu0 %v23814_v7 }
  0xff   :  { %14860 = vmatprep.subr.bf16.mxu1 %v18181_v15 }
 0x100   :  { %1775 = vmatmul.mubr.f32.vlgmr.msra.gmra.mrb[10].mxu0 %v18257_v54 }
 0x101   :  { %14870 = vmatpush3.bf16.msra.mxu0 %v23815_v33  ;;  %2014 = vmatprep.mubr.f32.mxu0 %v2013_v3  ;;  %v23829_v3 = vld [vmem:[#allocation26_spill] sm:$0xff] }
 0x102   :  { %14862 = vmatpush3.bf16.msra.mxu1 %v18325_v45  ;;  %14872 = vmatprep.subr.bf16.mxu0 %v23816_v20 }
 0x103   :  { %14864 = vmatprep.subr.bf16.mxu1 %v18327_v41 }
 0x105   :  { %14874 = vmatpush3.bf16.msra.mxu0 %v23817_v44 }
 0x106   :  { %14866 = vmatpush3.bf16.msra.mxu1 %v18356_v25  ;;  %14876 = vmatprep.subr.bf16.mxu0 %v23818_v50 }
 0x107   :  { %14900 = vmatprep.subr.bf16.mxu1 %v23819_v14  ;;  %v23836_v14 = vld [vmem:[#allocation29_spill] sm:$0xff] }
 0x109   :  { %1879 = vmatmul.mubr.f32.vlgmr.msra.gmra.mrb[10].mxu1 %v18257_v54  ;;  %14878 = vmatpush3.bf16.msra.mxu0 %v23820_v60  ;;  %v23827_v54 = vld [vmem:[#allocation24_spill] sm:$0xff] }
 0x10a   :  { %14902 = vmatpush3.bf16.msra.mxu1 %v23821_v6  ;;  %14880 = vmatprep.subr.bf16.mxu0 %v23822_v4  ;;  %v23834_v6 = vld [vmem:[#allocation27_spill] sm:$0xff] }
 0x10b   :  { %14904 = vmatprep.subr.bf16.mxu1 %v23823_v49  ;;  %2250 = vmatprep.mubr.f32.mxu1 %v18560_v48  ;;  %v23832_v49 = vld [vmem:[#allocation25_spill] sm:$0xff] }
 0x10d   :  { %14882 = vmatpush3.bf16.msra.mxu0 %v23824_v9 }
 0x10e   :  { %14906 = vmatpush3.bf16.msra.mxu1 %v23825_v5  ;;  %14884 = vmatprep.subr.bf16.mxu0 %v23826_v40  ;;  %v23833_v5 = vld [vmem:[#allocation30_spill] sm:$0xff] }
 0x10f   :  { %14908 = vmatprep.subr.bf16.mxu1 %v23827_v54  ;;  %v23835_v54 = vld [vmem:[#allocation32_spill] sm:$0xff] }
 0x111   :  { %14886 = vmatpush3.bf16.msra.mxu0 %v23828_v53 }
 0x112   :  { %14910 = vmatpush3.bf16.msra.mxu1 %v23829_v3  ;;  %14888 = vmatprep.subr.bf16.mxu0 %v23830_v13  ;;  %v23837_v3 = vld [vmem:[#allocation34_spill] sm:$0xff] }
 0x113   :  { %14912 = vmatprep.subr.bf16.mxu1 %v23831_v51  ;;  %v23839_v51 = vld [vmem:[#allocation36_spill] sm:$0xff] }
 0x115   :  { %14890 = vmatpush3.bf16.msra.mxu0 %v23832_v49 }
 0x116   :  { %14914 = vmatpush3.bf16.msra.mxu1 %v23833_v5  ;;  %14892 = vmatprep.subr.bf16.mxu0 %v23834_v6  ;;  %v23841_v5 = vld [vmem:[#allocation39_spill] sm:$0xff] }
 0x117   :  { %14916 = vmatprep.subr.bf16.mxu1 %v23835_v54  ;;  %v23843_v54 = vld [vmem:[#allocation40_spill] sm:$0xff] }
 0x119   :  { %14894 = vmatpush3.bf16.msra.mxu0 %v23836_v14 }
 0x11a   :  { %14918 = vmatpush3.bf16.msra.mxu1 %v23837_v3  ;;  %14896 = vmatprep.subr.bf16.mxu0 %v23838_v21  ;;  %v23846_v3 = vld [vmem:[#allocation43_spill] sm:$0xff] }
 0x11b   :  { %14920 = vmatprep.subr.bf16.mxu1 %v23839_v51  ;;  %v23849_v51 = vld [vmem:[#allocation51_spill] sm:$0xff] }
 0x11d   :  { %14898 = vmatpush3.bf16.msra.mxu0 %v23840_v57 }
 0x11e   :  { %14922 = vmatpush3.bf16.msra.mxu1 %v23841_v5  ;;  %14932 = vmatprep.subr.bf16.mxu0 %v23842_v55  ;;  %v23850_v5 = vld [vmem:[#allocation46_spill] sm:$0xff] }
 0x11f   :  { %14924 = vmatprep.subr.bf16.mxu1 %v23843_v54  ;;  %v23862_v54 = vld [vmem:[#allocation72_spill] sm:$0xff]  ;;  %v23879_v55 = vld [vmem:[#allocation74_spill] sm:$0xff] }
 0x120   :  { %2020 = vmatmul.mubr.f32.vlgmr.msra.gmra.mrb[12].mxu0 %v2019_v47  ;;  %v23851_v47 = vld [vmem:[#allocation47_spill] sm:$0xff] }
 0x121   :  { %14934 = vmatpush3.bf16.msra.mxu0 %v23844_v38  ;;  %2387 = vmatprep.mubr.f32.mxu0 %v18579_v29 }
 0x122   :  { %14926 = vmatpush3.bf16.msra.mxu1 %v23845_v61  ;;  %14936 = vmatprep.subr.bf16.mxu0 %v23846_v3  ;;  %v23852_v61 = vand.u32 4294901760, %v18579_v29  ;;  %v23853_v3 = vld [vmem:[#allocation48_spill] sm:$0xff] }
 0x123   :  { %14928 = vmatprep.subr.bf16.mxu1 %v23847_v23 }
 0x125   :  { %14938 = vmatpush3.bf16.msra.mxu0 %v23848_v24  ;;  %v23854_v24 = vld [vmem:[#allocation63_spill] sm:$0xff] }
 0x126   :  { %14930 = vmatpush3.bf16.msra.mxu1 %v23849_v51  ;;  %14940 = vmatprep.subr.bf16.mxu0 %v23850_v5  ;;  %v23855_v5 = vld [vmem:[#allocation64_spill] sm:$0xff]  ;;  %v23856_v51 = vld [vmem:[#allocation66_spill] sm:$0xff] }
 0x127   :  { %14964 = vmatprep.subr.bf16.mxu1 %v23814_v7 }
 0x129   :  { %2252 = vmatmul.mubr.f32.vlgmr.msra.gmra.mrb[12].mxu1 %v18640_v30  ;;  %14942 = vmatpush3.bf16.msra.mxu0 %v23851_v47  ;;  %v23857_v47 = vld [vmem:[#allocation67_spill] sm:$0xff] }
 0x12a   :  { %14966 = vmatpush3.bf16.msra.mxu1 %v23815_v33  ;;  %2494 = vmatprep.mubr.f32.mxu1 %v23852_v61 }
 0x12b   :  { %14944 = vmatprep.subr.bf16.mxu0 %v23853_v3  ;;  %14968 = vmatprep.subr.bf16.mxu1 %v23816_v20  ;;  %v23858_v3 = vld [vmem:[#allocation68_spill] sm:$0xff] }
 0x12d   :  { %14946 = vmatpush3.bf16.msra.mxu0 %v23854_v24  ;;  %v23859_v24 = vld [vmem:[#allocation69_spill] sm:$0xff] }
 0x12e   :  { %14970 = vmatpush3.bf16.msra.mxu1 %v23817_v44  ;;  %14948 = vmatprep.subr.bf16.mxu0 %v23855_v5  ;;  %v23860_v5 = vld [vmem:[#allocation70_spill] sm:$0xff] }
 0x12f   :  { %14972 = vmatprep.subr.bf16.mxu1 %v23818_v50 }
 0x130   :  { %v11935_v29 = vpop.f32.mrb[0].mxu0 }
 0x131   :  { %14950 = vmatpush3.bf16.msra.mxu0 %v23856_v51  ;;  %v11936_v61 = vpop.f32.mrb[1].mxu0  ;;  %v23861_v51 = vld [vmem:[#allocation71_spill] sm:$0xff] }
 0x132   :  { %14974 = vmatpush3.bf16.msra.mxu1 %v23820_v60  ;;  %14952 = vmatprep.subr.bf16.mxu0 %v23857_v47  ;;  %v11937_v23 = vadd.f32 %v11936_v61, %v11935_v29  ;;  %v23863_v29 = vld [vmem:[#allocation49_spill] sm:$0xff] }
 0x133   :  { %14976 = vmatprep.subr.bf16.mxu1 %v23822_v4 }
 0x135   :  { %14954 = vmatpush3.bf16.msra.mxu0 %v23858_v3 }
 0x136   :  { %14978 = vmatpush3.bf16.msra.mxu1 %v23824_v9  ;;  %14956 = vmatprep.subr.bf16.mxu0 %v23859_v24  ;;  %v23876_v24 = vld [vmem:[#allocation38_spill] sm:$0xff] }
 0x137   :  { %14980 = vmatprep.subr.bf16.mxu1 %v23826_v40 }
 0x139   :  { %14958 = vmatpush3.bf16.msra.mxu0 %v23860_v5  ;;  %v23864_v5 = vld [vmem:[#allocation50_spill] sm:$0xff] }
 0x13a   :  { %14982 = vmatpush3.bf16.msra.mxu1 %v23828_v53  ;;  %14960 = vmatprep.subr.bf16.mxu0 %v23861_v51  ;;  %v23865_v51 = vld [vmem:[#allocation52_spill] sm:$0xff] }
 0x13b   :  { %14984 = vmatprep.subr.bf16.mxu1 %v23830_v13  ;;  %v11970_v47 = vpop.f32.mrb[0].mxu1 }
 0x13c   :  { %v11971_v38 = vpop.f32.mrb[1].mxu1 }
 0x13d   :  { %14962 = vmatpush3.bf16.msra.mxu0 %v23862_v54  ;;  %v11972_v3 = vadd.f32 %v11971_v38, %v11970_v47  ;;  %v23866_v38 = vld [vmem:[#allocation53_spill] sm:$0xff]  ;;  %v23867_v47 = vld [vmem:[#allocation54_spill] sm:$0xff] }
 0x13e   :  { %14986 = vmatpush3.bf16.msra.mxu1 %v23832_v49  ;;  %14996 = vmatprep.subr.bf16.mxu0 %v23863_v29  ;;  %v1908_v29 = vpop.permute.xlu0 %1907 }
 0x13f   :  { %14988 = vmatprep.subr.bf16.mxu1 %v23834_v6  ;;  %v501_v61 = vadd.f32 %v11972_v3, %v11937_v23  ;;  %v23868_v23 = vand.u32 4294901760, %v18647_v34  ;;  %v23869_v3 = vld [vmem:[#allocation55_spill] sm:$0xff] }
 0x140   :  { %2390 = vmatmul.mubr.f32.vlgmr.msra.gmra.mrb[14].mxu0 %v18647_v34  ;;  %v23872_v34 = vld [vmem:[#allocation58_spill] sm:$0xff] }
 0x141   :  { %14998 = vmatpush3.bf16.msra.mxu0 %v23864_v5  ;;  %2664 = vmatprep.mubr.f32.mxu0 %v18560_v48  ;;  %v1910_v5 = vpop.permute.xlu1 %1909 }
 0x142   :  { %14990 = vmatpush3.bf16.msra.mxu1 %v23836_v14  ;;  %15000 = vmatprep.subr.bf16.mxu0 %v23865_v51  ;;  %v1911_v51 = vsel %vm1889_vm0, %v1908_v29, %v1910_v5  ;;  %v23874_v5 = vld [vmem:[#allocation60_spill] sm:$0xff] }
 0x143   :  { %14992 = vmatprep.subr.bf16.mxu1 %v23838_v21  ;;  %v18724_v54 = vand.u32 4294901760, %v1911_v51 }
 0x145   :  { %15002 = vmatpush3.bf16.msra.mxu0 %v23866_v38  ;;  %v23870_v38 = vld [vmem:[#allocation56_spill] sm:$0xff] }
 0x146   :  { %14994 = vmatpush3.bf16.msra.mxu1 %v23840_v57  ;;  %15004 = vmatprep.subr.bf16.mxu0 %v23867_v47  ;;  %v23871_v47 = vld [vmem:[#allocation57_spill] sm:$0xff] }
 0x147   :  { %15028 = vmatprep.subr.bf16.mxu1 %v23814_v7 }
 0x149   :  { %2498 = vmatmul.mubr.f32.vlgmr.msra.gmra.mrb[14].mxu1 %v23868_v23  ;;  %15006 = vmatpush3.bf16.msra.mxu0 %v23869_v3  ;;  %v23873_v23 = vld [vmem:[#allocation59_spill] sm:$0xff]  ;;  %v23875_v3 = vld [vmem:[#allocation61_spill] sm:$0xff] }
 0x14a   :  { %15030 = vmatpush3.bf16.msra.mxu1 %v23815_v33  ;;  %2768 = vmatprep.mubr.f32.mxu1 %v18560_v48  ;;  %v18731_v48 = vsub.f32 %v1911_v51, %v18724_v54  ;;  %v23877_v51 = vld [vmem:[#allocation37_spill] sm:$0xff] }
 0x14b   :  { %15008 = vmatprep.subr.bf16.mxu0 %v23870_v38  ;;  %15032 = vmatprep.subr.bf16.mxu1 %v23816_v20 }
 0x14d   :  { %15010 = vmatpush3.bf16.msra.mxu0 %v23871_v47 }
 0x14e   :  { %15034 = vmatpush3.bf16.msra.mxu1 %v23817_v44  ;;  %15012 = vmatprep.subr.bf16.mxu0 %v23872_v34  ;;  %v23234_v34 = vand.u32 4294901760, %v18731_v48 }
 0x14f   :  { %15036 = vmatprep.subr.bf16.mxu1 %v23818_v50 }
 0x151   :  { %15014 = vmatpush3.bf16.msra.mxu0 %v23873_v23 }
 0x152   :  { %15038 = vmatpush3.bf16.msra.mxu1 %v23820_v60  ;;  %15016 = vmatprep.subr.bf16.mxu0 %v23874_v5  ;;  %v2874_v5 = vsub.f32 %v18731_v48, %v23234_v34 }
 0x153   :  { %v12005_v29 = vpop.f32.mrb[2].mxu0  ;;  %15040 = vmatprep.subr.bf16.mxu1 %v23822_v4 }
 0x154   :  { %v12006_v47 = vpop.f32.mrb[3].mxu0 }
 0x155   :  { %v12007_v38 = vadd.f32 %v12006_v47, %v12005_v29  ;;  %15018 = vmatpush3.bf16.msra.mxu0 %v23875_v3  ;;  %v23878_v47 = vld [vmem:[#allocation73_spill] sm:$0xff] }
 0x156   :  { %15042 = vmatpush3.bf16.msra.mxu1 %v23824_v9  ;;  %15020 = vmatprep.subr.bf16.mxu0 %v23876_v24  ;;  %v2875_v24 = vand.u32 4294901760, %v2874_v5  ;;  %v1901_v5 = vpop.permute.xlu0 %1900 }
 0x157   :  { %v639_v23 = vadd.f32 %v12007_v38, %v501_v61  ;;  %15044 = vmatprep.subr.bf16.mxu1 %v23826_v40 }
 0x159   :  { %15022 = vmatpush3.bf16.msra.mxu0 %v23877_v51 }
 0x15a   :  { %15046 = vmatpush3.bf16.msra.mxu1 %v23828_v53  ;;  %15024 = vmatprep.subr.bf16.mxu0 %v23878_v47 }
 0x15b   :  { %15048 = vmatprep.subr.bf16.mxu1 %v23830_v13 }
 0x15c   :  { %v12040_v29 = vpop.f32.mrb[2].mxu1 }
 0x15d   :  { %v12041_v3 = vpop.f32.mrb[3].mxu1  ;;  %15026 = vmatpush3.bf16.msra.mxu0 %v23879_v55  ;;  %v23883_v55 = vld [vmem:[#allocation88_spill] sm:$0xff] }
 0x15e   :  { %v12042_v61 = vadd.f32 %v12041_v3, %v12040_v29  ;;  %15050 = vmatpush3.bf16.msra.mxu1 %v23832_v49  ;;  %15060 = vmatprep.subr.bf16.mxu0 %v23753_v56  ;;  %v1903_v3 = vpop.permute.xlu1 %1902  ;;  %v23881_v29 = vld [vmem:[#allocation84_spill] sm:$0xff] }
 0x15f   :  { %15052 = vmatprep.subr.bf16.mxu1 %v23834_v6 }
 0x160   :  { %v747_v38 = vadd.f32 %v12042_v61, %v639_v23  ;;  %2666 = vmatmul.mubr.f32.vlgmr.msra.gmra.mrb[16].mxu0 %v18640_v30  ;;  %v23880_v23 = vld [vmem:[#allocation83_spill] sm:$0xff]  ;;  %v23882_v61 = vld [vmem:[#allocation86_spill] sm:$0xff] }
 0x161   :  { %15062 = vmatpush3.bf16.msra.mxu0 %v23755_v46  ;;  %2876 = vmatprep.mubr.f32.mxu0 %v2875_v24  ;;  %v1904_v24 = vsel %vm1889_vm0, %v1901_v5, %v1903_v3  ;;  %v23885_v5 = vld [vmem:[#allocation92_spill] sm:$0xff] }
 0x162   :  { %15054 = vmatpush3.bf16.msra.mxu1 %v23836_v14  ;;  %15064 = vmatprep.subr.bf16.mxu0 %v23757_v26  ;;  %v18768_v34 = vand.u32 4294901760, %v1904_v24 }
 0x163   :  { %15056 = vmatprep.subr.bf16.mxu1 %v23838_v21 }
 0x164   :  { %v18775_v3 = vsub.f32 %v1904_v24, %v18768_v34 }
 0x165   :  { %15066 = vmatpush3.bf16.msra.mxu0 %v17980_v62 }
 0x166   :  { %15058 = vmatpush3.bf16.msra.mxu1 %v23840_v57  ;;  %15068 = vmatprep.subr.bf16.mxu0 %v17988_v10 }
 0x167   :  { %15092 = vmatprep.subr.bf16.mxu1 %v23880_v23  ;;  %v23236_v23 = vand.u32 4294901760, %v18775_v3 }
 0x169   :  { %2770 = vmatmul.mubr.f32.vlgmr.msra.gmra.mrb[16].mxu1 %v18640_v30  ;;  %15070 = vmatpush3.bf16.msra.mxu0 %v18005_v31  ;;  %v23884_v30 = vld [vmem:[#allocation90_spill] sm:$0xff] }
 0x16a   :  { %15094 = vmatpush3.bf16.msra.mxu1 %v23881_v29  ;;  %15072 = vmatprep.subr.bf16.mxu0 %v18007_v58  ;;  %v23886_v29 = vld [vmem:[#allocation94_spill] sm:$0xff] }
 0x16b   :  { %15096 = vmatprep.subr.bf16.mxu1 %v23882_v61  ;;  %3112 = vmatprep.mubr.f32.mxu1 %v18724_v54 }
 0x16d   :  { %15074 = vmatpush3.bf16.msra.mxu0 %v23764_v27 }
 0x16e   :  { %15098 = vmatpush3.bf16.msra.mxu1 %v23883_v55  ;;  %15076 = vmatprep.subr.bf16.mxu0 %v23765_v35 }
 0x16f   :  { %15100 = vmatprep.subr.bf16.mxu1 %v23884_v30 }
 0x171   :  { %15078 = vmatpush3.bf16.msra.mxu0 %v18121_v37 }
 0x172   :  { %15102 = vmatpush3.bf16.msra.mxu1 %v23885_v5  ;;  %15080 = vmatprep.subr.bf16.mxu0 %v23768_v52  ;;  %v2880_v5 = vsub.f32 %v18775_v3, %v23236_v23 }
 0x173   :  { %v12075_v61 = vpop.f32.mrb[4].mxu0  ;;  %15104 = vmatprep.subr.bf16.mxu1 %v23886_v29  ;;  %v23892_v29 = vld [vmem:[#allocation104_spill] sm:$0xff] }
 0x174   :  { %v12076_v47 = vpop.f32.mrb[5].mxu0 }
 0x175   :  { %v12077_v55 = vadd.f32 %v12076_v47, %v12075_v61  ;;  %15082 = vmatpush3.bf16.msra.mxu0 %v18167_v18  ;;  %v2881_v61 = vand.u32 4294901760, %v2880_v5  ;;  %v23891_v5 = vld [vmem:[#allocation103_spill] sm:$0xff] }
 0x176   :  { %15106 = vmatpush3.bf16.msra.mxu1 %v18231_v11  ;;  %15084 = vmatprep.subr.bf16.mxu0 %v18181_v15 }
 0x177   :  { %v915_v24 = vadd.f32 %v12077_v55, %v747_v38  ;;  %15108 = vmatprep.subr.bf16.mxu1 %v18291_v42  ;;  %v23887_v38 = vld [vmem:[#allocation99_spill] sm:$0xff]  ;;  %v23888_v42 = vld [vmem:[#allocation100_spill] sm:$0xff] }
 0x179   :  { %15086 = vmatpush3.bf16.msra.mxu0 %v18325_v45 }
 0x17a   :  { %15110 = vmatpush3.bf16.msra.mxu1 %v18331_v16  ;;  %15088 = vmatprep.subr.bf16.mxu0 %v18327_v41  ;;  %v23889_v16 = vld [vmem:[#allocation101_spill] sm:$0xff] }
 0x17b   :  { %15112 = vmatprep.subr.bf16.mxu1 %v18333_v43  ;;  %v23890_v43 = vld [vmem:[#allocation102_spill] sm:$0xff] }
 0x17c   :  { %v12110_v47 = vpop.f32.mrb[4].mxu1 }
 0x17d   :  { %v12111_v11 = vpop.f32.mrb[5].mxu1  ;;  %15090 = vmatpush3.bf16.msra.mxu0 %v18356_v25 }
 0x17e   :  { %v12112_v55 = vadd.f32 %v12111_v11, %v12110_v47  ;;  %15114 = vmatpush3.bf16.msra.mxu1 %v18358_v17  ;;  %15124 = vmatprep.subr.bf16.mxu0 %v18362_v28  ;;  %v23893_v11 = vld [vmem:[#allocation80_spill] sm:$0xff]  ;;  %v23894_v47 = vld [vmem:[#allocation79_spill] sm:$0xff] }
 0x17f   :  { %15116 = vmatprep.subr.bf16.mxu1 %v23887_v38 }
 0x180   :  { %v1019_v23 = vadd.f32 %v12112_v55, %v915_v24  ;;  %2882 = vmatmul.mubr.f32.vlgmr.msra.gmra.mrb[18].mxu0 %v2881_v61  ;;  %v23895_v24 = vld [vmem:[#allocation81_spill] sm:$0xff]  ;;  %v23896_v61 = vand.u32 4294901760, %v18731_v48  ;;  %v23897_v55 = vld [vmem:[#allocation82_spill] sm:$0xff] }
 0x181   :  { %15126 = vmatpush3.bf16.msra.mxu0 %v23888_v42  ;;  %3249 = vmatprep.mubr.f32.mxu0 %v18731_v48 }
 0x182   :  { %15118 = vmatpush3.bf16.msra.mxu1 %v23889_v16  ;;  %15128 = vmatprep.subr.bf16.mxu0 %v23890_v43  ;;  %v23904_v43 = vld [vmem:[#allocation108_spill] sm:$0xff] }
 0x183   :  { %15120 = vmatprep.subr.bf16.mxu1 %v23891_v5  ;;  %v23902_v5 = vld [vmem:[#allocation106_spill] sm:$0xff] }
 0x185   :  { %15130 = vmatpush3.bf16.msra.mxu0 %v23892_v29  ;;  %v23898_v29 = vld [vmem:[#allocation75_spill] sm:$0xff] }
 0x186   :  { %15122 = vmatpush3.bf16.msra.mxu1 %v23893_v11  ;;  %15132 = vmatprep.subr.bf16.mxu0 %v23894_v47  ;;  %v23899_v47 = vld [vmem:[#allocation76_spill] sm:$0xff]  ;;  %v23900_v11 = vld [vmem:[#allocation77_spill] sm:$0xff] }
 0x187   :  { %15156 = vmatprep.subr.bf16.mxu1 %v23753_v56 }
 0x189   :  { %3114 = vmatmul.mubr.f32.vlgmr.msra.gmra.mrb[18].mxu1 %v18768_v34  ;;  %15134 = vmatpush3.bf16.msra.mxu0 %v23895_v24  ;;  %v23901_v24 = vld [vmem:[#allocation105_spill] sm:$0xff] }
 0x18a   :  { %15158 = vmatpush3.bf16.msra.mxu1 %v23755_v46  ;;  %3356 = vmatprep.mubr.f32.mxu1 %v23896_v61 }
 0x18b   :  { %15136 = vmatprep.subr.bf16.mxu0 %v23897_v55  ;;  %15160 = vmatprep.subr.bf16.mxu1 %v23757_v26 }
 0x18d   :  { %15138 = vmatpush3.bf16.msra.mxu0 %v23898_v29  ;;  %v23903_v29 = vld [vmem:[#allocation107_spill] sm:$0xff] }
 0x18e   :  { %15162 = vmatpush3.bf16.msra.mxu1 %v17980_v62  ;;  %15140 = vmatprep.subr.bf16.mxu0 %v23899_v47 }
 0x18f   :  { %15164 = vmatprep.subr.bf16.mxu1 %v17988_v10 }
 0x191   :  { %15142 = vmatpush3.bf16.msra.mxu0 %v23900_v11 }
 0x192   :  { %15166 = vmatpush3.bf16.msra.mxu1 %v18005_v31  ;;  %15144 = vmatprep.subr.bf16.mxu0 %v23901_v24 }
 0x193   :  { %v12145_v48 = vpop.f32.mrb[6].mxu0  ;;  %15168 = vmatprep.subr.bf16.mxu1 %v18007_v58 }
 0x194   :  { %v12146_v61 = vpop.f32.mrb[7].mxu0 }
 0x195   :  { %v12147_v55 = vadd.f32 %v12146_v61, %v12145_v48  ;;  %15146 = vmatpush3.bf16.msra.mxu0 %v23902_v5 }
 0x196   :  { %15170 = vmatpush3.bf16.msra.mxu1 %v23764_v27  ;;  %15148 = vmatprep.subr.bf16.mxu0 %v23903_v29 }
 0x197   :  { %v1131_v47 = vadd.f32 %v12147_v55, %v1019_v23  ;;  %15172 = vmatprep.subr.bf16.mxu1 %v23765_v35 }
 0x199   :  { %15150 = vmatpush3.bf16.msra.mxu0 %v23904_v43 }
 0x19a   :  { %15174 = vmatpush3.bf16.msra.mxu1 %v18121_v37  ;;  %15152 = vmatprep.subr.bf16.mxu0 %v18466_v1 }
 0x19b   :  { %15176 = vmatprep.subr.bf16.mxu1 %v23768_v52 }
 0x19c   :  { %v12180_v24 = vpop.f32.mrb[6].mxu1 }
 0x19d   :  { %v12181_v11 = vpop.f32.mrb[7].mxu1  ;;  %15154 = vmatpush3.bf16.msra.mxu0 %v18472_v2 }
 0x19e   :  { %v12182_v48 = vadd.f32 %v12181_v11, %v12180_v24  ;;  %15178 = vmatpush3.bf16.msra.mxu1 %v18167_v18  ;;  %15188 = vmatprep.subr.bf16.mxu0 %v18480_v39  ;;  %v23905_v11 = vand.u32 4294901760, %v18775_v3 }
 0x19f   :  { %15180 = vmatprep.subr.bf16.mxu1 %v18181_v15 }
 0x1a0   :  { %v1363_v23 = vadd.f32 %v12182_v48, %v1131_v47  ;;  %3252 = vmatmul.mubr.f32.vlgmr.msra.gmra.mrb[20].mxu0 %v18775_v3  ;;  %v23906_v47 = vld [vmem:[#allocation62_spill] sm:$0xff] }
 0x1a1   :  { %15190 = vmatpush3.bf16.msra.mxu0 %v18488_v19  ;;  %3526 = vmatprep.mubr.f32.mxu0 %v18724_v54  ;;  %v18851_v24 = vand.u32 4294901760, %v23906_v47 }
 0x1a2   :  { %15182 = vmatpush3.bf16.msra.mxu1 %v18325_v45  ;;  %15192 = vmatprep.subr.bf16.mxu0 %v18496_v32 }
 0x1a3   :  { %15184 = vmatprep.subr.bf16.mxu1 %v18327_v41  ;;  %v18859_v3 = vsub.f32 %v23906_v47, %v18851_v24 }
 0x1a5   :  { %15194 = vmatpush3.bf16.msra.mxu0 %v18505_v36  ;;  %v23931_v36 = vld [vmem:[#allocation44_spill] sm:$0xff] }
 0x1a6   :  { %15186 = vmatpush3.bf16.msra.mxu1 %v18356_v25  ;;  %15196 = vmatprep.subr.bf16.mxu0 %v18514_v63  ;;  %v23927_v63 = vld [vmem:[#allocation40_spill] sm:$0xff] }
 0x1a7   :  { %15220 = vmatprep.subr.bf16.mxu1 %v23753_v56 }
 0x1a9   :  { %3360 = vmatmul.mubr.f32.vlgmr.msra.gmra.mrb[20].mxu1 %v23905_v11  ;;  %15198 = vmatpush3.bf16.msra.mxu0 %v18522_v22  ;;  %v23908_v11 = vld [vmem:[#allocation113_spill] sm:$0xff] }
 0x1aa   :  { %15222 = vmatpush3.bf16.msra.mxu1 %v23755_v46  ;;  %3630 = vmatprep.mubr.f32.mxu1 %v18724_v54  ;;  %v23907_v54 = vld [vmem:[#allocation112_spill] sm:$0xff] }
 0x1ab   :  { %15200 = vmatprep.subr.bf16.mxu0 %v18530_v59  ;;  %15224 = vmatprep.subr.bf16.mxu1 %v23757_v26  ;;  %v23912_v59 = vld [vmem:[#allocation117_spill] sm:$0xff] }
 0x1ad   :  { %15202 = vmatpush3.bf16.msra.mxu0 %v18540_v8  ;;  %v23909_v8 = vld [vmem:[#allocation114_spill] sm:$0xff] }
 0x1ae   :  { %15226 = vmatpush3.bf16.msra.mxu1 %v17980_v62  ;;  %15204 = vmatprep.subr.bf16.mxu0 %v18548_v12  ;;  %v23244_v12 = vand.u32 4294901760, %v18859_v3 }
 0x1af   :  { %15228 = vmatprep.subr.bf16.mxu1 %v17988_v10 }
 0x1b1   :  { %15206 = vmatpush3.bf16.msra.mxu0 %v18558_v0  ;;  %v23910_v0 = vld [vmem:[#allocation115_spill] sm:$0xff] }
 0x1b2   :  { %15230 = vmatpush3.bf16.msra.mxu1 %v18005_v31  ;;  %15208 = vmatprep.subr.bf16.mxu0 %v23907_v54  ;;  %v3740_v54 = vsub.f32 %v18859_v3, %v23244_v12  ;;  %v23920_v12 = vld [vmem:[#allocation28_spill] sm:$0xff] }
 0x1b3   :  { %v12215_v55 = vpop.f32.mrb[8].mxu0  ;;  %15232 = vmatprep.subr.bf16.mxu1 %v18007_v58 }
 0x1b4   :  { %v12216_v61 = vpop.f32.mrb[9].mxu0 }
 0x1b5   :  { %v12217_v48 = vadd.f32 %v12216_v61, %v12215_v55  ;;  %15210 = vmatpush3.bf16.msra.mxu0 %v23908_v11  ;;  %v23911_v55 = vld [vmem:[#allocation116_spill] sm:$0xff] }
 0x1b6   :  { %15234 = vmatpush3.bf16.msra.mxu1 %v23764_v27  ;;  %15212 = vmatprep.subr.bf16.mxu0 %v23909_v8  ;;  %v3741_v8 = vand.u32 4294901760, %v3740_v54  ;;  %v23913_v54 = vld [vmem:[#allocation16_spill] sm:$0xff] }
 0x1b7   :  { %v1501_v47 = vadd.f32 %v12217_v48, %v1363_v23  ;;  %15236 = vmatprep.subr.bf16.mxu1 %v23765_v35 }
 0x1b9   :  { %15214 = vmatpush3.bf16.msra.mxu0 %v23910_v0  ;;  %v23922_v0 = vld [vmem:[#allocation32_spill] sm:$0xff] }
 0x1ba   :  { %15238 = vmatpush3.bf16.msra.mxu1 %v18121_v37  ;;  %15216 = vmatprep.subr.bf16.mxu0 %v23911_v55 }
 0x1bb   :  { %15240 = vmatprep.subr.bf16.mxu1 %v23768_v52 }
 0x1bc   :  { %v12250_v61 = vpop.f32.mrb[8].mxu1 }
 0x1bd   :  { %v12251_v11 = vpop.f32.mrb[9].mxu1  ;;  %15218 = vmatpush3.bf16.msra.mxu0 %v23912_v59 }
 0x1be   :  { %v12252_v23 = vadd.f32 %v12251_v11, %v12250_v61  ;;  %15242 = vmatpush3.bf16.msra.mxu1 %v18167_v18  ;;  %15252 = vmatprep.subr.bf16.mxu0 %v23814_v7  ;;  %v23914_v11 = vld [vmem:[#allocation18_spill] sm:$0xff] }
 0x1bf   :  { %15244 = vmatprep.subr.bf16.mxu1 %v18181_v15 }
 0x1c0   :  { %v1609_v48 = vadd.f32 %v12252_v23, %v1501_v47  ;;  %3528 = vmatmul.mubr.f32.vlgmr.msra.gmra.mrb[22].mxu0 %v18768_v34  ;;  %v23916_v47 = vld [vmem:[#allocation65_spill] sm:$0xff]  ;;  %v23917_v23 = vld [vmem:[#allocation22_spill] sm:$0xff] }
 0x1c1   :  { %15254 = vmatpush3.bf16.msra.mxu0 %v23815_v33  ;;  %3742 = vmatprep.mubr.f32.mxu0 %v3741_v8  ;;  %v23915_v8 = vld [vmem:[#allocation19_spill] sm:$0xff]  ;;  %v18897_v61 = vand.u32 4294901760, %v23916_v47 }
 0x1c2   :  { %15246 = vmatpush3.bf16.msra.mxu1 %v18325_v45  ;;  %15256 = vmatprep.subr.bf16.mxu0 %v23816_v20 }
 0x1c3   :  { %15248 = vmatprep.subr.bf16.mxu1 %v18327_v41 }
 0x1c5   :  { %15258 = vmatpush3.bf16.msra.mxu0 %v23817_v44 }
 0x1c6   :  { %15250 = vmatpush3.bf16.msra.mxu1 %v18356_v25  ;;  %15260 = vmatprep.subr.bf16.mxu0 %v23818_v50 }
 0x1c7   :  { %15284 = vmatprep.subr.bf16.mxu1 %v23913_v54  ;;  %v18905_v54 = vsub.f32 %v23916_v47, %v18897_v61 }
 0x1c9   :  { %3632 = vmatmul.mubr.f32.vlgmr.msra.gmra.mrb[22].mxu1 %v18768_v34  ;;  %15262 = vmatpush3.bf16.msra.mxu0 %v23820_v60  ;;  %v23918_v34 = vld [vmem:[#allocation24_spill] sm:$0xff] }
 0x1ca   :  { %15286 = vmatpush3.bf16.msra.mxu1 %v23914_v11  ;;  %15264 = vmatprep.subr.bf16.mxu0 %v23822_v4  ;;  %v23919_v11 = vld [vmem:[#allocation26_spill] sm:$0xff] }
 0x1cb   :  { %15288 = vmatprep.subr.bf16.mxu1 %v23915_v8  ;;  %3978 = vmatprep.mubr.f32.mxu1 %v18851_v24 }
 0x1cd   :  { %15266 = vmatpush3.bf16.msra.mxu0 %v23824_v9 }
 0x1ce   :  { %15290 = vmatpush3.bf16.msra.mxu1 %v23917_v23  ;;  %15268 = vmatprep.subr.bf16.mxu0 %v23826_v40  ;;  %v23247_v23 = vand.u32 4294901760, %v18905_v54 }
 0x1cf   :  { %15292 = vmatprep.subr.bf16.mxu1 %v23918_v34  ;;  %v23921_v34 = vld [vmem:[#allocation30_spill] sm:$0xff] }
 0x1d1   :  { %15270 = vmatpush3.bf16.msra.mxu0 %v23828_v53 }
 0x1d2   :  { %15294 = vmatpush3.bf16.msra.mxu1 %v23919_v11  ;;  %15272 = vmatprep.subr.bf16.mxu0 %v23830_v13  ;;  %v3746_v11 = vsub.f32 %v18905_v54, %v23247_v23 }
 0x1d3   :  { %v12285_v8 = vpop.f32.mrb[10].mxu0  ;;  %15296 = vmatprep.subr.bf16.mxu1 %v23920_v12  ;;  %v23923_v12 = vld [vmem:[#allocation34_spill] sm:$0xff] }
 0x1d4   :  { %v12286_v59 = vpop.f32.mrb[11].mxu0  ;;  %v3747_v22 = vand.u32 4294901760, %v3746_v11  ;;  %v23930_v11 = vld [vmem:[#allocation43_spill] sm:$0xff] }
 0x1d5   :  { %v12287_v55 = vadd.f32 %v12286_v59, %v12285_v8  ;;  %15274 = vmatpush3.bf16.msra.mxu0 %v23832_v49  ;;  %v23924_v59 = vld [vmem:[#allocation36_spill] sm:$0xff] }
 0x1d6   :  { %15298 = vmatpush3.bf16.msra.mxu1 %v23921_v34  ;;  %15276 = vmatprep.subr.bf16.mxu0 %v23834_v6 }
 0x1d7   :  { %v1777_v47 = vadd.f32 %v12287_v55, %v1609_v48  ;;  %15300 = vmatprep.subr.bf16.mxu1 %v23922_v0  ;;  %v23925_v48 = vld [vmem:[#allocation39_spill] sm:$0xff] }
 0x1d8   :  { %v23926_v0 = vld [vmem:[#allocation35_spill] sm:$0xff] }
 0x1d9   :  { %15278 = vmatpush3.bf16.msra.mxu0 %v23836_v14 }
 0x1da   :  { %15302 = vmatpush3.bf16.msra.mxu1 %v23923_v12  ;;  %15280 = vmatprep.subr.bf16.mxu0 %v23838_v21  ;;  %v23928_v12 = vld [vmem:[#allocation41_spill] sm:$0xff] }
 0x1db   :  { %15304 = vmatprep.subr.bf16.mxu1 %v23924_v59  ;;  %v23929_v59 = vld [vmem:[#allocation42_spill] sm:$0xff] }
 0x1dc   :  { %v12320_v8 = vpop.f32.mrb[10].mxu1 }
 0x1dd   :  { %v12321_v34 = vpop.f32.mrb[11].mxu1  ;;  %15282 = vmatpush3.bf16.msra.mxu0 %v23840_v57 }
 0x1de   :  { %v12322_v55 = vadd.f32 %v12321_v34, %v12320_v8  ;;  %15306 = vmatpush3.bf16.msra.mxu1 %v23925_v48  ;;  %15316 = vmatprep.subr.bf16.mxu0 %v23926_v0  ;;  %v23932_v8 = vld [vmem:[#allocation45_spill] sm:$0xff]  ;;  %v23933_v34 = vld [vmem:[#allocation51_spill] sm:$0xff]  ;;  %v23934_v48 = vld [vmem:[#allocation46_spill] sm:$0xff] }
 0x1df   :  { %15308 = vmatprep.subr.bf16.mxu1 %v23927_v63  ;;  %v23935_v63 = vld [vmem:[#allocation47_spill] sm:$0xff]  ;;  %v23940_v0 = vld [vmem:[#allocation66_spill] sm:$0xff] }
 0x1e0   :  { %v18927_v23 = vadd.f32 %v12322_v55, %v1777_v47  ;;  %3748 = vmatmul.mubr.f32.vlgmr.msra.gmra.mrb[24].mxu0 %v3747_v22  ;;  %v23936_v22 = vld [vmem:[#allocation48_spill] sm:$0xff]  ;;  %v23938_v47 = vld [vmem:[#allocation63_spill] sm:$0xff] }
 0x1e1   :  { %15318 = vmatpush3.bf16.msra.mxu0 %v23928_v12  ;;  %4115 = vmatprep.mubr.f32.mxu0 %v18859_v3  ;;  %v23939_v55 = vld [vmem:[#allocation64_spill] sm:$0xff]  ;;  %v23941_v12 = vld [vmem:[#allocation67_spill] sm:$0xff] }
 0x1e2   :  { %15310 = vmatpush3.bf16.msra.mxu1 %v23929_v59  ;;  %15320 = vmatprep.subr.bf16.mxu0 %v23930_v11 }
 0x1e3   :  { %15312 = vmatprep.subr.bf16.mxu1 %v23931_v36  ;;  %v23937_v36 = vand.u32 4294901760, %v18859_v3 }
 0x1e5   :  { %15322 = vmatpush3.bf16.msra.mxu0 %v23932_v8  ;;  %v23942_v8 = vld [vmem:[#allocation68_spill] sm:$0xff] }
 0x1e6   :  { %15314 = vmatpush3.bf16.msra.mxu1 %v23933_v34  ;;  %15324 = vmatprep.subr.bf16.mxu0 %v23934_v48  ;;  %v23943_v34 = vld [vmem:[#allocation69_spill] sm:$0xff]  ;;  %v23944_v48 = vld [vmem:[#allocation70_spill] sm:$0xff] }
 0x1e7   :  { %15348 = vmatprep.subr.bf16.mxu1 %v23814_v7 }
 0x1e9   :  { %3980 = vmatmul.mubr.f32.vlgmr.msra.gmra.mrb[24].mxu1 %v18897_v61  ;;  %15326 = vmatpush3.bf16.msra.mxu0 %v23935_v63  ;;  %v23945_v63 = vld [vmem:[#allocation71_spill] sm:$0xff] }
 0x1ea   :  { %15350 = vmatpush3.bf16.msra.mxu1 %v23815_v33  ;;  %15328 = vmatprep.subr.bf16.mxu0 %v23936_v22 }
 0x1eb   :  { %15352 = vmatprep.subr.bf16.mxu1 %v23816_v20  ;;  %4222 = vmatprep.mubr.f32.mxu1 %v23937_v36 }
 0x1ed   :  { %15330 = vmatpush3.bf16.msra.mxu0 %v23938_v47  ;;  %v23946_v47 = vld [vmem:[#allocation72_spill] sm:$0xff] }
 0x1ee   :  { %15354 = vmatpush3.bf16.msra.mxu1 %v23817_v44  ;;  %15332 = vmatprep.subr.bf16.mxu0 %v23939_v55 }
 0x1ef   :  { %15356 = vmatprep.subr.bf16.mxu1 %v23818_v50 }
 0x1f1   :  { %15334 = vmatpush3.bf16.msra.mxu0 %v23940_v0  ;;  %v23947_v0 = vld [vmem:[#allocation49_spill] sm:$0xff] }
 0x1f2   :  { %15358 = vmatpush3.bf16.msra.mxu1 %v23820_v60  ;;  %15336 = vmatprep.subr.bf16.mxu0 %v23941_v12 }
 0x1f3   :  { %v12355_v59 = vpop.f32.mrb[12].mxu0  ;;  %15360 = vmatprep.subr.bf16.mxu1 %v23822_v4 }
 0x1f4   :  { %v12356_v11 = vpop.f32.mrb[13].mxu0 }
 0x1f5   :  { %v12357_v3 = vadd.f32 %v12356_v11, %v12355_v59  ;;  %15338 = vmatpush3.bf16.msra.mxu0 %v23942_v8  ;;  %v23948_v59 = vld [vmem:[#allocation50_spill] sm:$0xff]  ;;  %v23949_v11 = vld [vmem:[#allocation52_spill] sm:$0xff]  ;;  %v23950_v8 = vld [vmem:[#allocation53_spill] sm:$0xff] }
 0x1f6   :  { %15362 = vmatpush3.bf16.msra.mxu1 %v23824_v9  ;;  %15340 = vmatprep.subr.bf16.mxu0 %v23943_v34  ;;  %v23951_v34 = vld [vmem:[#allocation54_spill] sm:$0xff] }
 0x1f7   :  { %15364 = vmatprep.subr.bf16.mxu1 %v23826_v40 }
 0x1f9   :  { %15342 = vmatpush3.bf16.msra.mxu0 %v23944_v48  ;;  %v23953_v48 = vld [vmem:[#allocation55_spill] sm:$0xff] }
 0x1fa   :  { %15366 = vmatpush3.bf16.msra.mxu1 %v23828_v53  ;;  %15344 = vmatprep.subr.bf16.mxu0 %v23945_v63  ;;  %v23954_v63 = vld [vmem:[#allocation56_spill] sm:$0xff] }
 0x1fb   :  { %15368 = vmatprep.subr.bf16.mxu1 %v23830_v13 }
 0x1fc   :  { %v12390_v22 = vpop.f32.mrb[12].mxu1 }
 0x1fd   :  { %v12391_v36 = vpop.f32.mrb[13].mxu1  ;;  %15346 = vmatpush3.bf16.msra.mxu0 %v23946_v47  ;;  %v23956_v47 = vld [vmem:[#allocation57_spill] sm:$0xff] }
 0x1fe   :  { %v12392_v55 = vadd.f32 %v12391_v36, %v12390_v22  ;;  %15370 = vmatpush3.bf16.msra.mxu1 %v23832_v49  ;;  %15380 = vmatprep.subr.bf16.mxu0 %v23947_v0  ;;  %v23955_v22 = vld [vmem:[#allocation91_spill] sm:$0xff] }
 0x1ff   :  { %15372 = vmatprep.subr.bf16.mxu1 %v23834_v6  ;;  %v18983_v36 = vand.u32 4294901760, %v23955_v22 }
 0x200   :  { %v2254_v12 = vadd.f32 %v12392_v55, %v12357_v3  ;;  %4118 = vmatmul.mubr.f32.vlgmr.msra.gmra.mrb[26].mxu0 %v18905_v54  ;;  %v23952_v3 = vand.u32 4294901760, %v18905_v54  ;;  %v23958_v54 = vld [vmem:[#allocation59_spill] sm:$0xff] }
 0x201   :  { %15382 = vmatpush3.bf16.msra.mxu0 %v23948_v59  ;;  %4392 = vmatprep.mubr.f32.mxu0 %v18851_v24 }
 0x202   :  { %15374 = vmatpush3.bf16.msra.mxu1 %v23836_v14  ;;  %15384 = vmatprep.subr.bf16.mxu0 %v23949_v11 }
 0x203   :  { %15376 = vmatprep.subr.bf16.mxu1 %v23838_v21 }
 0x205   :  { %15386 = vmatpush3.bf16.msra.mxu0 %v23950_v8 }
 0x206   :  { %15378 = vmatpush3.bf16.msra.mxu1 %v23840_v57  ;;  %15388 = vmatprep.subr.bf16.mxu0 %v23951_v34 }
 0x207   :  { %15412 = vmatprep.subr.bf16.mxu1 %v23814_v7  ;;  %v23957_v7 = vld [vmem:[#allocation58_spill] sm:$0xff] }
 0x209   :  { %4226 = vmatmul.mubr.f32.vlgmr.msra.gmra.mrb[26].mxu1 %v23952_v3  ;;  %15390 = vmatpush3.bf16.msra.mxu0 %v23953_v48  ;;  %v23970_v48 = vld [vmem:[#allocation94_spill] sm:$0xff] }
 0x20a   :  { %15414 = vmatpush3.bf16.msra.mxu1 %v23815_v33  ;;  %15392 = vmatprep.subr.bf16.mxu0 %v23954_v63  ;;  %v18991_v33 = vsub.f32 %v23955_v22, %v18983_v36 }
 0x20b   :  { %15416 = vmatprep.subr.bf16.mxu1 %v23816_v20  ;;  %4496 = vmatprep.mubr.f32.mxu1 %v18851_v24  ;;  %v23959_v20 = vld [vmem:[#allocation60_spill] sm:$0xff] }
 0x20c   :  { %v4601_v59 = vand.u32 4294901760, %v18991_v33 }
 0x20d   :  { %15394 = vmatpush3.bf16.msra.mxu0 %v23956_v47 }
 0x20e   :  { %15418 = vmatpush3.bf16.msra.mxu1 %v23817_v44  ;;  %15396 = vmatprep.subr.bf16.mxu0 %v23957_v7  ;;  %v23960_v44 = vld [vmem:[#allocation61_spill] sm:$0xff] }
 0x20f   :  { %15420 = vmatprep.subr.bf16.mxu1 %v23818_v50  ;;  %v23961_v50 = vld [vmem:[#allocation38_spill] sm:$0xff] }
 0x211   :  { %15398 = vmatpush3.bf16.msra.mxu0 %v23958_v54  ;;  %v23972_v54 = vld [vmem:[#allocation96_spill] sm:$0xff] }
 0x212   :  { %15422 = vmatpush3.bf16.msra.mxu1 %v23820_v60  ;;  %15400 = vmatprep.subr.bf16.mxu0 %v23959_v20  ;;  %v4602_v60 = vsub.f32 %v18991_v33, %v4601_v59 }
 0x213   :  { %v12425_v24 = vpop.f32.mrb[14].mxu0  ;;  %15424 = vmatprep.subr.bf16.mxu1 %v23822_v4  ;;  %v23962_v4 = vld [vmem:[#allocation73_spill] sm:$0xff] }
 0x214   :  { %v12426_v55 = vpop.f32.mrb[15].mxu0  ;;  %v4603_v3 = vand.u32 4294901760, %v4602_v60 }
 0x215   :  { %v12427_v0 = vadd.f32 %v12426_v55, %v12425_v24  ;;  %15402 = vmatpush3.bf16.msra.mxu0 %v23960_v44  ;;  %v23973_v24 = vld [vmem:[#allocation97_spill] sm:$0xff]  ;;  %v23974_v55 = vld [vmem:[#allocation98_spill] sm:$0xff] }
 0x216   :  { %15426 = vmatpush3.bf16.msra.mxu1 %v23824_v9  ;;  %15404 = vmatprep.subr.bf16.mxu0 %v23961_v50  ;;  %v23963_v9 = vld [vmem:[#allocation74_spill] sm:$0xff] }
 0x217   :  { %v2392_v11 = vadd.f32 %v12427_v0, %v2254_v12  ;;  %15428 = vmatprep.subr.bf16.mxu1 %v23826_v40 }
 0x219   :  { %15406 = vmatpush3.bf16.msra.mxu0 %v23877_v51  ;;  %v23969_v51 = vld [vmem:[#allocation92_spill] sm:$0xff] }
 0x21a   :  { %15430 = vmatpush3.bf16.msra.mxu1 %v23828_v53  ;;  %15408 = vmatprep.subr.bf16.mxu0 %v23962_v4  ;;  %v23975_v4 = vld [vmem:[#allocation102_spill] sm:$0xff] }
 0x21b   :  { %15432 = vmatprep.subr.bf16.mxu1 %v23830_v13 }
 0x21c   :  { %v12460_v8 = vpop.f32.mrb[14].mxu1 }
 0x21d   :  { %v12461_v34 = vpop.f32.mrb[15].mxu1  ;;  %15410 = vmatpush3.bf16.msra.mxu0 %v23963_v9  ;;  %v23978_v9 = vld [vmem:[#allocation80_spill] sm:$0xff] }
 0x21e   :  { %v12462_v12 = vadd.f32 %v12461_v34, %v12460_v8  ;;  %15434 = vmatpush3.bf16.msra.mxu1 %v23832_v49  ;;  %15444 = vmatprep.subr.bf16.mxu0 %v23753_v56  ;;  %v23964_v49 = vld [vmem:[#allocation83_spill] sm:$0xff]  ;;  %v23977_v34 = vld [vmem:[#allocation104_spill] sm:$0xff] }
 0x21f   :  { %15436 = vmatprep.subr.bf16.mxu1 %v23834_v6  ;;  %v23965_v6 = vld [vmem:[#allocation84_spill] sm:$0xff]  ;;  %v23976_v8 = vld [vmem:[#allocation103_spill] sm:$0xff] }
 0x220   :  { %v2500_v40 = vadd.f32 %v12462_v12, %v2392_v11  ;;  %4394 = vmatmul.mubr.f32.vlgmr.msra.gmra.mrb[28].mxu0 %v18897_v61  ;;  %v23985_v12 = vld [vmem:[#allocation105_spill] sm:$0xff] }
 0x221   :  { %15446 = vmatpush3.bf16.msra.mxu0 %v23755_v46  ;;  %4604 = vmatprep.mubr.f32.mxu0 %v4603_v3  ;;  %v23984_v3 = vld [vmem:[#allocation77_spill] sm:$0xff] }
 0x222   :  { %15438 = vmatpush3.bf16.msra.mxu1 %v23836_v14  ;;  %15448 = vmatprep.subr.bf16.mxu0 %v23757_v26  ;;  %v23966_v14 = vld [vmem:[#allocation86_spill] sm:$0xff] }
 0x223   :  { %15440 = vmatprep.subr.bf16.mxu1 %v23838_v21  ;;  %v23967_v21 = vld [vmem:[#allocation93_spill] sm:$0xff] }
 0x224   :  { %v19029_v53 = vand.u32 4294901760, %v23967_v21 }
 0x225   :  { %15450 = vmatpush3.bf16.msra.mxu0 %v17980_v62 }
 0x226   :  { %15442 = vmatpush3.bf16.msra.mxu1 %v23840_v57  ;;  %15452 = vmatprep.subr.bf16.mxu0 %v17988_v10  ;;  %v23968_v57 = vld [vmem:[#allocation88_spill] sm:$0xff]  ;;  %v19037_v13 = vsub.f32 %v23967_v21, %v19029_v53 }
 0x227   :  { %15476 = vmatprep.subr.bf16.mxu1 %v23964_v49 }
 0x228   :  { %v4607_v22 = vand.u32 4294901760, %v19037_v13 }
 0x229   :  { %4498 = vmatmul.mubr.f32.vlgmr.msra.gmra.mrb[28].mxu1 %v18897_v61  ;;  %15454 = vmatpush3.bf16.msra.mxu0 %v18005_v31 }
 0x22a   :  { %15478 = vmatpush3.bf16.msra.mxu1 %v23965_v6  ;;  %15456 = vmatprep.subr.bf16.mxu0 %v18007_v58  ;;  %v4608_v20 = vsub.f32 %v19037_v13, %v4607_v22  ;;  %v19090_v6 = vld [vmem:[%s22954_s3 + $0xe0] sm:$0xff] }
 0x22b   :  { %15480 = vmatprep.subr.bf16.mxu1 %v23966_v14  ;;  %4840 = vmatprep.mubr.f32.mxu1 %v18983_v36  ;;  %v19096_v14 = vld [vmem:[%s22954_s3 + $0xe8] sm:$0xff] }
 0x22c   :  { %v4609_v44 = vand.u32 4294901760, %v4608_v20 }
 0x22d   :  { %15458 = vmatpush3.bf16.msra.mxu0 %v23764_v27 }
 0x22e   :  { %15482 = vmatpush3.bf16.msra.mxu1 %v23968_v57  ;;  %15460 = vmatprep.subr.bf16.mxu0 %v23765_v35  ;;  %v23256_v57 = vand.u32 4294901760, %v19096_v14 }
 0x22f   :  { %15484 = vmatprep.subr.bf16.mxu1 %v23884_v30  ;;  %v23971_v30 = vld [vmem:[#allocation95_spill] sm:$0xff] }
 0x231   :  { %15462 = vmatpush3.bf16.msra.mxu0 %v18121_v37 }
 0x232   :  { %15486 = vmatpush3.bf16.msra.mxu1 %v23969_v51  ;;  %15464 = vmatprep.subr.bf16.mxu0 %v23768_v52 }
 0x233   :  { %v12495_v61 = vpop.f32.mrb[16].mxu0  ;;  %15488 = vmatprep.subr.bf16.mxu1 %v23970_v48  ;;  %v19119_v48 = vld [vmem:[%s22954_s3 + $0xf0] sm:$0xff] }
 0x234   :  { %v12496_v63 = vpop.f32.mrb[17].mxu0  ;;  %v23252_v20 = vand.u32 4294901760, %v19119_v48 }
 0x235   :  { %v12497_v47 = vadd.f32 %v12496_v63, %v12495_v61  ;;  %15466 = vmatpush3.bf16.msra.mxu0 %v18167_v18  ;;  %v19124_v63 = vld [vmem:[%s22954_s3 + $0xf8] sm:$0xff] }
 0x236   :  { %15490 = vmatpush3.bf16.msra.mxu1 %v23971_v30  ;;  %15468 = vmatprep.subr.bf16.mxu0 %v18181_v15  ;;  %v19136_v30 = vld [vmem:[%s22954_s3 + $0x78] sm:$0xff] }
 0x237   :  { %v2668_v7 = vadd.f32 %v12497_v47, %v2500_v40  ;;  %15492 = vmatprep.subr.bf16.mxu1 %v23972_v54 }
 0x239   :  { %15470 = vmatpush3.bf16.msra.mxu0 %v18325_v45 }
 0x23a   :  { %15494 = vmatpush3.bf16.msra.mxu1 %v23973_v24  ;;  %15472 = vmatprep.subr.bf16.mxu0 %v18327_v41  ;;  %v23251_v24 = vand.u32 4294901760, %v19124_v63 }
 0x23b   :  { %15496 = vmatprep.subr.bf16.mxu1 %v23974_v55 }
 0x23c   :  { %v12530_v0 = vpop.f32.mrb[16].mxu1 }
 0x23d   :  { %v12531_v50 = vpop.f32.mrb[17].mxu1  ;;  %15474 = vmatpush3.bf16.msra.mxu0 %v18356_v25 }
 0x23e   :  { %v12532_v11 = vadd.f32 %v12531_v50, %v12530_v0  ;;  %15498 = vmatpush3.bf16.msra.mxu1 %v18358_v17  ;;  %15508 = vmatprep.subr.bf16.mxu0 %v18362_v28  ;;  %v23979_v17 = vld [vmem:[#allocation79_spill] sm:$0xff]  ;;  %v23980_v28 = vld [vmem:[#allocation81_spill] sm:$0xff]  ;;  %v23250_v50 = vand.u32 4294901760, %v19136_v30 }
 0x23f   :  { %15500 = vmatprep.subr.bf16.mxu1 %v23887_v38  ;;  %v23983_v38 = vld [vmem:[#allocation76_spill] sm:$0xff] }
 0x240   :  { %v2772_v60 = vadd.f32 %v12532_v11, %v2668_v7  ;;  %4610 = vmatmul.mubr.f32.vlgmr.msra.gmra.mrb[30].mxu0 %v4609_v44  ;;  %v19179_v11 = vld [vmem:[%s22954_s3 + $0x88] sm:$0xff] }
 0x241   :  { %15510 = vmatpush3.bf16.msra.mxu0 %v23888_v42  ;;  %4977 = vmatprep.mubr.f32.mxu0 %v18991_v33  ;;  %v23981_v42 = vld [vmem:[#allocation82_spill] sm:$0xff] }
 0x242   :  { %15502 = vmatpush3.bf16.msra.mxu1 %v23889_v16  ;;  %15512 = vmatprep.subr.bf16.mxu0 %v23975_v4  ;;  %v23982_v16 = vld [vmem:[#allocation75_spill] sm:$0xff]  ;;  %v19194_v4 = vld [vmem:[%s22954_s3 + $0x90] sm:$0xff] }
 0x243   :  { %15504 = vmatprep.subr.bf16.mxu1 %v23976_v8  ;;  %v19199_v8 = vld [vmem:[%s22954_s3 + $0x98] sm:$0xff] }
 0x245   :  { %15514 = vmatpush3.bf16.msra.mxu0 %v23977_v34 }
 0x246   :  { %15506 = vmatpush3.bf16.msra.mxu1 %v23978_v9  ;;  %15516 = vmatprep.subr.bf16.mxu0 %v23979_v17  ;;  %v19206_v17 = vsub.f32 %v19119_v48, %v23252_v20 }
 0x247   :  { %15540 = vmatprep.subr.bf16.mxu1 %v23753_v56 }
 0x248   :  { %v23262_v20 = vand.u32 4294901760, %v19206_v17 }
 0x249   :  { %4842 = vmatmul.mubr.f32.vlgmr.msra.gmra.mrb[30].mxu1 %v19029_v53  ;;  %15518 = vmatpush3.bf16.msra.mxu0 %v23980_v28  ;;  %v19211_v28 = vsub.f32 %v19124_v63, %v23251_v24 }
 0x24a   :  { %15542 = vmatpush3.bf16.msra.mxu1 %v23755_v46  ;;  %15520 = vmatprep.subr.bf16.mxu0 %v23981_v42  ;;  %v23986_v42 = vld [vmem:[#allocation85_spill] sm:$0xff] }
 0x24b   :  { %15544 = vmatprep.subr.bf16.mxu1 %v23757_v26  ;;  %5084 = vmatprep.mubr.f32.mxu1 %v4601_v59 }
 0x24d   :  { %15522 = vmatpush3.bf16.msra.mxu0 %v23982_v16  ;;  %v19217_v16 = vld [vmem:[%s22954_s3 + $0x10] sm:$0xff] }
 0x24e   :  { %15546 = vmatpush3.bf16.msra.mxu1 %v17980_v62  ;;  %15524 = vmatprep.subr.bf16.mxu0 %v23983_v38  ;;  %v19222_v38 = vld [vmem:[%s22954_s3 + $0x18] sm:$0xff]  ;;  %v23265_v24 = vand.u32 4294901760, %v19217_v16 }
 0x24f   :  { %15548 = vmatprep.subr.bf16.mxu1 %v17988_v10 }
 0x251   :  { %15526 = vmatpush3.bf16.msra.mxu0 %v23984_v3 }
 0x252   :  { %15550 = vmatpush3.bf16.msra.mxu1 %v18005_v31  ;;  %15528 = vmatprep.subr.bf16.mxu0 %v23985_v12 }
 0x253   :  { %v12565_v40 = vpop.f32.mrb[18].mxu0  ;;  %15552 = vmatprep.subr.bf16.mxu1 %v18007_v58 }
 0x254   :  { %v12566_v49 = vpop.f32.mrb[19].mxu0 }
 0x255   :  { %v12567_v33 = vadd.f32 %v12566_v49, %v12565_v40  ;;  %15530 = vmatpush3.bf16.msra.mxu0 %v23902_v5  ;;  %v19108_v5 = vld [vmem:[%s22954_s3 + $0x68] sm:$0xff]  ;;  %v19234_v49 = vsub.f32 %v19136_v30, %v23250_v50 }
 0x256   :  { %15554 = vmatpush3.bf16.msra.mxu1 %v23764_v27  ;;  %15532 = vmatprep.subr.bf16.mxu0 %v23903_v29  ;;  %v19103_v29 = vld [vmem:[%s22954_s3 + $0x60] sm:$0xff]  ;;  %v23253_v61 = vand.u32 4294901760, %v19108_v5 }
 0x257   :  { %v2884_v59 = vadd.f32 %v12567_v33, %v2772_v60  ;;  %15556 = vmatprep.subr.bf16.mxu1 %v23765_v35  ;;  %v19184_v60 = vld [vmem:[%s22954_s3] sm:$0xff]  ;;  %v23987_v33 = vld [vmem:[#allocation87_spill] sm:$0xff] }
 0x258   :  { %v19164_v0 = vsub.f32 %v19108_v5, %v23253_v61  ;;  %v23259_v61 = vand.u32 4294901760, %v19211_v28 }
 0x259   :  { %15534 = vmatpush3.bf16.msra.mxu0 %v23904_v43  ;;  %v23263_v43 = vand.u32 4294901760, %v19090_v6 }
 0x25a   :  { %15558 = vmatpush3.bf16.msra.mxu1 %v18121_v37  ;;  %15536 = vmatprep.subr.bf16.mxu0 %v18466_v1  ;;  %v23254_v1 = vand.u32 4294901760, %v19103_v29  ;;  %v23257_v12 = vand.u32 4294901760, %v19164_v0 }
 0x25b   :  { %15560 = vmatprep.subr.bf16.mxu1 %v23768_v52  ;;  %v19142_v7 = vsub.f32 %v19090_v6, %v23263_v43  ;;  %v24002_v43 = vld [vmem:[#allocation110_spill] sm:$0xff] }
 0x25c   :  { %v12600_v21 = vpop.f32.mrb[18].mxu1  ;;  %v19159_v55 = vsub.f32 %v19103_v29, %v23254_v1  ;;  %v23990_v1 = vld [vmem:[#allocation89_spill] sm:$0xff] }
 0x25d   :  { %v12601_v51 = vpop.f32.mrb[19].mxu1  ;;  %15538 = vmatpush3.bf16.msra.mxu0 %v18472_v2  ;;  %v19131_v2 = vld [vmem:[%s22954_s3 + $0x70] sm:$0xff]  ;;  %v23264_v34 = vand.u32 4294901760, %v19142_v7 }
 0x25e   :  { %v12602_v47 = vadd.f32 %v12601_v51, %v12600_v21  ;;  %15562 = vmatpush3.bf16.msra.mxu1 %v18167_v18  ;;  %15572 = vmatprep.subr.bf16.mxu0 %v18480_v39  ;;  %v19150_v39 = vsub.f32 %v19096_v14, %v23256_v57  ;;  %v23249_v44 = vand.u32 4294901760, %v19131_v2  ;;  %v23258_v3 = vand.u32 4294901760, %v19159_v55 }
 0x25f   :  { %15564 = vmatprep.subr.bf16.mxu1 %v18181_v15  ;;  %v23271_v21 = vand.u32 4294901760, %v19179_v11  ;;  %v23270_v51 = vand.u32 4294901760, %v19184_v60  ;;  %v23260_v57 = vand.u32 4294901760, %v19234_v49 }
 0x260   :  { %v19144_v54 = vadd.f32 %v12602_v47, %v2884_v59  ;;  %4980 = vmatmul.mubr.f32.vlgmr.msra.gmra.mrb[32].mxu0 %v19037_v13  ;;  %v23255_v9 = vand.u32 4294901760, %v19150_v39  ;;  %v19229_v40 = vsub.f32 %v19131_v2, %v23249_v44  ;;  %v23267_v44 = vand.u32 4294901760, %v19199_v8 }
 0x261   :  { %15574 = vmatpush3.bf16.msra.mxu0 %v18488_v19  ;;  %5254 = vmatprep.mubr.f32.mxu0 %v18983_v36  ;;  %v19173_v19 = vld [vmem:[%s22954_s3 + $0x80] sm:$0xff]  ;;  %v19276_v13 = vsub.f32 %v19179_v11, %v23271_v21 }
 0x262   :  { %15566 = vmatpush3.bf16.msra.mxu1 %v18325_v45  ;;  %15576 = vmatprep.subr.bf16.mxu0 %v18496_v32  ;;  %v19189_v32 = vld [vmem:[%s22954_s3 + $0x8] sm:$0xff]  ;;  %v23272_v59 = vand.u32 4294901760, %v19173_v19  ;;  %v19249_v50 = vpack.c.bf16 %v23255_v9, %v23264_v34  ;;  %v23261_v9 = vand.u32 4294901760, %v19229_v40  ;;  %v24004_v21 = vld [vmem:[#allocation112_spill] sm:$0xff] }
 0x263   :  { %15568 = vmatprep.subr.bf16.mxu1 %v18327_v41  ;;  %v23269_v47 = vand.u32 4294901760, %v19189_v32  ;;  %23992 = vst [vmem:[#allocation11_spill] sm:$0xff] %v19276_v13 }
 0x264   :  { %23988 = vst [vmem:[#allocation9_spill] sm:$0xff] %v19249_v50 }
 0x265   :  { %15578 = vmatpush3.bf16.msra.mxu0 %v23986_v42  ;;  %v23268_v42 = vand.u32 4294901760, %v19194_v4 }
 0x266   :  { %15570 = vmatpush3.bf16.msra.mxu1 %v18356_v25  ;;  %15580 = vmatprep.subr.bf16.mxu0 %v23987_v33  ;;  %v19255_v33 = vpack.c.bf16 %v23257_v12, %v23258_v3  ;;  %v23991_v12 = vld [vmem:[#allocation78_spill] sm:$0xff]  ;;  %v19271_v3 = vsub.f32 %v19173_v19, %v23272_v59 }
 0x267   :  { %15604 = vmatprep.subr.bf16.mxu1 %v23753_v56  ;;  %v23266_v56 = vand.u32 4294901760, %v19222_v38 }
 0x268   :  { %23989 = vst [vmem:[#allocation10_spill] sm:$0xff] %v19255_v33  ;;  %v23274_v34 = vand.u32 4294901760, %v19271_v3 }
 0x269   :  { %5088 = vmatmul.mubr.f32.vlgmr.msra.gmra.mrb[32].mxu1 %v4607_v22  ;;  %15582 = vmatpush3.bf16.msra.mxu0 %v23990_v1  ;;  %v19282_v22 = vpack.c.bf16 %v23259_v61, %v23262_v20  ;;  %v19294_v1 = vsub.f32 %v19189_v32, %v23269_v47  ;;  %v19315_v61 = vsub.f32 %v19217_v16, %v23265_v24  ;;  %v24001_v20 = vld [vmem:[#allocation109_spill] sm:$0xff]  ;;  %v23273_v24 = vand.u32 4294901760, %v19276_v13 }
 0x26a   :  { %15606 = vmatpush3.bf16.msra.mxu1 %v23755_v46  ;;  %15584 = vmatprep.subr.bf16.mxu0 %v23991_v12  ;;  %v19289_v46 = vsub.f32 %v19184_v60, %v23270_v51  ;;  %v19300_v12 = vpack.c.bf16 %v23260_v57, %v23261_v9  ;;  %v19320_v57 = vsub.f32 %v19222_v38, %v23266_v56  ;;  %v19325_v9 = vld [vmem:[%s22954_s3 + $0xa0] sm:$0xff] }
 0x26b   :  { %23993 = vst [vmem:[#allocation12_spill] sm:$0xff] %v19282_v22  ;;  %15608 = vmatprep.subr.bf16.mxu1 %v23757_v26  ;;  %5358 = vmatprep.mubr.f32.mxu1 %v18983_v36  ;;  %23995 = vst [vmem:[#allocation14_spill] sm:$0xff] %v19294_v1  ;;  %v19305_v26 = vsub.f32 %v19194_v4, %v23268_v42  ;;  %v19310_v36 = vsub.f32 %v19199_v8, %v23267_v44  ;;  %v23276_v44 = vand.u32 4294901760, %v19294_v1  ;;  %v19338_v42 = vld [vmem:[%s22954_s3 + $0xa8] sm:$0xff]  ;;  %v19358_v51 = vld [vmem:[%s22954_s3 + $0x20] sm:$0xff] }
 0x26c   :  { %23994 = vst [vmem:[#allocation13_spill] sm:$0xff] %v19289_v46  ;;  %23996 = vst [vmem:[#allocation15_spill] sm:$0xff] %v19300_v12  ;;  %v23275_v56 = vand.u32 4294901760, %v19289_v46  ;;  %v5671_v59 = vsub.f32 %v19271_v3, %v23274_v34  ;;  %v19375_v34 = vld [vmem:[%s22954_s3 + $0x28] sm:$0xff] }
 0x26d   :  { %23997 = vst [vmem:[#allocation17_spill] sm:$0xff] %v19305_v26  ;;  %23998 = vst [vmem:[#allocation20_spill] sm:$0xff] %v19310_v36  ;;  %15586 = vmatpush3.bf16.msra.mxu0 %v24001_v20  ;;  %v23277_v20 = vand.u32 4294901760, %v19325_v9 }
 0x26e   :  { %23999 = vst [vmem:[#allocation21_spill] sm:$0xff] %v19315_v61  ;;  %24000 = vst [vmem:[#allocation23_spill] sm:$0xff] %v19320_v57  ;;  %15610 = vmatpush3.bf16.msra.mxu1 %v17980_v62  ;;  %15588 = vmatprep.subr.bf16.mxu0 %v24002_v43  ;;  %v5678_v62 = vsub.f32 %v19276_v13, %v23273_v24 }
 0x26f   :  { %15612 = vmatprep.subr.bf16.mxu1 %v17988_v10  ;;  %v24003_v10 = vld [vmem:[#allocation111_spill] sm:$0xff]  ;;  %v19370_v24 = vsub.f32 %v19325_v9, %v23277_v20  ;;  %v24009_v20 = vand.u32 4294901760, %v19320_v57 }
 0x270   :  { %v5679_v13 = vand.u32 4294901760, %v5678_v62 }
 0x271   :  { %15590 = vmatpush3.bf16.msra.mxu0 %v24003_v10  ;;  %24005 = vst [vmem:[#allocation25_spill] sm:$0xff] %v19370_v24  ;;  %v5580_v33 = vsub.f32 %v19320_v57, %v24009_v20  ;;  %v19402_v20 = vld [vmem:[%s22954_s3 + $0xb0] sm:$0xff]  ;;  %v24015_v57 = vand.u32 4294901760, %v19358_v51 }
 0x272   :  { %15614 = vmatpush3.bf16.msra.mxu1 %v18005_v31  ;;  %15592 = vmatprep.subr.bf16.mxu0 %v24004_v21  ;;  %v5559_v31 = vsub.f32 %v19289_v46, %v23275_v56  ;;  %v5566_v21 = vsub.f32 %v19294_v1, %v23276_v44  ;;  %v24007_v56 = vand.u32 4294901760, %v19310_v36  ;;  %v24008_v44 = vand.u32 4294901760, %v19315_v61  ;;  %v24010_v1 = vld [vmem:[#allocation113_spill] sm:$0xff]  ;;  %v24014_v46 = vld [vmem:[#allocation115_spill] sm:$0xff] }
 0x273   :  { %v12635_v10 = vpop.f32.mrb[20].mxu0  ;;  %15616 = vmatprep.subr.bf16.mxu1 %v18007_v58  ;;  %v24006_v58 = vand.u32 4294901760, %v19305_v26 }
 0x274   :  { %v12636_v43 = vpop.f32.mrb[21].mxu0  ;;  %v5692_v12 = vsub.f32 %v19310_v36, %v24007_v56  ;;  %v5573_v22 = vsub.f32 %v19315_v61, %v24008_v44  ;;  %v24012_v56 = vand.u32 4294901760, %v19338_v42  ;;  %v19410_v44 = vld [vmem:[%s22954_s3 + $0xb8] sm:$0xff] }
 0x275   :  { %v5685_v47 = vsub.f32 %v19305_v26, %v24006_v58  ;;  %v12637_v50 = vadd.f32 %v12636_v43, %v12635_v10  ;;  %15594 = vmatpush3.bf16.msra.mxu0 %v24010_v1  ;;  %v24011_v58 = vld [vmem:[#allocation114_spill] sm:$0xff]  ;;  %v5672_v26 = vand.u32 4294901760, %v5671_v59  ;;  %v5567_v43 = vand.u32 4294901760, %v5566_v21  ;;  %v19441_v21 = vld [vmem:[%s22954_s3 + $0x38] sm:$0xff] }
 0x276   :  { %15618 = vmatpush3.bf16.msra.mxu1 %v23764_v27  ;;  %15596 = vmatprep.subr.bf16.mxu0 %v24011_v58  ;;  %v19396_v36 = vsub.f32 %v19338_v42, %v24012_v56  ;;  %v5560_v27 = vand.u32 4294901760, %v5559_v31  ;;  %v23290_v59 = vand.u32 4294901760, %v19370_v24  ;;  %v5693_v10 = vand.u32 4294901760, %v5692_v12  ;;  %v19571_v61 = vld [vmem:[%s22954_s3 + $0x58] sm:$0xff] }
 0x277   :  { %v3254_v1 = vadd.f32 %v12637_v50, %v19144_v54  ;;  %15620 = vmatprep.subr.bf16.mxu1 %v23765_v35  ;;  %v5686_v62 = vand.u32 4294901760, %v5685_v47  ;;  %v5574_v58 = vand.u32 4294901760, %v5573_v22  ;;  %v5581_v56 = vand.u32 4294901760, %v5580_v33  ;;  %v19422_v50 = vld [vmem:[%s22954_s3 + $0x30] sm:$0xff]  ;;  %v24017_v47 = vld [vmem:[#allocation116_spill] sm:$0xff] }
 0x278   :  { %24013 = vst [vmem:[#allocation27_spill] sm:$0xff] %v19396_v36  ;;  %v19416_v54 = vsub.f32 %v19358_v51, %v24015_v57  ;;  %v23291_v35 = vand.u32 4294901760, %v19402_v20  ;;  %v24018_v33 = vand.u32 4294901760, %v19173_v19  ;;  %v24019_v22 = vand.u32 4294901760, %v19179_v11  ;;  %v19486_v57 = vld [vmem:[%s22954_s3 + $0x40] sm:$0xff] }
 0x279   :  { %15598 = vmatpush3.bf16.msra.mxu0 %v24014_v46  ;;  %v24020_v12 = vand.u32 4294901760, %v19375_v34  ;;  %v19449_v19 = vsub.f32 %v19370_v24, %v23290_v59  ;;  %v23292_v11 = vand.u32 4294901760, %v19410_v44  ;;  %v24022_v59 = vld [vmem:[#allocation117_spill] sm:$0xff] }
 0x27a   :  { %24016 = vst [vmem:[#allocation29_spill] sm:$0xff] %v19416_v54  ;;  %15622 = vmatpush3.bf16.msra.mxu1 %v18121_v37  ;;  %15600 = vmatprep.subr.bf16.mxu0 %v24017_v47  ;;  %v19430_v46 = vpack.c.bf16 %v24019_v22, %v24018_v33  ;;  %v19444_v37 = vpack.c.bf16 %v5679_v13, %v5672_v26  ;;  %v19467_v13 = vld [vmem:[%s22954_s3 + $0xc8] sm:$0xff] }
 0x27b   :  { %v19436_v31 = vsub.f32 %v19375_v34, %v24020_v12  ;;  %15624 = vmatprep.subr.bf16.mxu1 %v23768_v52  ;;  %v19452_v33 = vpack.c.bf16 %v5567_v43, %v5560_v27  ;;  %v19454_v22 = vpack.c.bf16 %v5693_v10, %v5686_v62  ;;  %v19456_v12 = vpack.c.bf16 %v5581_v56, %v5574_v58  ;;  %v19462_v52 = vld [vmem:[%s22954_s3 + $0xc0] sm:$0xff] }
 0x27c   :  { %v12670_v47 = vpop.f32.mrb[20].mxu1  ;;  %v24023_v27 = vand.u32 4294901760, %v19184_v60  ;;  %v24024_v43 = vand.u32 4294901760, %v19189_v32  ;;  %v19480_v58 = vsub.f32 %v19402_v20, %v23291_v35  ;;  %v19491_v60 = vld [vmem:[%s22954_s3 + $0x48] sm:$0xff]  ;;  %v24028_v35 = vand.u32 4294901760, %v19194_v4  ;;  %v19519_v4 = vld [vmem:[%s22954_s3 + $0xd0] sm:$0xff] }
 0x27d   :  { %24021 = vst [vmem:[#allocation31_spill] sm:$0xff] %v19436_v31  ;;  %v12671_v26 = vpop.f32.mrb[21].mxu1  ;;  %15602 = vmatpush3.bf16.msra.mxu0 %v24022_v59  ;;  %v24027_v59 = vand.u32 4294901760, %v19396_v36  ;;  %v24029_v56 = vand.u32 4294901760, %v19199_v8 }
 0x27e   :  { %v19474_v62 = vpack.c.bf16 %v24024_v43, %v24023_v27  ;;  %24026 = vst [vmem:[#allocation37_spill] sm:$0xff] %v19480_v58  ;;  %v12672_v32 = vadd.f32 %v12671_v26, %v12670_v47  ;;  %15626 = vmatpush3.bf16.msra.mxu1 %v18167_v18  ;;  %15636 = vmatprep.subr.bf16.mxu0 %v19430_v46  ;;  %v5700_v47 = vand.u32 4294901760, %v19449_v19  ;;  %v5516_v26 = vand.u32 4294901760, %v19462_v52 }
 0x27f   :  { %v19498_v27 = vsub.f32 %v19396_v36, %v24027_v59  ;;  %v19505_v10 = vpack.c.bf16 %v24029_v56, %v24028_v35  ;;  %15628 = vmatprep.subr.bf16.mxu1 %v18181_v15  ;;  %v19512_v18 = vsub.f32 %v19410_v44, %v23292_v11  ;;  %v5519_v59 = vand.u32 4294901760, %v19467_v13  ;;  %v19524_v15 = vld [vmem:[%s22954_s3 + $0xd8] sm:$0xff]  ;;  %v19555_v11 = vld [vmem:[%s22954_s3 + $0x50] sm:$0xff] }
 0x280   :  { %24025 = vst [vmem:[#allocation33_spill] sm:$0xff] %v19474_v62  ;;  %v19526_v8 = vadd.f32 %v12672_v32, %v3254_v1  ;;  %5256 = vmatmul.mubr.f32.vlgmr.msra.gmra.mrb[34].mxu0 %v19029_v53  ;;  %v24031_v35 = vand.u32 4294901760, %v19422_v50  ;;  %v24032_v43 = vand.u32 4294901760, %v19416_v54  ;;  %v24033_v1 = vand.u32 4294901760, %v19217_v16 }
 0x281   :  { %24030 = vst [vmem:[#allocation90_spill] sm:$0xff] %v19505_v10  ;;  %15638 = vmatpush3.bf16.msra.mxu0 %v19474_v62  ;;  %v24034_v32 = vand.u32 4294901760, %v19222_v38  ;;  %v5707_v16 = vand.u32 4294901760, %v19498_v27  ;;  %v24038_v38 = vand.u32 4294901760, %v19325_v9  ;;  %v24045_v9 = vand.u32 4294901760, %v19358_v51 }
 0x282   :  { %v19532_v19 = vsub.f32 %v19422_v50, %v24031_v35  ;;  %v5587_v36 = vsub.f32 %v19416_v54, %v24032_v43  ;;  %v24036_v35 = vand.u32 4294901760, %v19441_v21  ;;  %15630 = vmatpush3.bf16.msra.mxu1 %v18325_v45  ;;  %15640 = vmatprep.subr.bf16.mxu0 %v19505_v10  ;;  %v24039_v43 = vand.u32 4294901760, %v19338_v42 }
 0x283   :  { %v19544_v24 = vpack.c.bf16 %v24034_v32, %v24033_v1  ;;  %15632 = vmatprep.subr.bf16.mxu1 %v18327_v41  ;;  %v24040_v45 = vand.u32 4294901760, %v19436_v31  ;;  %v19579_v42 = vsub.f32 %v19462_v52, %v5516_v26  ;;  %v24041_v32 = vand.u32 4294901760, %v19486_v57 }
 0x284   :  { %v19550_v56 = vsub.f32 %v19441_v21, %v24036_v35  ;;  %v19564_v1 = vpack.c.bf16 %v24039_v43, %v24038_v38  ;;  %v5525_v35 = vand.u32 4294901760, %v19524_v15  ;;  %v19582_v38 = vsub.f32 %v19467_v13, %v5519_v59 }
 0x285   :  { %24035 = vst [vmem:[#allocation99_spill] sm:$0xff] %v19544_v24  ;;  %v5594_v27 = vsub.f32 %v19436_v31, %v24040_v45  ;;  %v19588_v54 = vsub.f32 %v19486_v57, %v24041_v32  ;;  %v24042_v41 = vand.u32 4294901760, %v19491_v60  ;;  %15642 = vmatpush3.bf16.msra.mxu0 %v19544_v24  ;;  %v24044_v52 = vand.u32 4294901760, %v19480_v58 }
 0x286   :  { %24037 = vst [vmem:[#allocation100_spill] sm:$0xff] %v19550_v56  ;;  %v24046_v32 = vand.u32 4294901760, %v19375_v34  ;;  %v5477_v62 = vand.u32 4294901760, %v19571_v61  ;;  %15634 = vmatpush3.bf16.msra.mxu1 %v18356_v25  ;;  %15644 = vmatprep.subr.bf16.mxu0 %v19564_v1  ;;  %v24047_v45 = vand.u32 4294901760, %v19402_v20  ;;  %v24048_v24 = vand.u32 4294901760, %v19410_v44 }
 0x287   :  { %v19593_v10 = vsub.f32 %v19491_v60, %v24042_v41  ;;  %v5713_v13 = vsub.f32 %v19480_v58, %v24044_v52  ;;  %v5588_v41 = vand.u32 4294901760, %v5587_v36  ;;  %v24049_v43 = vand.u32 4294901760, %v19519_v4  ;;  %15668 = vmatprep.subr.bf16.mxu1 %v19444_v37 }
 0x288   :  { %v19605_v31 = vpack.c.bf16 %v24046_v32, %v24045_v9  ;;  %v19614_v52 = vpack.c.bf16 %v24048_v24, %v24047_v45  ;;  %v19622_v34 = vsub.f32 %v19524_v15, %v5525_v35  ;;  %v5595_v25 = vand.u32 4294901760, %v5594_v27  ;;  %v24055_v27 = vld [vmem:[#allocation8_spill] sm:$0xff] }
 0x289   :  { %24043 = vst [vmem:[#allocation101_spill] sm:$0xff] %v19593_v10  ;;  %v19619_v51 = vsub.f32 %v19519_v4, %v24049_v43  ;;  %v24052_v36 = vand.u32 4294901760, %v19512_v18  ;;  %v24053_v44 = vand.u32 4294901760, %v19532_v19  ;;  %v24054_v32 = vand.u32 4294901760, %v19555_v11  ;;  %5360 = vmatmul.mubr.f32.vlgmr.msra.gmra.mrb[34].mxu1 %v19029_v53 }
 0x28a   :  { %24051 = vst [vmem:[#allocation107_spill] sm:$0xff] %v19622_v34  ;;  %v19641_v58 = vsub.s32 0, %v24055_v27  ;;  %15646 = vmatpush3.bf16.msra.mxu0 %v19605_v31  ;;  %v24059_v15 = vand.u32 4294901760, %v19441_v21  ;;  %15670 = vmatpush3.bf16.msra.mxu1 %v19452_v33  ;;  %v15675_v20 = vpack.c.bf16 %v5707_v16, %v5700_v47  ;;  %v15677_v47 = vpack.c.bf16 %v5595_v25, %v5588_v41 }
 0x28b   :  { %24050 = vst [vmem:[#allocation106_spill] sm:$0xff] %v19619_v51  ;;  %v5720_v9 = vsub.f32 %v19512_v18, %v24052_v36  ;;  %v5601_v45 = vsub.f32 %v19532_v19, %v24053_v44  ;;  %v19638_v37 = vsub.f32 %v19555_v11, %v24054_v32  ;;  %v24057_v36 = vand.u32 4294901760, %v19550_v56  ;;  %15648 = vmatprep.subr.bf16.mxu0 %v19614_v52 }
 0x28c   :  { %24056 = vst [vmem:[#allocation108_spill] sm:$0xff] %v19641_v58  ;;  %v24058_v44 = vand.u32 4294901760, %v19422_v50  ;;  %v19655_v32 = vsub.f32 %v19571_v61, %v5477_v62  ;;  %15672 = vmatprep.subr.bf16.mxu1 %v19454_v22  ;;  %v5714_v50 = vand.u32 4294901760, %v5713_v13  ;;  %v24062_v16 = vand.u32 4294901760, %v19588_v54  ;;  %v19680_v13 = vld [vmem:[%s22959_s8] sm:$0x7] }
 0x28d   :  { %v5608_v24 = vsub.f32 %v19550_v56, %v24057_v36  ;;  %v23317_v36 = vand.u32 4294901760, %v19622_v34  ;;  %v19661_v56 = vpack.c.bf16 %v5519_v59, %v5516_v26  ;;  %v5721_v21 = vand.u32 4294901760, %v5720_v9 }
 0x28e   :  { %v19652_v43 = vpack.c.bf16 %v24059_v15, %v24058_v44  ;;  %v24060_v15 = vand.u32 4294901760, %v19579_v42  ;;  %v24061_v44 = vand.u32 4294901760, %v19582_v38  ;;  %v5615_v53 = vsub.f32 %v19588_v54, %v24062_v16  ;;  %15674 = vmatpush3.bf16.msra.mxu1 %v19456_v12 }
 0x28f   :  { %v24063_v26 = vand.u32 4294901760, %v19593_v10  ;;  %v5602_v9 = vand.u32 4294901760, %v5601_v45  ;;  %v24064_v25 = vand.u32 4294901760, %v19486_v57  ;;  %v24067_v45 = vand.u32 4294901760, %v19519_v4  ;;  %15676 = vmatprep.subr.bf16.mxu1 %v15675_v20 }
 0x290   :  { %v5727_v61 = vsub.f32 %v19579_v42, %v24060_v15  ;;  %v5734_v33 = vsub.f32 %v19582_v38, %v24061_v44  ;;  %v5609_v15 = vand.u32 4294901760, %v5608_v24  ;;  %15650 = vmatpush3.bf16.msra.mxu0 %v19652_v43  ;;  %v24065_v44 = vand.u32 4294901760, %v19491_v60 }
 0x291   :  { %v5622_v59 = vsub.f32 %v19593_v10, %v24063_v26  ;;  %v24066_v26 = vand.u32 4294901760, %v19619_v51  ;;  %v5748_v24 = vsub.f32 %v19622_v34, %v23317_v36  ;;  %15652 = vmatprep.subr.bf16.mxu0 %v19661_v56  ;;  %v19700_v41 = vpack.c.bf16 %v5525_v35, %v24067_v45 }
 0x292   :  { %v19688_v16 = vpack.c.bf16 %v24065_v44, %v24064_v25  ;;  %v15679_v57 = vpack.c.bf16 %v5721_v21, %v5714_v50  ;;  %v5728_v60 = vand.u32 4294901760, %v5727_v61  ;;  %v5735_v25 = vand.u32 4294901760, %v5734_v33  ;;  %15678 = vmatpush3.bf16.msra.mxu1 %v15677_v47 }
 0x293   :  { %v5741_v22 = vsub.f32 %v19619_v51, %v24066_v26  ;;  %v5370_v12 = vrot.slane %v19680_v13, %v19641_v58  ;;  %v5616_v44 = vand.u32 4294901760, %v5615_v53  ;;  %v5623_v10 = vand.u32 4294901760, %v5622_v59 }
 0x294   :  { %v24068_v26 = vand.u32 4294901760, %v19638_v37  ;;  %v15681_v36 = vpack.c.bf16 %v5609_v15, %v5602_v9  ;;  %v24069_v34 = vand.u32 4294901760, %v19655_v32  ;;  %15654 = vmatpush3.bf16.msra.mxu0 %v19688_v16  ;;  %v24070_v35 = vand.u32 4294901760, %v19555_v11  ;;  %v12705_v9 = vpop.f32.mrb[22].mxu0  ;;  %15680 = vmatprep.subr.bf16.mxu1 %v15679_v57 }
 0x295   :  { %v5742_v50 = vand.u32 4294901760, %v5741_v22  ;;  %v5749_v21 = vand.u32 4294901760, %v5748_v24  ;;  %v24071_v53 = vand.u32 4294901760, %v19142_v7  ;;  %15656 = vmatprep.subr.bf16.mxu0 %v19700_v41  ;;  %v24072_v33 = vand.u32 4294901760, %v19090_v6  ;;  %v12706_v15 = vpop.f32.mrb[23].mxu0 }
 0x296   :  { %v5629_v51 = vsub.f32 %v19638_v37, %v24068_v26  ;;  %v5636_v4 = vsub.f32 %v19655_v32, %v24069_v34  ;;  %v19713_v20 = vpack.c.bf16 %v5477_v62, %v24070_v35  ;;  %v24073_v59 = vand.u32 4294901760, %v19096_v14  ;;  %15682 = vmatpush3.bf16.msra.mxu1 %v15681_v36 }
 0x297   :  { %v5755_v61 = vsub.f32 %v19142_v7, %v24071_v53  ;;  %v15683_v11 = vpack.c.bf16 %v5735_v25, %v5728_v60  ;;  %v24074_v62 = vand.u32 4294901760, %v19150_v39  ;;  %v5382_v22 = vadd.f32 %v5370_v12, %v18927_v23 }
 0x298   :  { %v19723_v34 = vpack.c.bf16 %v24073_v59, %v24072_v33  ;;  %v15685_v24 = vpack.c.bf16 %v5623_v10, %v5616_v44  ;;  %v5630_v45 = vand.u32 4294901760, %v5629_v51  ;;  %v12707_v26 = vadd.f32 %v12706_v15, %v12705_v9  ;;  %15658 = vmatpush3.bf16.msra.mxu0 %v19713_v20 }
 0x299   :  { %v5762_v47 = vsub.f32 %v19150_v39, %v24074_v62  ;;  %v5637_v35 = vand.u32 4294901760, %v5636_v4  ;;  %v24075_v6 = vand.u32 4294901760, %v19159_v55  ;;  %v24076_v57 = vand.u32 4294901760, %v19103_v29  ;;  %15684 = vmatprep.subr.bf16.mxu1 %v15683_v11 }
 0x29a   :  { %v24077_v60 = vand.u32 4294901760, %v19108_v5  ;;  %v15687_v53 = vpack.c.bf16 %v5749_v21, %v5742_v50  ;;  %v5756_v23 = vand.u32 4294901760, %v5755_v61  ;;  %v24078_v10 = vand.u32 4294901760, %v19164_v0  ;;  %15660 = vmatprep.subr.bf16.mxu0 %v19723_v34  ;;  %15686 = vmatpush3.bf16.msra.mxu1 %v15685_v24 }
 0x29b   :  { %v5643_v14 = vsub.f32 %v19159_v55, %v24075_v6  ;;  %v24079_v12 = vand.u32 4294901760, %v19119_v48  ;;  %v24080_v44 = vand.u32 4294901760, %v19124_v63  ;;  %v3530_v29 = vadd.f32 %v12707_v26, %v19526_v8 }
 0x29c   :  { %v19737_v25 = vpack.c.bf16 %v24077_v60, %v24076_v57  ;;  %v5650_v51 = vsub.f32 %v19164_v0, %v24078_v10  ;;  %v5763_v5 = vand.u32 4294901760, %v5762_v47  ;;  %v24081_v36 = vand.u32 4294901760, %v19206_v17  ;;  %15688 = vmatprep.subr.bf16.mxu1 %v15687_v53  ;;  %v12740_v24 = vpop.f32.mrb[22].mxu1 }
 0x29d   :  { %v19747_v4 = vpack.c.bf16 %v24080_v44, %v24079_v12  ;;  %v24082_v21 = vand.u32 4294901760, %v19211_v28  ;;  %v19757_v33 = vsub.s32 1, %v24055_v27  ;;  %v15689_v48 = vpack.c.bf16 %v5637_v35, %v5630_v45  ;;  %v24088_v45 = vld [vmem:[#allocation11_spill] sm:$0xff]  ;;  %v12741_v57 = vpop.f32.mrb[23].mxu1 }
 0x29e   :  { %v5769_v50 = vsub.f32 %v19206_v17, %v24081_v36  ;;  %v5644_v59 = vand.u32 4294901760, %v5643_v14  ;;  %15662 = vmatpush3.bf16.msra.mxu0 %v19737_v25  ;;  %v24084_v63 = vand.u32 4294901760, %v19131_v2  ;;  %v24085_v8 = vand.u32 4294901760, %v19136_v30 }
 0x29f   :  { %v5776_v61 = vsub.f32 %v19211_v28, %v24082_v21  ;;  %24083 = vst [vmem:[#allocation62_spill] sm:$0xff] %v19757_v33  ;;  %v5651_v11 = vand.u32 4294901760, %v5650_v51  ;;  %v24086_v62 = vand.u32 4294901760, %v19229_v40  ;;  %v24087_v15 = vand.u32 4294901760, %v19234_v49  ;;  %15664 = vmatprep.subr.bf16.mxu0 %v19747_v4  ;;  %15690 = vmatpush3.bf16.msra.mxu1 %v15689_v48 }
 0x2a0   :  { %v19764_v9 = vpack.c.bf16 %v24085_v8, %v24084_v63  ;;  %v15699_v35 = vpack.c.bf16 %v24088_v45, %v19271_v3  ;;  %v5385_v2 = vmax.f32 %v5382_v22, 0.0  ;;  %v15691_v30 = vpack.c.bf16 %v5763_v5, %v5756_v23  ;;  %v24090_v8 = vld [vmem:[#allocation90_spill] sm:$0xff] }
 0x2a1   :  { %v5657_v47 = vsub.f32 %v19229_v40, %v24086_v62  ;;  %v5664_v26 = vsub.f32 %v19234_v49, %v24087_v15  ;;  %v5770_v6 = vand.u32 4294901760, %v5769_v50  ;;  %v5777_v14 = vand.u32 4294901760, %v5776_v61 }
 0x2a2   :  { %v5374_v60 = vrot.slane %v19680_v13, %v19757_v33  ;;  %15666 = vmatpush3.bf16.msra.mxu0 %v19764_v9  ;;  %v12742_v10 = vadd.f32 %v12741_v57, %v12740_v24  ;;  %v15693_v51 = vpack.c.bf16 %v5651_v11, %v5644_v59  ;;  %v19778_v36 = vand.u32 4294901760, %v5385_v2  ;;  %15692 = vmatprep.subr.bf16.mxu1 %v15691_v30  ;;  %v24096_v57 = vld [vmem:[#allocation21_spill] sm:$0xff] }
 0x2a3   :  { %v5658_v12 = vand.u32 4294901760, %v5657_v47  ;;  %v5665_v44 = vand.u32 4294901760, %v5664_v26  ;;  %15700 = vmatprep.subr.bf16.mxu0 %v15699_v35  ;;  %v15695_v22 = vpack.c.bf16 %v5777_v14, %v5770_v6  ;;  %v24091_v47 = vld [vmem:[#allocation99_spill] sm:$0xff]  ;;  %v24092_v26 = vld [vmem:[#allocation13_spill] sm:$0xff]  ;;  %v24093_v35 = vld [vmem:[#allocation14_spill] sm:$0xff] }
 0x2a4   :  { %v3634_v53 = vadd.f32 %v12742_v10, %v3530_v29  ;;  %15694 = vmatpush3.bf16.msra.mxu1 %v15693_v51  ;;  %v19781_v50 = vsub.f32 %v5385_v2, %v19778_v36  ;;  %v24089_v29 = vld [vmem:[#allocation33_spill] sm:$0xff]  ;;  %v15701_v2 = vpack.c.bf16 %v24093_v35, %v24092_v26  ;;  %v24095_v14 = vld [vmem:[#allocation20_spill] sm:$0xff] }
 0x2a5   :  { %v15697_v5 = vpack.c.bf16 %v5665_v44, %v5658_v12  ;;  %15696 = vmatprep.subr.bf16.mxu1 %v15695_v22  ;;  %v24094_v6 = vld [vmem:[#allocation17_spill] sm:$0xff]  ;;  %v24099_v12 = vld [vmem:[#allocation27_spill] sm:$0xff] }
 0x2a6   :  { %v5383_v23 = vadd.f32 %v5374_v60, %v3634_v53  ;;  %v23320_v48 = vand.u32 4294901760, %v19781_v50  ;;  %v15703_v24 = vpack.c.bf16 %v24095_v14, %v24094_v6  ;;  %v24097_v60 = vld [vmem:[#allocation23_spill] sm:$0xff]  ;;  %v24098_v51 = vld [vmem:[#allocation25_spill] sm:$0xff] }
 0x2a7   :  { %v15705_v10 = vpack.c.bf16 %v24097_v60, %v24096_v57  ;;  %v15707_v44 = vpack.c.bf16 %v24099_v12, %v24098_v51 }
 0x2a8   :  { %v5386_v21 = vmax.f32 %v5383_v23, 0.0  ;;  %15698 = vmatpush3.bf16.msra.mxu1 %v15697_v5  ;;  %v5548_v11 = vsub.f32 %v19781_v50, %v23320_v48  ;;  %v24100_v5 = vld [vmem:[#allocation29_spill] sm:$0xff] }
 0x2a9   :  { %15732 = vmatprep.subr.bf16.mxu1 %v19430_v46 }
 0x2aa   :  { %v19783_v61 = vand.u32 4294901760, %v5386_v21  ;;  %v5549_v30 = vand.u32 4294901760, %v5548_v11 }
 0x2ac   :  { %v5540_v59 = vsub.f32 %v5386_v21, %v19783_v61  ;;  %5780 = vmatprep.mubr.f32.mxu1 %v19783_v61  ;;  %v24101_v21 = vld [vmem:[#allocation31_spill] sm:$0xff] }
 0x2ad   :  { %5782 = vmatmul.mubr.f32.vlgmr.msra.gmra.mrb[36].mxu1 %v19778_v36 }
 0x2ae   :  { %15734 = vmatpush3.bf16.msra.mxu1 %v24089_v29  ;;  %v5541_v63 = vand.u32 4294901760, %v5540_v59 }
 0x2af   :  { %15736 = vmatprep.subr.bf16.mxu1 %v24090_v8 }
 0x2b0   :  { %6024 = vmatprep.mubr.f32.mxu1 %v5541_v63  ;;  %v5542_v62 = vsub.f32 %v5540_v59, %v5541_v63  ;;  %v15709_v63 = vpack.c.bf16 %v24101_v21, %v24100_v5 }
 0x2b2   :  { %15738 = vmatpush3.bf16.msra.mxu1 %v24091_v47  ;;  %v5543_v15 = vand.u32 4294901760, %v5542_v62  ;;  %v24103_v62 = vld [vmem:[#allocation100_spill] sm:$0xff] }
 0x2b3   :  { %15740 = vmatprep.subr.bf16.mxu1 %v19564_v1  ;;  %v12775_v22 = vpop.f32.mrb[24].mxu0 }
 0x2b4   :  { %5544 = vmatprep.mubr.f32.mxu0 %v5543_v15  ;;  %v12776_v53 = vpop.f32.mrb[25].mxu0  ;;  %v15713_v15 = vpack.c.bf16 %v24103_v62, %v19532_v19 }
 0x2b5   :  { %5550 = vmatmul.mubr.f32.vlgmr.msra.gmra.mrb[36].mxu0 %v5549_v30  ;;  %v12777_v23 = vadd.f32 %v12776_v53, %v12775_v22  ;;  %v24105_v53 = vld [vmem:[#allocation106_spill] sm:$0xff] }
 0x2b6   :  { %15702 = vmatpush3.bf16.msra.mxu0 %v15701_v2  ;;  %5917 = vmatprep.mubr.f32.mxu0 %v5540_v59  ;;  %v24102_v59 = vld [vmem:[#allocation37_spill] sm:$0xff]  ;;  %v15715_v2 = vpack.c.bf16 %v19582_v38, %v19579_v42 }
 0x2b7   :  { %15742 = vmatpush3.bf16.msra.mxu1 %v19605_v31  ;;  %15704 = vmatprep.subr.bf16.mxu0 %v15703_v24  ;;  %v15711_v11 = vpack.c.bf16 %v19512_v18, %v24102_v59 }
 0x2b8   :  { %15744 = vmatprep.subr.bf16.mxu1 %v19614_v52 }
 0x2ba   :  { %15706 = vmatpush3.bf16.msra.mxu0 %v15705_v10 }
 0x2bb   :  { %15746 = vmatpush3.bf16.msra.mxu1 %v19652_v43  ;;  %15708 = vmatprep.subr.bf16.mxu0 %v15707_v44  ;;  %v24104_v44 = vld [vmem:[#allocation101_spill] sm:$0xff] }
 0x2bc   :  { %15748 = vmatprep.subr.bf16.mxu1 %v19661_v56  ;;  %v12810_v30 = vpop.f32.mrb[24].mxu1  ;;  %v15717_v22 = vpack.c.bf16 %v24104_v44, %v19588_v54 }
 0x2bd   :  { %v12811_v24 = vpop.f32.mrb[25].mxu1 }
 0x2be   :  { %15710 = vmatpush3.bf16.msra.mxu0 %v15709_v63  ;;  %v12812_v10 = vadd.f32 %v12811_v24, %v12810_v30  ;;  %v24106_v63 = vld [vmem:[#allocation107_spill] sm:$0xff]  ;;  %v15723_v24 = vpack.c.bf16 %v19150_v39, %v19142_v7  ;;  %v15727_v7 = vpack.c.bf16 %v19211_v28, %v19206_v17  ;;  %v24107_v39 = vand.u32 4294901760, %v19781_v50 }
 0x2bf   :  { %15750 = vmatpush3.bf16.msra.mxu1 %v19688_v16  ;;  %15712 = vmatprep.subr.bf16.mxu0 %v15711_v11  ;;  %v15719_v48 = vpack.c.bf16 %v24106_v63, %v24105_v53  ;;  %v19828_v11 = vld [vmem:[%s22954_s3 + $0x100] sm:$0xff]  ;;  %v24110_v17 = vand.u32 4294901760, %v24092_v26  ;;  %v24111_v28 = vand.u32 4294901760, %v24093_v35  ;;  %v24115_v26 = vand.u32 4294901760, %v24097_v60  ;;  %v19922_v60 = vld [vmem:[%s22954_s3 + $0x128] sm:$0xff] }
 0x2c0   :  { %15752 = vmatprep.subr.bf16.mxu1 %v19700_v41  ;;  %v3982_v58 = vadd.f32 %v12812_v10, %v12777_v23  ;;  %v6306_v30 = vand.u32 4294901760, %v19828_v11  ;;  %v15721_v23 = vpack.c.bf16 %v19655_v32, %v19638_v37 }
 0x2c2   :  { %15714 = vmatpush3.bf16.msra.mxu0 %v15713_v15  ;;  %v19833_v15 = vld [vmem:[%s22954_s3 + $0x108] sm:$0xff]  ;;  %v19845_v10 = vsub.f32 %v19828_v11, %v6306_v30 }
 0x2c3   :  { %15754 = vmatpush3.bf16.msra.mxu1 %v19713_v20  ;;  %15716 = vmatprep.subr.bf16.mxu0 %v15715_v2  ;;  %v6309_v2 = vand.u32 4294901760, %v19833_v15 }
 0x2c4   :  { %15756 = vmatprep.subr.bf16.mxu1 %v19723_v34 }
 0x2c5   :  { %v19850_v33 = vsub.f32 %v19833_v15, %v6309_v2 }
 0x2c6   :  { %15718 = vmatpush3.bf16.msra.mxu0 %v15717_v22  ;;  %v15725_v22 = vpack.c.bf16 %v19164_v0, %v19159_v55  ;;  %v24108_v55 = vand.u32 4294901760, %v19271_v3  ;;  %v24109_v0 = vand.u32 4294901760, %v24088_v45  ;;  %v19883_v45 = vld [vmem:[%s22954_s3 + $0x110] sm:$0xff] }
 0x2c7   :  { %15758 = vmatpush3.bf16.msra.mxu1 %v19737_v25  ;;  %15720 = vmatprep.subr.bf16.mxu0 %v15719_v48  ;;  %v15729_v48 = vpack.c.bf16 %v19234_v49, %v19229_v40  ;;  %v24112_v40 = vand.u32 4294901760, %v24094_v6  ;;  %v24113_v49 = vand.u32 4294901760, %v24095_v14  ;;  %v24116_v14 = vand.u32 4294901760, %v24098_v51 }
 0x2c8   :  { %15760 = vmatprep.subr.bf16.mxu1 %v19747_v4 }
 0x2c9   :  { %v15767_v3 = vpack.c.bf16 %v24113_v49, %v24112_v40  ;;  %v24124_v40 = vand.u32 4294901760, %v19579_v42  ;;  %v24125_v49 = vand.u32 4294901760, %v19582_v38  ;;  %v24126_v42 = vand.u32 4294901760, %v19588_v54 }
 0x2ca   :  { %15722 = vmatpush3.bf16.msra.mxu0 %v15721_v23  ;;  %v15763_v23 = vpack.c.bf16 %v24109_v0, %v24108_v55  ;;  %v24120_v0 = vand.u32 4294901760, %v24102_v59  ;;  %v24127_v38 = vand.u32 4294901760, %v24104_v44  ;;  %v24131_v54 = vand.u32 4294901760, %v19655_v32  ;;  %v20003_v44 = vld [vmem:[%s22954_s3 + $0x148] sm:$0xff]  ;;  %v20013_v32 = vld [vmem:[%s22954_s3 + $0x158] sm:$0xff] }
 0x2cb   :  { %15762 = vmatpush3.bf16.msra.mxu1 %v19764_v9  ;;  %15724 = vmatprep.subr.bf16.mxu0 %v15723_v24 }
 0x2cc   :  { %15796 = vmatprep.subr.bf16.mxu1 %v19430_v46  ;;  %v15765_v46 = vpack.c.bf16 %v24111_v28, %v24110_v17 }
 0x2ce   :  { %15726 = vmatpush3.bf16.msra.mxu0 %v15725_v22  ;;  %6028 = vmatmul.mubr.f32.vlgmr.msra.gmra.mrb[38].mxu1 %v24107_v39  ;;  %v24119_v39 = vand.u32 4294901760, %v24101_v21 }
 0x2cf   :  { %15798 = vmatpush3.bf16.msra.mxu1 %v24089_v29  ;;  %6298 = vmatprep.mubr.f32.mxu1 %v19783_v61  ;;  %v19888_v29 = vld [vmem:[%s22954_s3 + $0x118] sm:$0xff] }
 0x2d0   :  { %15728 = vmatprep.subr.bf16.mxu0 %v15727_v7  ;;  %15800 = vmatprep.subr.bf16.mxu1 %v24090_v8  ;;  %v6312_v8 = vand.u32 4294901760, %v19883_v45  ;;  %v24118_v7 = vand.u32 4294901760, %v24100_v5 }
 0x2d2   :  { %15730 = vmatpush3.bf16.msra.mxu0 %v15729_v48  ;;  %v19906_v22 = vsub.f32 %v19883_v45, %v6312_v8  ;;  %v15773_v48 = vpack.c.bf16 %v24119_v39, %v24118_v7  ;;  %v6339_v7 = vand.u32 4294901760, %v20013_v32 }
 0x2d3   :  { %15802 = vmatpush3.bf16.msra.mxu1 %v24091_v47  ;;  %15764 = vmatprep.subr.bf16.mxu0 %v15763_v23  ;;  %v6315_v47 = vand.u32 4294901760, %v19888_v29  ;;  %v12845_v6 = vpop.f32.mrb[26].mxu0  ;;  %v24121_v23 = vand.u32 4294901760, %v19512_v18  ;;  %v19954_v18 = vld [vmem:[%s22954_s3 + $0x138] sm:$0xff] }
 0x2d4   :  { %15804 = vmatprep.subr.bf16.mxu1 %v19564_v1  ;;  %v24114_v1 = vand.u32 4294901760, %v24096_v57  ;;  %v12846_v57 = vpop.f32.mrb[27].mxu0 }
 0x2d5   :  { %5920 = vmatmul.mubr.f32.vlgmr.msra.gmra.mrb[38].mxu0 %v19781_v50  ;;  %v24117_v50 = vand.u32 4294901760, %v24099_v12  ;;  %v12847_v51 = vadd.f32 %v12846_v57, %v12845_v6  ;;  %v15775_v17 = vpack.c.bf16 %v24121_v23, %v24120_v0  ;;  %v24129_v6 = vand.u32 4294901760, %v24106_v63 }
 0x2d6   :  { %15766 = vmatpush3.bf16.msra.mxu0 %v15765_v46  ;;  %6194 = vmatprep.mubr.f32.mxu0 %v19783_v61  ;;  %v15769_v35 = vpack.c.bf16 %v24115_v26, %v24114_v1  ;;  %v19911_v61 = vsub.f32 %v19888_v29, %v6315_v47  ;;  %v6327_v46 = vand.u32 4294901760, %v19954_v18  ;;  %v6333_v63 = vand.u32 4294901760, %v20003_v44 }
 0x2d7   :  { %15806 = vmatpush3.bf16.msra.mxu1 %v19605_v31  ;;  %15768 = vmatprep.subr.bf16.mxu0 %v15767_v3  ;;  %v15771_v24 = vpack.c.bf16 %v24117_v50, %v24116_v14  ;;  %v19917_v31 = vld [vmem:[%s22954_s3 + $0x120] sm:$0xff]  ;;  %v4120_v55 = vadd.f32 %v12847_v51, %v3982_v58  ;;  %v19949_v58 = vld [vmem:[%s22954_s3 + $0x130] sm:$0xff]  ;;  %v15779_v3 = vpack.c.bf16 %v24125_v49, %v24124_v40 }
 0x2d8   :  { %15808 = vmatprep.subr.bf16.mxu1 %v19614_v52  ;;  %v6318_v12 = vand.u32 4294901760, %v19917_v31  ;;  %v6321_v52 = vand.u32 4294901760, %v19922_v60  ;;  %v6324_v59 = vand.u32 4294901760, %v19949_v58  ;;  %v20042_v0 = vsub.f32 %v20003_v44, %v6333_v63 }
 0x2d9   :  { %v20052_v23 = vsub.f32 %v20013_v32, %v6339_v7 }
 0x2da   :  { %15770 = vmatpush3.bf16.msra.mxu0 %v15769_v35  ;;  %v19938_v28 = vsub.f32 %v19917_v31, %v6318_v12  ;;  %v19944_v5 = vsub.f32 %v19922_v60, %v6321_v52  ;;  %v15781_v35 = vpack.c.bf16 %v24127_v38, %v24126_v42  ;;  %v24134_v42 = vld [vmem:[#allocation12_spill] sm:$0xff] }
 0x2db   :  { %15810 = vmatpush3.bf16.msra.mxu1 %v19652_v43  ;;  %15772 = vmatprep.subr.bf16.mxu0 %v15771_v24  ;;  %v24122_v43 = vand.u32 4294901760, %v19532_v19  ;;  %v19971_v19 = vsub.f32 %v19949_v58, %v6324_v59  ;;  %v24130_v24 = vand.u32 4294901760, %v19638_v37  ;;  %v20008_v37 = vld [vmem:[%s22954_s3 + $0x150] sm:$0xff] }
 0x2dc   :  { %15812 = vmatprep.subr.bf16.mxu1 %v19661_v56  ;;  %v24123_v56 = vand.u32 4294901760, %v24103_v62  ;;  %v12880_v1 = vpop.f32.mrb[26].mxu1  ;;  %v19976_v62 = vsub.f32 %v19954_v18, %v6327_v46  ;;  %v6336_v51 = vand.u32 4294901760, %v20008_v37 }
 0x2dd   :  { %v15785_v57 = vpack.c.bf16 %v24131_v54, %v24130_v24  ;;  %v6413_v24 = vand.u32 4294901760, %v19906_v22  ;;  %v23340_v54 = vand.u32 4294901760, %v19911_v61 }
 0x2de   :  { %15774 = vmatpush3.bf16.msra.mxu0 %v15773_v48  ;;  %v15777_v21 = vpack.c.bf16 %v24123_v56, %v24122_v43  ;;  %v20062_v43 = vld [vmem:[%s22954_s3 + $0x178] sm:$0xff]  ;;  %v16907_v56 = vmov 0.0|0.0  }
 0x2df   :  { %15814 = vmatpush3.bf16.msra.mxu1 %v19688_v16  ;;  %15776 = vmatprep.subr.bf16.mxu0 %v15775_v17  ;;  %v12881_v16 = vpop.f32.mrb[27].mxu1  ;;  %v20057_v17 = vld [vmem:[%s22954_s3 + $0x170] sm:$0xff] }
 0x2e0   :  { %15816 = vmatprep.subr.bf16.mxu1 %v19700_v41  ;;  %v12882_v26 = vadd.f32 %v12881_v16, %v12880_v1  ;;  %v24128_v41 = vand.u32 4294901760, %v24105_v53  ;;  %v6348_v49 = vand.u32 4294901760, %v20057_v17  ;;  %v24133_v1 = vld [vmem:[#allocation10_spill] sm:$0xff]  ;;  %v23326_v16 = vand.u32 4294901760, %v19845_v10 }
 0x2e2   :  { %15778 = vmatpush3.bf16.msra.mxu0 %v15777_v21  ;;  %v15783_v14 = vpack.c.bf16 %v24129_v6, %v24128_v41  ;;  %v19987_v50 = vadd.f32 %v12882_v26, %v4120_v55  ;;  %v23325_v26 = vand.u32 4294901760, %v19850_v33  ;;  %v20085_v38 = vsub.f32 %v20057_v17, %v6348_v49 }
 0x2e3   :  { %15818 = vmatpush3.bf16.msra.mxu1 %v19713_v20  ;;  %15780 = vmatprep.subr.bf16.mxu0 %v15779_v3  ;;  %v19997_v20 = vld [vmem:[%s22954_s3 + $0x140] sm:$0xff]  ;;  %v23327_v3 = vand.u32 4294901760, %v20062_v43  ;;  %v23343_v41 = vmov 0.0   ;;  %v6400_v6 = vsub.f32 %v19845_v10, %v23326_v16  ;;  %v6421_v16 = vsub.f32 %v19911_v61, %v23340_v54 }
 0x2e4   :  { %15820 = vmatprep.subr.bf16.mxu1 %v19723_v34  ;;  %v20019_v34 = vld [vmem:[%s22954_s3 + $0x160] sm:$0xff]  ;;  %v6330_v53 = vand.u32 4294901760, %v19997_v20 }
 0x2e5   :  { %v6342_v39 = vand.u32 4294901760, %v20019_v34  ;;  %v6422_v15 = vand.u32 4294901760, %v6421_v16 }
 0x2e6   :  { %15782 = vmatpush3.bf16.msra.mxu0 %v15781_v35  ;;  %v20037_v55 = vsub.f32 %v19997_v20, %v6330_v53  ;;  %v20090_v35 = vsub.f32 %v20062_v43, %v23327_v3 }
 0x2e7   :  { %15822 = vmatpush3.bf16.msra.mxu1 %v19737_v25  ;;  %15784 = vmatprep.subr.bf16.mxu0 %v15783_v14  ;;  %v20024_v25 = vld [vmem:[%s22954_s3 + $0x168] sm:$0xff]  ;;  %v20068_v21 = vsub.f32 %v20019_v34, %v6342_v39  ;;  %v6407_v14 = vsub.f32 %v19850_v33, %v23325_v26  ;;  %v6414_v26 = vsub.f32 %v19906_v22, %v6413_v24  ;;  %v24136_v34 = vand.u32 4294901760, %v20062_v43 }
 0x2e8   :  { %15824 = vmatprep.subr.bf16.mxu1 %v19747_v4  ;;  %v24132_v4 = vld [vmem:[#allocation9_spill] sm:$0xff]  ;;  %v6345_v48 = vand.u32 4294901760, %v20024_v25  ;;  %v23335_v60 = vand.u32 4294901760, %v20037_v55  ;;  %v23328_v32 = vand.u32 4294901760, %v20090_v35  ;;  %v15882_v43 = vpack.c.bf16 %v19944_v5, %v19938_v28 }
 0x2e9   :  { %v6415_v11 = vand.u32 4294901760, %v6414_v26  ;;  %v23331_v20 = vand.u32 4294901760, %v20068_v21 }
 0x2ea   :  { %15786 = vmatpush3.bf16.msra.mxu0 %v15785_v57  ;;  %v20073_v40 = vsub.f32 %v20024_v25, %v6345_v48  ;;  %v24135_v57 = vld [vmem:[#allocation15_spill] sm:$0xff]  ;;  %v20235_v25 = vpack.c.bf16 %v24136_v34, %v6348_v49 }
 0x2eb   :  { %15826 = vmatpush3.bf16.msra.mxu1 %v19764_v9  ;;  %15788 = vmatprep.subr.bf16.mxu0 %v24132_v4  ;;  %v20047_v9 = vsub.f32 %v20008_v37, %v6336_v51  ;;  %v20107_v4 = vpack.c.bf16 %v6309_v2, %v6306_v30  ;;  %v23339_v30 = vand.u32 4294901760, %v19938_v28  ;;  %v23338_v2 = vand.u32 4294901760, %v19944_v5 }
 0x2ec   :  { %15971 = vmatprep.subr.bf16.mxu1 %v16907_v56  ;;  %v23330_v44 = vand.u32 4294901760, %v20073_v40  ;;  %v23329_v37 = vand.u32 4294901760, %v20085_v38 }
 0x2ed   :  { %v6428_v16 = vsub.f32 %v19938_v28, %v23339_v30  ;;  %v6435_v45 = vsub.f32 %v19944_v5, %v23338_v2  ;;  %v23333_v18 = vand.u32 4294901760, %v20047_v9 }
 0x2ee   :  { %15790 = vmatpush3.bf16.msra.mxu0 %v24133_v1  ;;  %6300 = vmatmul.mubr.f32.vlgmr.msra.gmra.mrb[40].mxu1 %v19778_v36  ;;  %v6401_v1 = vand.u32 4294901760, %v6400_v6  ;;  %v20126_v6 = vpack.c.bf16 %v6315_v47, %v6312_v8 }
 0x2ef   :  { %15792 = vmatprep.subr.bf16.mxu0 %v24134_v42  ;;  %14271 = vmatprep.mubr.msk.f32.mxu1 %vm16908_vm1, %v23343_v41  ;;  %v6408_v42 = vand.u32 4294901760, %v6407_v14  ;;  %v6429_v8 = vand.u32 4294901760, %v6428_v16  ;;  %v6436_v47 = vand.u32 4294901760, %v6435_v45  ;;  %v6456_v45 = vsub.f32 %v20037_v55, %v23335_v60 }
 0x2f0   :  { %v20259_v60 = vsub.s32 2, %v24055_v27 }
 0x2f1   :  { %v20116_v3 = vpack.c.bf16 %v6408_v42, %v6401_v1  ;;  %v20145_v1 = vpack.c.bf16 %v6321_v52, %v6318_v12  ;;  %v23336_v42 = vand.u32 4294901760, %v19976_v62  ;;  %v23334_v12 = vand.u32 4294901760, %v20042_v0 }
 0x2f2   :  { %15794 = vmatpush3.bf16.msra.mxu0 %v24135_v57  ;;  %v23337_v57 = vand.u32 4294901760, %v19971_v19  ;;  %v20165_v52 = vpack.c.bf16 %v6327_v46, %v6324_v59  ;;  %v6457_v58 = vand.u32 4294901760, %v6456_v45  ;;  %v23332_v59 = vand.u32 4294901760, %v20052_v23  ;;  %24137 = vst [vmem:[#allocation16_spill] sm:$0xff] %v20259_v60 }
 0x2f3   :  { %15827 = vmatprep.subr.bf16.mxu0 %v16907_v56  ;;  %v12915_v14 = vpop.f32.mrb[28].mxu0  ;;  %v6449_v31 = vsub.f32 %v19976_v62, %v23336_v42  ;;  %v5378_v30 = vrot.slane %v19680_v13, %v20259_v60 }
 0x2f4   :  { %v12916_v26 = vpop.f32.mrb[29].mxu0  ;;  %v6477_v45 = vsub.f32 %v20052_v23, %v23332_v59 }
 0x2f5   :  { %6196 = vmatmul.mubr.f32.vlgmr.msra.gmra.mrb[40].mxu0 %v19778_v36  ;;  %v20131_v36 = vpack.c.bf16 %v6422_v15, %v6415_v11  ;;  %v12917_v29 = vadd.f32 %v12916_v26, %v12915_v14  ;;  %v20150_v15 = vpack.c.bf16 %v6436_v47, %v6429_v8  ;;  %v6442_v14 = vsub.f32 %v19971_v19, %v23337_v57 }
 0x2f6   :  { %15829 = vmatpush3.bf16.msra.mxu0 %v20107_v4  ;;  %14077 = vmatprep.mubr.msk.f32.mxu0 %vm16908_vm1, %v23343_v41  ;;  %v6463_v26 = vsub.f32 %v20042_v0, %v23334_v12 }
 0x2f7   :  { %15830 = vmatprep.subr.bf16.mxu0 %v16907_v56  ;;  %v4396_v11 = vadd.f32 %v12917_v29, %v19987_v50  ;;  %v6443_v16 = vand.u32 4294901760, %v6442_v14  ;;  %v6450_v50 = vand.u32 4294901760, %v6449_v31  ;;  %v20183_v31 = vpack.c.bf16 %v6333_v63, %v6330_v53 }
 0x2f8   :  { %v6464_v14 = vand.u32 4294901760, %v6463_v26  ;;  %v20201_v53 = vpack.c.bf16 %v6339_v7, %v6336_v51  ;;  %v20219_v51 = vpack.c.bf16 %v6345_v48, %v6342_v39  ;;  %v15876_v48 = vpack.c.bf16 %v19850_v33, %v19845_v10 }
 0x2f9   :  { %v20174_v8 = vpack.c.bf16 %v6450_v50, %v6443_v16  ;;  %v6470_v50 = vsub.f32 %v20047_v9, %v23333_v18 }
 0x2fa   :  { %15832 = vmatpush3.bf16.msra.mxu0 %v20126_v6  ;;  %v20186_v16 = vpack.c.bf16 %v6464_v14, %v6457_v58  ;;  %v6491_v58 = vsub.f32 %v20073_v40, %v23330_v44 }
 0x2fb   :  { %15833 = vmatprep.subr.bf16.mxu0 %v16907_v56 }
 0x2fc   :  { %v12950_v29 = vpop.f32.mrb[28].mxu1 }
 0x2fd   :  { %v12951_v47 = vpop.f32.mrb[29].mxu1 }
 0x2fe   :  { %15835 = vmatpush3.bf16.msra.mxu0 %v20145_v1  ;;  %v12952_v46 = vadd.f32 %v12951_v47, %v12950_v29  ;;  %v6471_v29 = vand.u32 4294901760, %v6470_v50  ;;  %v6478_v47 = vand.u32 4294901760, %v6477_v45  ;;  %v6498_v50 = vsub.f32 %v20085_v38, %v23329_v37 }
 0x2ff   :  { %15836 = vmatprep.subr.bf16.mxu0 %v16907_v56  ;;  %v6505_v45 = vsub.f32 %v20090_v35, %v23328_v32  ;;  %v15891_v32 = vpack.c.bf16 %v20052_v23, %v20047_v9 }
 0x300   :  { %v4500_v26 = vadd.f32 %v12952_v46, %v4396_v11  ;;  %v20204_v63 = vpack.c.bf16 %v6478_v47, %v6471_v29  ;;  %v6484_v11 = vsub.f32 %v20068_v21, %v23331_v20  ;;  %v6492_v46 = vand.u32 4294901760, %v6491_v58 }
 0x301   :  { %v6499_v29 = vand.u32 4294901760, %v6498_v50  ;;  %v6506_v47 = vand.u32 4294901760, %v6505_v45 }
 0x302   :  { %15838 = vmatpush3.bf16.msra.mxu0 %v20165_v52  ;;  %v6485_v14 = vand.u32 4294901760, %v6484_v11  ;;  %v15879_v11 = vpack.c.bf16 %v19911_v61, %v19906_v22  ;;  %v24144_v22 = vand.u32 4294901760, %v19976_v62 }
 0x303   :  { %15839 = vmatprep.subr.bf16.mxu0 %v16907_v56  ;;  %v20238_v39 = vpack.c.bf16 %v6506_v47, %v6499_v29  ;;  %v15888_v47 = vpack.c.bf16 %v20042_v0, %v20037_v55 }
 0x304   :  { %v20222_v7 = vpack.c.bf16 %v6492_v46, %v6485_v14  ;;  %v15885_v46 = vpack.c.bf16 %v19976_v62, %v19971_v19  ;;  %v24150_v62 = vand.u32 4294901760, %v20073_v40 }
 0x306   :  { %15841 = vmatpush3.bf16.msra.mxu0 %v20183_v31 }
 0x307   :  { %15842 = vmatprep.subr.bf16.mxu0 %v16907_v56 }
 0x30a   :  { %15844 = vmatpush3.bf16.msra.mxu0 %v20201_v53 }
 0x30b   :  { %15845 = vmatprep.subr.bf16.mxu0 %v16907_v56 }
 0x30e   :  { %15847 = vmatpush3.bf16.msra.mxu0 %v20219_v51 }
 0x30f   :  { %15848 = vmatprep.subr.bf16.mxu0 %v16907_v56 }
 0x312   :  { %15850 = vmatpush3.bf16.msra.mxu0 %v20235_v25 }
 0x313   :  { %15851 = vmatprep.subr.bf16.mxu0 %v16907_v56  ;;  %v12985_v58 = vpop.f32.mrb[30].mxu0 }
 0x314   :  { %v12986_v17 = vpop.f32.mrb[31].mxu0 }
 0x315   :  { %v12987_v14 = vadd.f32 %v12986_v17, %v12985_v58  ;;  %v15894_v58 = vpack.c.bf16 %v20073_v40, %v20068_v21  ;;  %v15897_v17 = vpack.c.bf16 %v20090_v35, %v20085_v38 }
 0x317   :  { %v4612_v49 = vadd.f32 %v12987_v14, %v4500_v26 }
 0x31c   :  { %v13020_v50 = vpop.f32.mrb[30].mxu1 }
 0x31d   :  { %v13021_v45 = vpop.f32.mrb[31].mxu1 }
 0x31e   :  { %v13022_v29 = vadd.f32 %v13021_v45, %v13020_v50 }
 0x320   :  { %v4844_v34 = vadd.f32 %v13022_v29, %v4612_v49 }
 0x333   :  { %v13055_v26 = vpop.f32.mrb[32].mxu0 }
 0x334   :  { %v13056_v14 = vpop.f32.mrb[33].mxu0 }
 0x335   :  { %v13057_v37 = vadd.f32 %v13056_v14, %v13055_v26 }
 0x337   :  { %v4982_v44 = vadd.f32 %v13057_v37, %v4844_v34 }
 0x33c   :  { %v13090_v20 = vpop.f32.mrb[32].mxu1 }
 0x33d   :  { %v13091_v59 = vpop.f32.mrb[33].mxu1 }
 0x33e   :  { %v13092_v50 = vadd.f32 %v13091_v59, %v13090_v20 }
 0x340   :  { %v5090_v45 = vadd.f32 %v13092_v50, %v4982_v44  ;;  %v16910_v44 = vmov 0  }
 0x341   :  { %16823 = vset.pattern.permute.xlu0 %v16910_v44  ;;  %16824 = vset.pattern.permute.xlu1 %v16910_v44 }
 0x353   :  { %v13125_v18 = vpop.f32.mrb[34].mxu0 }
 0x354   :  { %v13126_v12 = vpop.f32.mrb[35].mxu0 }
 0x355   :  { %v13127_v49 = vadd.f32 %v13126_v12, %v13125_v18 }
 0x357   :  { %v5258_v29 = vadd.f32 %v13127_v49, %v5090_v45 }
 0x35c   :  { %v13160_v42 = vpop.f32.mrb[34].mxu1 }
 0x35d   :  { %v13161_v57 = vpop.f32.mrb[35].mxu1 }
 0x35e   :  { %v13162_v2 = vadd.f32 %v13161_v57, %v13160_v42 }
 0x360   :  { %v5362_v54 = vadd.f32 %v13162_v2, %v5258_v29  ;;  %v11886_v2 = vld [vmem:[%s22959_s8 + $0x3] ss:$0 sm:$0xff] }
 0x362   :  { %v5384_v26 = vadd.f32 %v5378_v30, %v5362_v54 }
 0x364   :  { %v5387_v37 = vmax.f32 %v5384_v26, 0.0  ;;  %v24138_v26 = vand.u32 4294901760, %v19845_v10  ;;  %v24142_v10 = vand.u32 4294901760, %v19944_v5  ;;  %v24148_v5 = vand.u32 4294901760, %v20052_v23  ;;  %v6948_v23 = vld [vmem:[%s22955_s4 + $0x8] sm:$0xff] }
 0x365   :  { %v6969_v40 = vand.u32 4294901760, %v6948_v23 }
 0x366   :  { %v20263_v34 = vand.u32 4294901760, %v5387_v37 }
 0x368   :  { %v20266_v59 = vsub.f32 %v5387_v37, %v20263_v34  ;;  %v24139_v37 = vand.u32 4294901760, %v19850_v33  ;;  %v24141_v33 = vand.u32 4294901760, %v19938_v28  ;;  %v24147_v28 = vand.u32 4294901760, %v20047_v9  ;;  %v6947_v9 = vld [vmem:[%s22955_s4] sm:$0xff] }
 0x36a   :  { %v6388_v12 = vand.u32 4294901760, %v20266_v59 }
 0x36c   :  { %v6389_v18 = vsub.f32 %v20266_v59, %v6388_v12 }
 0x36e   :  { %v6390_v20 = vand.u32 4294901760, %v6389_v18  ;;  %v15924_v18 = vpack.c.bf16 %v24139_v37, %v24138_v26 }
 0x370   :  { %14078 = vmatmul.mubr.f32.vlgmr.msra.gmra.mrb[42].mxu0 %v6390_v20  ;;  %v24140_v20 = vand.u32 4294901760, %v19911_v61 }
 0x371   :  { %15853 = vmatpush3.bf16.msra.mxu0 %v20116_v3  ;;  %14112 = vmatprep.mubr.msk.f32.mxu0 %vm16908_vm1, %v23343_v41 }
 0x372   :  { %15854 = vmatprep.subr.bf16.mxu0 %v16907_v56 }
 0x375   :  { %15856 = vmatpush3.bf16.msra.mxu0 %v20131_v36 }
 0x376   :  { %15857 = vmatprep.subr.bf16.mxu0 %v16907_v56 }
 0x379   :  { %15859 = vmatpush3.bf16.msra.mxu0 %v20150_v15 }
 0x37a   :  { %15860 = vmatprep.subr.bf16.mxu0 %v16907_v56 }
 0x37d   :  { %15862 = vmatpush3.bf16.msra.mxu0 %v20174_v8  ;;  %v7503_v8 = vld [vmem:[%s22952_s1] sm:$0xff] }
 0x37e   :  { %15863 = vmatprep.subr.bf16.mxu0 %v16907_v56  ;;  %7508 = vperm.xlu0 %16823, %v7503_v8   ;;  %v6954_v8 = vld [vmem:[%s22955_s4 + $0x38] sm:$0xff] }
 0x37f   :  { %v6987_v44 = vand.u32 4294901760, %v6954_v8 }
 0x380   :  { %v13230_v13 = vpop.f32.mrb[36].mxu1 }
 0x381   :  { %v13231_v54 = vpop.f32.mrb[37].mxu1  ;;  %15865 = vmatpush3.bf16.msra.mxu0 %v20186_v16  ;;  %v7504_v16 = vld [vmem:[%s22952_s1 + $0x8] sm:$0xff] }
 0x382   :  { %v13232_v30 = vadd.f32 %v13231_v54, %v13230_v13  ;;  %15866 = vmatprep.subr.bf16.mxu0 %v16907_v56  ;;  %7513 = vperm.xlu1 %16824, %v7504_v16   ;;  %v15927_v13 = vpack.c.bf16 %v24140_v20, %v6413_v24  ;;  %v15930_v54 = vpack.c.bf16 %v24142_v10, %v24141_v33  ;;  %v24145_v24 = vand.u32 4294901760, %v20037_v55 }
 0x383   :  { %v24151_v55 = vand.u32 4294901760, %v20085_v38 }
 0x385   :  { %15868 = vmatpush3.bf16.msra.mxu0 %v20204_v63 }
 0x386   :  { %15869 = vmatprep.subr.bf16.mxu0 %v16907_v56 }
 0x388   :  { %v13195_v3 = vpop.f32.mrb[36].mxu0 }
 0x389   :  { %v13196_v36 = vpop.f32.mrb[37].mxu0  ;;  %15871 = vmatpush3.bf16.msra.mxu0 %v20222_v7 }
 0x38a   :  { %v13197_v57 = vadd.f32 %v13196_v36, %v13195_v3  ;;  %15872 = vmatprep.subr.bf16.mxu0 %v16907_v56  ;;  %v15939_v3 = vpack.c.bf16 %v24148_v5, %v24147_v28 }
 0x38c   :  { %v5552_v42 = vadd.f32 %v13197_v57, %v11886_v2  ;;  %v20447_v57 = vsub.f32 %v6948_v23, %v6969_v40 }
 0x38d   :  { %15874 = vmatpush3.bf16.msra.mxu0 %v20238_v39 }
 0x38e   :  { %v5784_v15 = vadd.f32 %v13232_v30, %v5552_v42  ;;  %15875 = vmatprep.subr.bf16.mxu0 %v16907_v56 }
 0x390   :  { %14113 = vmatmul.mubr.f32.vlgmr.msra.gmra.mrb[42].mxu0 %v20263_v34 }
 0x391   :  { %15877 = vmatpush3.bf16.msra.mxu0 %v15876_v48  ;;  %14147 = vmatprep.mubr.msk.f32.mxu0 %vm16908_vm1, %v23343_v41 }
 0x392   :  { %15878 = vmatprep.subr.bf16.mxu0 %v16907_v56 }
 0x395   :  { %15880 = vmatpush3.bf16.msra.mxu0 %v15879_v11 }
 0x396   :  { %15881 = vmatprep.subr.bf16.mxu0 %v16907_v56 }
 0x399   :  { %15883 = vmatpush3.bf16.msra.mxu0 %v15882_v43 }
 0x39a   :  { %15884 = vmatprep.subr.bf16.mxu0 %v16907_v56 }
 0x39d   :  { %15886 = vmatpush3.bf16.msra.mxu0 %v15885_v46 }
 0x39e   :  { %15887 = vmatprep.subr.bf16.mxu0 %v16907_v56 }
 0x3a1   :  { %v13300_v63 = vpop.f32.mrb[38].mxu1  ;;  %15889 = vmatpush3.bf16.msra.mxu0 %v15888_v47 }
 0x3a2   :  { %v13301_v7 = vpop.f32.mrb[39].mxu1  ;;  %15890 = vmatprep.subr.bf16.mxu0 %v16907_v56 }
 0x3a3   :  { %v13302_v39 = vadd.f32 %v13301_v7, %v13300_v63  ;;  %v7058_v7 = vand.u32 4294901760, %v20447_v57 }
 0x3a5   :  { %15892 = vmatpush3.bf16.msra.mxu0 %v15891_v32 }
 0x3a6   :  { %15893 = vmatprep.subr.bf16.mxu0 %v16907_v56 }
 0x3a8   :  { %v13265_v48 = vpop.f32.mrb[38].mxu0 }
 0x3a9   :  { %v13266_v11 = vpop.f32.mrb[39].mxu0  ;;  %15895 = vmatpush3.bf16.msra.mxu0 %v15894_v58 }
 0x3aa   :  { %v13267_v43 = vadd.f32 %v13266_v11, %v13265_v48  ;;  %15896 = vmatprep.subr.bf16.mxu0 %v16907_v56 }
 0x3ac   :  { %v5922_v46 = vadd.f32 %v13267_v43, %v5784_v15  ;;  %v6953_v15 = vld [vmem:[%s22955_s4 + $0x30] sm:$0xff] }
 0x3ad   :  { %15898 = vmatpush3.bf16.msra.mxu0 %v15897_v17  ;;  %v6984_v16 = vand.u32 4294901760, %v6953_v15 }
 0x3ae   :  { %v6030_v14 = vadd.f32 %v13302_v39, %v5922_v46  ;;  %15899 = vmatprep.subr.bf16.mxu0 %v16907_v56 }
 0x3af   :  { %v20469_v46 = vpack.c.bf16 %v6987_v44, %v6984_v16 }
 0x3b0   :  { %14148 = vmatmul.mubr.f32.vlgmr.msra.gmra.mrb[42].mxu0 %v20266_v59  ;;  %v24143_v59 = vand.u32 4294901760, %v19971_v19  ;;  %v24149_v19 = vand.u32 4294901760, %v20068_v21  ;;  %v6966_v21 = vand.u32 4294901760, %v6947_v9 }
 0x3b1   :  { %15901 = vmatpush3.bf16.msra.mxu0 %v20107_v4  ;;  %14182 = vmatprep.mubr.msk.f32.mxu0 %vm16908_vm1, %v23343_v41 }
 0x3b2   :  { %15902 = vmatprep.subr.bf16.mxu0 %v16907_v56  ;;  %v15933_v61 = vpack.c.bf16 %v24144_v22, %v24143_v59  ;;  %v15942_v2 = vpack.c.bf16 %v24150_v62, %v24149_v19  ;;  %v20425_v38 = vpack.c.bf16 %v6969_v40, %v6966_v21 }
 0x3b4   :  { %15973 = vmatpush3.bf16.msra.mxu1 %v20425_v38 }
 0x3b5   :  { %15904 = vmatpush3.bf16.msra.mxu0 %v20126_v6  ;;  %15974 = vmatprep.subr.bf16.mxu1 %v16907_v56 }
 0x3b6   :  { %15905 = vmatprep.subr.bf16.mxu0 %v16907_v56 }
 0x3b9   :  { %15907 = vmatpush3.bf16.msra.mxu0 %v20145_v1 }
 0x3ba   :  { %15908 = vmatprep.subr.bf16.mxu0 %v16907_v56 }
 0x3bd   :  { %15910 = vmatpush3.bf16.msra.mxu0 %v20165_v52 }
 0x3be   :  { %15911 = vmatprep.subr.bf16.mxu0 %v16907_v56 }
 0x3c1   :  { %v13370_v32 = vpop.f32.mrb[40].mxu1  ;;  %15913 = vmatpush3.bf16.msra.mxu0 %v20183_v31 }
 0x3c2   :  { %v13371_v47 = vpop.f32.mrb[41].mxu1  ;;  %15914 = vmatprep.subr.bf16.mxu0 %v16907_v56 }
 0x3c3   :  { %v13372_v58 = vadd.f32 %v13371_v47, %v13370_v32  ;;  %v20473_v32 = vsub.f32 %v6954_v8, %v6987_v44 }
 0x3c5   :  { %15916 = vmatpush3.bf16.msra.mxu0 %v20201_v53 }
 0x3c6   :  { %15917 = vmatprep.subr.bf16.mxu0 %v16907_v56 }
 0x3c8   :  { %v13335_v17 = vpop.f32.mrb[40].mxu0 }
 0x3c9   :  { %v13336_v50 = vpop.f32.mrb[41].mxu0  ;;  %15919 = vmatpush3.bf16.msra.mxu0 %v20219_v51 }
 0x3ca   :  { %v13337_v45 = vadd.f32 %v13336_v50, %v13335_v17  ;;  %15920 = vmatprep.subr.bf16.mxu0 %v16907_v56 }
 0x3cc   :  { %v6198_v49 = vadd.f32 %v13337_v45, %v6030_v14  ;;  %v20471_v14 = vsub.f32 %v6953_v15, %v6984_v16 }
 0x3cd   :  { %15922 = vmatpush3.bf16.msra.mxu0 %v20235_v25 }
 0x3ce   :  { %v20351_v29 = vadd.f32 %v13372_v58, %v6198_v49  ;;  %15923 = vmatprep.subr.bf16.mxu0 %v16907_v56  ;;  %v7059_v58 = vsub.f32 %v20447_v57, %v7058_v7 }
 0x3d0   :  { %14183 = vmatmul.mubr.f32.vlgmr.msra.gmra.mrb[42].mxu0 %v6388_v12  ;;  %v24146_v12 = vand.u32 4294901760, %v20042_v0  ;;  %v24152_v0 = vand.u32 4294901760, %v20090_v35  ;;  %v6949_v35 = vld [vmem:[%s22955_s4 + $0x10] sm:$0xff]  ;;  %v7060_v49 = vand.u32 4294901760, %v7059_v58 }
 0x3d1   :  { %15925 = vmatpush3.bf16.msra.mxu0 %v15924_v18  ;;  %14217 = vmatprep.mubr.msk.f32.mxu0 %vm16908_vm1, %v23343_v41 }
 0x3d2   :  { %15926 = vmatprep.subr.bf16.mxu0 %v16907_v56  ;;  %v15936_v30 = vpack.c.bf16 %v24146_v12, %v24145_v24  ;;  %v15945_v36 = vpack.c.bf16 %v24152_v0, %v24151_v55  ;;  %v7093_v12 = vand.u32 4294901760, %v20471_v14  ;;  %v11888_v0 = vld [vmem:[%s22959_s8 + $0x5] ss:$0 sm:$0xff] }
 0x3d4   :  { %v7094_v5 = vsub.f32 %v20471_v14, %v7093_v12 }
 0x3d5   :  { %15928 = vmatpush3.bf16.msra.mxu0 %v15927_v13 }
 0x3d6   :  { %15929 = vmatprep.subr.bf16.mxu0 %v16907_v56  ;;  %v7095_v19 = vand.u32 4294901760, %v7094_v5 }
 0x3d9   :  { %15931 = vmatpush3.bf16.msra.mxu0 %v15930_v54 }
 0x3da   :  { %15932 = vmatprep.subr.bf16.mxu0 %v16907_v56 }
 0x3dd   :  { %15934 = vmatpush3.bf16.msra.mxu0 %v15933_v61 }
 0x3de   :  { %15935 = vmatprep.subr.bf16.mxu0 %v16907_v56 }
 0x3e1   :  { %15937 = vmatpush3.bf16.msra.mxu0 %v15936_v30  ;;  %v7100_v30 = vand.u32 4294901760, %v20473_v32 }
 0x3e2   :  { %15938 = vmatprep.subr.bf16.mxu0 %v16907_v56 }
 0x3e5   :  { %15940 = vmatpush3.bf16.msra.mxu0 %v15939_v3  ;;  %v7101_v3 = vsub.f32 %v20473_v32, %v7100_v30 }
 0x3e6   :  { %15941 = vmatprep.subr.bf16.mxu0 %v16907_v56 }
 0x3e7   :  { %v7102_v62 = vand.u32 4294901760, %v7101_v3  ;;  %v16915_v3 = vmov 2475754826  }
 0x3e9   :  { %15943 = vmatpush3.bf16.msra.mxu0 %v15942_v2  ;;  %v20497_v2 = vpack.c.bf16 %v7102_v62, %v7095_v19  ;;  %v16916_v62 = vmov 2131351028  }
 0x3ea   :  { %15944 = vmatprep.subr.bf16.mxu0 %v16907_v56 }
 0x3ed   :  { %15946 = vmatpush3.bf16.msra.mxu0 %v15945_v36 }
 0x3ee   :  { %15947 = vmatprep.subr.bf16.mxu0 %v16907_v56 }
 0x3f0   :  { %14218 = vmatmul.mubr.f32.vlgmr.msra.gmra.mrb[42].mxu0 %v20263_v34 }
 0x3f1   :  { %15949 = vmatpush3.bf16.msra.mxu0 %v20107_v4  ;;  %14252 = vmatprep.mubr.msk.f32.mxu0 %vm16908_vm1, %v23343_v41  ;;  %v6950_v4 = vld [vmem:[%s22955_s4 + $0x18] sm:$0xff] }
 0x3f2   :  { %15950 = vmatprep.subr.bf16.mxu0 %v16907_v56 }
 0x3f5   :  { %15952 = vmatpush3.bf16.msra.mxu0 %v20126_v6  ;;  %v6972_v6 = vand.u32 4294901760, %v6949_v35 }
 0x3f6   :  { %15953 = vmatprep.subr.bf16.mxu0 %v16907_v56 }
 0x3f7   :  { %v20461_v39 = vsub.f32 %v6949_v35, %v6972_v6 }
 0x3f9   :  { %15955 = vmatpush3.bf16.msra.mxu0 %v20145_v1  ;;  %v6975_v1 = vand.u32 4294901760, %v6950_v4  ;;  %v7065_v17 = vand.u32 4294901760, %v20461_v39 }
 0x3fa   :  { %15956 = vmatprep.subr.bf16.mxu0 %v16907_v56 }
 0x3fb   :  { %v20463_v48 = vsub.f32 %v6950_v4, %v6975_v1  ;;  %v7066_v26 = vsub.f32 %v20461_v39, %v7065_v17 }
 0x3fd   :  { %15958 = vmatpush3.bf16.msra.mxu0 %v20165_v52  ;;  %v20435_v52 = vpack.c.bf16 %v6975_v1, %v6972_v6  ;;  %v7072_v50 = vand.u32 4294901760, %v20463_v48  ;;  %v7067_v20 = vand.u32 4294901760, %v7066_v26  ;;  %v7509_v36 = vpop.permute.xlu0 %7508  ;;  %v16911_v26 = vmov 2102212464  }
 0x3fe   :  { %15959 = vmatprep.subr.bf16.mxu0 %v16907_v56  ;;  %v20506_v23 = vmul.f32 %v11888_v0, %v7509_v36 }
 0x3ff   :  { %15976 = vmatpush3.bf16.msra.mxu1 %v20435_v52  ;;  %v7073_v37 = vsub.f32 %v20463_v48, %v7072_v50 }
 0x400   :  { %15977 = vmatprep.subr.bf16.mxu1 %v16907_v56  ;;  %v7527_v40 = vand.u32 2139095040, %v20506_v23 }
 0x401   :  { %15961 = vmatpush3.bf16.msra.mxu0 %v20183_v31  ;;  %v6951_v31 = vld [vmem:[%s22955_s4 + $0x20] sm:$0xff]  ;;  %v7074_v13 = vand.u32 4294901760, %v7073_v37  ;;  %v7514_v6 = vpop.permute.xlu1 %7513 }
 0x402   :  { %15962 = vmatprep.subr.bf16.mxu0 %v16907_v56  ;;  %v7528_v4 = vshrl.u32 %v7527_v40, 23 }
 0x403   :  { %v20487_v54 = vpack.c.bf16 %v7074_v13, %v7067_v20  ;;  %v16912_v20 = vmov 920167782  }
 0x404   :  { %v11889_v1 = vadd.s32 4294967169, %v7528_v4 }
 0x405   :  { %15964 = vmatpush3.bf16.msra.mxu0 %v20201_v53  ;;  %v6952_v53 = vld [vmem:[%s22955_s4 + $0x28] sm:$0xff] }
 0x406   :  { %15965 = vmatprep.subr.bf16.mxu0 %v16907_v56 }
 0x409   :  { %15967 = vmatpush3.bf16.msra.mxu0 %v20219_v51  ;;  %v6978_v51 = vand.u32 4294901760, %v6951_v31 }
 0x40a   :  { %15968 = vmatprep.subr.bf16.mxu0 %v16907_v56 }
 0x40b   :  { %v20465_v11 = vsub.f32 %v6951_v31, %v6978_v51  ;;  %v20513_v31 = vmul.f32 %v11888_v0, %v7514_v6 }
 0x40d   :  { %15970 = vmatpush3.bf16.msra.mxu0 %v20235_v25  ;;  %v6981_v25 = vand.u32 4294901760, %v6952_v53  ;;  %v7079_v33 = vand.u32 4294901760, %v20465_v11 }
 0x40f   :  { %v20449_v42 = vpack.c.bf16 %v6981_v25, %v6978_v51  ;;  %v20467_v43 = vsub.f32 %v6952_v53, %v6981_v25  ;;  %v7080_v59 = vsub.f32 %v20465_v11, %v7079_v33  ;;  %v7534_v53 = vadd.s32 1, %v11889_v1 }
 0x410   :  { %14253 = vmatmul.mubr.f32.vlgmr.msra.gmra.mrb[42].mxu0 %v20263_v34  ;;  %v20445_v34 = vsub.f32 %v6947_v9, %v6966_v21  ;;  %v7630_v51 = vand.u32 2139095040, %v20513_v31 }
 0x411   :  { %8538 = vmatprep.mubr.f32.mxu0 %v23343_v41  ;;  %15979 = vmatpush3.bf16.msra.mxu1 %v20449_v42  ;;  %v7086_v10 = vand.u32 4294901760, %v20467_v43  ;;  %v7081_v61 = vand.u32 4294901760, %v7080_v59  ;;  %vm7535_vm2 = vcmp.gt.s32.totalorder %v7534_v53, 0 }
 0x412   :  { %v7051_v63 = vand.u32 4294901760, %v20445_v34  ;;  %15980 = vmatprep.subr.bf16.mxu1 %v16907_v56  ;;  %v15996_v55 = vpack.c.bf16 %v20447_v57, %v20445_v34  ;;  %v7631_v25 = vshrl.u32 %v7630_v51, 23  ;;  %v7536_v15 = vsel %vm7535_vm2, %v7534_v53, 0 }
 0x413   :  { %v7087_v22 = vsub.f32 %v20467_v43, %v7086_v10  ;;  %v7538_v16 = vand.u32 31, %v7536_v15  ;;  %v20521_v59 = vshrl.u32 %v7536_v15, 5  ;;  %v20523_v5 = vpack.c.bf16 %v7086_v10, %v7079_v33 }
 0x414   :  { %v7052_v47 = vsub.f32 %v20445_v34, %v7051_v63  ;;  %v11893_v8 = vadd.s32 4294967169, %v7631_v25  ;;  %v20516_v44 = vpack.c.bf16 %v7058_v7, %v7051_v63  ;;  %v16914_v63 = vmov 683565275  }
 0x415   :  { %15982 = vmatpush3.bf16.msra.mxu1 %v20469_v46  ;;  %v7088_v24 = vand.u32 4294901760, %v7087_v22  ;;  %v7539_v58 = vsub.s32 32, %v7538_v16  ;;  %v7550_v37 = vshll.u32 %v16911_v26, %v7538_v16  ;;  %v7553_v22 = vshll.u32 %v16912_v20, %v7538_v16 }
 0x416   :  { %15983 = vmatprep.subr.bf16.mxu1 %v16907_v56  ;;  %v7053_v45 = vand.u32 4294901760, %v7052_v47  ;;  %v7637_v47 = vadd.s32 1, %v11893_v8  ;;  %v7541_v7 = vshll.u32 %v16914_v63, %v7538_v16  ;;  %v7547_v36 = vshll.u32 %v16916_v62, %v7538_v16 }
 0x417   :  { %v20493_v28 = vpack.c.bf16 %v7088_v24, %v7081_v61  ;;  %v7551_v13 = vshrl.u32 %v16912_v20, %v7539_v58  ;;  %v16913_v61 = vmov 1326507024   ;;  %v7542_v19 = vshrl.u32 %v16915_v3, %v7539_v58 }
 0x418   :  { %v20483_v18 = vpack.c.bf16 %v7060_v49, %v7053_v45  ;;  %v20518_v45 = vpack.c.bf16 %v7072_v50, %v7065_v17  ;;  %vm7638_vm3 = vcmp.gt.s32.totalorder %v7637_v47, 0  ;;  %v23341_v49 = vand.u32 2147483647, %v20506_v23 }
 0x419   :  { %v7554_v24 = vshrl.u32 %v16913_v61, %v7539_v58  ;;  %v7544_v17 = vshll.u32 %v16915_v3, %v7538_v16  ;;  %v7639_v50 = vsel %vm7638_vm3, %v7637_v47, 0  ;;  %v7545_v0 = vshrl.u32 %v16916_v62, %v7539_v58 }
 0x41a   :  { %v7548_v40 = vshrl.u32 %v16911_v26, %v7539_v58  ;;  %v7531_v4 = vand.u32 8388607, %v23341_v49  ;;  %v7552_v6 = vor.u32 %v7551_v13, %v7550_v37  ;;  %vm7559_vm4 = vcmp.lt.s32.totalorder %v20521_v59, 4 }
 0x41b   :  { %v7555_v1 = vor.u32 %v7554_v24, %v7553_v22  ;;  %v7641_v33 = vand.u32 31, %v7639_v50  ;;  %v20529_v10 = vpack.c.bf16 %v7100_v30, %v7093_v12  ;;  %v7543_v53 = vor.u32 %v7542_v19, %v7541_v7 }
 0x41c   :  { %v7546_v51 = vor.u32 %v7545_v0, %v7544_v17  ;;  %v7549_v25 = vor.u32 %v7548_v40, %v7547_v36  ;;  %vm7556_vm5 = vcmp.lt.s32.totalorder %v20521_v59, 1  ;;  %vm7558_vm6 = vcmp.lt.s32.totalorder %v20521_v59, 3 }
 0x41d   :  { %v7565_v15 = vsel %vm7559_vm4, %v7552_v6, 920167782  ;;  %v7532_v8 = vor.u32 8388608, %v7531_v4  ;;  %v7569_v16 = vsel %vm7559_vm4, %v7555_v1, 1326507024  ;;  %v7642_v47 = vsub.s32 32, %v7641_v33 }
 0x41e   :  { %vm7557_vm7 = vcmp.lt.s32.totalorder %v20521_v59, 2  ;;  %v7564_v12 = vsel %vm7556_vm5, %v7543_v53, %v7546_v51  ;;  %v7566_v30 = vsel %vm7558_vm6, %v7549_v25, %v7565_v15  ;;  %v23342_v37 = vand.u32 2147483647, %v20513_v31 }
 0x41f   :  { %v7568_v13 = vsel %vm7556_vm5, %v7546_v51, %v7549_v25  ;;  %v7570_v22 = vsel %vm7558_vm6, %v7552_v6, %v7569_v16  ;;  %v7572_v24 = vshll.u32 %v7532_v8, 8  ;;  %v7653_v7 = vshll.u32 %v16911_v26, %v7641_v33 }
 0x420   :  { %v7654_v17 = vshrl.u32 %v16912_v20, %v7642_v47  ;;  %v7567_v19 = vsel %vm7557_vm7, %v7564_v12, %v7566_v30  ;;  %v7640_v0 = vshrl.u32 %v7639_v50, 5  ;;  %v7656_v36 = vshll.u32 %v16912_v20, %v7641_v33 }
 0x421   :  { %v7657_v40 = vshrl.u32 %v16913_v61, %v7642_v47  ;;  %v7571_v4 = vsel %vm7557_vm7, %v7568_v13, %v7570_v22  ;;  %v7634_v1 = vand.u32 8388607, %v23342_v37  ;;  %v7644_v15 = vshll.u32 %v16914_v63, %v7641_v33 }
 0x422   :  { %v7647_v35 = vshll.u32 %v16915_v3, %v7641_v33  ;;  %v7645_v49 = vshrl.u32 %v16915_v3, %v7642_v47  ;;  %v7648_v6 = vshrl.u32 %v16916_v62, %v7642_v47  ;;  %v7650_v8 = vshll.u32 %v16916_v62, %v7641_v33 }
 0x423   :  { %v7651_v16 = vshrl.u32 %v16911_v26, %v7642_v47  ;;  %v7540_v21 = vshrl.u32 %v16914_v63, %v7539_v58  ;;  %v20555_v9 = vmul.u32.u64.low %v7572_v24, %v7567_v19  ;;  %v20556_v12 = vmul.u32.u64.high %v7572_v24, %v7567_v19, %v20555_v9 }
 0x424   :  { %v7655_v20 = vor.u32 %v7654_v17, %v7653_v7  ;;  %v20559_v61 = vmul.u32.u64.low %v7572_v24, %v7571_v4  ;;  %v20560_v50 = vmul.u32.u64.high %v7572_v24, %v7571_v4, %v20559_v61  ;;  %v7658_v30 = vor.u32 %v7657_v40, %v7656_v36 }
 0x425   :  { %vm7662_vm8 = vcmp.lt.s32.totalorder %v7640_v0, 4  ;;  %v7561_v13 = vsel %vm7559_vm4, %v7549_v25, 2102212464  ;;  %v7646_v22 = vor.u32 %v7645_v49, %v7644_v15  ;;  %v7649_v3 = vor.u32 %v7648_v6, %v7647_v35 }
 0x426   :  { %v7652_v37 = vor.u32 %v7651_v16, %v7650_v8  ;;  %vm7659_vm9 = vcmp.lt.s32.totalorder %v7640_v0, 1  ;;  %vm7661_vm10 = vcmp.lt.s32.totalorder %v7640_v0, 3  ;;  %v7668_v58 = vsel %vm7662_vm8, %v7655_v20, 920167782 }
 0x427   :  { %v7560_v26 = vsel %vm7556_vm5, %v7540_v21, %v7543_v53  ;;  %v7562_v62 = vsel %vm7558_vm6, %v7546_v51, %v7561_v13  ;;  %v7635_v33 = vor.u32 8388608, %v7634_v1  ;;  %v7672_v7 = vsel %vm7662_vm8, %v7658_v30, 1326507024 }
 0x428   :  { %vm7660_vm11 = vcmp.lt.s32.totalorder %v7640_v0, 2  ;;  %v7667_v17 = vsel %vm7659_vm9, %v7646_v22, %v7649_v3  ;;  %v7669_v49 = vsel %vm7661_vm10, %v7652_v37, %v7668_v58  ;;  %v7563_v35 = vsel %vm7557_vm7, %v7560_v26, %v7562_v62 }
 0x429   :  { %v7582_v25 = vadd.s32 1, %v20556_v12  ;;  %v7671_v19 = vsel %vm7659_vm9, %v7649_v3, %v7652_v37  ;;  %v7673_v21 = vsel %vm7661_vm10, %v7655_v20, %v7672_v7  ;;  %vm7581_vm12 = vc.u32 %v20560_v50, %v20555_v9 }
 0x42a   :  { %v7675_v53 = vshll.u32 %v7635_v33, 8  ;;  %v7670_v51 = vsel %vm7660_vm11, %v7667_v17, %v7669_v49  ;;  %v7579_v36 = vmul.u32 %v7572_v24, %v7563_v35  ;;  %v7674_v40 = vsel %vm7660_vm11, %v7671_v19, %v7673_v21 }
 0x42b   :  { %v7583_v4 = vsel %vm7581_vm12, %v7582_v25, %v20556_v12  ;;  %v7643_v15 = vshrl.u32 %v16914_v63, %v7642_v47  ;;  %v7664_v20 = vsel %vm7662_vm8, %v7652_v37, 2102212464  ;;  %vm7526_vm2 = vcmp.lt.s32.totalorder %v20506_v23, 0 }
 0x42c   :  { %v20582_v1 = vmul.u32.u64.low %v7675_v53, %v7670_v51  ;;  %v20583_v59 = vmul.u32.u64.high %v7675_v53, %v7670_v51, %v20582_v1  ;;  %v20587_v6 = vmul.u32.u64.low %v7675_v53, %v7674_v40  ;;  %v20588_v8 = vmul.u32.u64.high %v7675_v53, %v7674_v40, %v20587_v6 }
 0x42d   :  { %v7584_v16 = vadd.s32 %v7583_v4, %v7579_v36  ;;  %v7663_v61 = vsel %vm7659_vm9, %v7643_v15, %v7646_v22  ;;  %v7665_v24 = vsel %vm7661_vm10, %v7649_v3, %v7664_v20  ;;  %vm7629_vm4 = vcmp.lt.s32.totalorder %v20513_v31, 0 }
 0x42e   :  { %v7666_v13 = vsel %vm7660_vm11, %v7663_v61, %v7665_v24  ;;  %v7685_v12 = vadd.s32 1, %v20583_v59  ;;  %vm7684_vm13 = vc.u32 %v20588_v8, %v20582_v1  ;;  %vm7616_vm9 = vweird.f32 %v20506_v23 }
 0x42f   :  { %v7585_v30 = vadd.s32 536870912, %v7584_v16  ;;  %v7682_v63 = vmul.u32 %v7675_v53, %v7666_v13 }
 0x430   :  { %v7686_v47 = vsel %vm7684_vm13, %v7685_v12, %v20583_v59  ;;  %vm7719_vm13 = vweird.f32 %v20513_v31 }
 0x431   :  { %v20597_v58 = vshrl.u32 %v7585_v30, 30  ;;  %v7687_v37 = vadd.s32 %v7686_v47, %v7682_v63  ;;  %v7580_v30 = vadd.s32 %v20555_v9, %v20560_v50  ;;  %v7683_v50 = vadd.s32 %v20582_v1, %v20588_v8 }
 0x432   :  { %v24153_v1 = vpack.c.bf16 %v20463_v48, %v20461_v39 }
 0x433   :  { %v7587_v26 = vshll.u32 %v20597_v58, 30  ;;  %v7688_v22 = vadd.s32 536870912, %v7687_v37 }
 0x435   :  { %v7588_v62 = vsub.s32 %v7584_v16, %v7587_v26  ;;  %v20601_v3 = vshrl.u32 %v7688_v22, 30 }
 0x437   :  { %v7590_v33 = vsub.s32 0, %v7588_v62  ;;  %v7690_v7 = vshll.u32 %v20601_v3, 30 }
 0x439   :  { %v11890_v0 = vmin.u32 %v7590_v33, %v7588_v62  ;;  %v7691_v19 = vsub.s32 %v7687_v37, %v7690_v7 }
 0x43b   :  { %v7592_v49 = vclz %v11890_v0  ;;  %v7693_v36 = vsub.s32 0, %v7691_v19 }
 0x43d   :  { %v11891_v53 = vadd.s32 4294967294, %v7592_v49  ;;  %v11894_v59 = vmin.u32 %v7693_v36, %v7691_v19  ;;  %v24155_v49 = vand.u32 2147483647, %v20506_v23 }
 0x43f   :  { %vm11892_vm14 = vcmp.lt.s32.totalorder %v11891_v53, 0  ;;  %v7695_v16 = vclz %v11894_v59  ;;  %vm20647_vm3 = vcmp.le.f32.partialorder %v24155_v49, 0.7853982 }
 0x440   :  { %v7595_v6 = vsel %vm11892_vm14, 0, %v11891_v53  ;;  %v24159_v53 = vand.u32 2147483647, %v20513_v31 }
 0x441   :  { %v7600_v61 = vsub.s32 4294967266, %v7595_v6  ;;  %v11895_v24 = vadd.s32 4294967294, %v7695_v16  ;;  %v7596_v13 = vsub.s32 32, %v7595_v6  ;;  %v7597_v63 = vshll.u32 %v7588_v62, %v7595_v6 }
 0x442   :  { %vm20674_vm5 = vcmp.le.f32.partialorder %v24159_v53, 0.7853982 }
 0x443   :  { %v7601_v12 = vadd.s32 127, %v7600_v61  ;;  %vm11896_vm15 = vcmp.lt.s32.totalorder %v11895_v24, 0  ;;  %v7598_v47 = vshrl.u32 %v7580_v30, %v7596_v13 }
 0x445   :  { %v7602_v26 = vshll.u32 %v7601_v12, 23  ;;  %v7599_v37 = vor.u32 %v7598_v47, %v7597_v63 }
 0x447   :  { %v7603_v22 = vor.u32 4788187, %v7602_v26 }
 0x449   :  { %v7604_v9 = vand.u32 2147483647, %v7603_v22 }
 0x4e3   :  { %v6942_v17 = vpop.f32.mrb[42].mxu0 }
 0x4e4   :  { %v16715_v35 = vadd.f32 %v6942_v17, %v20351_v29  ;;  %v14254_v25 = vpop.f32.mrb[43].mxu0 }
 0x4e6   :  { %v6946_v21 = vmax.f32 %v16715_v35, 0.0 }
 0x4e8   :  { %v6963_v51 = vsel %vm1889_vm0, %v6946_v21, 0  ;;  %v7610_v21 = vsub.s32 4, %v20597_v58 }
 0x4e9   :  { %v20606_v40 = vand.u32 4294901760, %v6963_v51 }
 0x4eb   :  { %v20609_v4 = vsub.f32 %v6963_v51, %v20606_v40 }
 0x4ed   :  { %v7040_v15 = vand.u32 4294901760, %v20609_v4 }
 0x4ef   :  { %v7041_v29 = vsub.f32 %v20609_v4, %v7040_v15 }
 0x4f1   :  { %v7042_v20 = vand.u32 4294901760, %v7041_v29 }
 0x4f3   :  { %14272 = vmatmul.mubr.f32.vlgmr.msra.gmra.mrb[42].mxu1 %v7042_v20  ;;  %v7713_v20 = vsub.s32 4, %v20601_v3 }
 0x4f4   :  { %15985 = vmatpush3.bf16.msra.mxu1 %v20483_v18  ;;  %14290 = vmatprep.mubr.msk.f32.mxu1 %vm16908_vm1, %v23343_v41  ;;  %v7698_v18 = vsel %vm11896_vm15, 0, %v11895_v24 }
 0x4f5   :  { %15986 = vmatprep.subr.bf16.mxu1 %v16907_v56  ;;  %v7703_v33 = vsub.s32 4294967266, %v7698_v18  ;;  %v7699_v62 = vsub.s32 32, %v7698_v18  ;;  %v7714_v30 = vsel %vm7629_vm4, %v7713_v20, %v20601_v3 }
 0x4f7   :  { %v7704_v0 = vadd.s32 127, %v7703_v33  ;;  %v7701_v7 = vshrl.u32 %v7683_v50, %v7699_v62  ;;  %v7731_v33 = vld [vmem:[%s22956_s5 + $0x8] sm:$0xff]  ;;  %v7732_v62 = vld [vmem:[%s22956_s5 + $0x10] sm:$0xff] }
 0x4f8   :  { %15988 = vmatpush3.bf16.msra.mxu1 %v20487_v54  ;;  %v7606_v54 = vcvt.s32.f32 %v7599_v37  ;;  %v7755_v50 = vand.u32 4294901760, %v7731_v33 }
 0x4f9   :  { %15989 = vmatprep.subr.bf16.mxu1 %v16907_v56  ;;  %v7705_v17 = vshll.u32 %v7704_v0, 23  ;;  %v7733_v0 = vld [vmem:[%s22956_s5 + $0x18] sm:$0xff] }
 0x4fb   :  { %v7706_v57 = vor.u32 4788187, %v7705_v17  ;;  %v7758_v17 = vand.u32 4294901760, %v7732_v62 }
 0x4fc   :  { %15991 = vmatpush3.bf16.msra.mxu1 %v20493_v28  ;;  %v7607_v28 = vmul.f32 %v7606_v54, %v7604_v9 }
 0x4fd   :  { %15992 = vmatprep.subr.bf16.mxu1 %v16907_v56  ;;  %v7707_v48 = vand.u32 2147483647, %v7706_v57 }
 0x4fe   :  { %v7608_v8 = vxor.u32 2147483648, %v7607_v28 }
 0x500   :  { %15994 = vmatpush3.bf16.msra.mxu1 %v20497_v2  ;;  %v7700_v2 = vshll.u32 %v7691_v19, %v7698_v18  ;;  %v7609_v39 = vsel %vm7526_vm2, %v7608_v8, %v7607_v28  ;;  %v24158_v19 = vpack.c.bf16 %v20473_v32, %v20471_v14  ;;  %v7611_v32 = vsel %vm7526_vm2, %v7610_v21, %v20597_v58 }
 0x501   :  { %15995 = vmatprep.subr.bf16.mxu1 %v16907_v56  ;;  %v7613_v59 = vsel %vm20647_vm3, 0, %v7611_v32 }
 0x502   :  { %v7702_v34 = vor.u32 %v7701_v7, %v7700_v2  ;;  %v7617_v16 = vand.u32 3, %v7613_v59  ;;  %v20739_v2 = vsub.f32 %v7731_v33, %v7755_v50 }
 0x503   :  { %14291 = vmatmul.mubr.f32.vlgmr.msra.gmra.mrb[42].mxu1 %v20606_v40 }
 0x504   :  { %15997 = vmatpush3.bf16.msra.mxu1 %v15996_v55  ;;  %14309 = vmatprep.mubr.msk.f32.mxu1 %vm16908_vm1, %v23343_v41  ;;  %v24154_v55 = vpack.c.bf16 %v20467_v43, %v20465_v11  ;;  %v7709_v25 = vcvt.s32.f32 %v7702_v34  ;;  %v7612_v11 = vsel %vm20647_vm3, %v20506_v23, %v7609_v39  ;;  %vm7619_vm6 = vcmp.eq.s32.totalorder %v7617_v16, 0  ;;  %v7735_v34 = vld [vmem:[%s22956_s5 + $0x28] sm:$0xff] }
 0x505   :  { %15998 = vmatprep.subr.bf16.mxu1 %v16907_v56  ;;  %16827 = vcosq.f32 %v7612_v11  ;;  %vm7622_vm7 = vcmp.eq.s32.totalorder %v7617_v16, 2  ;;  %vm7618_vm8 = vcmp.lt.s32.totalorder %v7617_v16, 2  ;;  %v7854_v35 = vand.u32 4294901760, %v20739_v2 }
 0x506   :  { %v7710_v43 = vmul.f32 %v7709_v25, %v7707_v48  ;;  %16829 = vsinq.f32 %v7612_v11  ;;  %v20764_v39 = vsub.f32 %v7732_v62, %v7758_v17 }
 0x507   :  { %v7855_v53 = vsub.f32 %v20739_v2, %v7854_v35 }
 0x508   :  { %16000 = vmatpush3.bf16.msra.mxu1 %v24153_v1  ;;  %v7711_v14 = vxor.u32 2147483648, %v7710_v43  ;;  %v7761_v1 = vand.u32 4294901760, %v7733_v0  ;;  %v7861_v51 = vand.u32 4294901760, %v20764_v39 }
 0x509   :  { %16001 = vmatprep.subr.bf16.mxu1 %v16907_v56  ;;  %v7856_v20 = vand.u32 4294901760, %v7855_v53  ;;  %v8399_v53 = vld [vmem:[#allocation2 + $0x8] sm:$0xff] }
 0x50a   :  { %v7712_v36 = vsel %vm7629_vm4, %v7711_v14, %v7710_v43  ;;  %v20766_v48 = vsub.f32 %v7733_v0, %v7761_v1  ;;  %v20769_v25 = vpack.c.bf16 %v7761_v1, %v7758_v17 }
 0x50b   :  { %v7715_v58 = vsel %vm20674_vm5, %v20513_v31, %v7712_v36 }
 0x50c   :  { %16003 = vmatpush3.bf16.msra.mxu1 %v24154_v55  ;;  %16831 = vcosq.f32 %v7715_v58  ;;  %v7737_v55 = vld [vmem:[%s22956_s5 + $0x38] sm:$0xff]  ;;  %v16079_v17 = vpack.c.bf16 %v20766_v48, %v20764_v39 }
 0x50d   :  { %16004 = vmatprep.subr.bf16.mxu1 %v16907_v56  ;;  %16833 = vsinq.f32 %v7715_v58  ;;  %v7773_v21 = vand.u32 4294901760, %v7737_v55 }
 0x50f   :  { %v16828_v6 = vpop.eup %16827 }
 0x510   :  { %16006 = vmatpush3.bf16.msra.mxu1 %v24158_v19  ;;  %v16830_v29 = vpop.eup %16829  ;;  %v7623_v24 = vxor.u32 2147483648, %v16828_v6  ;;  %v7767_v19 = vand.u32 4294901760, %v7735_v34 }
 0x511   :  { %16007 = vmatprep.subr.bf16.mxu1 %v16907_v56  ;;  %v7620_v61 = vxor.u32 2147483648, %v16830_v29 }
 0x512   :  { %v7624_v12 = vsel %vm7622_vm7, %v7623_v24, %v16830_v29 }
 0x513   :  { %14310 = vmatmul.mubr.f32.vlgmr.msra.gmra.mrb[42].mxu1 %v20609_v4  ;;  %v7621_v13 = vsel %vm7619_vm6, %v16828_v6, %v7620_v61  ;;  %v7716_v4 = vsel %vm20674_vm5, 0, %v7714_v30  ;;  %v20789_v6 = vsub.f32 %v7735_v34, %v7767_v19  ;;  %v7862_v61 = vsub.f32 %v20764_v39, %v7861_v51 }
 0x514   :  { %16009 = vmatpush3.bf16.msra.mxu1 %v20425_v38  ;;  %14328 = vmatprep.mubr.msk.f32.mxu1 %vm16908_vm1, %v23343_v41  ;;  %v7720_v47 = vand.u32 3, %v7716_v4  ;;  %v20806_v4 = vsub.f32 %v7737_v55, %v7773_v21 }
 0x515   :  { %16010 = vmatprep.subr.bf16.mxu1 %v16907_v56 }
 0x516   :  { %vm7722_vm10 = vcmp.eq.s32.totalorder %v7720_v47, 0  ;;  %vm7725_vm11 = vcmp.eq.s32.totalorder %v7720_v47, 2  ;;  %vm7721_vm12 = vcmp.lt.s32.totalorder %v7720_v47, 2 }
 0x518   :  { %16012 = vmatpush3.bf16.msra.mxu1 %v20435_v52 }
 0x519   :  { %16013 = vmatprep.subr.bf16.mxu1 %v16907_v56 }
 0x51c   :  { %16015 = vmatpush3.bf16.msra.mxu1 %v20449_v42 }
 0x51d   :  { %16016 = vmatprep.subr.bf16.mxu1 %v16907_v56 }
 0x520   :  { %16018 = vmatpush3.bf16.msra.mxu1 %v20469_v46 }
 0x521   :  { %16019 = vmatprep.subr.bf16.mxu1 %v16907_v56 }
 0x523   :  { %14329 = vmatmul.mubr.f32.vlgmr.msra.gmra.mrb[42].mxu1 %v7040_v15  ;;  %v16832_v15 = vpop.eup %16831 }
 0x524   :  { %16021 = vmatpush3.bf16.msra.mxu1 %v20516_v44  ;;  %14347 = vmatprep.mubr.msk.f32.mxu1 %vm16908_vm1, %v23343_v41  ;;  %v7625_v44 = vsel %vm7618_vm8, %v7621_v13, %v7624_v12  ;;  %v16834_v63 = vpop.eup %16833  ;;  %v7726_v18 = vxor.u32 2147483648, %v16832_v15  ;;  %v7882_v13 = vand.u32 4294901760, %v20789_v6 }
 0x525   :  { %16022 = vmatprep.subr.bf16.mxu1 %v16907_v56  ;;  %v7626_v26 = vsel %vm7616_vm9, nan, %v7625_v44  ;;  %v7723_v3 = vxor.u32 2147483648, %v16834_v63 }
 0x526   :  { %v7727_v22 = vsel %vm7725_vm11, %v7726_v18, %v16834_v63  ;;  %v7863_v63 = vand.u32 4294901760, %v7862_v61 }
 0x527   :  { %v7724_v37 = vsel %vm7722_vm10, %v16832_v15, %v7723_v3  ;;  %v7883_v3 = vsub.f32 %v20789_v6, %v7882_v13 }
 0x528   :  { %16024 = vmatpush3.bf16.msra.mxu1 %v20518_v45  ;;  %v7746_v45 = vsel %vm1889_vm0, %v7626_v26, 0 }
 0x529   :  { %16025 = vmatprep.subr.bf16.mxu1 %v16907_v56  ;;  %v20709_v23 = vand.u32 4294901760, %v7746_v45 }
 0x52b   :  { %v20724_v9 = vsub.f32 %v7746_v45, %v20709_v23  ;;  %v7896_v45 = vand.u32 4294901760, %v20806_v4 }
 0x52c   :  { %16027 = vmatpush3.bf16.msra.mxu1 %v20523_v5  ;;  %v7728_v5 = vsel %vm7721_vm12, %v7724_v37, %v7727_v22 }
 0x52d   :  { %16028 = vmatprep.subr.bf16.mxu1 %v16907_v56  ;;  %v7826_v31 = vand.u32 4294901760, %v20724_v9 }
 0x52f   :  { %v7827_v8 = vsub.f32 %v20724_v9, %v7826_v31 }
 0x530   :  { %16030 = vmatpush3.bf16.msra.mxu1 %v20529_v10  ;;  %v7730_v10 = vld [vmem:[%s22956_s5] sm:$0xff] }
 0x531   :  { %16031 = vmatprep.subr.bf16.mxu1 %v16907_v56  ;;  %v7752_v54 = vand.u32 4294901760, %v7730_v10  ;;  %v7828_v11 = vand.u32 4294901760, %v7827_v8 }
 0x533   :  { %14348 = vmatmul.mubr.f32.vlgmr.msra.gmra.mrb[42].mxu1 %v20606_v40  ;;  %v20742_v7 = vpack.c.bf16 %v7755_v50, %v7752_v54 }
 0x534   :  { %16033 = vmatpush3.bf16.msra.mxu1 %v20425_v38  ;;  %14366 = vmatprep.mubr.msk.f32.mxu1 %vm16908_vm1, %v23343_v41  ;;  %v7729_v38 = vsel %vm7719_vm13, nan, %v7728_v5 }
 0x535   :  { %16034 = vmatprep.subr.bf16.mxu1 %v16907_v56  ;;  %v7749_v28 = vsel %vm1889_vm0, %v7729_v38, 0  ;;  %v7897_v38 = vsub.f32 %v20806_v4, %v7896_v45 }
 0x536   :  { %v20753_v57 = vand.u32 4294901760, %v7749_v28 }
 0x537   :  { %v7898_v62 = vand.u32 4294901760, %v7897_v38 }
 0x538   :  { %16036 = vmatpush3.bf16.msra.mxu1 %v20435_v52  ;;  %v20737_v52 = vsub.f32 %v7730_v10, %v7752_v54  ;;  %v20773_v14 = vsub.f32 %v7749_v28, %v20753_v57  ;;  %v7884_v10 = vand.u32 4294901760, %v7883_v3  ;;  %v8413_v3 = vld [vmem:[#allocation2 + $0x78] sm:$0xff] }
 0x539   :  { %16037 = vmatprep.subr.bf16.mxu1 %v16907_v56 }
 0x53a   :  { %v7847_v49 = vand.u32 4294901760, %v20737_v52  ;;  %v7836_v29 = vand.u32 4294901760, %v20773_v14  ;;  %v16075_v28 = vpack.c.bf16 %v20739_v2, %v20737_v52 }
 0x53c   :  { %16039 = vmatpush3.bf16.msra.mxu1 %v20449_v42  ;;  %v7734_v42 = vld [vmem:[%s22956_s5 + $0x20] sm:$0xff]  ;;  %v7848_v32 = vsub.f32 %v20737_v52, %v7847_v49  ;;  %v7837_v44 = vsub.f32 %v20773_v14, %v7836_v29 }
 0x53d   :  { %16040 = vmatprep.subr.bf16.mxu1 %v16907_v56  ;;  %v7736_v56 = vld [vmem:[%s22956_s5 + $0x30] sm:$0xff] }
 0x53e   :  { %v7770_v43 = vand.u32 4294901760, %v7736_v56  ;;  %v7849_v16 = vand.u32 4294901760, %v7848_v32  ;;  %v7838_v37 = vand.u32 4294901760, %v7837_v44 }
 0x540   :  { %16042 = vmatpush3.bf16.msra.mxu1 %v20469_v46  ;;  %v7764_v46 = vand.u32 4294901760, %v7734_v42  ;;  %v20791_v58 = vpack.c.bf16 %v7773_v21, %v7770_v43  ;;  %v20804_v12 = vsub.f32 %v7736_v56, %v7770_v43  ;;  %v16059_v15 = vpack.c.bf16 %v7856_v20, %v7849_v16  ;;  %v8402_v16 = vld [vmem:[#allocation2 + $0x20] sm:$0xff] }
 0x541   :  { %16044 = vmatprep.subr.bf16.mxu1 %v20742_v7 }
 0x542   :  { %v20785_v36 = vpack.c.bf16 %v7767_v19, %v7764_v46  ;;  %v20787_v59 = vsub.f32 %v7734_v42, %v7764_v46  ;;  %v7889_v18 = vand.u32 4294901760, %v20804_v12  ;;  %v16087_v8 = vpack.c.bf16 %v20806_v4, %v20804_v12 }
 0x543   :  { %14367 = vmatmul.mubr.f32.vlgmr.msra.gmra.mrb[42].mxu1 %v20606_v40  ;;  %v7868_v40 = vand.u32 4294901760, %v20766_v48  ;;  %v16107_v42 = vpack.c.bf16 %v7854_v35, %v7847_v49 }
 0x544   :  { %16046 = vmatpush3.bf16.msra.mxu1 %v20742_v7  ;;  %14385 = vmatprep.mubr.f32.mxu1 %v7828_v11  ;;  %v7875_v30 = vand.u32 4294901760, %v20787_v59  ;;  %v7890_v33 = vsub.f32 %v20804_v12, %v7889_v18  ;;  %v16083_v1 = vpack.c.bf16 %v20789_v6, %v20787_v59  ;;  %v16119_v52 = vpack.c.bf16 %v7896_v45, %v7889_v18  ;;  %v8405_v6 = vld [vmem:[#allocation2 + $0x38] sm:$0xff]  ;;  %v8407_v12 = vld [vmem:[#allocation2 + $0x48] sm:$0xff] }
 0x545   :  { %16048 = vmatprep.subr.bf16.mxu1 %v20769_v25  ;;  %v7869_v24 = vsub.f32 %v20766_v48, %v7868_v40  ;;  %v9158_v20 = vand.u32 4294901760, %v8405_v6 }
 0x546   :  { %v7876_v26 = vsub.f32 %v20787_v59, %v7875_v30  ;;  %v7891_v50 = vand.u32 4294901760, %v7890_v33 }
 0x547   :  { %v7870_v47 = vand.u32 4294901760, %v7869_v24  ;;  %v8464_v24 = vand.u32 4294901760, %v8402_v16  ;;  %v20900_v45 = vsub.f32 %v8405_v6, %v9158_v20 }
 0x548   :  { %16050 = vmatpush3.bf16.msra.mxu1 %v20769_v25  ;;  %v7877_v5 = vand.u32 4294901760, %v7876_v26  ;;  %v16071_v0 = vpack.c.bf16 %v7898_v62, %v7891_v50  ;;  %v8409_v26 = vld [vmem:[#allocation2 + $0x58] sm:$0xff]  ;;  %v8410_v50 = vld [vmem:[#allocation2 + $0x60] sm:$0xff] }
 0x549   :  { %16052 = vmatprep.subr.bf16.mxu1 %v20785_v36  ;;  %v16063_v22 = vpack.c.bf16 %v7870_v47, %v7863_v63  ;;  %v8411_v47 = vld [vmem:[#allocation2 + $0x68] sm:$0xff] }
 0x54a   :  { %v16067_v54 = vpack.c.bf16 %v7884_v10, %v7877_v5  ;;  %v8406_v5 = vld [vmem:[#allocation2 + $0x40] sm:$0xff]  ;;  %v20907_v10 = vsub.f32 %v8402_v16, %v8464_v24  ;;  %v8470_v62 = vand.u32 4294901760, %v8411_v47  ;;  %v8423_v16 = vld [vmem:[#allocation2 + $0xc8] sm:$0xff] }
 0x54c   :  { %16054 = vmatpush3.bf16.msra.mxu1 %v20785_v36 }
 0x54d   :  { %16056 = vmatprep.subr.bf16.mxu1 %v20791_v58 }
 0x550   :  { %16058 = vmatpush3.bf16.msra.mxu1 %v20791_v58 }
 0x551   :  { %16060 = vmatprep.subr.bf16.mxu1 %v16059_v15 }
 0x553   :  { %14386 = vmatmul.mubr.f32.vlgmr.msra.gmra.mrb[44].mxu1 %v7838_v37 }
 0x554   :  { %16062 = vmatpush3.bf16.msra.mxu1 %v16059_v15  ;;  %14404 = vmatprep.mubr.f32.mxu1 %v20709_v23 }
 0x555   :  { %16064 = vmatprep.subr.bf16.mxu1 %v16063_v22 }
 0x558   :  { %16066 = vmatpush3.bf16.msra.mxu1 %v16063_v22 }
 0x559   :  { %16068 = vmatprep.subr.bf16.mxu1 %v16067_v54 }
 0x55c   :  { %16070 = vmatpush3.bf16.msra.mxu1 %v16067_v54  ;;  %v8466_v54 = vand.u32 4294901760, %v8407_v12 }
 0x55d   :  { %16072 = vmatprep.subr.bf16.mxu1 %v16071_v0 }
 0x560   :  { %16074 = vmatpush3.bf16.msra.mxu1 %v16071_v0  ;;  %v9162_v0 = vand.u32 4294901760, %v8409_v26 }
 0x561   :  { %16076 = vmatprep.subr.bf16.mxu1 %v16075_v28 }
 0x563   :  { %14405 = vmatmul.mubr.f32.vlgmr.msra.gmra.mrb[44].mxu1 %v20753_v57 }
 0x564   :  { %16078 = vmatpush3.bf16.msra.mxu1 %v16075_v28  ;;  %14423 = vmatprep.mubr.f32.mxu1 %v20724_v9  ;;  %v16111_v9 = vpack.c.bf16 %v7868_v40, %v7861_v51  ;;  %v8403_v51 = vld [vmem:[#allocation2 + $0x28] sm:$0xff]  ;;  %v8401_v40 = vld [vmem:[#allocation2 + $0x18] sm:$0xff]  ;;  %v9166_v28 = vand.u32 4294901760, %v8413_v3 }
 0x565   :  { %16080 = vmatprep.subr.bf16.mxu1 %v16079_v17  ;;  %v8462_v59 = vand.u32 4294901760, %v8403_v51 }
 0x567   :  { %v20894_v15 = vsub.f32 %v8403_v51, %v8462_v59  ;;  %v8418_v51 = vld [vmem:[#allocation2 + $0xa0] sm:$0xff] }
 0x568   :  { %16082 = vmatpush3.bf16.msra.mxu1 %v16079_v17  ;;  %v8468_v17 = vand.u32 4294901760, %v8406_v5 }
 0x569   :  { %16084 = vmatprep.subr.bf16.mxu1 %v16083_v1 }
 0x56c   :  { %16086 = vmatpush3.bf16.msra.mxu1 %v16083_v1  ;;  %v8408_v1 = vld [vmem:[#allocation2 + $0x50] sm:$0xff] }
 0x56d   :  { %16088 = vmatprep.subr.bf16.mxu1 %v16087_v8 }
 0x570   :  { %16090 = vmatpush3.bf16.msra.mxu1 %v16087_v8  ;;  %v8412_v8 = vld [vmem:[#allocation2 + $0x70] sm:$0xff] }
 0x571   :  { %16092 = vmatprep.subr.bf16.mxu1 %v20742_v7 }
 0x573   :  { %14424 = vmatmul.mubr.f32.vlgmr.msra.gmra.mrb[44].mxu1 %v20773_v14 }
 0x574   :  { %16094 = vmatpush3.bf16.msra.mxu1 %v20742_v7  ;;  %14442 = vmatprep.mubr.f32.mxu1 %v7826_v31  ;;  %v16115_v31 = vpack.c.bf16 %v7882_v13, %v7875_v30  ;;  %v8400_v30 = vld [vmem:[#allocation2 + $0x10] sm:$0xff] }
 0x575   :  { %16096 = vmatprep.subr.bf16.mxu1 %v20769_v25  ;;  %v8404_v13 = vld [vmem:[#allocation2 + $0x30] sm:$0xff]  ;;  %v9156_v33 = vand.u32 4294901760, %v8400_v30 }
 0x576   :  { %v9160_v38 = vand.u32 4294901760, %v8404_v13 }
 0x578   :  { %16098 = vmatpush3.bf16.msra.mxu1 %v20769_v25 }
 0x579   :  { %16100 = vmatprep.subr.bf16.mxu1 %v20785_v36 }
 0x57c   :  { %16102 = vmatpush3.bf16.msra.mxu1 %v20785_v36 }
 0x57d   :  { %16104 = vmatprep.subr.bf16.mxu1 %v20791_v58 }
 0x580   :  { %16106 = vmatpush3.bf16.msra.mxu1 %v20791_v58 }
 0x581   :  { %16108 = vmatprep.subr.bf16.mxu1 %v16107_v42 }
 0x583   :  { %14443 = vmatmul.mubr.f32.vlgmr.msra.gmra.mrb[44].mxu1 %v7836_v29  ;;  %v8398_v29 = vld [vmem:[#allocation2] sm:$0xff] }
 0x584   :  { %16110 = vmatpush3.bf16.msra.mxu1 %v16107_v42  ;;  %14461 = vmatprep.mubr.f32.mxu1 %v20709_v23  ;;  %v8460_v61 = vand.u32 4294901760, %v8398_v29  ;;  %v20911_v42 = vpack.c.bf16 %v9160_v38, %v9156_v33 }
 0x585   :  { %16112 = vmatprep.subr.bf16.mxu1 %v16111_v9 }
 0x586   :  { %v20902_v37 = vpack.c.bf16 %v8464_v24, %v8460_v61  ;;  %v20904_v22 = vsub.f32 %v8398_v29, %v8460_v61  ;;  %24165 = vst [vmem:[#allocation22_spill] sm:$0xff] %v20911_v42  ;;  %v8420_v29 = vld [vmem:[#allocation2 + $0xb0] sm:$0xff] }
 0x588   :  { %16114 = vmatpush3.bf16.msra.mxu1 %v16111_v9  ;;  %24164 = vst [vmem:[#allocation65_spill] sm:$0xff] %v20902_v37  ;;  %v20913_v9 = vsub.f32 %v8400_v30, %v9156_v33 }
 0x589   :  { %16116 = vmatprep.subr.bf16.mxu1 %v16115_v31 }
 0x58c   :  { %16118 = vmatpush3.bf16.msra.mxu1 %v16115_v31  ;;  %v20915_v31 = vsub.f32 %v8404_v13, %v9160_v38  ;;  %v8427_v13 = vld [vmem:[#allocation2 + $0xe8] sm:$0xff] }
 0x58d   :  { %16120 = vmatprep.subr.bf16.mxu1 %v16119_v52 }
 0x590   :  { %16122 = vmatpush3.bf16.msra.mxu1 %v16119_v52  ;;  %v20917_v52 = vsub.f32 %v8407_v12, %v8466_v54  ;;  %v8425_v12 = vld [vmem:[#allocation2 + $0xd8] sm:$0xff] }
 0x591   :  { %16124 = vmatprep.subr.bf16.mxu1 %v20742_v7 }
 0x593   :  { %14462 = vmatmul.mubr.f32.vlgmr.msra.gmra.mrb[44].mxu1 %v20753_v57 }
 0x594   :  { %16126 = vmatpush3.bf16.msra.mxu1 %v20742_v7  ;;  %14480 = vmatprep.mubr.f32.mxu1 %v20709_v23  ;;  %v11897_v23 = vld [vmem:[%s22959_s8 + $0x6] ss:$0 sm:$0xff] }
 0x595   :  { %16128 = vmatprep.subr.bf16.mxu1 %v20769_v25 }
 0x598   :  { %16130 = vmatpush3.bf16.msra.mxu1 %v20769_v25 }
 0x599   :  { %16132 = vmatprep.subr.bf16.mxu1 %v20785_v36 }
 0x59c   :  { %16134 = vmatpush3.bf16.msra.mxu1 %v20785_v36  ;;  %v8458_v36 = vand.u32 4294901760, %v8399_v53 }
 0x59d   :  { %16136 = vmatprep.subr.bf16.mxu1 %v20791_v58 }
 0x59e   :  { %v20890_v4 = vpack.c.bf16 %v8462_v59, %v8458_v36  ;;  %v20892_v44 = vsub.f32 %v8399_v53, %v8458_v36  ;;  %v8414_v53 = vld [vmem:[#allocation2 + $0x80] sm:$0xff] }
 0x59f   :  { %v8476_v38 = vand.u32 4294901760, %v8414_v53 }
 0x5a0   :  { %16138 = vmatpush3.bf16.msra.mxu1 %v20791_v58  ;;  %v9154_v58 = vand.u32 4294901760, %v8401_v40  ;;  %24162 = vst [vmem:[#allocation18_spill] sm:$0xff] %v20890_v4  ;;  %16140 = vmatprep.subr.bf16.mxu0 %v20890_v4 }
 0x5a1   :  { %16142 = vmatpush1.bf16.msra.mxu0 %v20902_v37 }
 0x5a2   :  { %v20896_v63 = vsub.f32 %v8401_v40, %v9154_v58  ;;  %v20898_v18 = vpack.c.bf16 %v9158_v20, %v9154_v58  ;;  %v8416_v58 = vld [vmem:[#allocation2 + $0x90] sm:$0xff] }
 0x5a3   :  { %14481 = vmatmul.mubr.f32.vlgmr.msra.gmra.mrb[44].mxu1 %v20753_v57 }
 0x5a4   :  { %9234 = vmatprep.mubr.f32.mxu1 %v23343_v41  ;;  %24163 = vst [vmem:[#allocation19_spill] sm:$0xff] %v20898_v18  ;;  %16236 = vmatprep.subr.bf16.mxu1 %v20898_v18 }
 0x5a5   :  { %16238 = vmatpush1.bf16.msra.mxu1 %v20911_v42 }
 0x616   :  { %v20873_v2 = vpop.f32.mrb[42].mxu1 }
 0x617   :  { %v14368_v7 = vpop.f32.mrb[43].mxu1 }
 0x618   :  { %v8415_v7 = vld [vmem:[#allocation2 + $0x88] sm:$0xff] }
 0x676   :  { %v14482_v34 = vpop.f32.mrb[44].mxu1 }
 0x677   :  { %v16717_v56 = vadd.f32 %v14482_v34, %v11897_v23  ;;  %v8321_v55 = vpop.f32.mrb[45].mxu1  ;;  %v8417_v34 = vld [vmem:[#allocation2 + $0x98] sm:$0xff] }
 0x678   :  { %v16718_v49 = vadd.f32 %v11897_v23, %v8321_v55  ;;  %v8419_v23 = vld [vmem:[#allocation2 + $0xa8] sm:$0xff]  ;;  %v20921_v55 = vsub.f32 %v8411_v47, %v8470_v62  ;;  %v8429_v47 = vld [vmem:[#allocation2 + $0xf8] sm:$0xff] }
 0x679   :  { %v8336_v35 = vsel %vm1889_vm0, %v16717_v56, 0.0 }
 0x67a   :  { %8337 = vadd.xlane.f32.xlu0 %v8336_v35  ;;  %v8333_v39 = vsel %vm1889_vm0, %v16718_v49, 0.0  ;;  %v20925_v35 = vsub.f32 %v8409_v26, %v9162_v0 }
 0x67b   :  { %8334 = vadd.xlane.f32.xlu1 %v8333_v39  ;;  %v8421_v39 = vld [vmem:[#allocation2 + $0xb8] sm:$0xff] }
 0x67c   :  { %v9174_v6 = vand.u32 4294901760, %v8421_v39 }
 0x67e   :  { %v20955_v33 = vsub.f32 %v8421_v39, %v9174_v6 }
 0x707   :  { %v8338_v57 = vpop.xlane.xlu0 %8337 }
 0x708   :  { %v8341_v48 = vmul.f32 0.015625, %v8338_v57  ;;  %v8335_v25 = vpop.xlane.xlu1 %8334  ;;  %v20928_v57 = vsub.f32 %v8413_v3, %v9166_v28 }
 0x709   :  { %v8340_v46 = vmul.f32 0.015625, %v8335_v25  ;;  %v20930_v25 = vsub.f32 %v8406_v5, %v8468_v17 }
 0x70a   :  { %v20880_v19 = vsub.f32 %v16717_v56, %v8341_v48  ;;  %v20919_v56 = vpack.c.bf16 %v8470_v62, %v8466_v54  ;;  %v8472_v48 = vand.u32 4294901760, %v8410_v50  ;;  %v8480_v54 = vand.u32 4294901760, %v8418_v51 }
 0x70b   :  { %v20882_v11 = vsub.f32 %v16718_v49, %v8340_v46  ;;  %v20923_v49 = vpack.c.bf16 %v9166_v28, %v9162_v0  ;;  %v9164_v46 = vand.u32 4294901760, %v8408_v1  ;;  %v9176_v62 = vand.u32 4294901760, %v8420_v29 }
 0x70c   :  { %v8345_v43 = vmul.f32 %v20880_v19, %v20880_v19  ;;  %24166 = vst [vmem:[#allocation24_spill] sm:$0xff] %v20919_v56  ;;  %16144 = vmatprep.subr.bf16.mxu0 %v20919_v56  ;;  %v20934_v40 = vpack.c.bf16 %v8472_v48, %v8468_v17  ;;  %v20936_v36 = vsub.f32 %v8410_v50, %v8472_v48  ;;  %v9172_v50 = vand.u32 4294901760, %v8416_v58  ;;  %v8426_v48 = vld [vmem:[#allocation2 + $0xe0] sm:$0xff] }
 0x70d   :  { %v8344_v21 = vmul.f32 %v20882_v11, %v20882_v11  ;;  %24167 = vst [vmem:[#allocation26_spill] sm:$0xff] %v20923_v49  ;;  %16240 = vmatprep.subr.bf16.mxu1 %v20923_v49  ;;  %v20938_v59 = vsub.f32 %v8408_v1, %v9164_v46  ;;  %v8482_v0 = vand.u32 4294901760, %v8423_v16  ;;  %v8486_v28 = vand.u32 4294901760, %v8427_v13 }
 0x70e   :  { %v8349_v14 = vsel %vm1889_vm0, %v8345_v43, 0.0  ;;  %v9168_v43 = vand.u32 4294901760, %v8412_v8  ;;  %24168 = vst [vmem:[#allocation28_spill] sm:$0xff] %v20934_v40  ;;  %16146 = vmatpush1.bf16.msra.mxu0 %v20934_v40  ;;  %v9178_v17 = vand.u32 4294901760, %v8425_v12  ;;  %v9182_v1 = vand.u32 4294901760, %v8429_v47 }
 0x70f   :  { %8350 = vadd.xlane.f32.xlu1 %v8349_v14  ;;  %v8346_v32 = vsel %vm1889_vm0, %v8344_v21, 0.0  ;;  %v8474_v21 = vand.u32 4294901760, %v8415_v7  ;;  %v8478_v14 = vand.u32 4294901760, %v8419_v23  ;;  %v20966_v39 = vpack.c.bf16 %v9176_v62, %v9172_v50 }
 0x710   :  { %8347 = vadd.xlane.f32.xlu0 %v8346_v32  ;;  %v9170_v32 = vand.u32 4294901760, %v8417_v34  ;;  %v20940_v20 = vpack.c.bf16 %v9168_v43, %v9164_v46  ;;  %v20942_v61 = vsub.f32 %v8412_v8, %v9168_v43  ;;  %v8422_v8 = vld [vmem:[#allocation2 + $0xc0] sm:$0xff]  ;;  %v8424_v46 = vld [vmem:[#allocation2 + $0xd0] sm:$0xff] }
 0x711   :  { %v20944_v24 = vpack.c.bf16 %v8478_v14, %v8474_v21  ;;  %v20946_v30 = vsub.f32 %v8415_v7, %v8474_v21  ;;  %v20949_v26 = vsub.f32 %v8419_v23, %v8478_v14  ;;  %v20960_v7 = vpack.c.bf16 %v8480_v54, %v8476_v38  ;;  %24173 = vst [vmem:[#allocation39_spill] sm:$0xff] %v20966_v39  ;;  %v8428_v43 = vld [vmem:[#allocation2 + $0xf0] sm:$0xff] }
 0x712   :  { %24169 = vst [vmem:[#allocation30_spill] sm:$0xff] %v20940_v20  ;;  %v20951_v3 = vpack.c.bf16 %v9174_v6, %v9170_v32  ;;  %v20953_v5 = vsub.f32 %v8417_v34, %v9170_v32  ;;  %16242 = vmatpush1.bf16.msra.mxu1 %v20940_v20  ;;  %v20962_v23 = vsub.f32 %v8414_v53, %v8476_v38 }
 0x713   :  { %24170 = vst [vmem:[#allocation32_spill] sm:$0xff] %v20944_v24  ;;  %16148 = vmatprep.subr.bf16.mxu0 %v20944_v24  ;;  %24172 = vst [vmem:[#allocation36_spill] sm:$0xff] %v20960_v7  ;;  %v20964_v34 = vsub.f32 %v8418_v51, %v8480_v54  ;;  %v20968_v21 = vsub.f32 %v8416_v58, %v9172_v50  ;;  %v20970_v14 = vsub.f32 %v8420_v29, %v9176_v62 }
 0x714   :  { %24171 = vst [vmem:[#allocation34_spill] sm:$0xff] %v20951_v3  ;;  %16244 = vmatprep.subr.bf16.mxu1 %v20951_v3  ;;  %v20972_v32 = vpack.c.bf16 %v8486_v28, %v8482_v0  ;;  %v20974_v6 = vsub.f32 %v8423_v16, %v8482_v0  ;;  %16150 = vmatpush1.bf16.msra.mxu0 %v20960_v7  ;;  %v8484_v54 = vand.u32 4294901760, %v8422_v8  ;;  %v8488_v29 = vand.u32 4294901760, %v8426_v48 }
 0x715   :  { %v20978_v53 = vsub.f32 %v8427_v13, %v8486_v28  ;;  %v20980_v51 = vpack.c.bf16 %v9182_v1, %v9178_v17  ;;  %v20982_v38 = vsub.f32 %v8425_v12, %v9178_v17  ;;  %v20985_v58 = vsub.f32 %v8429_v47, %v9182_v1 }
 0x716   :  { %24174 = vst [vmem:[#allocation35_spill] sm:$0xff] %v20972_v32  ;;  %16246 = vmatpush1.bf16.msra.mxu1 %v20966_v39  ;;  %16152 = vmatprep.subr.bf16.mxu0 %v20972_v32  ;;  %v9180_v50 = vand.u32 4294901760, %v8424_v46  ;;  %v9184_v62 = vand.u32 4294901760, %v8428_v43  ;;  %v20988_v16 = vsub.f32 %v8422_v8, %v8484_v54  ;;  %v23347_v0 = vand.u32 4294901760, %v20892_v44 }
 0x717   :  { %24175 = vst [vmem:[#allocation40_spill] sm:$0xff] %v20980_v51  ;;  %16248 = vmatprep.subr.bf16.mxu1 %v20980_v51  ;;  %v23348_v13 = vand.u32 4294901760, %v20894_v15  ;;  %v23349_v28 = vand.u32 4294901760, %v20896_v63  ;;  %v20993_v12 = vpack.c.bf16 %v8488_v29, %v8484_v54  ;;  %v20995_v17 = vsub.f32 %v8426_v48, %v8488_v29 }
 0x718   :  { %24176 = vst [vmem:[#allocation41_spill] sm:$0xff] %v20988_v16  ;;  %v20997_v41 = vpack.c.bf16 %v9184_v62, %v9180_v50  ;;  %v20999_v47 = vsub.f32 %v8424_v46, %v9180_v50  ;;  %v21001_v1 = vsub.f32 %v8428_v43, %v9184_v62  ;;  %v8564_v8 = vsub.f32 %v20892_v44, %v23347_v0 }
 0x719   :  { %24177 = vst [vmem:[#allocation42_spill] sm:$0xff] %v20993_v12  ;;  %v8576_v60 = vsub.f32 %v20894_v15, %v23348_v13  ;;  %v9260_v54 = vsub.f32 %v20896_v63, %v23349_v28  ;;  %16154 = vmatpush1.bf16.msra.mxu0 %v20993_v12  ;;  %v23355_v48 = vand.u32 4294901760, %v20900_v45  ;;  %v23360_v46 = vand.u32 4294901760, %v20904_v22 }
 0x71a   :  { %24178 = vst [vmem:[#allocation43_spill] sm:$0xff] %v20997_v41  ;;  %24179 = vst [vmem:[#allocation44_spill] sm:$0xff] %v20999_v47  ;;  %16250 = vmatpush1.bf16.msra.mxu1 %v20997_v41  ;;  %v23365_v43 = vand.u32 4294901760, %v20907_v10  ;;  %v23367_v29 = vand.u32 4294901760, %v20913_v9  ;;  %v8565_v50 = vand.u32 4294901760, %v8564_v8  ;;  %v23366_v13 = vand.u32 4294901760, %v20915_v31 }
 0x71b   :  { %24180 = vst [vmem:[#allocation45_spill] sm:$0xff] %v21001_v1  ;;  %v8577_v62 = vand.u32 4294901760, %v8576_v60  ;;  %v9261_v0 = vand.u32 4294901760, %v9260_v54  ;;  %v9272_v28 = vsub.f32 %v20900_v45, %v23355_v48  ;;  %v8570_v27 = vsub.f32 %v20904_v22, %v23360_v46 }
 0x71c   :  { %v8582_v41 = vsub.f32 %v20907_v10, %v23365_v43  ;;  %v9266_v8 = vsub.f32 %v20913_v9, %v23367_v29  ;;  %v9278_v54 = vsub.f32 %v20915_v31, %v23366_v13  ;;  %v23373_v12 = vand.u32 4294901760, %v20917_v52 }
 0x71d   :  { %v16155_v60 = vpack.c.bf16 %v8577_v62, %v8565_v50  ;;  %v23368_v48 = vand.u32 4294901760, %v20921_v55  ;;  %v9273_v51 = vand.u32 4294901760, %v9272_v28  ;;  %v8571_v32 = vand.u32 4294901760, %v8570_v27 }
 0x71e   :  { %v8583_v46 = vand.u32 4294901760, %v8582_v41  ;;  %v9267_v39 = vand.u32 4294901760, %v9266_v8  ;;  %v9279_v7 = vand.u32 4294901760, %v9278_v54  ;;  %v8588_v43 = vsub.f32 %v20917_v52, %v23373_v12 }
 0x71f   :  { %16156 = vmatprep.subr.bf16.mxu0 %v16155_v60  ;;  %v8600_v50 = vsub.f32 %v20921_v55, %v23368_v48  ;;  %v23371_v62 = vand.u32 4294901760, %v20925_v35  ;;  %v16251_v13 = vpack.c.bf16 %v9273_v51, %v9261_v0  ;;  %v23369_v28 = vand.u32 4294901760, %v20928_v57 }
 0x720   :  { %v21043_v29 = vpack.c.bf16 %v8583_v46, %v8571_v32  ;;  %v23370_v27 = vand.u32 4294901760, %v20930_v25  ;;  %v21047_v41 = vpack.c.bf16 %v9279_v7, %v9267_v39  ;;  %v8589_v8 = vand.u32 4294901760, %v8588_v43 }
 0x721   :  { %v8601_v60 = vand.u32 4294901760, %v8600_v50  ;;  %v9284_v54 = vsub.f32 %v20925_v35, %v23371_v62  ;;  %16252 = vmatprep.subr.bf16.mxu1 %v16251_v13  ;;  %v9296_v48 = vsub.f32 %v20928_v57, %v23369_v28  ;;  %v23372_v51 = vand.u32 4294901760, %v20936_v36 }
 0x722   :  { %v8594_v32 = vsub.f32 %v20930_v25, %v23370_v27  ;;  %v23376_v7 = vand.u32 4294901760, %v20938_v59  ;;  %v23377_v46 = vand.u32 4294901760, %v20942_v61  ;;  %v23378_v43 = vand.u32 4294901760, %v20946_v30 }
 0x723   :  { %v21060_v39 = vpack.c.bf16 %v8601_v60, %v8589_v8  ;;  %v9285_v0 = vand.u32 4294901760, %v9284_v54  ;;  %v9297_v13 = vand.u32 4294901760, %v9296_v48  ;;  %v8606_v28 = vsub.f32 %v20936_v36, %v23372_v51 }
 0x724   :  { %v8595_v50 = vand.u32 4294901760, %v8594_v32  ;;  %v9290_v27 = vsub.f32 %v20938_v59, %v23376_v7  ;;  %v9302_v8 = vsub.f32 %v20942_v61, %v23377_v46  ;;  %v8612_v60 = vsub.f32 %v20946_v30, %v23378_v43 }
 0x725   :  { %v23381_v54 = vand.u32 4294901760, %v20949_v26  ;;  %v23385_v48 = vand.u32 4294901760, %v20953_v5  ;;  %v21078_v32 = vpack.c.bf16 %v9297_v13, %v9285_v0  ;;  %v8607_v62 = vand.u32 4294901760, %v8606_v28 }
 0x726   :  { %v9291_v51 = vand.u32 4294901760, %v9290_v27  ;;  %v23384_v12 = vand.u32 4294901760, %v20955_v33  ;;  %v9303_v3 = vand.u32 4294901760, %v9302_v8  ;;  %v8613_v7 = vand.u32 4294901760, %v8612_v60 }
 0x727   :  { %v8624_v46 = vsub.f32 %v20949_v26, %v23381_v54  ;;  %v9308_v43 = vsub.f32 %v20953_v5, %v23385_v48  ;;  %v21087_v24 = vpack.c.bf16 %v8607_v62, %v8595_v50  ;;  %v23386_v28 = vand.u32 4294901760, %v20962_v23 }
 0x728   :  { %v9320_v0 = vsub.f32 %v20955_v33, %v23384_v12  ;;  %v23387_v27 = vand.u32 4294901760, %v20964_v34  ;;  %v21094_v13 = vpack.c.bf16 %v9303_v3, %v9291_v51  ;;  %v23390_v54 = vand.u32 4294901760, %v20968_v21 }
 0x729   :  { %v8625_v8 = vand.u32 4294901760, %v8624_v46  ;;  %v9309_v60 = vand.u32 4294901760, %v9308_v43  ;;  %v8618_v62 = vsub.f32 %v20962_v23, %v23386_v28  ;;  %v23393_v12 = vand.u32 4294901760, %v20970_v14 }
 0x72a   :  { %v9321_v20 = vand.u32 4294901760, %v9320_v0  ;;  %v8630_v50 = vsub.f32 %v20964_v34, %v23387_v27  ;;  %v9314_v3 = vsub.f32 %v20968_v21, %v23390_v54  ;;  %v23396_v51 = vand.u32 4294901760, %v20974_v6 }
 0x72b   :  { %v21104_v48 = vpack.c.bf16 %v8625_v8, %v8613_v7  ;;  %v23399_v46 = vand.u32 4294901760, %v20978_v53  ;;  %v8619_v0 = vand.u32 4294901760, %v8618_v62  ;;  %v9326_v27 = vsub.f32 %v20970_v14, %v23393_v12 }
 0x72c   :  { %v21111_v43 = vpack.c.bf16 %v9321_v20, %v9309_v60  ;;  %v8631_v28 = vand.u32 4294901760, %v8630_v50  ;;  %v9315_v40 = vand.u32 4294901760, %v9314_v3  ;;  %v8636_v7 = vsub.f32 %v20974_v6, %v23396_v51 }
 0x72d   :  { %v8648_v8 = vsub.f32 %v20978_v53, %v23399_v46  ;;  %v9331_v54 = vand.u32 4294901760, %v20982_v38  ;;  %v9327_v20 = vand.u32 4294901760, %v9326_v27  ;;  %v9343_v60 = vand.u32 4294901760, %v20985_v58 }
 0x72e   :  { %v21123_v49 = vpack.c.bf16 %v8631_v28, %v8619_v0  ;;  %v8641_v62 = vand.u32 4294901760, %v20988_v16  ;;  %v8637_v50 = vand.u32 4294901760, %v8636_v7  ;;  %v8653_v56 = vand.u32 4294901760, %v20995_v17 }
 0x72f   :  { %v8649_v12 = vand.u32 4294901760, %v8648_v8  ;;  %v9332_v3 = vsub.f32 %v20982_v38, %v9331_v54  ;;  %v21129_v51 = vpack.c.bf16 %v9327_v20, %v9315_v40  ;;  %v9344_v42 = vsub.f32 %v20985_v58, %v9343_v60 }
 0x730   :  { %24181 = vst [vmem:[#allocation51_spill] sm:$0xff] %v21123_v49  ;;  %v8642_v46 = vsub.f32 %v20988_v16, %v8641_v62  ;;  %v9337_v28 = vand.u32 4294901760, %v20999_v47  ;;  %v8654_v37 = vsub.f32 %v20995_v17, %v8653_v56  ;;  %v9349_v7 = vand.u32 4294901760, %v21001_v1 }
 0x731   :  { %24182 = vst [vmem:[#allocation46_spill] sm:$0xff] %v21129_v51  ;;  %v21134_v0 = vpack.c.bf16 %v8649_v12, %v8637_v50  ;;  %v9333_v27 = vand.u32 4294901760, %v9332_v3  ;;  %v9345_v8 = vand.u32 4294901760, %v9344_v42  ;;  %v24184_v40 = vand.u32 4294901760, %v20892_v44 }
 0x732   :  { %v8643_v18 = vand.u32 4294901760, %v8642_v46  ;;  %v9338_v4 = vsub.f32 %v20999_v47, %v9337_v28  ;;  %v8655_v20 = vand.u32 4294901760, %v8654_v37  ;;  %v9350_v51 = vsub.f32 %v21001_v1, %v9349_v7 }
 0x733   :  { %24183 = vst [vmem:[#allocation47_spill] sm:$0xff] %v21134_v0  ;;  %v21146_v50 = vpack.c.bf16 %v9345_v8, %v9333_v27  ;;  %v24190_v27 = vand.u32 4294901760, %v20904_v22  ;;  %v24191_v46 = vand.u32 4294901760, %v20907_v10  ;;  %v24193_v8 = vand.u32 4294901760, %v20913_v9 }
 0x734   :  { %v9339_v3 = vand.u32 4294901760, %v9338_v4  ;;  %v21152_v0 = vpack.c.bf16 %v8655_v20, %v8643_v18  ;;  %v9351_v37 = vand.u32 4294901760, %v9350_v51  ;;  %v24187_v51 = vand.u32 4294901760, %v20896_v63 }
 0x735   :  { %v24188_v18 = vand.u32 4294901760, %v20900_v45  ;;  %v21194_v4 = vpack.c.bf16 %v24191_v46, %v24190_v27  ;;  %v24194_v42 = vand.u32 4294901760, %v20915_v31  ;;  %v24202_v46 = vand.u32 4294901760, %v20930_v25 }
 0x736   :  { %v21166_v20 = vpack.c.bf16 %v9351_v37, %v9339_v3  ;;  %v24185_v3 = vand.u32 4294901760, %v20894_v15  ;;  %v24203_v27 = vand.u32 4294901760, %v20936_v36 }
 0x737   :  { %v21188_v49 = vpack.c.bf16 %v24188_v18, %v24187_v51  ;;  %24192 = vst [vmem:[#allocation64_spill] sm:$0xff] %v21194_v4  ;;  %v21200_v12 = vpack.c.bf16 %v24194_v42, %v24193_v8  ;;  %v24199_v18 = vand.u32 4294901760, %v20925_v35  ;;  %v24200_v51 = vand.u32 4294901760, %v20928_v57 }
 0x738   :  { %v21182_v37 = vpack.c.bf16 %v24185_v3, %v24184_v40  ;;  %v24196_v40 = vand.u32 4294901760, %v20917_v52  ;;  %v24197_v3 = vand.u32 4294901760, %v20921_v55  ;;  %v21218_v4 = vpack.c.bf16 %v24203_v27, %v24202_v46 }
 0x739   :  { %24189 = vst [vmem:[#allocation63_spill] sm:$0xff] %v21188_v49  ;;  %24195 = vst [vmem:[#allocation66_spill] sm:$0xff] %v21200_v12  ;;  %v21212_v49 = vpack.c.bf16 %v24200_v51, %v24199_v18  ;;  %v24205_v42 = vand.u32 4294901760, %v20938_v59  ;;  %v24206_v8 = vand.u32 4294901760, %v20942_v61  ;;  %v24211_v18 = vand.u32 4294901760, %v20953_v5 }
 0x73a   :  { %24186 = vst [vmem:[#allocation48_spill] sm:$0xff] %v21182_v37  ;;  %v21206_v37 = vpack.c.bf16 %v24197_v3, %v24196_v40  ;;  %24204 = vst [vmem:[#allocation69_spill] sm:$0xff] %v21218_v4  ;;  %v24208_v40 = vand.u32 4294901760, %v20946_v30  ;;  %v24209_v3 = vand.u32 4294901760, %v20949_v26  ;;  %v24212_v51 = vand.u32 4294901760, %v20955_v33 }
 0x73b   :  { %24201 = vst [vmem:[#allocation68_spill] sm:$0xff] %v21212_v49  ;;  %v21224_v12 = vpack.c.bf16 %v24206_v8, %v24205_v42  ;;  %v24214_v46 = vand.u32 4294901760, %v20962_v23  ;;  %v24215_v27 = vand.u32 4294901760, %v20964_v34  ;;  %v24217_v42 = vand.u32 4294901760, %v20968_v21 }
 0x73c   :  { %24198 = vst [vmem:[#allocation67_spill] sm:$0xff] %v21206_v37  ;;  %v21230_v37 = vpack.c.bf16 %v24209_v3, %v24208_v40  ;;  %v21236_v49 = vpack.c.bf16 %v24212_v51, %v24211_v18  ;;  %v24218_v8 = vand.u32 4294901760, %v20970_v14  ;;  %v24219_v40 = vand.u32 4294901760, %v20974_v6 }
 0x73d   :  { %24207 = vst [vmem:[#allocation70_spill] sm:$0xff] %v21224_v12  ;;  %v21242_v4 = vpack.c.bf16 %v24215_v27, %v24214_v46  ;;  %v24220_v3 = vand.u32 4294901760, %v20978_v53  ;;  %v21256_v18 = vpack.c.bf16 %v9343_v60, %v9331_v54  ;;  %v21258_v51 = vpack.c.bf16 %v8653_v56, %v8641_v62  ;;  %v11899_v56 = vld [vmem:[%s22959_s8 + $0x8] ss:$0 sm:$0xff] }
 0x73e   :  { %24210 = vst [vmem:[#allocation71_spill] sm:$0xff] %v21230_v37  ;;  %24213 = vst [vmem:[#allocation72_spill] sm:$0xff] %v21236_v49  ;;  %v21248_v12 = vpack.c.bf16 %v24218_v8, %v24217_v42  ;;  %v21260_v49 = vpack.c.bf16 %v9349_v7, %v9337_v28  ;;  %v11898_v8 = vld [vmem:[%s22959_s8 + $0x7] ss:$0 sm:$0xff] }
 0x73f   :  { %24216 = vst [vmem:[#allocation49_spill] sm:$0xff] %v21242_v4  ;;  %v21254_v37 = vpack.c.bf16 %v24220_v3, %v24219_v40 }
 0x79c   :  { %v8351_v46 = vpop.xlane.xlu1 %8350 }
 0x79d   :  { %v8353_v27 = vmul.f32 0.015625, %v8351_v46  ;;  %v8348_v4 = vpop.xlane.xlu0 %8347 }
 0x79e   :  { %v8352_v47 = vmul.f32 0.015625, %v8348_v4 }
 0x79f   :  { %v8355_v1 = vadd.f32 1e-05, %v8353_v27 }
 0x7a0   :  { %v8354_v16 = vadd.f32 1e-05, %v8352_v47 }
 0x7a1   :  { %16835 = vrsqrt.f32 %v8355_v1 }
 0x7a2   :  { %16837 = vrsqrt.f32 %v8354_v16 }
 0x7ab   :  { %v16836_v42 = vpop.eup %16835 }
 0x7ac   :  { %v16838_v40 = vpop.eup %16837  ;;  %v8359_v54 = vmul.f32 %v16836_v42, %v20880_v19  ;;  %v11887_v19 = vld [vmem:[%s22959_s8 + $0x4] ss:$0 sm:$0xff] }
 0x7ad   :  { %v8358_v60 = vmul.f32 %v16838_v40, %v20882_v11  ;;  %v16716_v42 = vadd.f32 %v11887_v19, %v20873_v2 }
 0x7ae   :  { %v8367_v62 = vmul.f32 %v11898_v8, %v8359_v54 }
 0x7af   :  { %v8366_v28 = vmul.f32 %v11898_v8, %v8358_v60  ;;  %v7502_v11 = vmax.f32 %v16716_v42, 0.0  ;;  %v24221_v8 = vld [vmem:[#allocation62_spill] sm:$0xff] }
 0x7b0   :  { %v8375_v7 = vadd.f32 %v11899_v56, %v8367_v62 }
 0x7b1   :  { %v8374_v47 = vadd.f32 %v11899_v56, %v8366_v28  ;;  %v8395_v40 = vrot.slane %v7502_v11, %v24221_v8  ;;  %v24222_v56 = vld [vmem:[#allocation108_spill] sm:$0xff] }
 0x7b2   :  { %v11901_v1 = vmul.f32 -1.442695, %v8375_v7  ;;  %v8391_v60 = vrot.slane %v7502_v11, %v24222_v56 }
 0x7b3   :  { %v11900_v16 = vmul.f32 -1.442695, %v8374_v47 }
 0x7b4   :  { %16839 = vpow2.f32 %v11901_v1 }
 0x7b5   :  { %16841 = vpow2.f32 %v11900_v16 }
 0x7be   :  { %v16840_v4 = vpop.eup %16839 }
 0x7bf   :  { %v16842_v3 = vpop.eup %16841  ;;  %v8383_v46 = vadd.f32 1.0, %v16840_v4 }
 0x7c0   :  { %v8382_v27 = vadd.f32 1.0, %v16842_v3 }
 0x7c1   :  { %16843 = vrcp.f32 %v8383_v46 }
 0x7c2   :  { %16845 = vrcp.f32 %v8382_v27 }
 0x7cb   :  { %v16844_v54 = vpop.eup %16843 }
 0x7cc   :  { %v16846_v62 = vpop.eup %16845  ;;  %v8397_v28 = vmul.f32 %v16844_v54, %v8395_v40  ;;  %v24223_v40 = vmov 0.0  }
 0x7cd   :  { %v8396_v7 = vmul.f32 %v16846_v62, %v8391_v60  ;;  %v24264_v60 = vld [vmem:[#allocation64_spill] sm:$0xff]  ;;  %v24265_v62 = vld [vmem:[#allocation66_spill] sm:$0xff] }
 0x7ce   :  { %v8456_v47 = vsel %vm1889_vm0, %v8397_v28, 0  ;;  %v24266_v28 = vld [vmem:[#allocation67_spill] sm:$0xff] }
 0x7cf   :  { %v8453_v1 = vsel %vm1889_vm0, %v8396_v7, 0  ;;  %v21278_v16 = vand.u32 4294901760, %v8456_v47  ;;  %v24267_v7 = vld [vmem:[#allocation68_spill] sm:$0xff] }
 0x7d0   :  { %v21280_v4 = vand.u32 4294901760, %v8453_v1 }
 0x7d1   :  { %v21283_v2 = vsub.f32 %v8456_v47, %v21278_v16  ;;  %v24268_v47 = vld [vmem:[#allocation69_spill] sm:$0xff] }
 0x7d2   :  { %v8540_v3 = vsub.f32 %v8453_v1, %v21280_v4  ;;  %v24269_v1 = vld [vmem:[#allocation70_spill] sm:$0xff] }
 0x7d3   :  { %v21289_v46 = vand.u32 4294901760, %v21283_v2 }
 0x7d4   :  { %v21286_v19 = vand.u32 4294901760, %v8540_v3 }
 0x7d5   :  { %v8553_v11 = vsub.f32 %v21283_v2, %v21289_v46 }
 0x7d6   :  { %v8542_v27 = vsub.f32 %v8540_v3, %v21286_v19 }
 0x7d7   :  { %v8554_v54 = vand.u32 4294901760, %v8553_v11 }
 0x7d8   :  { %v8543_v42 = vand.u32 4294901760, %v8542_v27 }
 0x7da   :  { %8544 = vmatmul.mubr.f32.vlgmr.msra.gmra.mrb[44].mxu0 %v8543_v42  ;;  %9240 = vmatmul.mubr.f32.vlgmr.msra.gmra.mrb[46].mxu1 %v8543_v42 }
 0x7db   :  { %16158 = vmatpush1.bf16.msra.mxu0 %v21043_v29  ;;  %16254 = vmatpush1.bf16.msra.mxu1 %v21047_v41  ;;  %v24224_v29 = vld [vmem:[#allocation51_spill] sm:$0xff]  ;;  %v24225_v41 = vld [vmem:[#allocation46_spill] sm:$0xff] }
 0x7dc   :  { %8549 = vmatprep.mubr.f32.mxu0 %v24223_v40  ;;  %16160 = vmatprep.subr.bf16.mxu0 %v21060_v39  ;;  %v24226_v39 = vld [vmem:[#allocation47_spill] sm:$0xff] }
 0x7dd   :  { %9245 = vmatprep.mubr.f32.mxu1 %v24223_v40  ;;  %16256 = vmatprep.subr.bf16.mxu1 %v21078_v32  ;;  %v24229_v32 = vpack.c.bf16 %v20907_v10, %v20904_v22  ;;  %v24235_v22 = vpack.c.bf16 %v20949_v26, %v20946_v30  ;;  %v24236_v10 = vpack.c.bf16 %v20955_v33, %v20953_v5  ;;  %v24247_v30 = vld [vmem:[#allocation19_spill] sm:$0xff]  ;;  %v24248_v26 = vld [vmem:[#allocation65_spill] sm:$0xff]  ;;  %v24249_v5 = vld [vmem:[#allocation22_spill] sm:$0xff] }
 0x7de   :  { %8555 = vmatmul.mubr.f32.gmra.mrb[46].mxu0 %v8554_v54  ;;  %9251 = vmatmul.mubr.f32.gmra.mrb[48].mxu1 %v8554_v54  ;;  %v24250_v33 = vld [vmem:[#allocation24_spill] sm:$0xff] }
 0x7df   :  { %16162 = vmatpush1.bf16.msra.mxu0 %v21087_v24  ;;  %16258 = vmatpush1.bf16.msra.mxu1 %v21094_v13  ;;  %v24227_v24 = vpack.c.bf16 %v20894_v15, %v20892_v44  ;;  %v24230_v13 = vpack.c.bf16 %v20915_v31, %v20913_v9  ;;  %v24231_v44 = vpack.c.bf16 %v20921_v55, %v20917_v52 }
 0x7e0   :  { %16164 = vmatprep.subr.bf16.mxu0 %v21104_v48  ;;  %16260 = vmatprep.subr.bf16.mxu1 %v21111_v43  ;;  %v24228_v48 = vpack.c.bf16 %v20900_v45, %v20896_v63  ;;  %v24232_v15 = vpack.c.bf16 %v20928_v57, %v20925_v35  ;;  %v24233_v63 = vpack.c.bf16 %v20936_v36, %v20930_v25  ;;  %v24241_v35 = vld [vmem:[#allocation41_spill] sm:$0xff]  ;;  %v24244_v36 = vld [vmem:[#allocation44_spill] sm:$0xff]  ;;  %v24260_v43 = vld [vmem:[#allocation42_spill] sm:$0xff] }
 0x7e1   :  { %8705 = vmatprep.mubr.f32.mxu0 %v24223_v40  ;;  %9401 = vmatprep.mubr.f32.mxu1 %v24223_v40  ;;  %v24234_v45 = vpack.c.bf16 %v20942_v61, %v20938_v59  ;;  %v24237_v9 = vpack.c.bf16 %v20964_v34, %v20962_v23  ;;  %v24238_v31 = vpack.c.bf16 %v20970_v14, %v20968_v21  ;;  %v24243_v25 = vld [vmem:[#allocation45_spill] sm:$0xff]  ;;  %v24246_v61 = vld [vmem:[#allocation18_spill] sm:$0xff]  ;;  %v24252_v34 = vld [vmem:[#allocation28_spill] sm:$0xff] }
 0x7e2   :  { %v24239_v52 = vpack.c.bf16 %v20978_v53, %v20974_v6  ;;  %v24240_v55 = vpack.c.bf16 %v20985_v58, %v20982_v38  ;;  %v24242_v57 = vpack.c.bf16 %v20995_v17, %v24241_v35  ;;  %v24245_v59 = vpack.c.bf16 %v24243_v25, %v24244_v36  ;;  %v24251_v23 = vld [vmem:[#allocation26_spill] sm:$0xff]  ;;  %v24254_v14 = vld [vmem:[#allocation32_spill] sm:$0xff]  ;;  %v24257_v38 = vld [vmem:[#allocation39_spill] sm:$0xff] }
 0x7e3   :  { %16166 = vmatpush1.bf16.msra.mxu0 %v24224_v29  ;;  %16262 = vmatpush1.bf16.msra.mxu1 %v24225_v41  ;;  %v24253_v21 = vld [vmem:[#allocation30_spill] sm:$0xff]  ;;  %v24256_v53 = vld [vmem:[#allocation36_spill] sm:$0xff]  ;;  %v24258_v58 = vld [vmem:[#allocation35_spill] sm:$0xff] }
 0x7e4   :  { %16168 = vmatprep.subr.bf16.mxu0 %v24226_v39  ;;  %16264 = vmatprep.subr.bf16.mxu1 %v21146_v50  ;;  %v24255_v6 = vld [vmem:[#allocation34_spill] sm:$0xff]  ;;  %v24259_v17 = vld [vmem:[#allocation40_spill] sm:$0xff] }
 0x7e5   :  { %v24262_v50 = vld [vmem:[#allocation48_spill] sm:$0xff] }
 0x7e6   :  { %v21478_v35 = vld [vmem:[#allocation4 + $0x80] sm:$0xff] }
 0x7e7   :  { %16170 = vmatpush1.bf16.msra.mxu0 %v21152_v0  ;;  %16266 = vmatpush1.bf16.msra.mxu1 %v21166_v20  ;;  %v24261_v0 = vld [vmem:[#allocation43_spill] sm:$0xff]  ;;  %v21482_v25 = vld [vmem:[#allocation4] sm:$0xff]  ;;  %v10091_v36 = vand.u32 4294901760, %v21478_v35 }
 0x7e8   :  { %16172 = vmatprep.subr.bf16.mxu0 %v24227_v24  ;;  %16268 = vmatprep.subr.bf16.mxu1 %v24228_v48  ;;  %v24263_v20 = vld [vmem:[#allocation63_spill] sm:$0xff] }
 0x7ea   :  { %8707 = vmatmul.mubr.f32.vlgmr.msra.gmra.mrb[44].mxu0 %v21280_v4  ;;  %9403 = vmatmul.mubr.f32.vlgmr.msra.gmra.mrb[46].mxu1 %v21280_v4 }
 0x7eb   :  { %16174 = vmatpush1.bf16.msra.mxu0 %v24229_v32  ;;  %16270 = vmatpush1.bf16.msra.mxu1 %v24230_v13 }
 0x7ec   :  { %8712 = vmatprep.mubr.f32.mxu0 %v24223_v40  ;;  %9408 = vmatprep.mubr.f32.mxu1 %v24223_v40 }
 0x7ed   :  { %16176 = vmatprep.subr.bf16.mxu0 %v24231_v44  ;;  %16272 = vmatprep.subr.bf16.mxu1 %v24232_v15 }
 0x7ee   :  { %8714 = vmatmul.mubr.f32.gmra.mrb[46].mxu0 %v21278_v16  ;;  %9410 = vmatmul.mubr.f32.gmra.mrb[48].mxu1 %v21278_v16 }
 0x7ef   :  { %16178 = vmatpush1.bf16.msra.mxu0 %v24233_v63  ;;  %16274 = vmatpush1.bf16.msra.mxu1 %v24234_v45 }
 0x7f0   :  { %16180 = vmatprep.subr.bf16.mxu0 %v24235_v22  ;;  %16276 = vmatprep.subr.bf16.mxu1 %v24236_v10 }
 0x7f1   :  { %8816 = vmatprep.mubr.f32.mxu0 %v24223_v40  ;;  %9512 = vmatprep.mubr.f32.mxu1 %v24223_v40 }
 0x7f3   :  { %16182 = vmatpush1.bf16.msra.mxu0 %v24237_v9  ;;  %16278 = vmatpush1.bf16.msra.mxu1 %v24238_v31 }
 0x7f4   :  { %16184 = vmatprep.subr.bf16.mxu0 %v24239_v52  ;;  %16280 = vmatprep.subr.bf16.mxu1 %v24240_v55 }
 0x7f7   :  { %16186 = vmatpush1.bf16.msra.mxu0 %v24242_v57  ;;  %16282 = vmatpush1.bf16.msra.mxu1 %v24245_v59  ;;  %v21480_v57 = vld [vmem:[#allocation4 + $0x88] sm:$0xff] }
 0x7f8   :  { %16188 = vmatprep.subr.bf16.mxu0 %v24246_v61  ;;  %16284 = vmatprep.subr.bf16.mxu1 %v24247_v30  ;;  %v10094_v59 = vand.u32 4294901760, %v21480_v57 }
 0x7fa   :  { %8819 = vmatmul.mubr.f32.vlgmr.msra.gmra.mrb[44].mxu0 %v8540_v3  ;;  %9515 = vmatmul.mubr.f32.vlgmr.msra.gmra.mrb[46].mxu1 %v8540_v3  ;;  %v24271_v3 = vld [vmem:[#allocation72_spill] sm:$0xff] }
 0x7fb   :  { %16190 = vmatpush1.bf16.msra.mxu0 %v24248_v26  ;;  %16286 = vmatpush1.bf16.msra.mxu1 %v24249_v5 }
 0x7fc   :  { %8824 = vmatprep.mubr.f32.mxu0 %v24223_v40  ;;  %9520 = vmatprep.mubr.f32.mxu1 %v24223_v40 }
 0x7fd   :  { %16192 = vmatprep.subr.bf16.mxu0 %v24250_v33  ;;  %16288 = vmatprep.subr.bf16.mxu1 %v24251_v23 }
 0x7fe   :  { %8827 = vmatmul.mubr.f32.gmra.mrb[46].mxu0 %v21283_v2  ;;  %9523 = vmatmul.mubr.f32.gmra.mrb[48].mxu1 %v21283_v2  ;;  %v24270_v2 = vld [vmem:[#allocation71_spill] sm:$0xff] }
 0x7ff   :  { %16194 = vmatpush1.bf16.msra.mxu0 %v24252_v34  ;;  %16290 = vmatpush1.bf16.msra.mxu1 %v24253_v21 }
 0x800   :  { %16196 = vmatprep.subr.bf16.mxu0 %v24254_v14  ;;  %16292 = vmatprep.subr.bf16.mxu1 %v24255_v6 }
 0x801   :  { %8913 = vmatprep.mubr.f32.mxu0 %v24223_v40  ;;  %9609 = vmatprep.mubr.f32.mxu1 %v24223_v40 }
 0x803   :  { %16198 = vmatpush1.bf16.msra.mxu0 %v24256_v53  ;;  %16294 = vmatpush1.bf16.msra.mxu1 %v24257_v38 }
 0x804   :  { %16200 = vmatprep.subr.bf16.mxu0 %v24258_v58  ;;  %16296 = vmatprep.subr.bf16.mxu1 %v24259_v17 }
 0x807   :  { %16202 = vmatpush1.bf16.msra.mxu0 %v24260_v43  ;;  %16298 = vmatpush1.bf16.msra.mxu1 %v24261_v0 }
 0x808   :  { %16204 = vmatprep.subr.bf16.mxu0 %v24262_v50  ;;  %16300 = vmatprep.subr.bf16.mxu1 %v24263_v20 }
 0x80a   :  { %8917 = vmatmul.mubr.f32.vlgmr.msra.gmra.mrb[44].mxu0 %v21286_v19  ;;  %9613 = vmatmul.mubr.f32.vlgmr.msra.gmra.mrb[46].mxu1 %v21286_v19  ;;  %v24272_v19 = vld [vmem:[#allocation49_spill] sm:$0xff] }
 0x80b   :  { %16206 = vmatpush1.bf16.msra.mxu0 %v24264_v60  ;;  %16302 = vmatpush1.bf16.msra.mxu1 %v24265_v62 }
 0x80c   :  { %8922 = vmatprep.mubr.f32.mxu0 %v24223_v40  ;;  %9618 = vmatprep.mubr.f32.mxu1 %v24223_v40 }
 0x80d   :  { %16208 = vmatprep.subr.bf16.mxu0 %v24266_v28  ;;  %16304 = vmatprep.subr.bf16.mxu1 %v24267_v7 }
 0x80e   :  { %8926 = vmatmul.mubr.f32.gmra.mrb[46].mxu0 %v21289_v46  ;;  %9622 = vmatmul.mubr.f32.gmra.mrb[48].mxu1 %v21289_v46  ;;  %v24274_v46 = vld [vmem:[#allocation16_spill] sm:$0xff] }
 0x80f   :  { %16210 = vmatpush1.bf16.msra.mxu0 %v24268_v47  ;;  %16306 = vmatpush1.bf16.msra.mxu1 %v24269_v1 }
 0x810   :  { %16212 = vmatprep.subr.bf16.mxu0 %v24270_v2  ;;  %16308 = vmatprep.subr.bf16.mxu1 %v24271_v3 }
 0x811   :  { %9044 = vmatprep.mubr.f32.mxu0 %v24223_v40  ;;  %9740 = vmatprep.mubr.f32.mxu1 %v24223_v40 }
 0x813   :  { %16214 = vmatpush1.bf16.msra.mxu0 %v24272_v19  ;;  %16310 = vmatpush1.bf16.msra.mxu1 %v21248_v12 }
 0x814   :  { %16216 = vmatprep.subr.bf16.mxu0 %v21254_v37  ;;  %16312 = vmatprep.subr.bf16.mxu1 %v21256_v18  ;;  %v24273_v18 = vld [vmem:[#allocation8_spill] sm:$0xff] }
 0x817   :  { %16218 = vmatpush1.bf16.msra.mxu0 %v21258_v51  ;;  %16314 = vmatpush1.bf16.msra.mxu1 %v21260_v49  ;;  %v8430_v49 = vld [vmem:[%s22959_s8 + $0x9] sm:$0xf]  ;;  %v21450_v51 = vsub.s32 3, %v24273_v18 }
 0x818   :  { %16220 = vmatprep.subr.bf16.mxu0 %v24246_v61  ;;  %16316 = vmatprep.subr.bf16.mxu1 %v24247_v30  ;;  %v8435_v12 = vrot.slane %v8430_v49, %v24222_v56  ;;  %v8439_v37 = vrot.slane %v8430_v49, %v24221_v8  ;;  %v8443_v27 = vrot.slane %v8430_v49, %v24274_v46  ;;  %v21486_v61 = vld [vmem:[#allocation4 + $0x8] sm:$0xff]  ;;  %v10043_v30 = vand.u32 4294901760, %v21482_v25 }
 0x819   :  { %v8447_v29 = vrot.slane %v8430_v49, %v21450_v51  ;;  %v21848_v46 = vld [vmem:[#allocation4 + $0x68] sm:$0xff] }
 0x81a   :  { %9046 = vmatmul.mubr.f32.vlgmr.msra.gmra.mrb[44].mxu0 %v21280_v4  ;;  %9742 = vmatmul.mubr.f32.vlgmr.msra.gmra.mrb[46].mxu1 %v21280_v4 }
 0x81b   :  { %16222 = vmatpush1.bf16.msra.mxu0 %v24248_v26  ;;  %16318 = vmatpush1.bf16.msra.mxu1 %v24249_v5  ;;  %v21489_v26 = vld [vmem:[#allocation4 + $0x90] sm:$0xff]  ;;  %v21491_v5 = vld [vmem:[#allocation4 + $0x98] sm:$0xff] }
 0x81c   :  { %9051 = vmatprep.mubr.f32.mxu0 %v24223_v40  ;;  %9747 = vmatprep.mubr.f32.mxu1 %v24223_v40 }
 0x81d   :  { %16224 = vmatprep.subr.bf16.mxu0 %v24250_v33  ;;  %16320 = vmatprep.subr.bf16.mxu1 %v24251_v23  ;;  %v10046_v33 = vand.u32 4294901760, %v21486_v61  ;;  %v23432_v23 = vand.u32 4294901760, %v21489_v26 }
 0x81e   :  { %9053 = vmatmul.mubr.f32.gmra.mrb[46].mxu0 %v21278_v16  ;;  %9749 = vmatmul.mubr.f32.gmra.mrb[48].mxu1 %v21278_v16 }
 0x81f   :  { %16226 = vmatpush1.bf16.msra.mxu0 %v24252_v34  ;;  %16322 = vmatpush1.bf16.msra.mxu1 %v24253_v21  ;;  %v23429_v34 = vand.u32 4294901760, %v21491_v5  ;;  %v21496_v21 = vld [vmem:[#allocation4 + $0x10] sm:$0xff] }
 0x820   :  { %16228 = vmatprep.subr.bf16.mxu0 %v24254_v14  ;;  %16324 = vmatprep.subr.bf16.mxu1 %v24255_v6  ;;  %v21498_v14 = vld [vmem:[#allocation4 + $0x18] sm:$0xff]  ;;  %v21503_v6 = vsub.f32 %v21478_v35, %v10091_v36  ;;  %v21722_v35 = vpack.c.bf16 %v10046_v33, %v10043_v30 }
 0x821   :  { %9139 = vmatprep.mubr.f32.mxu0 %v24223_v40  ;;  %9835 = vmatprep.mubr.f32.mxu1 %v24223_v40  ;;  %v23426_v50 = vand.u32 4294901760, %v21498_v14 }
 0x822   :  { %v23416_v20 = vand.u32 4294901760, %v21503_v6 }
 0x823   :  { %16230 = vmatpush1.bf16.msra.mxu0 %v24256_v53  ;;  %16326 = vmatpush1.bf16.msra.mxu1 %v24257_v38  ;;  %v21508_v53 = vsub.f32 %v21480_v57, %v10094_v59  ;;  %v21513_v38 = vsub.f32 %v21482_v25, %v10043_v30  ;;  %v21546_v2 = vsub.f32 %v21498_v14, %v23426_v50 }
 0x824   :  { %16232 = vmatprep.subr.bf16.mxu0 %v24258_v58  ;;  %16328 = vmatprep.subr.bf16.mxu1 %v24259_v17  ;;  %v23428_v58 = vand.u32 4294901760, %v21496_v21  ;;  %v21519_v17 = vsub.f32 %v21486_v61, %v10046_v33  ;;  %v10285_v3 = vsub.f32 %v21503_v6, %v23416_v20 }
 0x825   :  { %v23415_v60 = vand.u32 4294901760, %v21508_v53  ;;  %v23414_v62 = vand.u32 4294901760, %v21513_v38  ;;  %24278 = vst [vmem:[#allocation54_spill] sm:$0xff] %v21546_v2 }
 0x826   :  { %v21538_v28 = vsub.f32 %v21496_v21, %v23428_v58  ;;  %v23413_v7 = vand.u32 4294901760, %v21519_v17 }
 0x827   :  { %16234 = vmatpush1.bf16.msra.mxu0 %v24260_v43  ;;  %16330 = vmatpush1.bf16.msra.mxu1 %v24261_v0  ;;  %v21524_v43 = vsub.f32 %v21489_v26, %v23432_v23  ;;  %v21529_v0 = vsub.f32 %v21491_v5, %v23429_v34  ;;  %v10292_v19 = vsub.f32 %v21508_v53, %v23415_v60  ;;  %v21698_v34 = vld [vmem:[#allocation4 + $0xc0] sm:$0xff]  ;;  %v21716_v23 = vld [vmem:[#allocation4 + $0x48] sm:$0xff] }
 0x828   :  { %24277 = vst [vmem:[#allocation53_spill] sm:$0xff] %v21538_v28  ;;  %v10173_v49 = vsub.f32 %v21513_v38, %v23414_v62  ;;  %v10115_v25 = vand.u32 4294901760, %v21698_v34 }
 0x829   :  { %24275 = vst [vmem:[#allocation50_spill] sm:$0xff] %v21524_v43  ;;  %24276 = vst [vmem:[#allocation52_spill] sm:$0xff] %v21529_v0  ;;  %v23412_v47 = vand.u32 4294901760, %v21524_v43  ;;  %v23411_v1 = vand.u32 4294901760, %v21529_v0 }
 0x82a   :  { %9141 = vmatmul.mubr.f32.vlgmr.msra.gmra.mrb[44].mxu0 %v21280_v4  ;;  %9837 = vmatmul.mubr.f32.vlgmr.msra.gmra.mrb[46].mxu1 %v21280_v4 }
 0x82b   :  { %9146 = vmatprep.mubr.f32.mxu0 %v24223_v40  ;;  %9842 = vmatprep.mubr.f32.mxu1 %v24223_v40  ;;  %v10299_v18 = vsub.f32 %v21524_v43, %v23412_v47  ;;  %v9985_v43 = vld [vmem:[#allocation4 + $0x70] sm:$0xff] }
 0x82e   :  { %9148 = vmatmul.mubr.f32.gmra.mrb[46].mxu0 %v21278_v16  ;;  %9844 = vmatmul.mubr.f32.gmra.mrb[48].mxu1 %v21278_v16 }
 0x8fd   :  { %v9142_v4 = vpop.f32.mrb[44].mxu0  ;;  %v9838_v42 = vpop.f32.mrb[46].mxu1 }
 0x8fe   :  { %v21453_v11 = vadd.f32 %v9142_v4, %v8435_v12  ;;  %v9144_v40 = vpop.f32.mrb[45].mxu0  ;;  %v9840_v54 = vpop.f32.mrb[47].mxu1  ;;  %v21458_v41 = vadd.f32 %v9838_v42, %v8443_v27  ;;  %v10306_v4 = vsub.f32 %v21529_v0, %v23411_v1  ;;  %v10286_v42 = vand.u32 4294901760, %v10285_v3 }
 0x8ff   :  { %v21455_v16 = vadd.f32 %v9144_v40, %v8439_v37  ;;  %v21464_v15 = vadd.f32 %v9840_v54, %v8447_v29  ;;  %v10293_v40 = vand.u32 4294901760, %v10292_v19  ;;  %v10174_v54 = vand.u32 4294901760, %v10173_v49 }
 0x901   :  { %v9852_v39 = vadd.f32 %v21455_v16, %v21453_v11  ;;  %v9149_v24 = vpop.f32.mrb[46].mxu0  ;;  %v9845_v48 = vpop.f32.mrb[48].mxu1 }
 0x902   :  { %v21462_v32 = vadd.f32 %v9149_v24, %v8435_v12  ;;  %v9151_v13 = vpop.f32.mrb[47].mxu0  ;;  %v9847_v44 = vpop.f32.mrb[49].mxu1  ;;  %v21469_v22 = vadd.f32 %v9845_v48, %v8443_v27  ;;  %v23410_v12 = vand.u32 4294901760, %v21538_v28  ;;  %v23409_v27 = vand.u32 4294901760, %v21546_v2 }
 0x903   :  { %v21466_v63 = vadd.f32 %v9151_v13, %v8439_v37  ;;  %v9853_v45 = vadd.f32 %v21458_v41, %v9852_v39  ;;  %v21474_v31 = vadd.f32 %v9847_v44, %v8447_v29  ;;  %v10180_v37 = vsub.f32 %v21519_v17, %v23413_v7 }
 0x904   :  { %v10187_v29 = vsub.f32 %v21538_v28, %v23410_v12  ;;  %v10300_v24 = vand.u32 4294901760, %v10299_v18  ;;  %v10307_v48 = vand.u32 4294901760, %v10306_v4  ;;  %v10194_v13 = vsub.f32 %v21546_v2, %v23409_v27 }
 0x905   :  { %v9857_v10 = vadd.f32 %v21466_v63, %v21462_v32  ;;  %v9854_v9 = vadd.f32 %v21464_v15, %v9853_v45  ;;  %v10181_v39 = vand.u32 4294901760, %v10180_v37  ;;  %v16363_v44 = vpack.c.bf16 %v10293_v40, %v10286_v42 }
 0x906   :  { %v10188_v45 = vand.u32 4294901760, %v10187_v29 }
 0x907   :  { %9855 = vadd.xlane.f32.xlu0 %v9854_v9  ;;  %v9858_v52 = vadd.f32 %v21469_v22, %v9857_v10  ;;  %v16365_v10 = vpack.c.bf16 %v10181_v39, %v10174_v54  ;;  %v16367_v9 = vpack.c.bf16 %v10307_v48, %v10300_v24  ;;  %16364 = vmatprep.subr.bf16.mxu1 %v16363_v44 }
 0x909   :  { %v9859_v55 = vadd.f32 %v21474_v31, %v9858_v52  ;;  %v10195_v52 = vand.u32 4294901760, %v10194_v13  ;;  %16366 = vmatpush3.bf16.msra.mxu1 %v16365_v10 }
 0x90a   :  { %16368 = vmatprep.subr.bf16.mxu1 %v16367_v9 }
 0x90b   :  { %9860 = vadd.xlane.f32.xlu1 %v9859_v55  ;;  %v16369_v55 = vpack.c.bf16 %v10195_v52, %v10188_v45 }
 0x90d   :  { %16370 = vmatpush3.bf16.msra.mxu1 %v16369_v55  ;;  %v21614_v55 = vld [vmem:[#allocation4 + $0xa0] sm:$0xff] }
 0x994   :  { %v9856_v3 = vpop.xlane.xlu0 %9855 }
 0x995   :  { %v9863_v19 = vmul.f32 0.001953125, %v9856_v3  ;;  %v23425_v3 = vand.u32 4294901760, %v21614_v55 }
 0x997   :  { %v21575_v49 = vsub.f32 %v21453_v11, %v9863_v19  ;;  %v21578_v37 = vsub.f32 %v21455_v16, %v9863_v19  ;;  %v21581_v18 = vsub.f32 %v21458_v41, %v9863_v19  ;;  %v21584_v42 = vsub.f32 %v21464_v15, %v9863_v19 }
 0x998   :  { %v9861_v4 = vpop.xlane.xlu1 %9860 }
 0x999   :  { %24279 = vst [vmem:[#allocation55_spill] sm:$0xff] %v21581_v18  ;;  %v9864_v40 = vmul.f32 0.001953125, %v9861_v4  ;;  %v9873_v54 = vmul.f32 %v21575_v49, %v21575_v49  ;;  %v9874_v29 = vmul.f32 %v21578_v37, %v21578_v37  ;;  %v9875_v11 = vmul.f32 %v21581_v18, %v21581_v18  ;;  %v21620_v4 = vld [vmem:[#allocation4 + $0x20] sm:$0xff] }
 0x99a   :  { %v9876_v24 = vmul.f32 %v21584_v42, %v21584_v42  ;;  %v24286_v18 = vand.u32 4294901760, %v21498_v14 }
 0x99b   :  { %v21593_v16 = vsub.f32 %v21462_v32, %v9864_v40  ;;  %v21596_v41 = vsub.f32 %v21466_v63, %v9864_v40  ;;  %v9881_v39 = vadd.f32 %v9874_v29, %v9873_v54  ;;  %v21599_v15 = vsub.f32 %v21469_v22, %v9864_v40 }
 0x99c   :  { %v21604_v13 = vsub.f32 %v21474_v31, %v9864_v40  ;;  %v21616_v31 = vld [vmem:[#allocation4 + $0xa8] sm:$0xff]  ;;  %v23422_v54 = vand.u32 4294901760, %v21620_v4 }
 0x99d   :  { %24280 = vst [vmem:[#allocation56_spill] sm:$0xff] %v21599_v15  ;;  %v9882_v48 = vadd.f32 %v9881_v39, %v9875_v11  ;;  %v9877_v44 = vmul.f32 %v21593_v16, %v21593_v16  ;;  %v9878_v32 = vmul.f32 %v21596_v41, %v21596_v41  ;;  %v9879_v63 = vmul.f32 %v21599_v15, %v21599_v15  ;;  %v21622_v40 = vld [vmem:[#allocation4 + $0x28] sm:$0xff] }
 0x99e   :  { %v9880_v22 = vmul.f32 %v21604_v13, %v21604_v13  ;;  %v23423_v19 = vand.u32 4294901760, %v21616_v31  ;;  %v23417_v29 = vand.u32 4294901760, %v21622_v40  ;;  %v21629_v11 = vsub.f32 %v21614_v55, %v23425_v3 }
 0x99f   :  { %v9883_v45 = vadd.f32 %v9882_v48, %v9876_v24  ;;  %v9886_v10 = vadd.f32 %v9878_v32, %v9877_v44  ;;  %v21639_v24 = vsub.f32 %v21620_v4, %v23422_v54  ;;  %v21646_v44 = vld [vmem:[#allocation4 + $0xb0] sm:$0xff]  ;;  %v21648_v32 = vld [vmem:[#allocation4 + $0xb8] sm:$0xff]  ;;  %v24285_v15 = vand.u32 4294901760, %v21496_v21 }
 0x9a0   :  { %v21634_v39 = vsub.f32 %v21616_v31, %v23423_v19  ;;  %v21644_v48 = vsub.f32 %v21622_v40, %v23417_v29 }
 0x9a1   :  { %9884 = vadd.xlane.f32.xlu0 %v9883_v45  ;;  %v9887_v9 = vadd.f32 %v9886_v10, %v9879_v63  ;;  %v23418_v45 = vand.u32 4294901760, %v21629_v11  ;;  %v23420_v10 = vand.u32 4294901760, %v21646_v44  ;;  %v23424_v27 = vand.u32 4294901760, %v21639_v24 }
 0x9a2   :  { %v23419_v63 = vand.u32 4294901760, %v21634_v39  ;;  %v23427_v12 = vand.u32 4294901760, %v21644_v48 }
 0x9a3   :  { %v9888_v52 = vadd.f32 %v9887_v9, %v9880_v22  ;;  %v23421_v22 = vand.u32 4294901760, %v21648_v32  ;;  %v21654_v9 = vld [vmem:[#allocation4 + $0x30] sm:$0xff]  ;;  %v10313_v7 = vsub.f32 %v21629_v11, %v23418_v45  ;;  %v21671_v60 = vsub.f32 %v21646_v44, %v23420_v10 }
 0x9a4   :  { %v23430_v1 = vand.u32 4294901760, %v21654_v9  ;;  %v10320_v62 = vsub.f32 %v21634_v39, %v23419_v63  ;;  %v10201_v29 = vsub.f32 %v21639_v24, %v23424_v27  ;;  %v10208_v45 = vsub.f32 %v21644_v48, %v23427_v12 }
 0x9a5   :  { %9889 = vadd.xlane.f32.xlu1 %v9888_v52  ;;  %v21656_v52 = vld [vmem:[#allocation4 + $0x38] sm:$0xff]  ;;  %v21676_v20 = vsub.f32 %v21648_v32, %v23421_v22  ;;  %v10314_v22 = vand.u32 4294901760, %v10313_v7  ;;  %v23436_v19 = vand.u32 4294901760, %v21671_v60  ;;  %v21706_v7 = vpack.c.bf16 %v10094_v59, %v10091_v36 }
 0x9a6   :  { %v23431_v47 = vand.u32 4294901760, %v21656_v52  ;;  %v21687_v63 = vsub.f32 %v21654_v9, %v23430_v1  ;;  %v10321_v54 = vand.u32 4294901760, %v10320_v62  ;;  %v10202_v3 = vand.u32 4294901760, %v10201_v29  ;;  %v21700_v1 = vld [vmem:[#allocation4 + $0xc8] sm:$0xff] }
 0x9a7   :  { %v23435_v27 = vand.u32 4294901760, %v21676_v20  ;;  %v10209_v50 = vand.u32 4294901760, %v10208_v45  ;;  %v10327_v29 = vsub.f32 %v21671_v60, %v23436_v19  ;;  %16332 = vmatprep.subr.bf16.mxu0 %v21706_v7  ;;  %v10118_v61 = vand.u32 4294901760, %v21700_v1 }
 0x9a8   :  { %v21692_v10 = vsub.f32 %v21656_v52, %v23431_v47  ;;  %v23433_v12 = vand.u32 4294901760, %v21687_v63  ;;  %v16371_v62 = vpack.c.bf16 %v10321_v54, %v10314_v22  ;;  %v21714_v47 = vld [vmem:[#allocation4 + $0x40] sm:$0xff]  ;;  %16334 = vmatpush3.bf16.msra.mxu0 %v21722_v35  ;;  %v21747_v19 = vsub.f32 %v21698_v34, %v10115_v25 }
 0x9a9   :  { %v10334_v45 = vsub.f32 %v21676_v20, %v23435_v27  ;;  %v16373_v57 = vpack.c.bf16 %v10209_v50, %v10202_v3  ;;  %v10328_v54 = vand.u32 4294901760, %v10327_v29  ;;  %v10067_v50 = vand.u32 4294901760, %v21714_v47 }
 0x9aa   :  { %v23434_v58 = vand.u32 4294901760, %v21692_v10  ;;  %v10215_v36 = vsub.f32 %v21687_v63, %v23433_v12  ;;  %16372 = vmatprep.subr.bf16.mxu1 %v16371_v62  ;;  %v10070_v3 = vand.u32 4294901760, %v21716_v23  ;;  %v21736_v12 = vld [vmem:[#allocation4 + $0xd0] sm:$0xff]  ;;  %v24281_v62 = vand.u32 4294901760, %v21489_v26  ;;  %24283 = vst [vmem:[#allocation91_spill] sm:$0xff] %v21747_v19 }
 0x9ab   :  { %v10335_v22 = vand.u32 4294901760, %v10334_v45  ;;  %16374 = vmatpush3.bf16.msra.mxu1 %v16373_v57  ;;  %v24282_v29 = vand.u32 4294901760, %v21491_v5  ;;  %v21750_v57 = vsub.f32 %v21700_v1, %v10118_v61  ;;  %v21760_v26 = vpack.c.bf16 %v24286_v18, %v24285_v15 }
 0x9ac   :  { %v10222_v59 = vsub.f32 %v21692_v10, %v23434_v58  ;;  %v10216_v30 = vand.u32 4294901760, %v10215_v36  ;;  %v21738_v58 = vld [vmem:[#allocation4 + $0xd8] sm:$0xff]  ;;  %v21752_v36 = vld [vmem:[#allocation4 + $0x50] sm:$0xff]  ;;  %v21766_v34 = vsub.f32 %v21716_v23, %v10070_v3  ;;  %v23439_v1 = vand.u32 4294901760, %v21747_v19 }
 0x9ad   :  { %v21744_v45 = vpack.c.bf16 %v24282_v29, %v24281_v62  ;;  %v16375_v27 = vpack.c.bf16 %v10335_v22, %v10328_v54  ;;  %24284 = vst [vmem:[#allocation57_spill] sm:$0xff] %v21750_v57  ;;  %v21763_v62 = vsub.f32 %v21714_v47, %v10067_v50  ;;  %v23441_v54 = vand.u32 4294901760, %v21750_v57 }
 0x9ae   :  { %v10223_v33 = vand.u32 4294901760, %v10222_v59  ;;  %v21754_v59 = vld [vmem:[#allocation4 + $0x58] sm:$0xff]  ;;  %v10121_v21 = vand.u32 4294901760, %v21736_v12  ;;  %v10124_v14 = vand.u32 4294901760, %v21738_v58  ;;  %v24288_v22 = vand.u32 4294901760, %v21616_v31 }
 0x9af   :  { %16336 = vmatprep.subr.bf16.mxu0 %v21744_v45  ;;  %16376 = vmatprep.subr.bf16.mxu1 %v16375_v27  ;;  %v23440_v47 = vand.u32 4294901760, %v21763_v62  ;;  %v24287_v27 = vand.u32 4294901760, %v21614_v55  ;;  %v10348_v29 = vsub.f32 %v21750_v57, %v23441_v54  ;;  %v24291_v23 = vand.u32 4294901760, %v21622_v40 }
 0x9b0   :  { %v16377_v5 = vpack.c.bf16 %v10223_v33, %v10216_v30  ;;  %16338 = vmatpush3.bf16.msra.mxu0 %v21760_v26  ;;  %v10341_v33 = vsub.f32 %v21747_v19, %v23439_v1  ;;  %v24293_v31 = vand.u32 4294901760, %v21766_v34  ;;  %v24295_v1 = vand.u32 4294901760, %v21648_v32 }
 0x9b1   :  { %v21782_v30 = vpack.c.bf16 %v24288_v22, %v24287_v27  ;;  %v10229_v55 = vsub.f32 %v21763_v62, %v23440_v47  ;;  %v24294_v22 = vand.u32 4294901760, %v21646_v44  ;;  %v24297_v47 = vand.u32 4294901760, %v21654_v9  ;;  %v21821_v44 = vld [vmem:[#allocation4 + $0xe0] sm:$0xff] }
 0x9b2   :  { %16378 = vmatpush3.bf16.msra.mxu1 %v16377_v5  ;;  %v24290_v5 = vand.u32 4294901760, %v21620_v4  ;;  %v10236_v27 = vsub.f32 %v21766_v34, %v24293_v31  ;;  %v21809_v4 = vsub.f32 %v21736_v12, %v10121_v21  ;;  %v10342_v40 = vand.u32 4294901760, %v10341_v33 }
 0x9b3   :  { %24289 = vst [vmem:[#allocation58_spill] sm:$0xff] %v21782_v30  ;;  %v21806_v15 = vpack.c.bf16 %v24295_v1, %v24294_v22  ;;  %16340 = vmatprep.subr.bf16.mxu0 %v21782_v30  ;;  %v24298_v31 = vand.u32 4294901760, %v21656_v52  ;;  %v10230_v32 = vand.u32 4294901760, %v10229_v55  ;;  %v24300_v33 = vand.u32 4294901760, %v21752_v36 }
 0x9b4   :  { %v21794_v18 = vpack.c.bf16 %v24291_v23, %v24290_v5  ;;  %v10349_v23 = vand.u32 4294901760, %v10348_v29  ;;  %v21813_v5 = vsub.f32 %v21738_v58, %v10124_v14  ;;  %v10237_v12 = vand.u32 4294901760, %v10236_v27  ;;  %v21830_v58 = vld [vmem:[#allocation4 + $0xe8] sm:$0xff]  ;;  %v21841_v27 = vld [vmem:[#allocation4 + $0x60] sm:$0xff] }
 0x9b5   :  { %24296 = vst [vmem:[#allocation60_spill] sm:$0xff] %v21806_v15  ;;  %v21819_v54 = vpack.c.bf16 %v24298_v31, %v24297_v47  ;;  %v23442_v1 = vand.u32 4294901760, %v21809_v4  ;;  %v21828_v29 = vsub.f32 %v21752_v36, %v24300_v33  ;;  %v24301_v47 = vand.u32 4294901760, %v21754_v59 }
 0x9b6   :  { %24292 = vst [vmem:[#allocation59_spill] sm:$0xff] %v21794_v18  ;;  %16342 = vmatpush3.bf16.msra.mxu0 %v21794_v18  ;;  %v16379_v9 = vpack.c.bf16 %v10349_v23, %v10342_v40  ;;  %v23445_v52 = vand.u32 4294901760, %v21813_v5  ;;  %v21839_v55 = vpack.c.bf16 %v10118_v61, %v10115_v25  ;;  %v16381_v31 = vpack.c.bf16 %v10237_v12, %v10230_v32 }
 0x9b7   :  { %24299 = vst [vmem:[#allocation61_spill] sm:$0xff] %v21819_v54  ;;  %16344 = vmatprep.subr.bf16.mxu0 %v21806_v15  ;;  %v21837_v22 = vsub.f32 %v21754_v59, %v24301_v47  ;;  %v10355_v33 = vsub.f32 %v21809_v4, %v23442_v1  ;;  %v23448_v40 = vand.u32 4294901760, %v21828_v29  ;;  %v10127_v23 = vand.u32 4294901760, %v21821_v44 }
 0x9b8   :  { %24302 = vst [vmem:[#allocation38_spill] sm:$0xff] %v21839_v55  ;;  %16380 = vmatprep.subr.bf16.mxu1 %v16379_v9  ;;  %v10362_v47 = vsub.f32 %v21813_v5, %v23445_v52  ;;  %v10130_v61 = vand.u32 4294901760, %v21830_v58  ;;  %v21855_v32 = vpack.c.bf16 %v10070_v3, %v10067_v50  ;;  %v10079_v15 = vand.u32 4294901760, %v21841_v27 }
 0x9b9   :  { %v23455_v25 = vand.u32 4294901760, %v21837_v22  ;;  %16382 = vmatpush3.bf16.msra.mxu1 %v16381_v31  ;;  %v10356_v12 = vand.u32 4294901760, %v10355_v33  ;;  %v10243_v1 = vsub.f32 %v21828_v29, %v23448_v40  ;;  %v21862_v9 = vsub.f32 %v21821_v44, %v10127_v23  ;;  %v10001_v31 = vld [vmem:[#allocation4 + $0xf0] sm:$0xff]  ;;  %v10002_v33 = vld [vmem:[#allocation4 + $0xf8] sm:$0xff] }
 0x9ba   :  { %24303 = vst [vmem:[#allocation73_spill] sm:$0xff] %v21855_v32  ;;  %16346 = vmatpush3.bf16.msra.mxu0 %v21819_v54  ;;  %v10363_v52 = vand.u32 4294901760, %v10362_v47  ;;  %v21870_v50 = vsub.f32 %v21830_v58, %v10130_v61  ;;  %v10082_v3 = vand.u32 4294901760, %v21848_v46  ;;  %v21875_v54 = vsub.f32 %v21841_v27, %v10079_v15 }
 0x9bb   :  { %v10250_v2 = vsub.f32 %v21837_v22, %v23455_v25  ;;  %16348 = vmatprep.subr.bf16.mxu0 %v21839_v55  ;;  %v10244_v40 = vand.u32 4294901760, %v10243_v1  ;;  %v23462_v44 = vand.u32 4294901760, %v21862_v9  ;;  %v21877_v47 = vpack.c.bf16 %v10124_v14, %v10121_v21  ;;  %v9986_v21 = vld [vmem:[#allocation4 + $0x78] sm:$0xff] }
 0x9bc   :  { %24304 = vst [vmem:[#allocation74_spill] sm:$0xff] %v21870_v50  ;;  %v16383_v28 = vpack.c.bf16 %v10363_v52, %v10356_v12  ;;  %v23465_v25 = vand.u32 4294901760, %v21870_v50  ;;  %v21881_v55 = vsub.f32 %v21848_v46, %v10082_v3  ;;  %v10133_v0 = vand.u32 4294901760, %v10001_v31 }
 0x9bd   :  { %24305 = vst [vmem:[#allocation83_spill] sm:$0xff] %v21877_v47  ;;  %v10251_v18 = vand.u32 4294901760, %v10250_v2  ;;  %v10369_v58 = vsub.f32 %v21862_v9, %v23462_v44  ;;  %v10136_v27 = vand.u32 4294901760, %v10002_v33  ;;  %v24306_v52 = vand.u32 4294901760, %v21752_v36 }
 0x9be   :  { %16350 = vmatpush3.bf16.msra.mxu0 %v21855_v32  ;;  %16384 = vmatprep.subr.bf16.mxu1 %v16383_v28  ;;  %v10376_v2 = vsub.f32 %v21870_v50, %v23465_v25  ;;  %v23470_v46 = vand.u32 4294901760, %v21881_v55  ;;  %v24307_v12 = vand.u32 4294901760, %v21754_v59  ;;  %v24309_v32 = vand.u32 4294901760, %v21875_v54 }
 0x9bf   :  { %v16385_v14 = vpack.c.bf16 %v10251_v18, %v10244_v40  ;;  %16352 = vmatprep.subr.bf16.mxu0 %v21877_v47  ;;  %v10370_v1 = vand.u32 4294901760, %v10369_v58  ;;  %v21902_v18 = vsub.f32 %v10001_v31, %v10133_v0  ;;  %v21904_v40 = vsub.f32 %v10002_v33, %v10136_v27 }
 0x9c0   :  { %v21897_v44 = vpack.c.bf16 %v24307_v12, %v24306_v52  ;;  %v10257_v28 = vsub.f32 %v21875_v54, %v24309_v32  ;;  %v10377_v25 = vand.u32 4294901760, %v10376_v2  ;;  %v10264_v47 = vsub.f32 %v21881_v55, %v23470_v46 }
 0x9c1   :  { %16386 = vmatpush3.bf16.msra.mxu1 %v16385_v14  ;;  %v10085_v36 = vand.u32 4294901760, %v9985_v43  ;;  %v10088_v30 = vand.u32 4294901760, %v9986_v21  ;;  %v23474_v52 = vand.u32 4294901760, %v21902_v18  ;;  %v23473_v58 = vand.u32 4294901760, %v21904_v40 }
 0x9c2   :  { %24308 = vst [vmem:[#allocation84_spill] sm:$0xff] %v21897_v44  ;;  %v10258_v59 = vand.u32 4294901760, %v10257_v28  ;;  %16354 = vmatpush3.bf16.msra.mxu0 %v21897_v44  ;;  %v21912_v32 = vpack.c.bf16 %v10130_v61, %v10127_v23  ;;  %v16387_v31 = vpack.c.bf16 %v10377_v25, %v10370_v1  ;;  %v10265_v33 = vand.u32 4294901760, %v10264_v47 }
 0x9c3   :  { %v21914_v12 = vsub.f32 %v9985_v43, %v10085_v36  ;;  %v21916_v14 = vsub.f32 %v9986_v21, %v10088_v30  ;;  %v10383_v2 = vsub.f32 %v21902_v18, %v23474_v52  ;;  %v10390_v28 = vsub.f32 %v21904_v40, %v23473_v58 }
 0x9c4   :  { %24310 = vst [vmem:[#allocation86_spill] sm:$0xff] %v21912_v32  ;;  %16356 = vmatprep.subr.bf16.mxu0 %v21912_v32  ;;  %16388 = vmatprep.subr.bf16.mxu1 %v16387_v31  ;;  %v16389_v46 = vpack.c.bf16 %v10265_v33, %v10258_v59  ;;  %v21927_v43 = vpack.c.bf16 %v10082_v3, %v10079_v15 }
 0x9c5   :  { %v23472_v23 = vand.u32 4294901760, %v21914_v12  ;;  %v23471_v25 = vand.u32 4294901760, %v21916_v14  ;;  %v10384_v61 = vand.u32 4294901760, %v10383_v2  ;;  %v10391_v47 = vand.u32 4294901760, %v10390_v28 }
 0x9c6   :  { %24311 = vst [vmem:[#allocation93_spill] sm:$0xff] %v21927_v43  ;;  %16390 = vmatpush3.bf16.msra.mxu1 %v16389_v46  ;;  %16358 = vmatpush3.bf16.msra.mxu0 %v21927_v43  ;;  %v21936_v59 = vpack.c.bf16 %v10136_v27, %v10133_v0  ;;  %v21938_v33 = vpack.c.bf16 %v10088_v30, %v10085_v36 }
 0x9c7   :  { %v10271_v1 = vsub.f32 %v21914_v12, %v23472_v23  ;;  %v10278_v21 = vsub.f32 %v21916_v14, %v23471_v25  ;;  %v16391_v31 = vpack.c.bf16 %v10391_v47, %v10384_v61  ;;  %v16395_v2 = vpack.c.bf16 %v21508_v53, %v21503_v6 }
 0x9c8   :  { %24312 = vst [vmem:[#allocation88_spill] sm:$0xff] %v21936_v59  ;;  %24313 = vst [vmem:[#allocation92_spill] sm:$0xff] %v21938_v33  ;;  %16360 = vmatprep.subr.bf16.mxu0 %v21936_v59 }
 0x9c9   :  { %v10272_v15 = vand.u32 4294901760, %v10271_v1  ;;  %v10279_v3 = vand.u32 4294901760, %v10278_v21  ;;  %16392 = vmatprep.subr.bf16.mxu1 %v16391_v31  ;;  %v21972_v21 = vld [vmem:[%s22959_s8 + $0xd] sm:$0xf] }
 0x9ca   :  { %16362 = vmatpush3.bf16.msra.mxu0 %v21938_v33 }
 0x9cb   :  { %v16393_v46 = vpack.c.bf16 %v10279_v3, %v10272_v15  ;;  %16396 = vmatprep.subr.bf16.mxu0 %v16395_v2  ;;  %v21977_v15 = vld [vmem:[%s22959_s8 + $0x11] sm:$0xf]  ;;  %v9921_v3 = vrot.slane %v21972_v21, %v21450_v51 }
 0x9cc   :  { %24314 = vst [vmem:[#allocation94_spill] sm:$0xff] %v21977_v15  ;;  %v9938_v31 = vrot.slane %v21977_v15, %v24222_v56  ;;  %v9950_v47 = vrot.slane %v21977_v15, %v21450_v51 }
 0x9cd   :  { %16394 = vmatpush3.bf16.msra.mxu1 %v16393_v46 }
 0x9ce   :  { %16428 = vmatprep.subr.bf16.mxu1 %v21706_v7 }
 0xa2e   :  { %v9885_v46 = vpop.xlane.xlu0 %9884 }
 0xa2f   :  { %v9891_v2 = vmul.f32 0.001953125, %v9885_v46  ;;  %v9913_v46 = vrot.slane %v21972_v21, %v24221_v8 }
 0xa31   :  { %v9893_v25 = vadd.f32 1e-05, %v9891_v2 }
 0xa32   :  { %v9890_v23 = vpop.xlane.xlu1 %9889 }
 0xa33   :  { %16847 = vrsqrt.f32 %v9893_v25  ;;  %v9892_v58 = vmul.f32 0.001953125, %v9890_v23  ;;  %v9942_v23 = vrot.slane %v21977_v15, %v24221_v8 }
 0xa35   :  { %v9894_v52 = vadd.f32 1e-05, %v9892_v58  ;;  %v9909_v58 = vrot.slane %v21972_v21, %v24222_v56 }
 0xa37   :  { %16849 = vrsqrt.f32 %v9894_v52 }
 0xa3d   :  { %v21985_v52 = vpop.eup %16847 }
 0xa3e   :  { %24315 = vst [vmem:[#allocation95_spill] sm:$0xff] %v21985_v52  ;;  %v9898_v25 = vmul.f32 %v21985_v52, %v21578_v37  ;;  %v9897_v2 = vmul.f32 %v21985_v52, %v21575_v49  ;;  %v9900_v1 = vmul.f32 %v21985_v52, %v21584_v42 }
 0xa40   :  { %v9927_v61 = vmul.f32 %v9913_v46, %v9898_v25  ;;  %v9926_v28 = vmul.f32 %v9909_v58, %v9897_v2  ;;  %v9929_v36 = vmul.f32 %v9921_v3, %v9900_v1 }
 0xa41   :  { %v21999_v27 = vpop.eup %16849 }
 0xa42   :  { %24316 = vst [vmem:[#allocation96_spill] sm:$0xff] %v21999_v27  ;;  %v9956_v8 = vadd.f32 %v9942_v23, %v9927_v61  ;;  %v9955_v30 = vadd.f32 %v9938_v31, %v9926_v28  ;;  %v9902_v37 = vmul.f32 %v21999_v27, %v21596_v41  ;;  %v9901_v49 = vmul.f32 %v21999_v27, %v21593_v16 }
 0xa43   :  { %v22005_v56 = vadd.f32 %v9950_v47, %v9929_v36  ;;  %v9904_v42 = vmul.f32 %v21999_v27, %v21604_v13 }
 0xa44   :  { %v9964_v0 = vmax.f32 %v9956_v8, 0.0  ;;  %v9963_v51 = vmax.f32 %v9955_v30, 0.0  ;;  %v9931_v25 = vmul.f32 %v9913_v46, %v9902_v37  ;;  %v9930_v2 = vmul.f32 %v9909_v58, %v9901_v49 }
 0xa45   :  { %24317 = vst [vmem:[#allocation97_spill] sm:$0xff] %v22005_v56  ;;  %v9933_v1 = vmul.f32 %v9921_v3, %v9904_v42  ;;  %v16397_v8 = vpack.c.bf16 %v21519_v17, %v21513_v38 }
 0xa46   :  { %v22009_v52 = vand.u32 4294901760, %v9964_v0  ;;  %v22011_v61 = vand.u32 4294901760, %v9963_v51  ;;  %v9960_v28 = vadd.f32 %v9942_v23, %v9931_v25  ;;  %v9959_v15 = vadd.f32 %v9938_v31, %v9930_v2  ;;  %v24322_v25 = vld [vmem:[#allocation58_spill] sm:$0xff] }
 0xa47   :  { %v22013_v41 = vadd.f32 %v9950_v47, %v9933_v1  ;;  %v24323_v2 = vld [vmem:[#allocation50_spill] sm:$0xff]  ;;  %v24324_v1 = vld [vmem:[#allocation52_spill] sm:$0xff] }
 0xa48   :  { %24318 = vst [vmem:[#allocation98_spill] sm:$0xff] %v22011_v61  ;;  %10394 = vmatprep.mubr.f32.mxu1 %v22009_v52  ;;  %v22017_v16 = vsub.f32 %v9963_v51, %v22011_v61  ;;  %v9968_v36 = vmax.f32 %v9960_v28, 0.0  ;;  %v9967_v13 = vmax.f32 %v9959_v15, 0.0  ;;  %v10139_v30 = vsub.f32 %v9964_v0, %v22009_v52 }
 0xa49   :  { %24319 = vst [vmem:[#allocation102_spill] sm:$0xff] %v22013_v41  ;;  %10396 = vmatmul.mubr.f32.vlgmr.msra.gmra.mrb[50].mxu1 %v22011_v61  ;;  %v16399_v28 = vpack.c.bf16 %v24324_v1, %v24323_v2  ;;  %v24327_v41 = vld [vmem:[#allocation54_spill] sm:$0xff]  ;;  %v22082_v61 = vld [vmem:[#allocation4 + $0x168] sm:$0xff] }
 0xa4a   :  { %16430 = vmatpush3.bf16.msra.mxu1 %v21722_v35  ;;  %v22022_v3 = vand.u32 4294901760, %v9968_v36  ;;  %v22024_v46 = vand.u32 4294901760, %v9967_v13  ;;  %v10140_v31 = vand.u32 4294901760, %v10139_v30  ;;  %v23477_v47 = vand.u32 4294901760, %v22017_v16  ;;  %24341 = vst [vmem:[#allocation76_spill] sm:$0xff] %v22082_v61 }
 0xa4b   :  { %16432 = vmatprep.subr.bf16.mxu1 %v21744_v45 }
 0xa4c   :  { %24320 = vst [vmem:[#allocation103_spill] sm:$0xff] %v22022_v3  ;;  %24321 = vst [vmem:[#allocation104_spill] sm:$0xff] %v22024_v46  ;;  %10401 = vmatprep.mubr.f32.mxu1 %v22022_v3  ;;  %v10141_v58 = vsub.f32 %v10139_v30, %v10140_v31  ;;  %v10147_v0 = vsub.f32 %v22017_v16, %v23477_v47  ;;  %v22033_v15 = vsub.f32 %v9968_v36, %v22022_v3  ;;  %v24326_v47 = vld [vmem:[#allocation53_spill] sm:$0xff]  ;;  %v22080_v3 = vld [vmem:[#allocation4 + $0x160] sm:$0xff] }
 0xa4d   :  { %v22036_v23 = vsub.f32 %v9967_v13, %v22024_v46  ;;  %10403 = vmatmul.mubr.f32.gmra.mrb[52].mxu1 %v22024_v46  ;;  %v16401_v27 = vpack.c.bf16 %v24327_v41, %v24326_v47  ;;  %v24328_v46 = vld [vmem:[#allocation60_spill] sm:$0xff]  ;;  %24340 = vst [vmem:[#allocation75_spill] sm:$0xff] %v22080_v3 }
 0xa4e   :  { %16434 = vmatpush3.bf16.msra.mxu1 %v21760_v26  ;;  %10654 = vmatprep.mubr.f32.mxu1 %v10140_v31  ;;  %v10142_v37 = vand.u32 4294901760, %v10141_v58  ;;  %v10148_v49 = vand.u32 4294901760, %v10147_v0  ;;  %v23482_v42 = vand.u32 4294901760, %v22033_v15  ;;  %v24325_v31 = vld [vmem:[#allocation59_spill] sm:$0xff] }
 0xa4f   :  { %v23481_v51 = vand.u32 4294901760, %v22036_v23  ;;  %16436 = vmatprep.subr.bf16.mxu1 %v24322_v25 }
 0xa50   :  { %10143 = vmatprep.mubr.f32.mxu0 %v10142_v37  ;;  %v10156_v36 = vsub.f32 %v22033_v15, %v23482_v42  ;;  %v24329_v37 = vld [vmem:[#allocation61_spill] sm:$0xff]  ;;  %v24339_v42 = vld [vmem:[#allocation83_spill] sm:$0xff] }
 0xa51   :  { %v10162_v13 = vsub.f32 %v22036_v23, %v23481_v51  ;;  %10149 = vmatmul.mubr.f32.vlgmr.msra.gmra.mrb[48].mxu0 %v10148_v49  ;;  %v24330_v49 = vpack.c.bf16 %v21634_v39, %v21629_v11  ;;  %v22074_v51 = vld [vmem:[#allocation4 + $0x1e8] sm:$0xff] }
 0xa52   :  { %16398 = vmatpush3.bf16.msra.mxu0 %v16397_v8  ;;  %16438 = vmatpush3.bf16.msra.mxu1 %v24325_v31  ;;  %v10157_v58 = vand.u32 4294901760, %v10156_v36  ;;  %v22061_v8 = vld [vmem:[#allocation4 + $0x150] sm:$0xff]  ;;  %v22063_v36 = vld [vmem:[#allocation4 + $0x158] sm:$0xff]  ;;  %24337 = vst [vmem:[#allocation82_spill] sm:$0xff] %v22074_v51 }
 0xa53   :  { %v10163_v0 = vand.u32 4294901760, %v10162_v13  ;;  %16400 = vmatprep.subr.bf16.mxu0 %v16399_v28  ;;  %16440 = vmatprep.subr.bf16.mxu1 %v24328_v46  ;;  %24331 = vst [vmem:[#allocation80_spill] sm:$0xff] %v22061_v8  ;;  %24332 = vst [vmem:[#allocation79_spill] sm:$0xff] %v22063_v36  ;;  %v24333_v13 = vld [vmem:[#allocation38_spill] sm:$0xff]  ;;  %v24334_v28 = vpack.c.bf16 %v21644_v48, %v21639_v24  ;;  %v24343_v56 = vand.u32 4294901760, %v22061_v8 }
 0xa54   :  { %10158 = vmatprep.mubr.f32.mxu0 %v10157_v58  ;;  %v24335_v58 = vld [vmem:[#allocation73_spill] sm:$0xff] }
 0xa55   :  { %10164 = vmatmul.mubr.f32.gmra.mrb[50].mxu0 %v10163_v0  ;;  %v22072_v0 = vld [vmem:[#allocation4 + $0x1e0] sm:$0xff] }
 0xa56   :  { %16402 = vmatpush3.bf16.msra.mxu0 %v16401_v27  ;;  %16442 = vmatpush3.bf16.msra.mxu1 %v24329_v37  ;;  %24336 = vst [vmem:[#allocation81_spill] sm:$0xff] %v22072_v0  ;;  %v22103_v27 = vld [vmem:[#allocation4 + $0x1f8] sm:$0xff] }
 0xa57   :  { %10538 = vmatprep.mubr.f32.mxu0 %v10139_v30  ;;  %16404 = vmatprep.subr.bf16.mxu0 %v24330_v49  ;;  %v24338_v49 = vpack.c.bf16 %v21676_v20, %v21671_v60  ;;  %v24342_v30 = vpack.c.bf16 %v21692_v10, %v21687_v63  ;;  %24348 = vst [vmem:[#allocation87_spill] sm:$0xff] %v22103_v27 }
 0xa58   :  { %16444 = vmatprep.subr.bf16.mxu1 %v24333_v13  ;;  %v22101_v13 = vld [vmem:[#allocation4 + $0x1f0] sm:$0xff] }
 0xa59   :  { %24347 = vst [vmem:[#allocation85_spill] sm:$0xff] %v22101_v13 }
 0xa5a   :  { %16406 = vmatpush3.bf16.msra.mxu0 %v24334_v28  ;;  %16446 = vmatpush3.bf16.msra.mxu1 %v24335_v58 }
 0xa5b   :  { %16408 = vmatprep.subr.bf16.mxu0 %v24338_v49  ;;  %16448 = vmatprep.subr.bf16.mxu1 %v24339_v42  ;;  %v22093_v49 = vsub.f32 %v22061_v8, %v24343_v56  ;;  %v24345_v42 = vand.u32 4294901760, %v22063_v36  ;;  %v22110_v8 = vld [vmem:[#allocation4 + $0x170] sm:$0xff]  ;;  %v24354_v56 = vpack.c.bf16 %v21766_v34, %v21763_v62 }
 0xa5c   :  { %24350 = vst [vmem:[#allocation89_spill] sm:$0xff] %v22110_v8 }
 0xa5d   :  { %24344 = vst [vmem:[#allocation77_spill] sm:$0xff] %v22093_v49  ;;  %v22098_v58 = vsub.f32 %v22063_v36, %v24345_v42  ;;  %v24352_v42 = vand.u32 4294901760, %v22072_v0  ;;  %v24353_v36 = vand.u32 4294901760, %v22074_v51 }
 0xa5e   :  { %16410 = vmatpush3.bf16.msra.mxu0 %v24342_v30  ;;  %16450 = vmatpush3.bf16.msra.mxu1 %v21897_v44  ;;  %v24349_v30 = vpack.c.bf16 %v21750_v57, %v21747_v19  ;;  %v22112_v44 = vld [vmem:[#allocation4 + $0x178] sm:$0xff]  ;;  %v23499_v57 = vand.u32 4294901760, %v22093_v49 }
 0xa5f   :  { %24346 = vst [vmem:[#allocation105_spill] sm:$0xff] %v22098_v58  ;;  %16452 = vmatprep.subr.bf16.mxu1 %v21912_v32  ;;  %24351 = vst [vmem:[#allocation78_spill] sm:$0xff] %v22112_v44  ;;  %v22117_v28 = vsub.f32 %v22072_v0, %v24352_v42  ;;  %v22122_v37 = vsub.f32 %v22074_v51, %v24353_v36  ;;  %v24355_v0 = vand.u32 4294901760, %v22080_v3  ;;  %v24357_v32 = vand.u32 4294901760, %v22082_v61  ;;  %v22154_v51 = vld [vmem:[#allocation4 + $0x180] sm:$0xff] }
 0xa60   :  { %16412 = vmatprep.subr.bf16.mxu0 %v24349_v30  ;;  %v24356_v36 = vpack.c.bf16 %v21813_v5, %v21809_v4  ;;  %v24360_v30 = vand.u32 4294901760, %v22101_v13 }
 0xa61   :  { %v22135_v19 = vsub.f32 %v22080_v3, %v24355_v0  ;;  %v24358_v0 = vand.u32 4294901760, %v22098_v58 }
 0xa62   :  { %16414 = vmatpush3.bf16.msra.mxu0 %v24354_v56  ;;  %16454 = vmatpush3.bf16.msra.mxu1 %v21927_v43  ;;  %v22144_v56 = vsub.f32 %v22082_v61, %v24357_v32  ;;  %v22165_v42 = vsub.f32 %v22101_v13, %v24360_v30  ;;  %v24361_v61 = vand.u32 4294901760, %v22103_v27  ;;  %v24364_v43 = vpack.c.bf16 %v21870_v50, %v21862_v9  ;;  %v22183_v30 = vld [vmem:[#allocation4 + $0x190] sm:$0xff]  ;;  %v22205_v50 = vld [vmem:[#allocation4 + $0x198] sm:$0xff] }
 0xa63   :  { %16416 = vmatprep.subr.bf16.mxu0 %v24356_v36  ;;  %16456 = vmatprep.subr.bf16.mxu1 %v21936_v59  ;;  %v22152_v3 = vpack.c.bf16 %v24358_v0, %v23499_v57  ;;  %v22156_v36 = vld [vmem:[#allocation4 + $0x188] sm:$0xff]  ;;  %v22158_v59 = vld [vmem:[#allocation4 + $0x100] sm:$0xff]  ;;  %v24363_v57 = vpack.c.bf16 %v21837_v22, %v21828_v29  ;;  %v24366_v13 = vand.u32 4294901760, %v22112_v44  ;;  %v24367_v32 = vand.u32 4294901760, %v22117_v28 }
 0xa64   :  { %v22170_v0 = vsub.f32 %v22103_v27, %v24361_v61  ;;  %v24365_v27 = vand.u32 4294901760, %v22110_v8  ;;  %v24375_v61 = vand.u32 4294901760, %v22033_v15 }
 0xa65   :  { %24359 = vst [vmem:[#allocation109_spill] sm:$0xff] %v22152_v3  ;;  %v22176_v3 = vld [vmem:[#allocation4 + $0x108] sm:$0xff]  ;;  %v22194_v58 = vsub.f32 %v22112_v44, %v24366_v13  ;;  %v24377_v13 = vand.u32 4294901760, %v21508_v53 }
 0xa66   :  { %24362 = vst [vmem:[#allocation110_spill] sm:$0xff] %v22170_v0  ;;  %16418 = vmatpush3.bf16.msra.mxu0 %v24363_v57  ;;  %16458 = vmatpush3.bf16.msra.mxu1 %v21938_v33  ;;  %v22189_v57 = vsub.f32 %v22110_v8, %v24365_v27  ;;  %v24370_v27 = vand.u32 4294901760, %v22017_v16  ;;  %v24374_v33 = vpack.c.bf16 %v21881_v55, %v21875_v54  ;;  %v24380_v53 = vand.u32 4294901760, %v22170_v0 }
 0xa67   :  { %16420 = vmatprep.subr.bf16.mxu0 %v24364_v43  ;;  %16492 = vmatprep.subr.bf16.mxu1 %v21706_v7  ;;  %v24368_v43 = vand.u32 4294901760, %v22122_v37  ;;  %v24386_v8 = vand.u32 4294901760, %v22036_v23  ;;  %v24396_v0 = vand.u32 4294901760, %v22183_v30 }
 0xa69   :  { %v22200_v49 = vpack.c.bf16 %v24368_v43, %v24367_v32  ;;  %10658 = vmatmul.mubr.f32.vlgmr.msra.gmra.mrb[54].mxu1 %v24370_v27  ;;  %v24371_v32 = vand.u32 4294901760, %v22135_v19  ;;  %v24372_v43 = vand.u32 4294901760, %v22144_v56  ;;  %v24376_v27 = vand.u32 4294901760, %v21503_v6 }
 0xa6a   :  { %16422 = vmatpush3.bf16.msra.mxu0 %v24374_v33  ;;  %10665 = vmatprep.mubr.f32.mxu1 %v24375_v61  ;;  %v24379_v6 = vand.u32 4294901760, %v22165_v42  ;;  %v24387_v61 = vand.u32 4294901760, %v22158_v59 }
 0xa6b   :  { %24369 = vst [vmem:[#allocation111_spill] sm:$0xff] %v22200_v49  ;;  %v22216_v7 = vpack.c.bf16 %v24372_v43, %v24371_v32  ;;  %v16459_v44 = vpack.c.bf16 %v24377_v13, %v24376_v27  ;;  %v22228_v49 = vld [vmem:[#allocation4 + $0x110] sm:$0xff]  ;;  %16494 = vmatpush3.bf16.msra.mxu1 %v21722_v35  ;;  %v24378_v32 = vpack.c.bf16 %v21904_v40, %v21902_v18  ;;  %v23512_v43 = vand.u32 4294901760, %v22189_v57 }
 0xa6c   :  { %v22241_v13 = vpack.c.bf16 %v24380_v53, %v24379_v6  ;;  %16496 = vmatprep.subr.bf16.mxu1 %v21744_v45  ;;  %v24382_v35 = vand.u32 4294901760, %v22154_v51  ;;  %v22259_v6 = vsub.f32 %v22158_v59, %v24387_v61  ;;  %v24389_v45 = vand.u32 4294901760, %v22176_v3 }
 0xa6d   :  { %24373 = vst [vmem:[#allocation112_spill] sm:$0xff] %v22216_v7  ;;  %16424 = vmatprep.subr.bf16.mxu0 %v24378_v32  ;;  %v24384_v32 = vand.u32 4294901760, %v22156_v36  ;;  %10669 = vmatmul.mubr.f32.gmra.mrb[56].mxu1 %v24386_v8  ;;  %v24393_v8 = vpack.c.bf16 %v21916_v14, %v21914_v12  ;;  %v24394_v61 = vand.u32 4294901760, %v21513_v38  ;;  %v24395_v7 = vand.u32 4294901760, %v21519_v17 }
 0xa6e   :  { %24381 = vst [vmem:[#allocation113_spill] sm:$0xff] %v22241_v13  ;;  %v22247_v27 = vsub.f32 %v22154_v51, %v24382_v35  ;;  %24388 = vst [vmem:[#allocation116_spill] sm:$0xff] %v22259_v6  ;;  %v22264_v53 = vsub.f32 %v22176_v3, %v24389_v45  ;;  %10946 = vmatprep.mubr.f32.mxu1 %v22009_v52  ;;  %v22284_v35 = vsub.f32 %v22183_v30, %v24396_v0 }
 0xa6f   :  { %v22252_v33 = vsub.f32 %v22156_v36, %v24384_v32  ;;  %v24391_v32 = vand.u32 4294901760, %v22194_v58  ;;  %16426 = vmatpush3.bf16.msra.mxu0 %v24393_v8  ;;  %v16461_v45 = vpack.c.bf16 %v24395_v7, %v24394_v61  ;;  %16498 = vmatpush3.bf16.msra.mxu1 %v21760_v26  ;;  %v22299_v7 = vld [vmem:[#allocation4 + $0x118] sm:$0xff]  ;;  %v23513_v26 = vand.u32 4294901760, %v22259_v6 }
 0xa70   :  { %24383 = vst [vmem:[#allocation114_spill] sm:$0xff] %v22247_v27  ;;  %24390 = vst [vmem:[#allocation117_spill] sm:$0xff] %v22264_v53  ;;  %16460 = vmatprep.subr.bf16.mxu0 %v16459_v44  ;;  %16500 = vmatprep.subr.bf16.mxu1 %v24322_v25  ;;  %v23515_v17 = vand.u32 4294901760, %v22247_v27  ;;  %v24404_v25 = vand.u32 4294901760, %v24326_v47  ;;  %v23517_v61 = vand.u32 4294901760, %v22284_v35  ;;  %v24409_v47 = vand.u32 4294901760, %v21644_v48 }
 0xa71   :  { %24385 = vst [vmem:[#allocation115_spill] sm:$0xff] %v22252_v33  ;;  %v22271_v13 = vpack.c.bf16 %v24391_v32, %v23512_v43  ;;  %24397 = vst [vmem:[#allocation33_spill] sm:$0xff] %v22284_v35  ;;  %v24398_v32 = vand.u32 4294901760, %v24323_v2  ;;  %v24399_v43 = vand.u32 4294901760, %v24324_v1  ;;  %v23514_v0 = vand.u32 4294901760, %v22252_v33 }
 0xa72   :  { %10541 = vmatmul.mubr.f32.vlgmr.msra.gmra.mrb[52].mxu0 %v22017_v16  ;;  %v24402_v2 = vand.u32 4294901760, %v22228_v49  ;;  %v22315_v16 = vld [vmem:[#allocation4 + $0x1a0] sm:$0xff]  ;;  %v24411_v48 = vand.u32 4294901760, %v22264_v53 }
 0xa73   :  { %24392 = vst [vmem:[#allocation11_spill] sm:$0xff] %v22271_v13  ;;  %v16463_v8 = vpack.c.bf16 %v24399_v43, %v24398_v32  ;;  %v24400_v13 = vand.u32 4294901760, %v22205_v50  ;;  %10547 = vmatprep.mubr.f32.mxu0 %v22033_v15  ;;  %16462 = vmatpush3.bf16.msra.mxu0 %v16461_v45  ;;  %v24405_v43 = vand.u32 4294901760, %v24327_v41  ;;  %v24406_v32 = vand.u32 4294901760, %v21629_v11 }
 0xa74   :  { %v22307_v1 = vsub.f32 %v22228_v49, %v24402_v2  ;;  %16502 = vmatpush3.bf16.msra.mxu1 %v24325_v31  ;;  %v24407_v2 = vand.u32 4294901760, %v21634_v39  ;;  %v23518_v45 = vand.u32 4294901760, %v22299_v7  ;;  %v24408_v41 = vand.u32 4294901760, %v21639_v24  ;;  %v22335_v39 = vld [vmem:[#allocation4 + $0x1a8] sm:$0xff] }
 0xa75   :  { %v22294_v38 = vsub.f32 %v22205_v50, %v24400_v13  ;;  %v16465_v13 = vpack.c.bf16 %v24405_v43, %v24404_v25  ;;  %16464 = vmatprep.subr.bf16.mxu0 %v16463_v8  ;;  %16504 = vmatprep.subr.bf16.mxu1 %v24328_v46  ;;  %v11203_v31 = vsub.f32 %v22247_v27, %v23515_v17  ;;  %v24410_v8 = vld [vmem:[#allocation16_spill] sm:$0xff]  ;;  %v24416_v17 = vld [vmem:[#allocation61_spill] sm:$0xff] }
 0xa76   :  { %24403 = vst [vmem:[#allocation99_spill] sm:$0xff] %v22307_v1  ;;  %v16467_v44 = vpack.c.bf16 %v24407_v2, %v24406_v32  ;;  %v16469_v25 = vpack.c.bf16 %v24409_v47, %v24408_v41  ;;  %v11210_v11 = vsub.f32 %v22252_v33, %v23514_v0  ;;  %v22339_v43 = vrot.slane %v21972_v21, %v24410_v8  ;;  %v24469_v33 = vld [vmem:[#allocation92_spill] sm:$0xff] }
 0xa77   :  { %24401 = vst [vmem:[#allocation90_spill] sm:$0xff] %v22294_v38  ;;  %v23516_v15 = vand.u32 4294901760, %v22294_v38  ;;  %10550 = vmatmul.mubr.f32.gmra.mrb[54].mxu0 %v22036_v23  ;;  %v11091_v24 = vsub.f32 %v22259_v6, %v23513_v26  ;;  %v11098_v46 = vsub.f32 %v22264_v53, %v24411_v48  ;;  %v24412_v21 = vand.u32 4294901760, %v21671_v60 }
 0xa78   :  { %16466 = vmatpush3.bf16.msra.mxu0 %v16465_v13  ;;  %10835 = vmatprep.mubr.f32.mxu0 %v22009_v52  ;;  %v24413_v41 = vand.u32 4294901760, %v21676_v20  ;;  %v24414_v47 = vand.u32 4294901760, %v21687_v63  ;;  %v24415_v26 = vand.u32 4294901760, %v21692_v10  ;;  %v11217_v48 = vsub.f32 %v22284_v35, %v23517_v61  ;;  %v24417_v13 = vld [vmem:[#allocation91_spill] sm:$0xff]  ;;  %v24419_v52 = vld [vmem:[#allocation57_spill] sm:$0xff]  ;;  %v22389_v61 = vld [vmem:[#allocation4 + $0x1b0] sm:$0xff] }
 0xa79   :  { %16506 = vmatpush3.bf16.msra.mxu1 %v24416_v17  ;;  %16468 = vmatprep.subr.bf16.mxu0 %v16467_v44  ;;  %v24418_v2 = vand.u32 4294901760, %v24417_v13  ;;  %v24420_v32 = vand.u32 4294901760, %v24419_v52  ;;  %v11224_v20 = vsub.f32 %v22294_v38, %v23516_v15  ;;  %v22373_v63 = vsub.f32 %v22299_v7, %v23518_v45  ;;  %v22378_v17 = vld [vmem:[#allocation4 + $0x128] sm:$0xff]  ;;  %v24422_v44 = vld [vmem:[#allocation38_spill] sm:$0xff] }
 0xa7a   :  { %v16471_v23 = vpack.c.bf16 %v24413_v41, %v24412_v21  ;;  %v16473_v0 = vpack.c.bf16 %v24415_v26, %v24414_v47  ;;  %v22376_v26 = vld [vmem:[#allocation4 + $0x120] sm:$0xff]  ;;  %16508 = vmatprep.subr.bf16.mxu1 %v24422_v44  ;;  %v24423_v21 = vand.u32 4294901760, %v21763_v62  ;;  %v24425_v41 = vand.u32 4294901760, %v21809_v4  ;;  %v22401_v4 = vld [vmem:[#allocation4 + $0x1b8] sm:$0xff] }
 0xa7b   :  { %v16475_v60 = vpack.c.bf16 %v24420_v32, %v24418_v2  ;;  %24421 = vst [vmem:[#allocation13_spill] sm:$0xff] %v22373_v63  ;;  %v24424_v32 = vand.u32 4294901760, %v21766_v34  ;;  %v24426_v47 = vand.u32 4294901760, %v21813_v5  ;;  %v11204_v52 = vand.u32 4294901760, %v11203_v31 }
 0xa7c   :  { %v11211_v15 = vand.u32 4294901760, %v11210_v11  ;;  %v11092_v45 = vand.u32 4294901760, %v11091_v24  ;;  %v11099_v10 = vand.u32 4294901760, %v11098_v46  ;;  %v24427_v38 = vand.u32 4294901760, %v22307_v1  ;;  %16470 = vmatpush3.bf16.msra.mxu0 %v16469_v25 }
 0xa7d   :  { %v16477_v2 = vpack.c.bf16 %v24424_v32, %v24423_v21  ;;  %v16479_v13 = vpack.c.bf16 %v24426_v47, %v24425_v41  ;;  %v24428_v62 = vand.u32 4294901760, %v22315_v16  ;;  %v24430_v5 = vand.u32 4294901760, %v21828_v29  ;;  %v24432_v21 = vld [vmem:[#allocation73_spill] sm:$0xff]  ;;  %16472 = vmatprep.subr.bf16.mxu0 %v16471_v23 }
 0xa7e   :  { %v22394_v44 = vsub.f32 %v22307_v1, %v24427_v38  ;;  %v24431_v31 = vand.u32 4294901760, %v21837_v22  ;;  %v11218_v24 = vand.u32 4294901760, %v11217_v48  ;;  %16510 = vmatpush3.bf16.msra.mxu1 %v24432_v21  ;;  %v11225_v32 = vand.u32 4294901760, %v11224_v20  ;;  %v22419_v22 = vld [vmem:[#allocation4 + $0x130] sm:$0xff]  ;;  %v22421_v48 = vld [vmem:[#allocation4 + $0x138] sm:$0xff] }
 0xa7f   :  { %v22399_v34 = vsub.f32 %v22315_v16, %v24428_v62  ;;  %v24433_v47 = vand.u32 4294901760, %v22335_v39  ;;  %v24435_v62 = vld [vmem:[#allocation83_spill] sm:$0xff]  ;;  %v22428_v21 = vpack.c.bf16 %v11211_v15, %v11204_v52  ;;  %v24439_v41 = vand.u32 4294901760, %v21875_v54  ;;  %v22447_v52 = vld [vmem:[#allocation4 + $0x1c0] sm:$0xff]  ;;  %v22449_v54 = vld [vmem:[#allocation4 + $0x1c8] sm:$0xff] }
 0xa80   :  { %v22407_v11 = vpack.c.bf16 %v24431_v31, %v24430_v5  ;;  %16512 = vmatprep.subr.bf16.mxu1 %v24435_v62  ;;  %v24436_v5 = vand.u32 4294901760, %v21862_v9  ;;  %v24437_v31 = vld [vmem:[#allocation74_spill] sm:$0xff]  ;;  %v23525_v29 = vand.u32 4294901760, %v22401_v4  ;;  %v22437_v46 = vpack.c.bf16 %v11099_v10, %v11092_v45  ;;  %16474 = vmatpush3.bf16.msra.mxu0 %v16473_v0 }
 0xa81   :  { %24429 = vst [vmem:[#allocation14_spill] sm:$0xff] %v22399_v34  ;;  %v22416_v25 = vsub.f32 %v22335_v39, %v24433_v47  ;;  %v24438_v23 = vand.u32 4294901760, %v24437_v31  ;;  %v24440_v47 = vand.u32 4294901760, %v21881_v55  ;;  %v24441_v1 = vand.u32 4294901760, %v21902_v18  ;;  %v22465_v31 = vld [vmem:[#allocation4 + $0x148] sm:$0xff]  ;;  %16476 = vmatprep.subr.bf16.mxu0 %v16475_v60  ;;  %v24452_v10 = vld [vmem:[#allocation86_spill] sm:$0xff] }
 0xa82   :  { %v24442_v62 = vand.u32 4294901760, %v21904_v40  ;;  %v24443_v55 = vand.u32 4294901760, %v22376_v26  ;;  %v24445_v18 = vand.u32 4294901760, %v22378_v17  ;;  %24447 = vst [vmem:[#allocation23_spill] sm:$0xff] %v22465_v31  ;;  %v22468_v0 = vpack.c.bf16 %v11225_v32, %v11218_v24 }
 0xa83   :  { %24434 = vst [vmem:[#allocation17_spill] sm:$0xff] %v22416_v25  ;;  %v16483_v20 = vpack.c.bf16 %v24438_v23, %v24436_v5  ;;  %v22434_v38 = vpack.c.bf16 %v24440_v47, %v24439_v41  ;;  %v22463_v41 = vld [vmem:[#allocation4 + $0x140] sm:$0xff]  ;;  %v24449_v47 = vand.u32 4294901760, %v22373_v63  ;;  %v22484_v60 = vsub.f32 %v22401_v4, %v23525_v29 }
 0xa84   :  { %v22443_v9 = vpack.c.bf16 %v24442_v62, %v24441_v1  ;;  %v22454_v45 = vsub.f32 %v22376_v26, %v24443_v55  ;;  %v22459_v40 = vsub.f32 %v22378_v17, %v24445_v18  ;;  %v24448_v23 = vld [vmem:[#allocation84_spill] sm:$0xff]  ;;  %v24450_v18 = vand.u32 4294901760, %v22389_v61  ;;  %v24453_v1 = vld [vmem:[#allocation97_spill] sm:$0xff]  ;;  %16478 = vmatpush3.bf16.msra.mxu0 %v16477_v2 }
 0xa85   :  { %16514 = vmatpush3.bf16.msra.mxu1 %v24448_v23  ;;  %v11112_v62 = vsub.f32 %v22373_v63, %v24449_v47  ;;  %v9966_v15 = vmax.f32 %v24453_v1, 0.0  ;;  %24454 = vst [vmem:[#allocation27_spill] sm:$0xff] %v22484_v60  ;;  %v22488_v23 = vld [vmem:[#allocation4 + $0x1d0] sm:$0xff]  ;;  %v22490_v47 = vld [vmem:[#allocation4 + $0x1d8] sm:$0xff]  ;;  %v24456_v55 = vand.u32 4294901760, %v21916_v14  ;;  %v24457_v1 = vand.u32 4294901760, %v22399_v34  ;;  %16480 = vmatprep.subr.bf16.mxu0 %v16479_v13 }
 0xa86   :  { %24444 = vst [vmem:[#allocation20_spill] sm:$0xff] %v22454_v45  ;;  %24446 = vst [vmem:[#allocation21_spill] sm:$0xff] %v22459_v40  ;;  %v22477_v5 = vsub.f32 %v22389_v61, %v24450_v18  ;;  %16516 = vmatprep.subr.bf16.mxu1 %v24452_v10  ;;  %v24455_v18 = vand.u32 4294901760, %v21914_v12  ;;  %v24458_v53 = vand.u32 4294901760, %v22419_v22  ;;  %v24459_v14 = vand.u32 4294901760, %v22421_v48 }
 0xa87   :  { %v11231_v63 = vsub.f32 %v22399_v34, %v24457_v1  ;;  %v24461_v1 = vand.u32 4294901760, %v22416_v25  ;;  %v22523_v29 = vand.u32 4294901760, %v9966_v15  ;;  %v24463_v34 = vand.u32 4294901760, %v22447_v52 }
 0xa88   :  { %24451 = vst [vmem:[#allocation25_spill] sm:$0xff] %v22477_v5  ;;  %v22496_v10 = vpack.c.bf16 %v24456_v55, %v24455_v18  ;;  %v22508_v12 = vsub.f32 %v22419_v22, %v24458_v53  ;;  %v22513_v55 = vsub.f32 %v22421_v48, %v24459_v14  ;;  %v24460_v18 = vld [vmem:[#allocation93_spill] sm:$0xff]  ;;  %v24462_v53 = vld [vmem:[#allocation88_spill] sm:$0xff]  ;;  %v11113_v32 = vand.u32 4294901760, %v11112_v62  ;;  %16482 = vmatpush3.bf16.msra.mxu0 %v22407_v11 }
 0xa89   :  { %16518 = vmatpush3.bf16.msra.mxu1 %v24460_v18  ;;  %v11238_v2 = vsub.f32 %v22416_v25, %v24461_v1  ;;  %v22529_v13 = vsub.f32 %v22447_v52, %v24463_v34  ;;  %v24464_v18 = vand.u32 4294901760, %v22449_v54  ;;  %v11232_v35 = vand.u32 4294901760, %v11231_v63  ;;  %16484 = vmatprep.subr.bf16.mxu0 %v16483_v20 }
 0xa8a   :  { %16520 = vmatprep.subr.bf16.mxu1 %v24462_v53  ;;  %v24465_v24 = vand.u32 4294901760, %v22463_v41  ;;  %v24466_v25 = vand.u32 4294901760, %v22465_v31  ;;  %v24467_v34 = vand.u32 4294901760, %v22454_v45 }
 0xa8b   :  { %v22534_v1 = vsub.f32 %v22449_v54, %v24464_v18  ;;  %v24468_v18 = vand.u32 4294901760, %v22459_v40  ;;  %v11239_v27 = vand.u32 4294901760, %v11238_v2  ;;  %v22574_v2 = vsub.f32 %v9966_v15, %v22523_v29 }
 0xa8c   :  { %v22539_v53 = vsub.f32 %v22463_v41, %v24465_v24  ;;  %v22544_v14 = vsub.f32 %v22465_v31, %v24466_v25  ;;  %v11119_v6 = vsub.f32 %v22454_v45, %v24467_v34  ;;  %v24470_v25 = vand.u32 4294901760, %v22477_v5  ;;  %16486 = vmatpush3.bf16.msra.mxu0 %v22434_v38  ;;  %v24487_v38 = vld [vmem:[#allocation104_spill] sm:$0xff] }
 0xa8d   :  { %v11126_v63 = vsub.f32 %v22459_v40, %v24468_v18  ;;  %16522 = vmatpush3.bf16.msra.mxu1 %v24469_v33  ;;  %v24471_v31 = vand.u32 4294901760, %v22488_v23  ;;  %v24472_v45 = vand.u32 4294901760, %v22490_v47  ;;  %v24473_v33 = vand.u32 4294901760, %v22484_v60  ;;  %16488 = vmatprep.subr.bf16.mxu0 %v22443_v9 }
 0xa8e   :  { %v11245_v11 = vsub.f32 %v22477_v5, %v24470_v25  ;;  %16556 = vmatprep.subr.bf16.mxu1 %v22428_v21  ;;  %v24475_v5 = vand.u32 4294901760, %v22154_v51  ;;  %v23549_v21 = vand.u32 4294901760, %v22539_v53  ;;  %v11120_v15 = vand.u32 4294901760, %v11119_v6 }
 0xa8f   :  { %v22562_v34 = vsub.f32 %v22488_v23, %v24471_v31  ;;  %v22567_v18 = vsub.f32 %v22490_v47, %v24472_v45  ;;  %v11252_v20 = vsub.f32 %v22484_v60, %v24473_v33  ;;  %v24474_v31 = vand.u32 4294901760, %v22394_v44  ;;  %v24477_v60 = vld [vmem:[#allocation98_spill] sm:$0xff] }
 0xa90   :  { %v24476_v45 = vand.u32 4294901760, %v22156_v36  ;;  %10948 = vmatmul.mubr.f32.vlgmr.msra.gmra.mrb[58].mxu1 %v24477_v60  ;;  %v11127_v25 = vand.u32 4294901760, %v11126_v63  ;;  %v24478_v24 = vand.u32 4294901760, %v22508_v12  ;;  %v24479_v51 = vand.u32 4294901760, %v22513_v55  ;;  %16490 = vmatpush3.bf16.msra.mxu0 %v22496_v10 }
 0xa91   :  { %v16561_v62 = vpack.c.bf16 %v11113_v32, %v24474_v31  ;;  %16558 = vmatpush3.bf16.msra.mxu1 %v22437_v46  ;;  %v16563_v32 = vpack.c.bf16 %v11239_v27, %v11232_v35  ;;  %v11246_v31 = vand.u32 4294901760, %v11245_v11  ;;  %v11253_v6 = vand.u32 4294901760, %v11252_v20 }
 0xa92   :  { %v22584_v40 = vpack.c.bf16 %v24476_v45, %v24475_v5  ;;  %v11133_v44 = vsub.f32 %v22508_v12, %v24478_v24  ;;  %v11140_v36 = vsub.f32 %v22513_v55, %v24479_v51  ;;  %v24480_v5 = vld [vmem:[#allocation103_spill] sm:$0xff]  ;;  %v23550_v45 = vand.u32 4294901760, %v22562_v34  ;;  %16560 = vmatprep.subr.bf16.mxu1 %v22468_v0 }
 0xa93   :  { %10953 = vmatprep.mubr.f32.mxu1 %v24480_v5  ;;  %v24481_v24 = vand.u32 4294901760, %v22529_v13  ;;  %v24482_v33 = vand.u32 4294901760, %v22534_v1  ;;  %v24483_v35 = vand.u32 4294901760, %v22158_v59  ;;  %v24484_v46 = vand.u32 4294901760, %v22176_v3  ;;  %10837 = vmatmul.mubr.f32.vlgmr.msra.gmra.mrb[56].mxu0 %v24477_v60  ;;  %v24498_v60 = vld [vmem:[#allocation77_spill] sm:$0xff] }
 0xa94   :  { %v11147_v9 = vsub.f32 %v22539_v53, %v23549_v21  ;;  %v24485_v0 = vand.u32 4294901760, %v22544_v14  ;;  %10955 = vmatmul.mubr.f32.gmra.mrb[60].mxu1 %v24487_v38  ;;  %v16565_v59 = vpack.c.bf16 %v11127_v25, %v11120_v15  ;;  %v24488_v3 = vand.u32 4294901760, %v22183_v30  ;;  %v24491_v25 = vld [vmem:[#allocation55_spill] sm:$0xff]  ;;  %16524 = vmatprep.subr.bf16.mxu0 %v22584_v40 }
 0xa95   :  { %v11259_v51 = vsub.f32 %v22529_v13, %v24481_v24  ;;  %v11266_v27 = vsub.f32 %v22534_v1, %v24482_v33  ;;  %v22613_v11 = vpack.c.bf16 %v24484_v46, %v24483_v35  ;;  %v24486_v24 = vld [vmem:[#allocation94_spill] sm:$0xff]  ;;  %v24489_v33 = vand.u32 4294901760, %v22205_v50  ;;  %16562 = vmatpush3.bf16.msra.mxu1 %v16561_v62  ;;  %11312 = vmatprep.mubr.f32.mxu1 %v22523_v29  ;;  %v24492_v15 = vld [vmem:[#allocation95_spill] sm:$0xff] }
 0xa96   :  { %v11154_v20 = vsub.f32 %v22544_v14, %v24485_v0  ;;  %v22623_v63 = vrot.slane %v24486_v24, %v24410_v8  ;;  %v11134_v46 = vand.u32 4294901760, %v11133_v44  ;;  %v11141_v21 = vand.u32 4294901760, %v11140_v36  ;;  %16564 = vmatprep.subr.bf16.mxu1 %v16563_v32  ;;  %10842 = vmatprep.mubr.f32.mxu0 %v24480_v5  ;;  %v24503_v5 = vld [vmem:[#allocation96_spill] sm:$0xff] }
 0xa97   :  { %v22631_v35 = vpack.c.bf16 %v24489_v33, %v24488_v3  ;;  %v11273_v8 = vsub.f32 %v22562_v34, %v23550_v45  ;;  %v24490_v0 = vand.u32 4294901760, %v22567_v18  ;;  %v9899_v30 = vmul.f32 %v24492_v15, %v24491_v25  ;;  %16526 = vmatpush3.bf16.msra.mxu0 %v22613_v11  ;;  %v24557_v45 = vld [vmem:[#allocation17_spill] sm:$0xff] }
 0xa98   :  { %v16567_v50 = vpack.c.bf16 %v11253_v6, %v11246_v31  ;;  %v24493_v44 = vand.u32 4294901760, %v22574_v2  ;;  %v11260_v36 = vand.u32 4294901760, %v11259_v51  ;;  %v11267_v24 = vand.u32 4294901760, %v11266_v27  ;;  %10844 = vmatmul.mubr.f32.gmra.mrb[58].mxu0 %v24487_v38 }
 0xa99   :  { %v11280_v10 = vsub.f32 %v22567_v18, %v24490_v0  ;;  %v24494_v3 = vand.u32 4294901760, %v22228_v49  ;;  %v24495_v33 = vand.u32 4294901760, %v22299_v7  ;;  %v24496_v25 = vand.u32 4294901760, %v22315_v16  ;;  %v24500_v7 = vld [vmem:[#allocation105_spill] sm:$0xff]  ;;  %16566 = vmatpush3.bf16.msra.mxu1 %v16565_v59  ;;  %16528 = vmatprep.subr.bf16.mxu0 %v22631_v35 }
 0xa9a   :  { %v11059_v62 = vsub.f32 %v22574_v2, %v24493_v44  ;;  %v24497_v15 = vand.u32 4294901760, %v22335_v39  ;;  %v11148_v31 = vand.u32 4294901760, %v11147_v9  ;;  %v11155_v6 = vand.u32 4294901760, %v11154_v20  ;;  %v24502_v20 = vld [vmem:[#allocation56_spill] sm:$0xff]  ;;  %16568 = vmatprep.subr.bf16.mxu1 %v16567_v50 }
 0xa9b   :  { %v22651_v0 = vpack.c.bf16 %v24495_v33, %v24494_v3  ;;  %v16569_v51 = vpack.c.bf16 %v11141_v21, %v11134_v46  ;;  %v24499_v27 = vand.u32 4294901760, %v24498_v60  ;;  %v24501_v44 = vand.u32 4294901760, %v24500_v7 }
 0xa9c   :  { %v22657_v32 = vpack.c.bf16 %v24497_v15, %v24496_v25  ;;  %v11274_v16 = vand.u32 4294901760, %v11273_v8  ;;  %v11281_v39 = vand.u32 4294901760, %v11280_v10  ;;  %v9928_v9 = vmul.f32 %v22339_v43, %v9899_v30 }
 0xa9d   :  { %v11161_v49 = vsub.f32 %v24498_v60, %v24499_v27  ;;  %v11168_v3 = vsub.f32 %v24500_v7, %v24501_v44  ;;  %v9903_v33 = vmul.f32 %v24503_v5, %v24502_v20  ;;  %v11060_v21 = vand.u32 4294901760, %v11059_v62  ;;  %16530 = vmatpush3.bf16.msra.mxu0 %v22651_v0  ;;  %16570 = vmatpush3.bf16.msra.mxu1 %v16569_v51 }
 0xa9e   :  { %v16571_v46 = vpack.c.bf16 %v11267_v24, %v11260_v36  ;;  %v24504_v25 = vand.u32 4294901760, %v22117_v28  ;;  %v24505_v27 = vand.u32 4294901760, %v22122_v37  ;;  %v24506_v8 = vand.u32 4294901760, %v22376_v26  ;;  %16532 = vmatprep.subr.bf16.mxu0 %v22657_v32 }
 0xa9f   :  { %v24507_v10 = vand.u32 4294901760, %v22378_v17  ;;  %v16573_v44 = vpack.c.bf16 %v11155_v6, %v11148_v31  ;;  %v24508_v50 = vand.u32 4294901760, %v22389_v61  ;;  %v24509_v62 = vand.u32 4294901760, %v22401_v4  ;;  %11061 = vmatprep.mubr.f32.mxu0 %v11060_v21 }
 0xaa0   :  { %v11287_v15 = vsub.f32 %v22117_v28, %v24504_v25  ;;  %v11294_v59 = vsub.f32 %v22122_v37, %v24505_v27  ;;  %v11162_v24 = vand.u32 4294901760, %v11161_v49  ;;  %v11169_v20 = vand.u32 4294901760, %v11168_v3  ;;  %16572 = vmatprep.subr.bf16.mxu1 %v16571_v46  ;;  %v24513_v25 = vld [vmem:[#allocation110_spill] sm:$0xff] }
 0xaa1   :  { %v22682_v30 = vpack.c.bf16 %v24507_v10, %v24506_v8  ;;  %v22688_v36 = vpack.c.bf16 %v24509_v62, %v24508_v50  ;;  %v24510_v38 = vand.u32 4294901760, %v22135_v19  ;;  %v24511_v17 = vand.u32 4294901760, %v22144_v56  ;;  %16574 = vmatpush3.bf16.msra.mxu1 %v16573_v44 }
 0xaa2   :  { %v16575_v61 = vpack.c.bf16 %v11281_v39, %v11274_v16  ;;  %v9957_v4 = vadd.f32 %v22623_v63, %v9928_v9  ;;  %v9932_v31 = vmul.f32 %v22339_v43, %v9903_v33  ;;  %v11288_v6 = vand.u32 4294901760, %v11287_v15 }
 0xaa3   :  { %v11175_v26 = vsub.f32 %v22135_v19, %v24510_v38  ;;  %v11182_v5 = vsub.f32 %v22144_v56, %v24511_v17  ;;  %v11295_v49 = vand.u32 4294901760, %v11294_v59  ;;  %v24512_v3 = vand.u32 4294901760, %v22165_v42  ;;  %16534 = vmatpush3.bf16.msra.mxu0 %v22682_v30  ;;  %v24521_v38 = vld [vmem:[#allocation102_spill] sm:$0xff]  ;;  %v24523_v17 = vld [vmem:[#allocation23_spill] sm:$0xff] }
 0xaa4   :  { %v24514_v27 = vand.u32 4294901760, %v24513_v25  ;;  %v24515_v51 = vand.u32 4294901760, %v22419_v22  ;;  %v24516_v10 = vand.u32 4294901760, %v22421_v48  ;;  %v16577_v43 = vpack.c.bf16 %v11169_v20, %v11162_v24  ;;  %16536 = vmatprep.subr.bf16.mxu0 %v22688_v36  ;;  %16576 = vmatprep.subr.bf16.mxu1 %v16575_v61 }
 0xaa5   :  { %v11301_v21 = vsub.f32 %v22165_v42, %v24512_v3  ;;  %v24517_v39 = vand.u32 4294901760, %v22447_v52  ;;  %v24518_v9 = vand.u32 4294901760, %v22449_v54  ;;  %v11176_v46 = vand.u32 4294901760, %v11175_v26 }
 0xaa6   :  { %v11308_v8 = vsub.f32 %v24513_v25, %v24514_v27  ;;  %v22710_v16 = vpack.c.bf16 %v24516_v10, %v24515_v51  ;;  %v11183_v15 = vand.u32 4294901760, %v11182_v5  ;;  %v24519_v22 = vand.u32 4294901760, %v22189_v57  ;;  %16578 = vmatpush3.bf16.msra.mxu1 %v16577_v43  ;;  %v24529_v10 = vld [vmem:[#allocation79_spill] sm:$0xff] }
 0xaa7   :  { %v22717_v33 = vpack.c.bf16 %v24518_v9, %v24517_v39  ;;  %v24520_v59 = vand.u32 4294901760, %v22194_v58  ;;  %v9965_v62 = vmax.f32 %v9957_v4, 0.0  ;;  %v9961_v52 = vadd.f32 %v22623_v63, %v9932_v31  ;;  %v24531_v9 = vld [vmem:[#allocation81_spill] sm:$0xff] }
 0xaa8   :  { %v11189_v48 = vsub.f32 %v22189_v57, %v24519_v22  ;;  %v16579_v54 = vpack.c.bf16 %v11295_v49, %v11288_v6  ;;  %v11302_v24 = vand.u32 4294901760, %v11301_v21  ;;  %v11309_v20 = vand.u32 4294901760, %v11308_v8  ;;  %16538 = vmatpush3.bf16.msra.mxu0 %v22710_v16  ;;  %v24527_v8 = vld [vmem:[#allocation80_spill] sm:$0xff] }
 0xaa9   :  { %v11196_v50 = vsub.f32 %v22194_v58, %v24520_v59  ;;  %v9970_v26 = vmax.f32 %v24521_v38, 0.0  ;;  %v24522_v44 = vand.u32 4294901760, %v22463_v41  ;;  %v24524_v5 = vand.u32 4294901760, %v24523_v17  ;;  %16540 = vmatprep.subr.bf16.mxu0 %v22717_v33 }
 0xaaa   :  { %v16581_v27 = vpack.c.bf16 %v11183_v15, %v11176_v46  ;;  %v24525_v51 = vand.u32 4294901760, %v22488_v23  ;;  %v24526_v4 = vand.u32 4294901760, %v22490_v47  ;;  %v11190_v61 = vand.u32 4294901760, %v11189_v48  ;;  %16580 = vmatprep.subr.bf16.mxu1 %v16579_v54  ;;  %v24533_v15 = vld [vmem:[#allocation82_spill] sm:$0xff]  ;;  %v24535_v54 = vld [vmem:[#allocation75_spill] sm:$0xff] }
 0xaab   :  { %v22733_v3 = vpack.c.bf16 %v24524_v5, %v24522_v44  ;;  %v11197_v31 = vand.u32 4294901760, %v11196_v50  ;;  %v22742_v6 = vand.u32 4294901760, %v9965_v62  ;;  %v9969_v49 = vmax.f32 %v9961_v52, 0.0 }
 0xaac   :  { %v22739_v63 = vpack.c.bf16 %v24526_v4, %v24525_v51  ;;  %v16583_v41 = vpack.c.bf16 %v11309_v20, %v11302_v24  ;;  %v22744_v21 = vand.u32 4294901760, %v9970_v26  ;;  %v24528_v23 = vand.u32 4294901760, %v24527_v8  ;;  %16582 = vmatpush3.bf16.msra.mxu1 %v16581_v27  ;;  %v24537_v20 = vld [vmem:[#allocation76_spill] sm:$0xff]  ;;  %v24541_v27 = vld [vmem:[#allocation87_spill] sm:$0xff]  ;;  %v24545_v8 = vld [vmem:[#allocation78_spill] sm:$0xff] }
 0xaad   :  { %16542 = vmatpush3.bf16.msra.mxu0 %v22733_v3  ;;  %v24530_v47 = vand.u32 4294901760, %v24529_v10  ;;  %v16585_v43 = vpack.c.bf16 %v11197_v31, %v11190_v61  ;;  %v24532_v46 = vand.u32 4294901760, %v24531_v9  ;;  %v24534_v22 = vand.u32 4294901760, %v24533_v15  ;;  %v24543_v31 = vld [vmem:[#allocation89_spill] sm:$0xff]  ;;  %v24548_v9 = vld [vmem:[#allocation115_spill] sm:$0xff] }
 0xaae   :  { %16544 = vmatprep.subr.bf16.mxu0 %v22739_v63  ;;  %v22761_v59 = vsub.f32 %v9965_v62, %v22742_v6  ;;  %v22763_v50 = vand.u32 4294901760, %v9969_v49  ;;  %16584 = vmatprep.subr.bf16.mxu1 %v16583_v41  ;;  %v22766_v52 = vsub.f32 %v9970_v26, %v22744_v21  ;;  %v24536_v24 = vand.u32 4294901760, %v24535_v54  ;;  %v24539_v26 = vld [vmem:[#allocation85_spill] sm:$0xff] }
 0xaaf   :  { %v22751_v39 = vpack.c.bf16 %v24530_v47, %v24528_v23  ;;  %v22758_v48 = vpack.c.bf16 %v24534_v22, %v24532_v46  ;;  %v24538_v38 = vand.u32 4294901760, %v24537_v20  ;;  %v24540_v5 = vand.u32 4294901760, %v24539_v26  ;;  %v24549_v22 = vld [vmem:[#allocation116_spill] sm:$0xff]  ;;  %v24550_v54 = vld [vmem:[#allocation117_spill] sm:$0xff] }
 0xab0   :  { %16586 = vmatpush3.bf16.msra.mxu1 %v16585_v43  ;;  %v11064_v62 = vand.u32 4294901760, %v22761_v59  ;;  %v22778_v17 = vsub.f32 %v9969_v49, %v22763_v50  ;;  %v24542_v51 = vand.u32 4294901760, %v24541_v27  ;;  %v23552_v61 = vand.u32 4294901760, %v22766_v52  ;;  %v24547_v43 = vld [vmem:[#allocation114_spill] sm:$0xff] }
 0xab1   :  { %16546 = vmatpush3.bf16.msra.mxu0 %v22751_v39  ;;  %v22773_v44 = vpack.c.bf16 %v24538_v38, %v24536_v24  ;;  %16620 = vmatprep.subr.bf16.mxu1 %v22584_v40  ;;  %v24544_v41 = vand.u32 4294901760, %v24543_v31  ;;  %v24546_v23 = vand.u32 4294901760, %v24545_v8  ;;  %v16587_v46 = vpack.c.bf16 %v24548_v9, %v24547_v43  ;;  %v24553_v27 = vld [vmem:[#allocation90_spill] sm:$0xff]  ;;  %v24555_v8 = vld [vmem:[#allocation13_spill] sm:$0xff] }
 0xab2   :  { %16548 = vmatprep.subr.bf16.mxu0 %v22758_v48  ;;  %v22785_v4 = vpack.c.bf16 %v24542_v51, %v24540_v5  ;;  %v11065_v10 = vsub.f32 %v22761_v59, %v11064_v62  ;;  %v23551_v47 = vand.u32 4294901760, %v22778_v17  ;;  %v11074_v15 = vsub.f32 %v22766_v52, %v23552_v61  ;;  %v24552_v5 = vld [vmem:[#allocation33_spill] sm:$0xff] }
 0xab3   :  { %11314 = vmatmul.mubr.f32.vlgmr.msra.gmra.mrb[62].mxu1 %v22742_v6  ;;  %v22794_v49 = vpack.c.bf16 %v24546_v23, %v24544_v41  ;;  %v16589_v24 = vpack.c.bf16 %v24550_v54, %v24549_v22  ;;  %v24551_v20 = vand.u32 4294901760, %v22574_v2  ;;  %v16591_v51 = vpack.c.bf16 %v24553_v27, %v24552_v5  ;;  %v24554_v41 = vld [vmem:[#allocation99_spill] sm:$0xff] }
 0xab4   :  { %11319 = vmatprep.mubr.f32.mxu1 %v22744_v21  ;;  %16622 = vmatpush3.bf16.msra.mxu1 %v22613_v11  ;;  %v11066_v38 = vand.u32 4294901760, %v11065_v10  ;;  %v11080_v26 = vsub.f32 %v22778_v17, %v23551_v47  ;;  %v11075_v31 = vand.u32 4294901760, %v11074_v15  ;;  %v16593_v23 = vpack.c.bf16 %v24555_v8, %v24554_v41  ;;  %v24559_v15 = vld [vmem:[#allocation21_spill] sm:$0xff] }
 0xab5   :  { %16550 = vmatpush3.bf16.msra.mxu0 %v22773_v44  ;;  %16624 = vmatprep.subr.bf16.mxu1 %v22631_v35 }
 0xab6   :  { %16552 = vmatprep.subr.bf16.mxu0 %v22785_v4  ;;  %v11081_v10 = vand.u32 4294901760, %v11080_v26  ;;  %v16601_v26 = vpack.c.bf16 %v22513_v55, %v22508_v12 }
 0xab7   :  { %11321 = vmatmul.mubr.f32.gmra.mrb[64].mxu1 %v22763_v50 }
 0xab8   :  { %16626 = vmatpush3.bf16.msra.mxu1 %v22651_v0  ;;  %11572 = vmatprep.mubr.f32.mxu1 %v24551_v20  ;;  %v24556_v20 = vld [vmem:[#allocation14_spill] sm:$0xff] }
 0xab9   :  { %16554 = vmatpush3.bf16.msra.mxu0 %v22794_v49  ;;  %16628 = vmatprep.subr.bf16.mxu1 %v22657_v32  ;;  %v16595_v47 = vpack.c.bf16 %v24557_v45, %v24556_v20 }
 0xaba   :  { %16588 = vmatprep.subr.bf16.mxu0 %v16587_v46  ;;  %v24558_v46 = vld [vmem:[#allocation20_spill] sm:$0xff] }
 0xabc   :  { %11067 = vmatmul.mubr.f32.vlgmr.msra.gmra.mrb[60].mxu0 %v11066_v38  ;;  %16630 = vmatpush3.bf16.msra.mxu1 %v22682_v30  ;;  %v16597_v38 = vpack.c.bf16 %v24559_v15, %v24558_v46 }
 0xabd   :  { %11076 = vmatprep.mubr.f32.mxu0 %v11075_v31  ;;  %16590 = vmatpush3.bf16.msra.mxu0 %v16589_v24  ;;  %v24560_v24 = vld [vmem:[#allocation25_spill] sm:$0xff]  ;;  %v24561_v31 = vld [vmem:[#allocation27_spill] sm:$0xff] }
 0xabe   :  { %16592 = vmatprep.subr.bf16.mxu0 %v16591_v51  ;;  %16632 = vmatprep.subr.bf16.mxu1 %v22688_v36  ;;  %v16599_v61 = vpack.c.bf16 %v24561_v31, %v24560_v24  ;;  %v16607_v51 = vpack.c.bf16 %v22567_v18, %v22562_v34 }
 0xac0   :  { %11082 = vmatmul.mubr.f32.gmra.mrb[62].mxu0 %v11081_v10  ;;  %16634 = vmatpush3.bf16.msra.mxu1 %v22710_v16  ;;  %v16613_v10 = vpack.c.bf16 %v22144_v56, %v22135_v19  ;;  %v24563_v19 = vand.u32 4294901760, %v24547_v43  ;;  %v24564_v56 = vand.u32 4294901760, %v24548_v9  ;;  %v24571_v43 = vand.u32 4294901760, %v24555_v8 }
 0xac1   :  { %16594 = vmatpush3.bf16.msra.mxu0 %v16593_v23  ;;  %11456 = vmatprep.mubr.f32.mxu0 %v22574_v2  ;;  %v16603_v2 = vpack.c.bf16 %v22534_v1, %v22529_v13  ;;  %v16611_v23 = vpack.c.bf16 %v22122_v37, %v22117_v28  ;;  %v16617_v37 = vpack.c.bf16 %v22194_v58, %v22189_v57  ;;  %v24562_v28 = vand.u32 4294901760, %v22766_v52 }
 0xac2   :  { %16596 = vmatprep.subr.bf16.mxu0 %v16595_v47  ;;  %16636 = vmatprep.subr.bf16.mxu1 %v22717_v33  ;;  %v16605_v47 = vpack.c.bf16 %v22544_v14, %v22539_v53  ;;  %v24567_v58 = vand.u32 4294901760, %v24550_v54  ;;  %v24572_v9 = vand.u32 4294901760, %v24556_v20  ;;  %v24582_v8 = vand.u32 4294901760, %v22539_v53  ;;  %v24589_v53 = vld [vmem:[#allocation113_spill] sm:$0xff] }
 0xac4   :  { %16638 = vmatpush3.bf16.msra.mxu1 %v22733_v3 }
 0xac5   :  { %16598 = vmatpush3.bf16.msra.mxu0 %v16597_v38  ;;  %16640 = vmatprep.subr.bf16.mxu1 %v22739_v63 }
 0xac6   :  { %16600 = vmatprep.subr.bf16.mxu0 %v16599_v61  ;;  %v16609_v61 = vpack.c.bf16 %v24500_v7, %v24498_v60  ;;  %v16615_v60 = vpack.c.bf16 %v24513_v25, %v22165_v42  ;;  %v16651_v42 = vpack.c.bf16 %v24564_v56, %v24563_v19  ;;  %v24566_v7 = vand.u32 4294901760, %v24549_v22 }
 0xac7   :  { %v24573_v22 = vand.u32 4294901760, %v24557_v45  ;;  %v24577_v45 = vand.u32 4294901760, %v24561_v31 }
 0xac8   :  { %16642 = vmatpush3.bf16.msra.mxu1 %v22751_v39  ;;  %v16653_v57 = vpack.c.bf16 %v24567_v58, %v24566_v7 }
 0xac9   :  { %16602 = vmatpush3.bf16.msra.mxu0 %v16601_v26  ;;  %16644 = vmatprep.subr.bf16.mxu1 %v22758_v48  ;;  %v16659_v54 = vpack.c.bf16 %v24573_v22, %v24572_v9 }
 0xaca   :  { %16604 = vmatprep.subr.bf16.mxu0 %v16603_v2 }
 0xacc   :  { %16646 = vmatpush3.bf16.msra.mxu1 %v22773_v44 }
 0xacd   :  { %16606 = vmatpush3.bf16.msra.mxu0 %v16605_v47  ;;  %16648 = vmatprep.subr.bf16.mxu1 %v22785_v4 }
 0xace   :  { %16608 = vmatprep.subr.bf16.mxu0 %v16607_v51 }
 0xad0   :  { %16650 = vmatpush3.bf16.msra.mxu1 %v22794_v49 }
 0xad1   :  { %16610 = vmatpush3.bf16.msra.mxu0 %v16609_v61  ;;  %16684 = vmatprep.subr.bf16.mxu1 %v22584_v40  ;;  %v24565_v40 = vand.u32 4294901760, %v22778_v17 }
 0xad2   :  { %16612 = vmatprep.subr.bf16.mxu0 %v16611_v23 }
 0xad3   :  { %11576 = vmatmul.mubr.f32.vlgmr.msra.gmra.mrb[66].mxu1 %v11064_v62  ;;  %v24570_v62 = vand.u32 4294901760, %v24554_v41 }
 0xad4   :  { %11583 = vmatprep.mubr.f32.mxu1 %v24562_v28  ;;  %16686 = vmatpush3.bf16.msra.mxu1 %v22613_v11  ;;  %v24568_v11 = vand.u32 4294901760, %v24552_v5 }
 0xad5   :  { %16614 = vmatpush3.bf16.msra.mxu0 %v16613_v10  ;;  %16688 = vmatprep.subr.bf16.mxu1 %v22631_v35  ;;  %v24569_v35 = vand.u32 4294901760, %v24553_v27  ;;  %v24580_v27 = vand.u32 4294901760, %v22529_v13  ;;  %v24586_v13 = vld [vmem:[#allocation109_spill] sm:$0xff] }
 0xad6   :  { %16616 = vmatprep.subr.bf16.mxu0 %v16615_v60 }
 0xad7   :  { %11587 = vmatmul.mubr.f32.gmra.mrb[68].mxu1 %v24565_v40  ;;  %v16655_v25 = vpack.c.bf16 %v24569_v35, %v24568_v11 }
 0xad8   :  { %16690 = vmatpush3.bf16.msra.mxu1 %v22651_v0  ;;  %11864 = vmatprep.mubr.f32.mxu1 %v22523_v29  ;;  %v16657_v0 = vpack.c.bf16 %v24571_v43, %v24570_v62 }
 0xad9   :  { %16618 = vmatpush3.bf16.msra.mxu0 %v16617_v37  ;;  %16692 = vmatprep.subr.bf16.mxu1 %v22657_v32  ;;  %v24574_v32 = vand.u32 4294901760, %v24558_v46  ;;  %v11902_v46 = vld [vmem:[%s22959_s8 + $0x15] ss:$0 sm:$0xff] }
 0xada   :  { %16652 = vmatprep.subr.bf16.mxu0 %v16651_v42 }
 0xadc   :  { %11459 = vmatmul.mubr.f32.vlgmr.msra.gmra.mrb[64].mxu0 %v22761_v59  ;;  %16694 = vmatpush3.bf16.msra.mxu1 %v22682_v30  ;;  %v24575_v59 = vand.u32 4294901760, %v24559_v15  ;;  %v24576_v30 = vand.u32 4294901760, %v24560_v24 }
 0xadd   :  { %11465 = vmatprep.mubr.f32.mxu0 %v22766_v52  ;;  %16654 = vmatpush3.bf16.msra.mxu0 %v16653_v57 }
 0xade   :  { %16656 = vmatprep.subr.bf16.mxu0 %v16655_v25  ;;  %16696 = vmatprep.subr.bf16.mxu1 %v22688_v36  ;;  %v16661_v52 = vpack.c.bf16 %v24575_v59, %v24574_v32  ;;  %v16663_v5 = vpack.c.bf16 %v24577_v45, %v24576_v30  ;;  %v24578_v36 = vand.u32 4294901760, %v22508_v12  ;;  %v24584_v12 = vand.u32 4294901760, %v22562_v34  ;;  %v24590_v34 = vld [vmem:[#allocation11_spill] sm:$0xff] }
 0xae0   :  { %11468 = vmatmul.mubr.f32.gmra.mrb[66].mxu0 %v22778_v17  ;;  %16698 = vmatpush3.bf16.msra.mxu1 %v22710_v16  ;;  %v24581_v16 = vand.u32 4294901760, %v22534_v1  ;;  %v24588_v1 = vld [vmem:[#allocation112_spill] sm:$0xff] }
 0xae1   :  { %16658 = vmatpush3.bf16.msra.mxu0 %v16657_v0  ;;  %11753 = vmatprep.mubr.f32.mxu0 %v22523_v29  ;;  %v24579_v29 = vand.u32 4294901760, %v22513_v55  ;;  %v24585_v55 = vand.u32 4294901760, %v22567_v18 }
 0xae2   :  { %16660 = vmatprep.subr.bf16.mxu0 %v16659_v54  ;;  %16700 = vmatprep.subr.bf16.mxu1 %v22717_v33  ;;  %v16667_v41 = vpack.c.bf16 %v24581_v16, %v24580_v27  ;;  %v24583_v33 = vand.u32 4294901760, %v22544_v14  ;;  %v24587_v14 = vld [vmem:[#allocation111_spill] sm:$0xff] }
 0xae3   :  { %v16665_v17 = vpack.c.bf16 %v24579_v29, %v24578_v36 }
 0xae4   :  { %16702 = vmatpush3.bf16.msra.mxu1 %v22733_v3  ;;  %v16669_v20 = vpack.c.bf16 %v24583_v33, %v24582_v8  ;;  %v16671_v3 = vpack.c.bf16 %v24585_v55, %v24584_v12 }
 0xae5   :  { %16662 = vmatpush3.bf16.msra.mxu0 %v16661_v52  ;;  %16704 = vmatprep.subr.bf16.mxu1 %v22739_v63 }
 0xae6   :  { %16664 = vmatprep.subr.bf16.mxu0 %v16663_v5 }
 0xae8   :  { %16706 = vmatpush3.bf16.msra.mxu1 %v22751_v39 }
 0xae9   :  { %16666 = vmatpush3.bf16.msra.mxu0 %v16665_v17  ;;  %16708 = vmatprep.subr.bf16.mxu1 %v22758_v48 }
 0xaea   :  { %16668 = vmatprep.subr.bf16.mxu0 %v16667_v41 }
 0xaec   :  { %16710 = vmatpush3.bf16.msra.mxu1 %v22773_v44 }
 0xaed   :  { %16670 = vmatpush3.bf16.msra.mxu0 %v16669_v20  ;;  %16712 = vmatprep.subr.bf16.mxu1 %v22785_v4 }
 0xaee   :  { %16672 = vmatprep.subr.bf16.mxu0 %v16671_v3 }
 0xaf0   :  { %16714 = vmatpush3.bf16.msra.mxu1 %v22794_v49 }
 0xaf1   :  { %16674 = vmatpush3.bf16.msra.mxu0 %v24586_v13 }
 0xaf2   :  { %16676 = vmatprep.subr.bf16.mxu0 %v24587_v14 }
 0xaf3   :  { %11866 = vmatmul.mubr.f32.vlgmr.msra.gmra.mrb[70].mxu1 %v22742_v6 }
 0xaf4   :  { %11871 = vmatprep.mubr.f32.mxu1 %v22744_v21 }
 0xaf5   :  { %16678 = vmatpush3.bf16.msra.mxu0 %v24588_v1 }
 0xaf6   :  { %16680 = vmatprep.subr.bf16.mxu0 %v24589_v53 }
 0xaf7   :  { %11873 = vmatmul.mubr.f32.gmra.mrb[72].mxu1 %v22763_v50 }
 0xaf9   :  { %16682 = vmatpush3.bf16.msra.mxu0 %v24590_v34 }
 0xafc   :  { %11755 = vmatmul.mubr.f32.vlgmr.msra.gmra.mrb[68].mxu0 %v22742_v6 }
 0xafd   :  { %11760 = vmatprep.mubr.f32.mxu0 %v22744_v21 }
 0xb00   :  { %11762 = vmatmul.mubr.f32.gmra.mrb[70].mxu0 %v22763_v50 }
 0xb1c   :  { %v13659_v18 = vpop.f32.mrb[50].mxu1 }
 0xb1d   :  { %v13660_v63 = vpop.f32.mrb[51].mxu1 }
 0xb1e   :  { %v13661_v39 = vadd.f32 %v13660_v63, %v13659_v18 }
 0xb20   :  { %v13662_v48 = vpop.f32.mrb[52].mxu1 }
 0xb21   :  { %v13663_v44 = vpop.f32.mrb[53].mxu1 }
 0xb22   :  { %v13664_v4 = vadd.f32 %v13663_v44, %v13662_v48 }
 0xb24   :  { %v13621_v49 = vpop.f32.mrb[48].mxu0 }
 0xb25   :  { %v13622_v15 = vpop.f32.mrb[49].mxu0 }
 0xb26   :  { %v13623_v38 = vadd.f32 %v13622_v15, %v13621_v49 }
 0xb28   :  { %v10151_v24 = vadd.f32 %v13623_v38, %v11902_v46  ;;  %v13624_v31 = vpop.f32.mrb[50].mxu0 }
 0xb29   :  { %v13625_v6 = vpop.f32.mrb[51].mxu0 }
 0xb2a   :  { %v13626_v26 = vadd.f32 %v13625_v6, %v13624_v31  ;;  %v10398_v21 = vadd.f32 %v13661_v39, %v10151_v24 }
 0xb2c   :  { %v10166_v2 = vadd.f32 %v13626_v26, %v11902_v46 }
 0xb2e   :  { %v10405_v50 = vadd.f32 %v13664_v4, %v10166_v2 }
 0xb3c   :  { %v13735_v47 = vpop.f32.mrb[54].mxu1 }
 0xb3d   :  { %v13736_v51 = vpop.f32.mrb[55].mxu1 }
 0xb3e   :  { %v13737_v61 = vadd.f32 %v13736_v51, %v13735_v47 }
 0xb40   :  { %v13738_v23 = vpop.f32.mrb[56].mxu1 }
 0xb41   :  { %v13739_v10 = vpop.f32.mrb[57].mxu1 }
 0xb42   :  { %v13740_v60 = vadd.f32 %v13739_v10, %v13738_v23 }
 0xb45   :  { %v13697_v37 = vpop.f32.mrb[52].mxu0 }
 0xb46   :  { %v13698_v28 = vpop.f32.mrb[53].mxu0 }
 0xb47   :  { %v13699_v19 = vadd.f32 %v13698_v28, %v13697_v37 }
 0xb49   :  { %v10543_v56 = vadd.f32 %v13699_v19, %v10398_v21 }
 0xb4a   :  { %v13700_v42 = vpop.f32.mrb[54].mxu0 }
 0xb4b   :  { %v13701_v40 = vpop.f32.mrb[55].mxu0  ;;  %v10660_v58 = vadd.f32 %v13737_v61, %v10543_v56 }
 0xb4c   :  { %v13702_v7 = vadd.f32 %v13701_v40, %v13700_v42 }
 0xb4e   :  { %v10552_v57 = vadd.f32 %v13702_v7, %v10405_v50 }
 0xb50   :  { %v10671_v11 = vadd.f32 %v13740_v60, %v10552_v57 }
 0xb63   :  { %v13811_v35 = vpop.f32.mrb[58].mxu1 }
 0xb64   :  { %v13812_v25 = vpop.f32.mrb[59].mxu1 }
 0xb65   :  { %v13813_v62 = vadd.f32 %v13812_v25, %v13811_v35 }
 0xb66   :  { %v13773_v22 = vpop.f32.mrb[56].mxu0 }
 0xb67   :  { %v13814_v43 = vpop.f32.mrb[60].mxu1  ;;  %v13774_v54 = vpop.f32.mrb[57].mxu0 }
 0xb68   :  { %v13815_v0 = vpop.f32.mrb[61].mxu1  ;;  %v13775_v32 = vadd.f32 %v13774_v54, %v13773_v22 }
 0xb69   :  { %v13816_v9 = vadd.f32 %v13815_v0, %v13814_v43 }
 0xb6a   :  { %v10839_v59 = vadd.f32 %v13775_v32, %v10660_v58 }
 0xb6b   :  { %v13776_v52 = vpop.f32.mrb[58].mxu0 }
 0xb6c   :  { %v13777_v30 = vpop.f32.mrb[59].mxu0  ;;  %v10950_v5 = vadd.f32 %v13813_v62, %v10839_v59 }
 0xb6d   :  { %v13778_v45 = vadd.f32 %v13777_v30, %v13776_v52 }
 0xb6f   :  { %v10846_v36 = vadd.f32 %v13778_v45, %v10671_v11 }
 0xb71   :  { %v10957_v29 = vadd.f32 %v13816_v9, %v10846_v36 }
 0xb86   :  { %v13887_v17 = vpop.f32.mrb[62].mxu1 }
 0xb87   :  { %v13888_v27 = vpop.f32.mrb[63].mxu1 }
 0xb88   :  { %v13889_v16 = vadd.f32 %v13888_v27, %v13887_v17 }
 0xb8a   :  { %v13890_v41 = vpop.f32.mrb[64].mxu1 }
 0xb8b   :  { %v13891_v8 = vpop.f32.mrb[65].mxu1 }
 0xb8c   :  { %v13892_v33 = vadd.f32 %v13891_v8, %v13890_v41 }
 0xb8f   :  { %v13849_v20 = vpop.f32.mrb[60].mxu0 }
 0xb90   :  { %v13850_v12 = vpop.f32.mrb[61].mxu0 }
 0xb91   :  { %v13851_v55 = vadd.f32 %v13850_v12, %v13849_v20 }
 0xb93   :  { %v11069_v3 = vadd.f32 %v13851_v55, %v10950_v5  ;;  %v13852_v13 = vpop.f32.mrb[62].mxu0 }
 0xb94   :  { %v13853_v14 = vpop.f32.mrb[63].mxu0 }
 0xb95   :  { %v13854_v1 = vadd.f32 %v13853_v14, %v13852_v13  ;;  %v11316_v53 = vadd.f32 %v13889_v16, %v11069_v3 }
 0xb97   :  { %v11084_v34 = vadd.f32 %v13854_v1, %v10957_v29 }
 0xb99   :  { %v11323_v18 = vadd.f32 %v13892_v33, %v11084_v34 }
 0xba6   :  { %v13963_v63 = vpop.f32.mrb[66].mxu1 }
 0xba7   :  { %v13964_v39 = vpop.f32.mrb[67].mxu1 }
 0xba8   :  { %v13965_v48 = vadd.f32 %v13964_v39, %v13963_v63 }
 0xbaa   :  { %v13966_v44 = vpop.f32.mrb[68].mxu1 }
 0xbab   :  { %v13967_v4 = vpop.f32.mrb[69].mxu1 }
 0xbac   :  { %v13968_v49 = vadd.f32 %v13967_v4, %v13966_v44 }
 0xbaf   :  { %v13925_v46 = vpop.f32.mrb[64].mxu0 }
 0xbb0   :  { %v13926_v15 = vpop.f32.mrb[65].mxu0 }
 0xbb1   :  { %v13927_v38 = vadd.f32 %v13926_v15, %v13925_v46 }
 0xbb3   :  { %v11461_v24 = vadd.f32 %v13927_v38, %v11316_v53  ;;  %v13928_v31 = vpop.f32.mrb[66].mxu0 }
 0xbb4   :  { %v13929_v6 = vpop.f32.mrb[67].mxu0 }
 0xbb5   :  { %v13930_v26 = vadd.f32 %v13929_v6, %v13928_v31  ;;  %v11578_v21 = vadd.f32 %v13965_v48, %v11461_v24 }
 0xbb7   :  { %v11470_v2 = vadd.f32 %v13930_v26, %v11323_v18 }
 0xbb9   :  { %v11589_v50 = vadd.f32 %v13968_v49, %v11470_v2 }
 0xbc6   :  { %v14039_v47 = vpop.f32.mrb[70].mxu1 }
 0xbc7   :  { %v14040_v51 = vpop.f32.mrb[71].mxu1 }
 0xbc8   :  { %v14041_v61 = vadd.f32 %v14040_v51, %v14039_v47 }
 0xbca   :  { %v14042_v23 = vpop.f32.mrb[72].mxu1 }
 0xbcb   :  { %v14043_v10 = vpop.f32.mrb[73].mxu1 }
 0xbcc   :  { %v14044_v60 = vadd.f32 %v14043_v10, %v14042_v23 }
 0xbcf   :  { %v14001_v37 = vpop.f32.mrb[68].mxu0 }
 0xbd0   :  { %v14002_v28 = vpop.f32.mrb[69].mxu0 }
 0xbd1   :  { %v14003_v19 = vadd.f32 %v14002_v28, %v14001_v37 }
 0xbd3   :  { %v11757_v56 = vadd.f32 %v14003_v19, %v11578_v21  ;;  %v14004_v42 = vpop.f32.mrb[70].mxu0 }
 0xbd4   :  { %v14005_v40 = vpop.f32.mrb[71].mxu0 }
 0xbd5   :  { %v11868_v7 = vadd.f32 %v14041_v61, %v11757_v56  ;;  %v14006_v58 = vadd.f32 %v14005_v40, %v14004_v42 }
 0xbd7   :  { %11878 = vst [vmem:[%s22960_s9] sm:$0xff] %v11868_v7  ;;  %v11764_v57 = vadd.f32 %v14006_v58, %v11589_v50 }
 0xbd9   :  { %v11875_v11 = vadd.f32 %v14044_v60, %v11764_v57 }
 0xbdb   :  { %11879 = vst [vmem:[%s22960_s9 + $0x8] sm:$0xff] %v11875_v11 }
 0xbdc   :  { %11884 = vsyncpa [#allocation3], 1 }
 0xbdd   :  { %11885 = vsyncpa [#allocation5], 1 }

</bundles_post_ra>
